<compile_context>
chip_gen: v5e
topology: v5e:2x2
jax: 0.10.0
libtpu: 0.0.40
codegen_flags: <defaults>
</compile_context>

<pallas_src>
import functools

import jax
import jax.numpy as jnp
from jax import lax
from jax.experimental import pallas as pl
from jax.experimental.pallas import tpu as pltpu

_LANE = 128


def _round_up(x, m):
    return (x + m - 1) // m * m


# ----------------------------------------------------------------------------
# Fused residual-block kernel (one grid step = one image)
# ----------------------------------------------------------------------------
def _resblock_kernel(*refs, stride, has_sc):
    if has_sc:
        (x_ref, w1_ref, s1_ref, b1_ref, w2_ref, s2_ref, b2_ref,
         wsc_ref, ssc_ref, bsc_ref, o_ref, xpad_ref, o1pad_ref) = refs
    else:
        (x_ref, w1_ref, s1_ref, b1_ref, w2_ref, s2_ref, b2_ref,
         o_ref, xpad_ref, o1pad_ref) = refs

    _, h, w, cpi = x_ref.shape
    _, ho, wo, cpo = o_ref.shape

    # Zero the padded scratch buffers every step (halo ring must be 0; scratch
    # persists across grid iterations / cores, so no program_id gating).
    xpad_ref[...] = jnp.zeros_like(xpad_ref)
    o1pad_ref[...] = jnp.zeros_like(o1pad_ref)
    xpad_ref[1:1 + h, 1:1 + w, :] = x_ref[0]          # full-lane (128) store

    def tap(src_ref, kh, kw, s):
        # (ho*wo, C) bf16 input patch for filter tap (kh, kw), output stride s.
        c = src_ref.shape[-1]
        if s == 1:
            p = src_ref[kh:kh + ho, kw:kw + wo, :]
            p = p.reshape(ho * wo, c)
        else:
            p = src_ref[kh:kh + s * ho, kw:kw + s * wo, :]
            p = p.reshape(ho, s, s * wo, c)[:, 0]      # keep every s-th row
            p = p.reshape(ho * wo, s, c)[:, 0]         # keep every s-th column
        return p.astype(jnp.bfloat16)

    def conv3x3(src_ref, w_ref, s):
        # Shift-and-matmul: 9 lane-dense (HW,128)x(128,128) bf16 MXU dots.
        acc = jnp.zeros((ho * wo, cpo), jnp.float32)
        for kh in range(3):
            for kw in range(3):
                acc = acc + jnp.dot(tap(src_ref, kh, kw, s),
                                    w_ref[kh * 3 + kw],
                                    preferred_element_type=jnp.float32)
        return acc

    # conv1 (3x3, stride s, pad 1) + BN affine + ReLU  -> VMEM scratch halo buf
    y1 = conv3x3(xpad_ref, w1_ref, stride)
    y1 = jnp.maximum(y1 * s1_ref[...] + b1_ref[...], 0.0)
    o1pad_ref[1:1 + ho, 1:1 + wo, :] = y1.reshape(ho, wo, cpo)

    # conv2 (3x3, stride 1, pad 1) + BN affine
    y2 = conv3x3(o1pad_ref, w2_ref, 1)
    y2 = y2 * s2_ref[...] + b2_ref[...]

    # shortcut (+ residual add + ReLU)
    xin = xpad_ref[1:1 + h, 1:1 + w, :]               # channel-padded input
    if stride > 1:
        xin = xin.reshape(ho, stride, w, cpi)[:, 0]
        xin = xin.reshape(ho * wo, stride, cpi)[:, 0]
    else:
        xin = xin.reshape(ho * wo, cpi)
    if has_sc:                                        # 1x1 conv + BN affine
        sc = jnp.dot(xin.astype(jnp.bfloat16), wsc_ref[...],
                     preferred_element_type=jnp.float32)
        sc = sc * ssc_ref[...] + bsc_ref[...]
    else:                                             # identity (cpi == cpo)
        sc = xin
    o_ref[0] = jnp.maximum(y2 + sc, 0.0).reshape(ho, wo, cpo)


# ----------------------------------------------------------------------------
# Wrapper: lane-dense layout plumbing + single pallas_call
# ----------------------------------------------------------------------------
@functools.partial(jax.jit, static_argnums=(2,))
def residual_block(x_nhwc, params, stride):
    n, h, w, cin = x_nhwc.shape
    cout = params["w1"].shape[-1]
    assert h % stride == 0 and w % stride == 0
    ho, wo = h // stride, w // stride
    cpi, cpo = _round_up(cin, _LANE), _round_up(cout, _LANE)
    has_sc = "wsc" in params
    if not has_sc:
        assert stride == 1 and cin == cout

    # Wrapper-side layout plumbing: channel-pad to lane width, bf16 weights.
    xp = jnp.pad(x_nhwc, ((0, 0), (0, 0), (0, 0), (0, cpi - cin)))

    def pad_w3(wt):                                   # (3,3,ci,co)->(9,cip,cop)
        ci, co = wt.shape[2], wt.shape[3]
        cip, cop = _round_up(ci, _LANE), _round_up(co, _LANE)
        wt = jnp.pad(wt, ((0, 0), (0, 0), (0, cip - ci), (0, cop - co)))
        return wt.reshape(9, cip, cop).astype(jnp.bfloat16)

    def pad_c(v):                                     # (1,c) -> (1,c_pad) f32
        return jnp.pad(v, ((0, 0), (0, _round_up(v.shape[1], _LANE) - v.shape[1])))

    args = [xp, pad_w3(params["w1"]), pad_c(params["s1"]), pad_c(params["b1"]),
            pad_w3(params["w2"]), pad_c(params["s2"]), pad_c(params["b2"])]
    vec_spec = pl.BlockSpec((1, cpo), lambda i: (0, 0))
    in_specs = [
        pl.BlockSpec((1, h, w, cpi), lambda i: (i, 0, 0, 0)),
        pl.BlockSpec((9, cpi, cpo), lambda i: (0, 0, 0)),
        vec_spec, vec_spec,
        pl.BlockSpec((9, cpo, cpo), lambda i: (0, 0, 0)),
        vec_spec, vec_spec,
    ]
    if has_sc:
        wsc = jnp.pad(params["wsc"],
                      ((0, cpi - cin), (0, cpo - cout))).astype(jnp.bfloat16)
        args += [wsc, pad_c(params["ssc"]), pad_c(params["bsc"])]
        in_specs += [pl.BlockSpec((cpi, cpo), lambda i: (0, 0)),
                     vec_spec, vec_spec]

    out = pl.pallas_call(
        functools.partial(_resblock_kernel, stride=stride, has_sc=has_sc),
        out_shape=jax.ShapeDtypeStruct((n, ho, wo, cpo), jnp.float32),
        grid=(n,),
        in_specs=in_specs,
        out_specs=pl.BlockSpec((1, ho, wo, cpo), lambda i: (i, 0, 0, 0)),
        scratch_shapes=[
            pltpu.VMEM((h + 2, w + 2, cpi), jnp.float32),    # padded input
            pltpu.VMEM((ho + 2, wo + 2, cpo), jnp.float32),  # padded conv1 out
        ],
        compiler_params=pltpu.CompilerParams(
            dimension_semantics=("parallel",),
            vmem_limit_bytes=32 * 1024 * 1024,
        ),
    )(*args)
    return out[..., :cout]


# ----------------------------------------------------------------------------
# Deterministic parameter construction (BatchNorm folded to affine)
# ----------------------------------------------------------------------------
def _fold_bn(gamma, beta, mean, var, eps=1e-5):
    scale = gamma / jnp.sqrt(var + eps)
    shift = beta - mean * scale
    return (scale.reshape(1, -1).astype(jnp.float32),
            shift.reshape(1, -1).astype(jnp.float32))


def make_params(key, in_planes, out_planes, stride):
    ks = jax.random.split(key, 6)

    def conv_w(k, kh, kw, cin, cout):
        fan_in = kh * kw * cin
        return (jax.random.normal(k, (kh, kw, cin, cout), jnp.float32)
                * (2.0 / fan_in) ** 0.5)

    def bn(k, c):
        k1, k2, k3, k4 = jax.random.split(k, 4)
        gamma = jax.random.uniform(k1, (c,), minval=0.5, maxval=1.5)
        beta = 0.1 * jax.random.normal(k2, (c,))
        mean = 0.1 * jax.random.normal(k3, (c,))
        var = jax.random.uniform(k4, (c,), minval=0.5, maxval=1.5)
        return _fold_bn(gamma, beta, mean, var)

    p = {}
    p["w1"] = conv_w(ks[0], 3, 3, in_planes, out_planes)
    p["s1"], p["b1"] = bn(ks[1], out_planes)
    p["w2"] = conv_w(ks[2], 3, 3, out_planes, out_planes)
    p["s2"], p["b2"] = bn(ks[3], out_planes)
    if stride != 1 or in_planes != out_planes:
        p["wsc"] = conv_w(ks[4], 1, 1, in_planes, out_planes)[0, 0]  # (Cin,Cout)
        p["ssc"], p["bsc"] = bn(ks[5], out_planes)
    return p


# ----------------------------------------------------------------------------
# Pure-JAX reference (mirrors the kernel's bf16 quantization of conv inputs)
# ----------------------------------------------------------------------------
def ref_residual_block(x_nhwc, params, stride):
    q = lambda a: a.astype(jnp.bfloat16).astype(jnp.float32)

    def conv(xv, wv, s, pad):
        return lax.conv_general_dilated(
            q(xv), q(wv), (s, s), pad,
            dimension_numbers=("NHWC", "HWIO", "NHWC"),
            preferred_element_type=jnp.float32)

    y = conv(x_nhwc, params["w1"], stride, [(1, 1), (1, 1)])
    y = jnp.maximum(y * params["s1"][0] + params["b1"][0], 0.0)
    y = conv(y, params["w2"], 1, [(1, 1), (1, 1)])
    y = y * params["s2"][0] + params["b2"][0]
    if "wsc" in params:
        w11 = params["wsc"].reshape(1, 1, *params["wsc"].shape)
        sc = conv(x_nhwc, w11, stride, [(0, 0), (0, 0)])
        sc = sc * params["ssc"][0] + params["bsc"][0]
    else:
        sc = x_nhwc
    return jnp.maximum(y + sc, 0.0)


# ----------------------------------------------------------------------------
if __name__ == "__main__":
    key = jax.random.PRNGKey(0)
    N, H, W = 2, 16, 16
    configs = [
        (4, 8, 2),   # downsampling block -> 1x1-conv shortcut
        (4, 4, 1),   # identity shortcut
    ]
    for in_p, out_p, stride in configs:
        key, kx, kp = jax.random.split(key, 3)
        # PyTorch-style NCHW input, transposed to NHWC for the kernel.
        x_nchw = jax.random.normal(kx, (N, in_p, H, W), jnp.float32)
        x_nhwc = jnp.transpose(x_nchw, (0, 2, 3, 1))
        params = make_params(kp, in_p, out_p, stride)

        out = jax.block_until_ready(residual_block(x_nhwc, params, stride))
        ref = ref_residual_block(x_nhwc, params, stride)

        assert out.shape == ref.shape, (out.shape, ref.shape)
        err = float(jnp.max(jnp.abs(out - ref)))
        if err > 2e-3:  # kernel matmuls use bf16 inputs with f32 accumulation
            raise SystemExit(f"mismatch (max abs err = {err})")

    print("KERNEL_OK")
</pallas_src>

<mosaic_0001>
module attributes {stable_mosaic.version = 11 : i64} {
  func.func @_resblock_kernel(%arg0: i32, %arg1: memref<1x16x16x128xf32, #tpu.memory_space<vmem>>, %arg2: memref<9x128x128xbf16, #tpu.memory_space<vmem>>, %arg3: memref<1x128xf32, #tpu.memory_space<vmem>>, %arg4: memref<1x128xf32, #tpu.memory_space<vmem>>, %arg5: memref<9x128x128xbf16, #tpu.memory_space<vmem>>, %arg6: memref<1x128xf32, #tpu.memory_space<vmem>>, %arg7: memref<1x128xf32, #tpu.memory_space<vmem>>, %arg8: memref<128x128xbf16, #tpu.memory_space<vmem>>, %arg9: memref<1x128xf32, #tpu.memory_space<vmem>>, %arg10: memref<1x128xf32, #tpu.memory_space<vmem>>, %arg11: memref<1x8x8x128xf32, #tpu.memory_space<vmem>>, %arg12: memref<18x18x128xf32, #tpu.memory_space<vmem>>, %arg13: memref<10x10x128xf32, #tpu.memory_space<vmem>>) attributes {dimension_semantics = [#tpu.dimension_semantics<parallel>], iteration_bounds = array<i64: 2>, scalar_prefetch = 0 : i64, scratch_operands = 2 : i64, tpu.core_type = #tpu.core_type<tc>, window_params = [{transform_indices = @transform_0, window_bounds = array<i64: 1, 16, 16, 128>}, {pipeline_mode = #tpu.pipeline_mode<synchronous>, transform_indices = @transform_1, window_bounds = array<i64: 9, 128, 128>}, {pipeline_mode = #tpu.pipeline_mode<synchronous>, transform_indices = @transform_2, window_bounds = array<i64: 1, 128>}, {pipeline_mode = #tpu.pipeline_mode<synchronous>, transform_indices = @transform_3, window_bounds = array<i64: 1, 128>}, {pipeline_mode = #tpu.pipeline_mode<synchronous>, transform_indices = @transform_4, window_bounds = array<i64: 9, 128, 128>}, {pipeline_mode = #tpu.pipeline_mode<synchronous>, transform_indices = @transform_5, window_bounds = array<i64: 1, 128>}, {pipeline_mode = #tpu.pipeline_mode<synchronous>, transform_indices = @transform_6, window_bounds = array<i64: 1, 128>}, {pipeline_mode = #tpu.pipeline_mode<synchronous>, transform_indices = @transform_7, window_bounds = array<i64: 128, 128>}, {pipeline_mode = #tpu.pipeline_mode<synchronous>, transform_indices = @transform_8, window_bounds = array<i64: 1, 128>}, {pipeline_mode = #tpu.pipeline_mode<synchronous>, transform_indices = @transform_9, window_bounds = array<i64: 1, 128>}, {transform_indices = @transform_10, window_bounds = array<i64: 1, 8, 8, 128>}]} {
    %cst = arith.constant 0.000000e+00 : f32
    %0 = vector.broadcast %cst : f32 to vector<18x18x128xf32>
    %c0 = arith.constant 0 : index
    %c0_0 = arith.constant 0 : index
    %c0_1 = arith.constant 0 : index
    %1 = vector.load %arg12[%c0, %c0_0, %c0_1] : memref<18x18x128xf32, #tpu.memory_space<vmem>>, vector<18x18x128xf32>
    tpu.vector_store %arg12[%c0, %c0_0, %c0_1], %0 {strides = array<i32>} : memref<18x18x128xf32, #tpu.memory_space<vmem>>, vector<18x18x128xf32>,
    %cst_2 = arith.constant 0.000000e+00 : f32
    %2 = vector.broadcast %cst_2 : f32 to vector<10x10x128xf32>
    %c0_3 = arith.constant 0 : index
    %c0_4 = arith.constant 0 : index
    %c0_5 = arith.constant 0 : index
    %3 = vector.load %arg13[%c0_3, %c0_4, %c0_5] : memref<10x10x128xf32, #tpu.memory_space<vmem>>, vector<10x10x128xf32>
    tpu.vector_store %arg13[%c0_3, %c0_4, %c0_5], %2 {strides = array<i32>} : memref<10x10x128xf32, #tpu.memory_space<vmem>>, vector<10x10x128xf32>,
    %c0_6 = arith.constant 0 : index
    %c0_7 = arith.constant 0 : index
    %c0_8 = arith.constant 0 : index
    %c0_9 = arith.constant 0 : index
    %4 = vector.load %arg1[%c0_6, %c0_7, %c0_8, %c0_9] : memref<1x16x16x128xf32, #tpu.memory_space<vmem>>, vector<1x16x16x128xf32>
    %5 = vector.shape_cast %4 : vector<1x16x16x128xf32> to vector<16x16x128xf32>
    %c1 = arith.constant 1 : index
    %c1_10 = arith.constant 1 : index
    %c0_11 = arith.constant 0 : index
    %6 = vector.load %arg12[%c1, %c1_10, %c0_11] : memref<18x18x128xf32, #tpu.memory_space<vmem>>, vector<16x16x128xf32>
    tpu.vector_store %arg12[%c1, %c1_10, %c0_11], %5 {strides = array<i32>} : memref<18x18x128xf32, #tpu.memory_space<vmem>>, vector<16x16x128xf32>,
    %cst_12 = arith.constant 0.000000e+00 : f32
    %7 = vector.broadcast %cst_12 : f32 to vector<64x128xf32>
    %c0_13 = arith.constant 0 : index
    %c0_14 = arith.constant 0 : index
    %c0_15 = arith.constant 0 : index
    %8 = vector.load %arg12[%c0_13, %c0_14, %c0_15] : memref<18x18x128xf32, #tpu.memory_space<vmem>>, vector<16x16x128xf32>
    %9 = vector.shape_cast %8 : vector<16x16x128xf32> to vector<8x2x16x128xf32>
    %10 = vector.extract_strided_slice %9 {offsets = [0, 0, 0, 0], sizes = [8, 1, 16, 128], strides = [1, 1, 1, 1]} : vector<8x2x16x128xf32> to vector<8x1x16x128xf32>
    %11 = vector.shape_cast %10 : vector<8x1x16x128xf32> to vector<8x16x128xf32>
    %12 = vector.shape_cast %11 : vector<8x16x128xf32> to vector<64x2x128xf32>
    %13 = vector.extract_strided_slice %12 {offsets = [0, 0, 0], sizes = [64, 1, 128], strides = [1, 1, 1]} : vector<64x2x128xf32> to vector<64x1x128xf32>
    %14 = vector.shape_cast %13 : vector<64x1x128xf32> to vector<64x128xf32>
    %15 = arith.truncf %14 : vector<64x128xf32> to vector<64x128xbf16>
    %c0_16 = arith.constant 0 : index
    %c0_17 = arith.constant 0 : index
    %c0_18 = arith.constant 0 : index
    %16 = vector.load %arg2[%c0_16, %c0_17, %c0_18] : memref<9x128x128xbf16, #tpu.memory_space<vmem>>, vector<1x128x128xbf16>
    %17 = vector.shape_cast %16 : vector<1x128x128xbf16> to vector<128x128xbf16>
    %cst_19 = arith.constant dense<0.000000e+00> : vector<64x128xf32>
    %18 = tpu.matmul %15, %17, %cst_19 {dimension_numbers = #tpu.dot_dimension_numbers<[1], [0], [0], [1], [0, 0, 1, 1], [], []>} : vector<64x128xbf16>, vector<128x128xbf16>, vector<64x128xf32> -> vector<64x128xf32>
    %19 = arith.addf %7, %18 : vector<64x128xf32>
    %c0_20 = arith.constant 0 : index
    %c1_21 = arith.constant 1 : index
    %c0_22 = arith.constant 0 : index
    %20 = vector.load %arg12[%c0_20, %c1_21, %c0_22] : memref<18x18x128xf32, #tpu.memory_space<vmem>>, vector<16x16x128xf32>
    %21 = vector.shape_cast %20 : vector<16x16x128xf32> to vector<8x2x16x128xf32>
    %22 = vector.extract_strided_slice %21 {offsets = [0, 0, 0, 0], sizes = [8, 1, 16, 128], strides = [1, 1, 1, 1]} : vector<8x2x16x128xf32> to vector<8x1x16x128xf32>
    %23 = vector.shape_cast %22 : vector<8x1x16x128xf32> to vector<8x16x128xf32>
    %24 = vector.shape_cast %23 : vector<8x16x128xf32> to vector<64x2x128xf32>
    %25 = vector.extract_strided_slice %24 {offsets = [0, 0, 0], sizes = [64, 1, 128], strides = [1, 1, 1]} : vector<64x2x128xf32> to vector<64x1x128xf32>
    %26 = vector.shape_cast %25 : vector<64x1x128xf32> to vector<64x128xf32>
    %27 = arith.truncf %26 : vector<64x128xf32> to vector<64x128xbf16>
    %c1_23 = arith.constant 1 : index
    %c0_24 = arith.constant 0 : index
    %c0_25 = arith.constant 0 : index
    %28 = vector.load %arg2[%c1_23, %c0_24, %c0_25] : memref<9x128x128xbf16, #tpu.memory_space<vmem>>, vector<1x128x128xbf16>
    %29 = vector.shape_cast %28 : vector<1x128x128xbf16> to vector<128x128xbf16>
    %cst_26 = arith.constant dense<0.000000e+00> : vector<64x128xf32>
    %30 = tpu.matmul %27, %29, %cst_26 {dimension_numbers = #tpu.dot_dimension_numbers<[1], [0], [0], [1], [0, 0, 1, 1], [], []>} : vector<64x128xbf16>, vector<128x128xbf16>, vector<64x128xf32> -> vector<64x128xf32>
    %31 = arith.addf %19, %30 : vector<64x128xf32>
    %c0_27 = arith.constant 0 : index
    %c2 = arith.constant 2 : index
    %c0_28 = arith.constant 0 : index
    %32 = vector.load %arg12[%c0_27, %c2, %c0_28] : memref<18x18x128xf32, #tpu.memory_space<vmem>>, vector<16x16x128xf32>
    %33 = vector.shape_cast %32 : vector<16x16x128xf32> to vector<8x2x16x128xf32>
    %34 = vector.extract_strided_slice %33 {offsets = [0, 0, 0, 0], sizes = [8, 1, 16, 128], strides = [1, 1, 1, 1]} : vector<8x2x16x128xf32> to vector<8x1x16x128xf32>
    %35 = vector.shape_cast %34 : vector<8x1x16x128xf32> to vector<8x16x128xf32>
    %36 = vector.shape_cast %35 : vector<8x16x128xf32> to vector<64x2x128xf32>
    %37 = vector.extract_strided_slice %36 {offsets = [0, 0, 0], sizes = [64, 1, 128], strides = [1, 1, 1]} : vector<64x2x128xf32> to vector<64x1x128xf32>
    %38 = vector.shape_cast %37 : vector<64x1x128xf32> to vector<64x128xf32>
    %39 = arith.truncf %38 : vector<64x128xf32> to vector<64x128xbf16>
    %c2_29 = arith.constant 2 : index
    %c0_30 = arith.constant 0 : index
    %c0_31 = arith.constant 0 : index
    %40 = vector.load %arg2[%c2_29, %c0_30, %c0_31] : memref<9x128x128xbf16, #tpu.memory_space<vmem>>, vector<1x128x128xbf16>
    %41 = vector.shape_cast %40 : vector<1x128x128xbf16> to vector<128x128xbf16>
    %cst_32 = arith.constant dense<0.000000e+00> : vector<64x128xf32>
    %42 = tpu.matmul %39, %41, %cst_32 {dimension_numbers = #tpu.dot_dimension_numbers<[1], [0], [0], [1], [0, 0, 1, 1], [], []>} : vector<64x128xbf16>, vector<128x128xbf16>, vector<64x128xf32> -> vector<64x128xf32>
    %43 = arith.addf %31, %42 : vector<64x128xf32>
    %c1_33 = arith.constant 1 : index
    %c0_34 = arith.constant 0 : index
    %c0_35 = arith.constant 0 : index
    %44 = vector.load %arg12[%c1_33, %c0_34, %c0_35] : memref<18x18x128xf32, #tpu.memory_space<vmem>>, vector<16x16x128xf32>
    %45 = vector.shape_cast %44 : vector<16x16x128xf32> to vector<8x2x16x128xf32>
    %46 = vector.extract_strided_slice %45 {offsets = [0, 0, 0, 0], sizes = [8, 1, 16, 128], strides = [1, 1, 1, 1]} : vector<8x2x16x128xf32> to vector<8x1x16x128xf32>
    %47 = vector.shape_cast %46 : vector<8x1x16x128xf32> to vector<8x16x128xf32>
    %48 = vector.shape_cast %47 : vector<8x16x128xf32> to vector<64x2x128xf32>
    %49 = vector.extract_strided_slice %48 {offsets = [0, 0, 0], sizes = [64, 1, 128], strides = [1, 1, 1]} : vector<64x2x128xf32> to vector<64x1x128xf32>
    %50 = vector.shape_cast %49 : vector<64x1x128xf32> to vector<64x128xf32>
    %51 = arith.truncf %50 : vector<64x128xf32> to vector<64x128xbf16>
    %c3 = arith.constant 3 : index
    %c0_36 = arith.constant 0 : index
    %c0_37 = arith.constant 0 : index
    %52 = vector.load %arg2[%c3, %c0_36, %c0_37] : memref<9x128x128xbf16, #tpu.memory_space<vmem>>, vector<1x128x128xbf16>
    %53 = vector.shape_cast %52 : vector<1x128x128xbf16> to vector<128x128xbf16>
    %cst_38 = arith.constant dense<0.000000e+00> : vector<64x128xf32>
    %54 = tpu.matmul %51, %53, %cst_38 {dimension_numbers = #tpu.dot_dimension_numbers<[1], [0], [0], [1], [0, 0, 1, 1], [], []>} : vector<64x128xbf16>, vector<128x128xbf16>, vector<64x128xf32> -> vector<64x128xf32>
    %55 = arith.addf %43, %54 : vector<64x128xf32>
    %c1_39 = arith.constant 1 : index
    %c1_40 = arith.constant 1 : index
    %c0_41 = arith.constant 0 : index
    %56 = vector.load %arg12[%c1_39, %c1_40, %c0_41] : memref<18x18x128xf32, #tpu.memory_space<vmem>>, vector<16x16x128xf32>
    %57 = vector.shape_cast %56 : vector<16x16x128xf32> to vector<8x2x16x128xf32>
    %58 = vector.extract_strided_slice %57 {offsets = [0, 0, 0, 0], sizes = [8, 1, 16, 128], strides = [1, 1, 1, 1]} : vector<8x2x16x128xf32> to vector<8x1x16x128xf32>
    %59 = vector.shape_cast %58 : vector<8x1x16x128xf32> to vector<8x16x128xf32>
    %60 = vector.shape_cast %59 : vector<8x16x128xf32> to vector<64x2x128xf32>
    %61 = vector.extract_strided_slice %60 {offsets = [0, 0, 0], sizes = [64, 1, 128], strides = [1, 1, 1]} : vector<64x2x128xf32> to vector<64x1x128xf32>
    %62 = vector.shape_cast %61 : vector<64x1x128xf32> to vector<64x128xf32>
    %63 = arith.truncf %62 : vector<64x128xf32> to vector<64x128xbf16>
    %c4 = arith.constant 4 : index
    %c0_42 = arith.constant 0 : index
    %c0_43 = arith.constant 0 : index
    %64 = vector.load %arg2[%c4, %c0_42, %c0_43] : memref<9x128x128xbf16, #tpu.memory_space<vmem>>, vector<1x128x128xbf16>
    %65 = vector.shape_cast %64 : vector<1x128x128xbf16> to vector<128x128xbf16>
    %cst_44 = arith.constant dense<0.000000e+00> : vector<64x128xf32>
    %66 = tpu.matmul %63, %65, %cst_44 {dimension_numbers = #tpu.dot_dimension_numbers<[1], [0], [0], [1], [0, 0, 1, 1], [], []>} : vector<64x128xbf16>, vector<128x128xbf16>, vector<64x128xf32> -> vector<64x128xf32>
    %67 = arith.addf %55, %66 : vector<64x128xf32>
    %c1_45 = arith.constant 1 : index
    %c2_46 = arith.constant 2 : index
    %c0_47 = arith.constant 0 : index
    %68 = vector.load %arg12[%c1_45, %c2_46, %c0_47] : memref<18x18x128xf32, #tpu.memory_space<vmem>>, vector<16x16x128xf32>
    %69 = vector.shape_cast %68 : vector<16x16x128xf32> to vector<8x2x16x128xf32>
    %70 = vector.extract_strided_slice %69 {offsets = [0, 0, 0, 0], sizes = [8, 1, 16, 128], strides = [1, 1, 1, 1]} : vector<8x2x16x128xf32> to vector<8x1x16x128xf32>
    %71 = vector.shape_cast %70 : vector<8x1x16x128xf32> to vector<8x16x128xf32>
    %72 = vector.shape_cast %71 : vector<8x16x128xf32> to vector<64x2x128xf32>
    %73 = vector.extract_strided_slice %72 {offsets = [0, 0, 0], sizes = [64, 1, 128], strides = [1, 1, 1]} : vector<64x2x128xf32> to vector<64x1x128xf32>
    %74 = vector.shape_cast %73 : vector<64x1x128xf32> to vector<64x128xf32>
    %75 = arith.truncf %74 : vector<64x128xf32> to vector<64x128xbf16>
    %c5 = arith.constant 5 : index
    %c0_48 = arith.constant 0 : index
    %c0_49 = arith.constant 0 : index
    %76 = vector.load %arg2[%c5, %c0_48, %c0_49] : memref<9x128x128xbf16, #tpu.memory_space<vmem>>, vector<1x128x128xbf16>
    %77 = vector.shape_cast %76 : vector<1x128x128xbf16> to vector<128x128xbf16>
    %cst_50 = arith.constant dense<0.000000e+00> : vector<64x128xf32>
    %78 = tpu.matmul %75, %77, %cst_50 {dimension_numbers = #tpu.dot_dimension_numbers<[1], [0], [0], [1], [0, 0, 1, 1], [], []>} : vector<64x128xbf16>, vector<128x128xbf16>, vector<64x128xf32> -> vector<64x128xf32>
    %79 = arith.addf %67, %78 : vector<64x128xf32>
    %c2_51 = arith.constant 2 : index
    %c0_52 = arith.constant 0 : index
    %c0_53 = arith.constant 0 : index
    %80 = vector.load %arg12[%c2_51, %c0_52, %c0_53] : memref<18x18x128xf32, #tpu.memory_space<vmem>>, vector<16x16x128xf32>
    %81 = vector.shape_cast %80 : vector<16x16x128xf32> to vector<8x2x16x128xf32>
    %82 = vector.extract_strided_slice %81 {offsets = [0, 0, 0, 0], sizes = [8, 1, 16, 128], strides = [1, 1, 1, 1]} : vector<8x2x16x128xf32> to vector<8x1x16x128xf32>
    %83 = vector.shape_cast %82 : vector<8x1x16x128xf32> to vector<8x16x128xf32>
    %84 = vector.shape_cast %83 : vector<8x16x128xf32> to vector<64x2x128xf32>
    %85 = vector.extract_strided_slice %84 {offsets = [0, 0, 0], sizes = [64, 1, 128], strides = [1, 1, 1]} : vector<64x2x128xf32> to vector<64x1x128xf32>
    %86 = vector.shape_cast %85 : vector<64x1x128xf32> to vector<64x128xf32>
    %87 = arith.truncf %86 : vector<64x128xf32> to vector<64x128xbf16>
    %c6 = arith.constant 6 : index
    %c0_54 = arith.constant 0 : index
    %c0_55 = arith.constant 0 : index
    %88 = vector.load %arg2[%c6, %c0_54, %c0_55] : memref<9x128x128xbf16, #tpu.memory_space<vmem>>, vector<1x128x128xbf16>
    %89 = vector.shape_cast %88 : vector<1x128x128xbf16> to vector<128x128xbf16>
    %cst_56 = arith.constant dense<0.000000e+00> : vector<64x128xf32>
    %90 = tpu.matmul %87, %89, %cst_56 {dimension_numbers = #tpu.dot_dimension_numbers<[1], [0], [0], [1], [0, 0, 1, 1], [], []>} : vector<64x128xbf16>, vector<128x128xbf16>, vector<64x128xf32> -> vector<64x128xf32>
    %91 = arith.addf %79, %90 : vector<64x128xf32>
    %c2_57 = arith.constant 2 : index
    %c1_58 = arith.constant 1 : index
    %c0_59 = arith.constant 0 : index
    %92 = vector.load %arg12[%c2_57, %c1_58, %c0_59] : memref<18x18x128xf32, #tpu.memory_space<vmem>>, vector<16x16x128xf32>
    %93 = vector.shape_cast %92 : vector<16x16x128xf32> to vector<8x2x16x128xf32>
    %94 = vector.extract_strided_slice %93 {offsets = [0, 0, 0, 0], sizes = [8, 1, 16, 128], strides = [1, 1, 1, 1]} : vector<8x2x16x128xf32> to vector<8x1x16x128xf32>
    %95 = vector.shape_cast %94 : vector<8x1x16x128xf32> to vector<8x16x128xf32>
    %96 = vector.shape_cast %95 : vector<8x16x128xf32> to vector<64x2x128xf32>
    %97 = vector.extract_strided_slice %96 {offsets = [0, 0, 0], sizes = [64, 1, 128], strides = [1, 1, 1]} : vector<64x2x128xf32> to vector<64x1x128xf32>
    %98 = vector.shape_cast %97 : vector<64x1x128xf32> to vector<64x128xf32>
    %99 = arith.truncf %98 : vector<64x128xf32> to vector<64x128xbf16>
    %c7 = arith.constant 7 : index
    %c0_60 = arith.constant 0 : index
    %c0_61 = arith.constant 0 : index
    %100 = vector.load %arg2[%c7, %c0_60, %c0_61] : memref<9x128x128xbf16, #tpu.memory_space<vmem>>, vector<1x128x128xbf16>
    %101 = vector.shape_cast %100 : vector<1x128x128xbf16> to vector<128x128xbf16>
    %cst_62 = arith.constant dense<0.000000e+00> : vector<64x128xf32>
    %102 = tpu.matmul %99, %101, %cst_62 {dimension_numbers = #tpu.dot_dimension_numbers<[1], [0], [0], [1], [0, 0, 1, 1], [], []>} : vector<64x128xbf16>, vector<128x128xbf16>, vector<64x128xf32> -> vector<64x128xf32>
    %103 = arith.addf %91, %102 : vector<64x128xf32>
    %c2_63 = arith.constant 2 : index
    %c2_64 = arith.constant 2 : index
    %c0_65 = arith.constant 0 : index
    %104 = vector.load %arg12[%c2_63, %c2_64, %c0_65] : memref<18x18x128xf32, #tpu.memory_space<vmem>>, vector<16x16x128xf32>
    %105 = vector.shape_cast %104 : vector<16x16x128xf32> to vector<8x2x16x128xf32>
    %106 = vector.extract_strided_slice %105 {offsets = [0, 0, 0, 0], sizes = [8, 1, 16, 128], strides = [1, 1, 1, 1]} : vector<8x2x16x128xf32> to vector<8x1x16x128xf32>
    %107 = vector.shape_cast %106 : vector<8x1x16x128xf32> to vector<8x16x128xf32>
    %108 = vector.shape_cast %107 : vector<8x16x128xf32> to vector<64x2x128xf32>
    %109 = vector.extract_strided_slice %108 {offsets = [0, 0, 0], sizes = [64, 1, 128], strides = [1, 1, 1]} : vector<64x2x128xf32> to vector<64x1x128xf32>
    %110 = vector.shape_cast %109 : vector<64x1x128xf32> to vector<64x128xf32>
    %111 = arith.truncf %110 : vector<64x128xf32> to vector<64x128xbf16>
    %c8 = arith.constant 8 : index
    %c0_66 = arith.constant 0 : index
    %c0_67 = arith.constant 0 : index
    %112 = vector.load %arg2[%c8, %c0_66, %c0_67] : memref<9x128x128xbf16, #tpu.memory_space<vmem>>, vector<1x128x128xbf16>
    %113 = vector.shape_cast %112 : vector<1x128x128xbf16> to vector<128x128xbf16>
    %cst_68 = arith.constant dense<0.000000e+00> : vector<64x128xf32>
    %114 = tpu.matmul %111, %113, %cst_68 {dimension_numbers = #tpu.dot_dimension_numbers<[1], [0], [0], [1], [0, 0, 1, 1], [], []>} : vector<64x128xbf16>, vector<128x128xbf16>, vector<64x128xf32> -> vector<64x128xf32>
    %115 = arith.addf %103, %114 : vector<64x128xf32>
    %c0_69 = arith.constant 0 : index
    %c0_70 = arith.constant 0 : index
    %116 = vector.load %arg3[%c0_69, %c0_70] : memref<1x128xf32, #tpu.memory_space<vmem>>, vector<1x128xf32>
    %117 = vector.broadcast %116 : vector<1x128xf32> to vector<64x128xf32>
    %118 = arith.mulf %115, %117 : vector<64x128xf32>
    %c0_71 = arith.constant 0 : index
    %c0_72 = arith.constant 0 : index
    %119 = vector.load %arg4[%c0_71, %c0_72] : memref<1x128xf32, #tpu.memory_space<vmem>>, vector<1x128xf32>
    %120 = vector.broadcast %119 : vector<1x128xf32> to vector<64x128xf32>
    %121 = arith.addf %118, %120 : vector<64x128xf32>
    %cst_73 = arith.constant 0.000000e+00 : f32
    %122 = vector.broadcast %cst_73 : f32 to vector<64x128xf32>
    %123 = arith.maximumf %121, %122 : vector<64x128xf32>
    %124 = vector.shape_cast %123 : vector<64x128xf32> to vector<8x8x128xf32>
    %c1_74 = arith.constant 1 : index
    %c1_75 = arith.constant 1 : index
    %c0_76 = arith.constant 0 : index
    %125 = vector.load %arg13[%c1_74, %c1_75, %c0_76] : memref<10x10x128xf32, #tpu.memory_space<vmem>>, vector<8x8x128xf32>
    tpu.vector_store %arg13[%c1_74, %c1_75, %c0_76], %124 {strides = array<i32>} : memref<10x10x128xf32, #tpu.memory_space<vmem>>, vector<8x8x128xf32>,
    %cst_77 = arith.constant 0.000000e+00 : f32
    %126 = vector.broadcast %cst_77 : f32 to vector<64x128xf32>
    %c0_78 = arith.constant 0 : index
    %c0_79 = arith.constant 0 : index
    %c0_80 = arith.constant 0 : index
    %127 = vector.load %arg13[%c0_78, %c0_79, %c0_80] : memref<10x10x128xf32, #tpu.memory_space<vmem>>, vector<8x8x128xf32>
    %128 = vector.shape_cast %127 : vector<8x8x128xf32> to vector<64x128xf32>
    %129 = arith.truncf %128 : vector<64x128xf32> to vector<64x128xbf16>
    %c0_81 = arith.constant 0 : index
    %c0_82 = arith.constant 0 : index
    %c0_83 = arith.constant 0 : index
    %130 = vector.load %arg5[%c0_81, %c0_82, %c0_83] : memref<9x128x128xbf16, #tpu.memory_space<vmem>>, vector<1x128x128xbf16>
    %131 = vector.shape_cast %130 : vector<1x128x128xbf16> to vector<128x128xbf16>
    %cst_84 = arith.constant dense<0.000000e+00> : vector<64x128xf32>
    %132 = tpu.matmul %129, %131, %cst_84 {dimension_numbers = #tpu.dot_dimension_numbers<[1], [0], [0], [1], [0, 0, 1, 1], [], []>} : vector<64x128xbf16>, vector<128x128xbf16>, vector<64x128xf32> -> vector<64x128xf32>
    %133 = arith.addf %126, %132 : vector<64x128xf32>
    %c0_85 = arith.constant 0 : index
    %c1_86 = arith.constant 1 : index
    %c0_87 = arith.constant 0 : index
    %134 = vector.load %arg13[%c0_85, %c1_86, %c0_87] : memref<10x10x128xf32, #tpu.memory_space<vmem>>, vector<8x8x128xf32>
    %135 = vector.shape_cast %134 : vector<8x8x128xf32> to vector<64x128xf32>
    %136 = arith.truncf %135 : vector<64x128xf32> to vector<64x128xbf16>
    %c1_88 = arith.constant 1 : index
    %c0_89 = arith.constant 0 : index
    %c0_90 = arith.constant 0 : index
    %137 = vector.load %arg5[%c1_88, %c0_89, %c0_90] : memref<9x128x128xbf16, #tpu.memory_space<vmem>>, vector<1x128x128xbf16>
    %138 = vector.shape_cast %137 : vector<1x128x128xbf16> to vector<128x128xbf16>
    %cst_91 = arith.constant dense<0.000000e+00> : vector<64x128xf32>
    %139 = tpu.matmul %136, %138, %cst_91 {dimension_numbers = #tpu.dot_dimension_numbers<[1], [0], [0], [1], [0, 0, 1, 1], [], []>} : vector<64x128xbf16>, vector<128x128xbf16>, vector<64x128xf32> -> vector<64x128xf32>
    %140 = arith.addf %133, %139 : vector<64x128xf32>
    %c0_92 = arith.constant 0 : index
    %c2_93 = arith.constant 2 : index
    %c0_94 = arith.constant 0 : index
    %141 = vector.load %arg13[%c0_92, %c2_93, %c0_94] : memref<10x10x128xf32, #tpu.memory_space<vmem>>, vector<8x8x128xf32>
    %142 = vector.shape_cast %141 : vector<8x8x128xf32> to vector<64x128xf32>
    %143 = arith.truncf %142 : vector<64x128xf32> to vector<64x128xbf16>
    %c2_95 = arith.constant 2 : index
    %c0_96 = arith.constant 0 : index
    %c0_97 = arith.constant 0 : index
    %144 = vector.load %arg5[%c2_95, %c0_96, %c0_97] : memref<9x128x128xbf16, #tpu.memory_space<vmem>>, vector<1x128x128xbf16>
    %145 = vector.shape_cast %144 : vector<1x128x128xbf16> to vector<128x128xbf16>
    %cst_98 = arith.constant dense<0.000000e+00> : vector<64x128xf32>
    %146 = tpu.matmul %143, %145, %cst_98 {dimension_numbers = #tpu.dot_dimension_numbers<[1], [0], [0], [1], [0, 0, 1, 1], [], []>} : vector<64x128xbf16>, vector<128x128xbf16>, vector<64x128xf32> -> vector<64x128xf32>
    %147 = arith.addf %140, %146 : vector<64x128xf32>
    %c1_99 = arith.constant 1 : index
    %c0_100 = arith.constant 0 : index
    %c0_101 = arith.constant 0 : index
    %148 = vector.load %arg13[%c1_99, %c0_100, %c0_101] : memref<10x10x128xf32, #tpu.memory_space<vmem>>, vector<8x8x128xf32>
    %149 = vector.shape_cast %148 : vector<8x8x128xf32> to vector<64x128xf32>
    %150 = arith.truncf %149 : vector<64x128xf32> to vector<64x128xbf16>
    %c3_102 = arith.constant 3 : index
    %c0_103 = arith.constant 0 : index
    %c0_104 = arith.constant 0 : index
    %151 = vector.load %arg5[%c3_102, %c0_103, %c0_104] : memref<9x128x128xbf16, #tpu.memory_space<vmem>>, vector<1x128x128xbf16>
    %152 = vector.shape_cast %151 : vector<1x128x128xbf16> to vector<128x128xbf16>
    %cst_105 = arith.constant dense<0.000000e+00> : vector<64x128xf32>
    %153 = tpu.matmul %150, %152, %cst_105 {dimension_numbers = #tpu.dot_dimension_numbers<[1], [0], [0], [1], [0, 0, 1, 1], [], []>} : vector<64x128xbf16>, vector<128x128xbf16>, vector<64x128xf32> -> vector<64x128xf32>
    %154 = arith.addf %147, %153 : vector<64x128xf32>
    %c1_106 = arith.constant 1 : index
    %c1_107 = arith.constant 1 : index
    %c0_108 = arith.constant 0 : index
    %155 = vector.load %arg13[%c1_106, %c1_107, %c0_108] : memref<10x10x128xf32, #tpu.memory_space<vmem>>, vector<8x8x128xf32>
    %156 = vector.shape_cast %155 : vector<8x8x128xf32> to vector<64x128xf32>
    %157 = arith.truncf %156 : vector<64x128xf32> to vector<64x128xbf16>
    %c4_109 = arith.constant 4 : index
    %c0_110 = arith.constant 0 : index
    %c0_111 = arith.constant 0 : index
    %158 = vector.load %arg5[%c4_109, %c0_110, %c0_111] : memref<9x128x128xbf16, #tpu.memory_space<vmem>>, vector<1x128x128xbf16>
    %159 = vector.shape_cast %158 : vector<1x128x128xbf16> to vector<128x128xbf16>
    %cst_112 = arith.constant dense<0.000000e+00> : vector<64x128xf32>
    %160 = tpu.matmul %157, %159, %cst_112 {dimension_numbers = #tpu.dot_dimension_numbers<[1], [0], [0], [1], [0, 0, 1, 1], [], []>} : vector<64x128xbf16>, vector<128x128xbf16>, vector<64x128xf32> -> vector<64x128xf32>
    %161 = arith.addf %154, %160 : vector<64x128xf32>
    %c1_113 = arith.constant 1 : index
    %c2_114 = arith.constant 2 : index
    %c0_115 = arith.constant 0 : index
    %162 = vector.load %arg13[%c1_113, %c2_114, %c0_115] : memref<10x10x128xf32, #tpu.memory_space<vmem>>, vector<8x8x128xf32>
    %163 = vector.shape_cast %162 : vector<8x8x128xf32> to vector<64x128xf32>
    %164 = arith.truncf %163 : vector<64x128xf32> to vector<64x128xbf16>
    %c5_116 = arith.constant 5 : index
    %c0_117 = arith.constant 0 : index
    %c0_118 = arith.constant 0 : index
    %165 = vector.load %arg5[%c5_116, %c0_117, %c0_118] : memref<9x128x128xbf16, #tpu.memory_space<vmem>>, vector<1x128x128xbf16>
    %166 = vector.shape_cast %165 : vector<1x128x128xbf16> to vector<128x128xbf16>
    %cst_119 = arith.constant dense<0.000000e+00> : vector<64x128xf32>
    %167 = tpu.matmul %164, %166, %cst_119 {dimension_numbers = #tpu.dot_dimension_numbers<[1], [0], [0], [1], [0, 0, 1, 1], [], []>} : vector<64x128xbf16>, vector<128x128xbf16>, vector<64x128xf32> -> vector<64x128xf32>
    %168 = arith.addf %161, %167 : vector<64x128xf32>
    %c2_120 = arith.constant 2 : index
    %c0_121 = arith.constant 0 : index
    %c0_122 = arith.constant 0 : index
    %169 = vector.load %arg13[%c2_120, %c0_121, %c0_122] : memref<10x10x128xf32, #tpu.memory_space<vmem>>, vector<8x8x128xf32>
    %170 = vector.shape_cast %169 : vector<8x8x128xf32> to vector<64x128xf32>
    %171 = arith.truncf %170 : vector<64x128xf32> to vector<64x128xbf16>
    %c6_123 = arith.constant 6 : index
    %c0_124 = arith.constant 0 : index
    %c0_125 = arith.constant 0 : index
    %172 = vector.load %arg5[%c6_123, %c0_124, %c0_125] : memref<9x128x128xbf16, #tpu.memory_space<vmem>>, vector<1x128x128xbf16>
    %173 = vector.shape_cast %172 : vector<1x128x128xbf16> to vector<128x128xbf16>
    %cst_126 = arith.constant dense<0.000000e+00> : vector<64x128xf32>
    %174 = tpu.matmul %171, %173, %cst_126 {dimension_numbers = #tpu.dot_dimension_numbers<[1], [0], [0], [1], [0, 0, 1, 1], [], []>} : vector<64x128xbf16>, vector<128x128xbf16>, vector<64x128xf32> -> vector<64x128xf32>
    %175 = arith.addf %168, %174 : vector<64x128xf32>
    %c2_127 = arith.constant 2 : index
    %c1_128 = arith.constant 1 : index
    %c0_129 = arith.constant 0 : index
    %176 = vector.load %arg13[%c2_127, %c1_128, %c0_129] : memref<10x10x128xf32, #tpu.memory_space<vmem>>, vector<8x8x128xf32>
    %177 = vector.shape_cast %176 : vector<8x8x128xf32> to vector<64x128xf32>
    %178 = arith.truncf %177 : vector<64x128xf32> to vector<64x128xbf16>
    %c7_130 = arith.constant 7 : index
    %c0_131 = arith.constant 0 : index
    %c0_132 = arith.constant 0 : index
    %179 = vector.load %arg5[%c7_130, %c0_131, %c0_132] : memref<9x128x128xbf16, #tpu.memory_space<vmem>>, vector<1x128x128xbf16>
    %180 = vector.shape_cast %179 : vector<1x128x128xbf16> to vector<128x128xbf16>
    %cst_133 = arith.constant dense<0.000000e+00> : vector<64x128xf32>
    %181 = tpu.matmul %178, %180, %cst_133 {dimension_numbers = #tpu.dot_dimension_numbers<[1], [0], [0], [1], [0, 0, 1, 1], [], []>} : vector<64x128xbf16>, vector<128x128xbf16>, vector<64x128xf32> -> vector<64x128xf32>
    %182 = arith.addf %175, %181 : vector<64x128xf32>
    %c2_134 = arith.constant 2 : index
    %c2_135 = arith.constant 2 : index
    %c0_136 = arith.constant 0 : index
    %183 = vector.load %arg13[%c2_134, %c2_135, %c0_136] : memref<10x10x128xf32, #tpu.memory_space<vmem>>, vector<8x8x128xf32>
    %184 = vector.shape_cast %183 : vector<8x8x128xf32> to vector<64x128xf32>
    %185 = arith.truncf %184 : vector<64x128xf32> to vector<64x128xbf16>
    %c8_137 = arith.constant 8 : index
    %c0_138 = arith.constant 0 : index
    %c0_139 = arith.constant 0 : index
    %186 = vector.load %arg5[%c8_137, %c0_138, %c0_139] : memref<9x128x128xbf16, #tpu.memory_space<vmem>>, vector<1x128x128xbf16>
    %187 = vector.shape_cast %186 : vector<1x128x128xbf16> to vector<128x128xbf16>
    %cst_140 = arith.constant dense<0.000000e+00> : vector<64x128xf32>
    %188 = tpu.matmul %185, %187, %cst_140 {dimension_numbers = #tpu.dot_dimension_numbers<[1], [0], [0], [1], [0, 0, 1, 1], [], []>} : vector<64x128xbf16>, vector<128x128xbf16>, vector<64x128xf32> -> vector<64x128xf32>
    %189 = arith.addf %182, %188 : vector<64x128xf32>
    %c0_141 = arith.constant 0 : index
    %c0_142 = arith.constant 0 : index
    %190 = vector.load %arg6[%c0_141, %c0_142] : memref<1x128xf32, #tpu.memory_space<vmem>>, vector<1x128xf32>
    %191 = vector.broadcast %190 : vector<1x128xf32> to vector<64x128xf32>
    %192 = arith.mulf %189, %191 : vector<64x128xf32>
    %c0_143 = arith.constant 0 : index
    %c0_144 = arith.constant 0 : index
    %193 = vector.load %arg7[%c0_143, %c0_144] : memref<1x128xf32, #tpu.memory_space<vmem>>, vector<1x128xf32>
    %194 = vector.broadcast %193 : vector<1x128xf32> to vector<64x128xf32>
    %195 = arith.addf %192, %194 : vector<64x128xf32>
    %c1_145 = arith.constant 1 : index
    %c1_146 = arith.constant 1 : index
    %c0_147 = arith.constant 0 : index
    %196 = vector.load %arg12[%c1_145, %c1_146, %c0_147] : memref<18x18x128xf32, #tpu.memory_space<vmem>>, vector<16x16x128xf32>
    %197 = vector.shape_cast %196 : vector<16x16x128xf32> to vector<8x2x16x128xf32>
    %198 = vector.extract_strided_slice %197 {offsets = [0, 0, 0, 0], sizes = [8, 1, 16, 128], strides = [1, 1, 1, 1]} : vector<8x2x16x128xf32> to vector<8x1x16x128xf32>
    %199 = vector.shape_cast %198 : vector<8x1x16x128xf32> to vector<8x16x128xf32>
    %200 = vector.shape_cast %199 : vector<8x16x128xf32> to vector<64x2x128xf32>
    %201 = vector.extract_strided_slice %200 {offsets = [0, 0, 0], sizes = [64, 1, 128], strides = [1, 1, 1]} : vector<64x2x128xf32> to vector<64x1x128xf32>
    %202 = vector.shape_cast %201 : vector<64x1x128xf32> to vector<64x128xf32>
    %203 = arith.truncf %202 : vector<64x128xf32> to vector<64x128xbf16>
    %c0_148 = arith.constant 0 : index
    %c0_149 = arith.constant 0 : index
    %204 = vector.load %arg8[%c0_148, %c0_149] : memref<128x128xbf16, #tpu.memory_space<vmem>>, vector<128x128xbf16>
    %cst_150 = arith.constant dense<0.000000e+00> : vector<64x128xf32>
    %205 = tpu.matmul %203, %204, %cst_150 {dimension_numbers = #tpu.dot_dimension_numbers<[1], [0], [0], [1], [0, 0, 1, 1], [], []>} : vector<64x128xbf16>, vector<128x128xbf16>, vector<64x128xf32> -> vector<64x128xf32>
    %c0_151 = arith.constant 0 : index
    %c0_152 = arith.constant 0 : index
    %206 = vector.load %arg9[%c0_151, %c0_152] : memref<1x128xf32, #tpu.memory_space<vmem>>, vector<1x128xf32>
    %207 = vector.broadcast %206 : vector<1x128xf32> to vector<64x128xf32>
    %208 = arith.mulf %205, %207 : vector<64x128xf32>
    %c0_153 = arith.constant 0 : index
    %c0_154 = arith.constant 0 : index
    %209 = vector.load %arg10[%c0_153, %c0_154] : memref<1x128xf32, #tpu.memory_space<vmem>>, vector<1x128xf32>
    %210 = vector.broadcast %209 : vector<1x128xf32> to vector<64x128xf32>
    %211 = arith.addf %208, %210 : vector<64x128xf32>
    %212 = arith.addf %195, %211 : vector<64x128xf32>
    %cst_155 = arith.constant 0.000000e+00 : f32
    %213 = vector.broadcast %cst_155 : f32 to vector<64x128xf32>
    %214 = arith.maximumf %212, %213 : vector<64x128xf32>
    %215 = vector.shape_cast %214 : vector<64x128xf32> to vector<8x8x128xf32>
    %c0_156 = arith.constant 0 : index
    %c0_157 = arith.constant 0 : index
    %c0_158 = arith.constant 0 : index
    %c0_159 = arith.constant 0 : index
    %216 = vector.load %arg11[%c0_156, %c0_157, %c0_158, %c0_159] : memref<1x8x8x128xf32, #tpu.memory_space<vmem>>, vector<1x8x8x128xf32>
    %217 = vector.shape_cast %216 : vector<1x8x8x128xf32> to vector<8x8x128xf32>
    %218 = vector.shape_cast %215 : vector<8x8x128xf32> to vector<1x8x8x128xf32>
    tpu.vector_store %arg11[%c0_156, %c0_157, %c0_158, %c0_159], %218 {strides = array<i32>} : memref<1x8x8x128xf32, #tpu.memory_space<vmem>>, vector<1x8x8x128xf32>,
    return
  }
  func.func @transform_0(%arg0: i32) -> (i32, i32, i32, i32) {
    %c0_i32 = arith.constant 0 : i32
    %c0_i32_0 = arith.constant 0 : i32
    %c0_i32_1 = arith.constant 0 : i32
    %c0_i32_2 = arith.constant 0 : i32
    return %arg0, %c0_i32, %c0_i32_0, %c0_i32_1 : i32, i32, i32, i32
  }
  func.func @transform_1(%arg0: i32) -> (i32, i32, i32) {
    %c0_i32 = arith.constant 0 : i32
    %c0_i32_0 = arith.constant 0 : i32
    %c0_i32_1 = arith.constant 0 : i32
    %c0_i32_2 = arith.constant 0 : i32
    return %c0_i32, %c0_i32_0, %c0_i32_1 : i32, i32, i32
  }
  func.func @transform_2(%arg0: i32) -> (i32, i32) {
    %c0_i32 = arith.constant 0 : i32
    %c0_i32_0 = arith.constant 0 : i32
    %c0_i32_1 = arith.constant 0 : i32
    return %c0_i32, %c0_i32_0 : i32, i32
  }
  func.func @transform_3(%arg0: i32) -> (i32, i32) {
    %c0_i32 = arith.constant 0 : i32
    %c0_i32_0 = arith.constant 0 : i32
    %c0_i32_1 = arith.constant 0 : i32
    return %c0_i32, %c0_i32_0 : i32, i32
  }
  func.func @transform_4(%arg0: i32) -> (i32, i32, i32) {
    %c0_i32 = arith.constant 0 : i32
    %c0_i32_0 = arith.constant 0 : i32
    %c0_i32_1 = arith.constant 0 : i32
    %c0_i32_2 = arith.constant 0 : i32
    return %c0_i32, %c0_i32_0, %c0_i32_1 : i32, i32, i32
  }
  func.func @transform_5(%arg0: i32) -> (i32, i32) {
    %c0_i32 = arith.constant 0 : i32
    %c0_i32_0 = arith.constant 0 : i32
    %c0_i32_1 = arith.constant 0 : i32
    return %c0_i32, %c0_i32_0 : i32, i32
  }
  func.func @transform_6(%arg0: i32) -> (i32, i32) {
    %c0_i32 = arith.constant 0 : i32
    %c0_i32_0 = arith.constant 0 : i32
    %c0_i32_1 = arith.constant 0 : i32
    return %c0_i32, %c0_i32_0 : i32, i32
  }
  func.func @transform_7(%arg0: i32) -> (i32, i32) {
    %c0_i32 = arith.constant 0 : i32
    %c0_i32_0 = arith.constant 0 : i32
    %c0_i32_1 = arith.constant 0 : i32
    return %c0_i32, %c0_i32_0 : i32, i32
  }
  func.func @transform_8(%arg0: i32) -> (i32, i32) {
    %c0_i32 = arith.constant 0 : i32
    %c0_i32_0 = arith.constant 0 : i32
    %c0_i32_1 = arith.constant 0 : i32
    return %c0_i32, %c0_i32_0 : i32, i32
  }
  func.func @transform_9(%arg0: i32) -> (i32, i32) {
    %c0_i32 = arith.constant 0 : i32
    %c0_i32_0 = arith.constant 0 : i32
    %c0_i32_1 = arith.constant 0 : i32
    return %c0_i32, %c0_i32_0 : i32, i32
  }
  func.func @transform_10(%arg0: i32) -> (i32, i32, i32, i32) {
    %c0_i32 = arith.constant 0 : i32
    %c0_i32_0 = arith.constant 0 : i32
    %c0_i32_1 = arith.constant 0 : i32
    %c0_i32_2 = arith.constant 0 : i32
    return %arg0, %c0_i32, %c0_i32_0, %c0_i32_1 : i32, i32, i32, i32
  }
}

</mosaic_0001>

<bundles_post_ra>
// kernel: residual_block.1
= control target key start
LH: loop header
LB: loop body
LE: loop exit
PB: predicated region body
PF: predicated region fallthrough
CT: control target
= control target key end

     0   :  { %15 = vsyncpa [#allocation5], 0  ;;  %s10245_s0 = inlined_call_operand.vmem [shape: f32[2,16,16,128], index: 0, kind: input, shape index: {}]   ;;  %s10246_s1 = inlined_call_operand.vmem [shape: bf16[9,128,128], index: 1, kind: input, shape index: {}]   ;;  %s10247_s2 = inlined_call_operand.vmem [shape: f32[1,128], index: 2, kind: input, shape index: {}]   ;;  %s10248_s3 = inlined_call_operand.vmem [shape: f32[1,128], index: 3, kind: input, shape index: {}]   ;;  %s10249_s4 = inlined_call_operand.vmem [shape: bf16[9,128,128], index: 4, kind: input, shape index: {}]   ;;  %s10250_s5 = inlined_call_operand.vmem [shape: f32[1,128], index: 5, kind: input, shape index: {}]   ;;  %s10251_s6 = inlined_call_operand.vmem [shape: f32[1,128], index: 6, kind: input, shape index: {}]   ;;  %s10252_s7 = inlined_call_operand.vmem [shape: bf16[128,128], index: 7, kind: input, shape index: {}]   ;;  %s10253_s8 = inlined_call_operand.vmem [shape: f32[1,128], index: 8, kind: input, shape index: {}]   ;;  %s10254_s9 = inlined_call_operand.vmem [shape: f32[1,128], index: 9, kind: input, shape index: {}]   ;;  %s10255_s10 = inlined_call_operand.hbm [shape: f32[2,8,8,128], index: 10, kind: output, shape index: {}]  }
   0x1   :  { %17 = vsyncpa [#allocation5 + $0x1], 0  ;;  %s8328_s13 = smov 0   ;;  %s8330_s14 = smov 0  }
   0x2   :  { %s8332_s15 = smov 0   ;;  %s8334_s16 = smov 0  }
   0x3 LB: > { %s8349_s17 = sadd.s32 4294967295, %s8267_s16   ;;  %s7100_s18 = sadd.s32 4294967294, %s8267_s16   ;;  %s8267_s16 = sphi %s8334_s16, %s10261_s16   ;;  %s8263_s15 = sphi %s8332_s15, %s10260_s15   ;;  %s8259_s14 = sphi %s8330_s14, %s10259_s14   ;;  %s8255_s13 = sphi %s8328_s13, %s10258_s13  }
   0x4   : > { %s8353_s19 = sadd.s32 1, %s8267_s16   ;;  %s245_s20 = sadd.s32 1, %s8263_s15 }
   0x5   : > { %s242_s21 = ssub.s32 %s8267_s16, %s8353_s19  ;;  %p255_p0 = scmp.ne.s32.totalorder %s8263_s15, %s8259_s14 }
   0x6   : > { %p243_p1 = scmp.eq.s32.totalorder %s242_s21, 0  ;;  %p256_p2 = scmp.eq.s32.totalorder %s8349_s17, 1 }
   0x7   : > { %p261_p3 = scmp.ne.s32.totalorder %s8259_s14, %s8255_s13  ;;  %p262_p4 = scmp.eq.s32.totalorder %s7100_s18, 1 }
   0x8   : > { %s8364_s22 = scalar_select %p243_p1, %s8263_s15, %s245_s20  }
   0x9   : > { %p8366_p5 = por %p256_p2, %p255_p0  ;;  %p8370_p6 = por %p262_p4, %p261_p3 }
   0xa   : > { %p7103_p7 = scmp.ge.s32.totalorder %s8267_s16, 1  ;;  %p315_p8 = scmp.lt.s32.totalorder %s8267_s16, 3 }
   0xc   : > { %p316_p9 = pnand %p7103_p7, %p315_p8 }
   0xd   : > { %p353_p10 = scmp.lt.s32.totalorder (!%p316_p9), %s8349_s17, 1  ;;  %s350_s26 = sand.u32 (!%p316_p9), 1, %s8259_s14  }
   0xe   : > { %319 = sbr.rel (%p316_p9) target bundleno = 1094 (0x446), region = 60  ;;  %s7104_s29 = sshll.u32 (!%p316_p9), %s350_s26, 6 }
   0xf   : > { %s10167_s11 = scalar_lea.vmem (!%p316_p9), [#allocation4], %s7104_s29  ;;  %s8129_s12 = sshll.u32 (!%p316_p9), %s8349_s17, 6 }
  0x10   : > { %s7034_s20 = scalar_lea.hbm (!%p316_p9), %s10255_s10, %s8129_s12  ;;  %s7035_s21 = sshll.u32 (!%p316_p9), %s10167_s11, 4  ;;  %s7036_s21 = int_to_ptr.vmem [resolvable:$true] %s7035_s21 }
  0x11   : > { %s7037_s25 = sshll.u32 (!%p316_p9), %s7034_s20, 4  ;;  %s7038_s25 = int_to_ptr.hbm [resolvable:$true] %s7037_s25 }
  0x13   : > { %v7992_v0 = vld [vmem:[%s10246_s1 + $0x78] sm:$0xff]  ;;  %v8269_v3 = vmov 0.0   ;;  %v7991_v4 = vld [vmem:[%s10246_s1 + $0x70] sm:$0xff]  ;;  %s354_s18 = scalar_select %p353_p10, %s8349_s17, 1  ;;  %v7990_v7 = vld [vmem:[%s10246_s1 + $0x68] sm:$0xff]  ;;  %vm1043_vm0 = vcmask 1041409  }
  0x14   : > { %v7984_v1 = vld [vmem:[%s10246_s1 + $0x38] sm:$0xff]  ;;  %358 = vst [vmem:[#allocation2] sm:$0xff] %v8269_v3  ;;  %1217 = vmatpush.bf16.msra.mxu0 %v7992_v0  ;;  %8130 = vmatpush.bf16.msra.mxu3 %v7992_v0  ;;  %v7983_v5 = vld [vmem:[%s10246_s1 + $0x30] sm:$0xff]  ;;  %v7982_v8 = vld [vmem:[%s10246_s1 + $0x28] sm:$0xff]  ;;  %vm1046_vm1 = vcmask 1042434   ;;  %vm1049_vm2 = vcmask 1043459  }
  0x15   : > { %v8000_v2 = vld [vmem:[%s10246_s1 + $0xb8] sm:$0xff]  ;;  %359 = vst [vmem:[#allocation2 + $0x8] sm:$0xff] %v8269_v3  ;;  %1542 = vmatpush.bf16.msra.mxu1 %v7984_v1  ;;  %v7999_v6 = vld [vmem:[%s10246_s1 + $0xb0] sm:$0xff]  ;;  %s7976_s27 = sshll.u32 %s354_s18, 8  ;;  %v7998_v9 = vld [vmem:[%s10246_s1 + $0xa8] sm:$0xff]  ;;  %vm1052_vm3 = vcmask 1044484  }
  0x16   : > { %2076 = vmatpush.bf16.msra.mxu2 %v8000_v2  ;;  %360 = vst [vmem:[#allocation2 + $0x10] sm:$0x3] %v8269_v3  ;;  %s8403_s30 = scalar_lea.vmem %s10245_s0, %s7976_s27  ;;  %v7989_v10 = vld [vmem:[%s10246_s1 + $0x60] sm:$0xff]  ;;  %v7988_v33 = vld [vmem:[%s10246_s1 + $0x58] sm:$0xff]  ;;  %vm1055_vm4 = vcmask 1045509   ;;  %vm1058_vm5 = vcmask 1046534  }
  0x17   : > { %364 = vst [vmem:[#allocation2 + $0x30] sm:$0xff] %v8269_v3  ;;  %v8420_v11 = vld [vmem:[%s8403_s30 + $0x10] sm:$0xff]  ;;  %v8423_v12 = vld [vmem:[%s8403_s30 + $0x18] sm:$0xff]  ;;  %v7981_v13 = vld [vmem:[%s10246_s1 + $0x20] sm:$0xff]  ;;  %vm1061_vm6 = vcmask 1047559   ;;  %s7023_s17 = scalar_lea.sflag [#allocation5], %s350_s26 }
  0x18   : > { %365 = vst [vmem:[#allocation2 + $0x38] sm:$0xff] %v8269_v3  ;;  %1218 = vmatpush.bf16.msra.mxu0 %v7991_v4  ;;  %8131 = vmatpush.bf16.msra.mxu3 %v7991_v4  ;;  %v743_v15 = vrot.slane %v8420_v11, 2  ;;  %v744_v16 = vrot.slane %v8420_v11, 4  ;;  %v745_v17 = vrot.slane %v8420_v11, 6  ;;  %v841_v18 = vpack.c.bf16 %v8420_v11, %v8420_v11  ;;  %v7997_v24 = vld [vmem:[%s10246_s1 + $0xa0] sm:$0xff]  ;;  %v7980_v41 = vld [vmem:[%s10246_s1 + $0x18] sm:$0xff] }
  0x19   : > { %366 = vst [vmem:[#allocation2 + $0x40] sm:$0x3] %v8269_v3  ;;  %1543 = vmatpush.bf16.msra.mxu1 %v7983_v5  ;;  %v746_v23 = vrot.slane %v8423_v12, 2  ;;  %v747_v28 = vrot.slane %v8423_v12, 4  ;;  %v748_v29 = vrot.slane %v8423_v12, 6  ;;  %v7996_v42 = vld [vmem:[%s10246_s1 + $0x98] sm:$0xff]  ;;  %v845_v44 = vpack.c.bf16 %v8423_v12, %v8423_v12 }
  0x1a   : > { %2077 = vmatpush.bf16.msra.mxu2 %v7999_v6  ;;  %467 = vst [vmem:[#allocation2 + $0x31] sm:$0xff] %v8420_v11  ;;  %v842_v39 = vpack.c.bf16 %v743_v15, %v743_v15  ;;  %v843_v40 = vpack.c.bf16 %v744_v16, %v744_v16  ;;  %v844_v43 = vpack.c.bf16 %v745_v17, %v745_v17  ;;  %v7987_v54 = vld [vmem:[%s10246_s1 + $0x50] sm:$0xff]  ;;  %v986_v62 = vunpack.c.l.b16 %v841_v18  ;;  %v7986_v6 = vld [vmem:[%s10246_s1 + $0x48] sm:$0xff]  ;;  %s8219_s27 = sshra.s32 %s7038_s25, 4  ;;  %s8220_s27 = int_to_ptr.hbm [resolvable:$true] %s8219_s27 }
  0x1b   : > { %468 = vst [vmem:[#allocation2 + $0x39] sm:$0xff] %v8423_v12  ;;  %v846_v45 = vpack.c.bf16 %v746_v23, %v746_v23  ;;  %v847_v46 = vpack.c.bf16 %v747_v28, %v747_v28  ;;  %v848_v50 = vpack.c.bf16 %v748_v29, %v748_v29  ;;  %v7979_v59 = vld [vmem:[%s10246_s1 + $0x10] sm:$0xff]  ;;  %v990_v63 = vunpack.c.l.b16 %v845_v44  ;;  %v7978_v11 = vld [vmem:[%s10246_s1 + $0x8] sm:$0xff]  ;;  %s8221_s28 = scalar_lea.hbm %s8220_s27, 64  ;;  %p8226_p0 = scmp.lt.s32.totalorder %s8220_s27, %s10255_s10 }
  0x1c   : > { %v705_v14 = vld [vmem:[#allocation2 + $0x1] sm:$0xff]  ;;  %1219 = vmatpush.bf16.msra.mxu0 %v7990_v7  ;;  %8132 = vmatpush.bf16.msra.mxu3 %v7990_v7  ;;  %361 = vst [vmem:[#allocation2 + $0x18] sm:$0xff] %v8269_v3  ;;  %v987_v56 = vunpack.c.l.b16 %v842_v39  ;;  %v988_v57 = vunpack.c.l.b16 %v843_v40  ;;  %v989_v58 = vunpack.c.l.b16 %v844_v43  ;;  %v7995_v60 = vld [vmem:[%s10246_s1 + $0x90] sm:$0xff]  ;;  %v8522_v39 = vld [vmem:[%s8403_s30 + $0x78] sm:$0xff]  ;;  %p8222_p11 = scmp.ne.s32.totalorder %s8220_s27, %s8221_s28 }
  0x1d   : > { %v706_v19 = vld [vmem:[#allocation2 + $0x9] sm:$0xff]  ;;  %v737_v20 = vrot.slane %v705_v14, 2  ;;  %v738_v21 = vrot.slane %v705_v14, 4  ;;  %v739_v22 = vrot.slane %v705_v14, 6  ;;  %1544 = vmatpush.bf16.msra.mxu1 %v7982_v8  ;;  %v833_v30 = vpack.c.bf16 %v705_v14, %v705_v14  ;;  %362 = vst [vmem:[#allocation2 + $0x20] sm:$0xff] %v8269_v3  ;;  %v8525_v40 = vld [vmem:[%s8403_s30 + $0x98] sm:$0xff] }
  0x1e   : > { %2078 = vmatpush.bf16.msra.mxu2 %v7998_v9  ;;  %v740_v25 = vrot.slane %v706_v19, 2  ;;  %v741_v26 = vrot.slane %v706_v19, 4  ;;  %v742_v27 = vrot.slane %v706_v19, 6  ;;  %v837_v35 = vpack.c.bf16 %v706_v19, %v706_v19  ;;  %363 = vst [vmem:[#allocation2 + $0x28] sm:$0x3] %v8269_v3  ;;  %v7994_v16 = vld [vmem:[%s10246_s1 + $0x88] sm:$0xff]  ;;  %p8223_p12 = pnand %p8222_p11, %p8366_p5 }
  0x1f   : > { %v834_v31 = vpack.c.bf16 %v737_v20, %v737_v20  ;;  %v835_v32 = vpack.c.bf16 %v738_v21, %v738_v21  ;;  %v836_v34 = vpack.c.bf16 %v739_v22, %v739_v22  ;;  %v978_v51 = vunpack.c.l.b16 %v833_v30  ;;  %367 = vst [vmem:[#allocation2 + $0x48] sm:$0xff] %v8269_v3  ;;  %v8493_v21 = vld [vmem:[%s8403_s30 + $0x70] sm:$0xff]  ;;  %v7985_v30 = vld [vmem:[%s10246_s1 + $0x40] sm:$0xff] }
  0x20   : > { %v838_v36 = vpack.c.bf16 %v740_v25, %v740_v25  ;;  %v8445_v37 = vpack.c.bf16 %v741_v26, %v741_v26  ;;  %1220 = vmatpush.bf16.msra.mxu0 %v7989_v10  ;;  %8133 = vmatpush.bf16.msra.mxu3 %v7989_v10  ;;  %v8448_v38 = vpack.c.bf16 %v742_v27, %v742_v27  ;;  %v982_v52 = vunpack.c.l.b16 %v837_v35  ;;  %v8496_v22 = vld [vmem:[%s8403_s30 + $0x90] sm:$0xff]  ;;  %p8224_p13 = pneg %p8223_p12 }
  0x21   : > { %1545 = vmatpush.bf16.msra.mxu1 %v7981_v13  ;;  %v979_v47 = vunpack.c.l.b16 %v834_v31  ;;  %v980_v48 = vunpack.c.l.b16 %v835_v32  ;;  %v981_v49 = vunpack.c.l.b16 %v836_v34  ;;  %368 = vst [vmem:[#allocation2 + $0x50] sm:$0xff] %v8269_v3  ;;  %v991_v0 = vunpack.c.l.b16 %v846_v45  ;;  %v7977_v31 = vld [vmem:[%s10246_s1] sm:$0xff] }
  0x22   : > { %2079 = vmatpush.bf16.msra.mxu2 %v7997_v24  ;;  %v983_v53 = vunpack.c.l.b16 %v838_v36  ;;  %v984_v55 = vunpack.c.l.b16 %v8445_v37  ;;  %v985_v61 = vunpack.c.l.b16 %v8448_v38  ;;  %369 = vst [vmem:[#allocation2 + $0x58] sm:$0x3] %v8269_v3  ;;  %v992_v1 = vunpack.c.l.b16 %v847_v46  ;;  %v7993_v36 = vld [vmem:[%s10246_s1 + $0x80] sm:$0xff] }
  0x23   : > { %v1042_v2 = vrot.slane %v979_v47, 7  ;;  %v1045_v4 = vrot.slane %v980_v48, 6  ;;  %v1048_v5 = vrot.slane %v981_v49, 5  ;;  %370 = vst [vmem:[#allocation2 + $0x60] sm:$0xff] %v8269_v3  ;;  %v993_v7 = vunpack.c.l.b16 %v848_v50 }
  0x24   : > { %1221 = vmatpush.bf16.msra.mxu0 %v7988_v33  ;;  %8134 = vmatpush.bf16.msra.mxu3 %v7988_v33  ;;  %v1051_v8 = vrot.slane %v982_v52, 4  ;;  %v1054_v9 = vrot.slane %v983_v53, 3  ;;  %v1063_v10 = vrot.slane %v987_v56, 7  ;;  %371 = vst [vmem:[#allocation2 + $0x68] sm:$0xff] %v8269_v3  ;;  %v1065_v13 = vrot.slane %v988_v57, 6 }
  0x25   : > { %1546 = vmatpush.bf16.msra.mxu1 %v7980_v41  ;;  %v1044_v12 = vsel %vm1043_vm0, %v1042_v2, %v978_v51  ;;  %v1067_v14 = vrot.slane %v989_v58, 5  ;;  %v1069_v15 = vrot.slane %v990_v63, 4  ;;  %372 = vst [vmem:[#allocation2 + $0x70] sm:$0x3] %v8269_v3  ;;  %v1057_v18 = vrot.slane %v984_v55, 2 }
  0x26   : > { %2080 = vmatpush.bf16.msra.mxu2 %v7996_v42  ;;  %v1047_v17 = vsel %vm1046_vm1, %v1045_v4, %v1044_v12  ;;  %v1064_v19 = vsel %vm1043_vm0, %v1063_v10, %v986_v62  ;;  %v1071_v20 = vrot.slane %v991_v0, 3  ;;  %373 = vst [vmem:[#allocation2 + $0x78] sm:$0xff] %v8269_v3  ;;  %v1060_v24 = vrot.slane %v985_v61, 1 }
  0x27   : > { %v1050_v23 = vsel %vm1049_vm2, %v1048_v5, %v1047_v17  ;;  %v1066_v25 = vsel %vm1046_vm1, %v1065_v13, %v1064_v19  ;;  %v1073_v26 = vrot.slane %v992_v1, 2  ;;  %374 = vst [vmem:[#allocation2 + $0x80] sm:$0xff] %v8269_v3  ;;  %v1075_v29 = vrot.slane %v993_v7, 1 }
  0x28   : > { %1222 = vmatpush.bf16.msra.mxu0 %v7987_v54  ;;  %8135 = vmatpush.bf16.msra.mxu3 %v7987_v54  ;;  %v1053_v27 = vsel %vm1052_vm3, %v1051_v8, %v1050_v23  ;;  %v1068_v28 = vsel %vm1049_vm2, %v1067_v14, %v1066_v25  ;;  %375 = vst [vmem:[#allocation2 + $0x88] sm:$0x3] %v8269_v3  ;;  %v761_v34 = vrot.slane %v8493_v21, 2  ;;  %v767_v35 = vrot.slane %v8496_v22, 2 }
  0x29   : > { %1547 = vmatpush.bf16.msra.mxu1 %v7979_v59  ;;  %v1056_v32 = vsel %vm1055_vm4, %v1054_v9, %v1053_v27  ;;  %v1070_v33 = vsel %vm1052_vm3, %v1069_v15, %v1068_v28  ;;  %376 = vst [vmem:[#allocation2 + $0x90] sm:$0xff] %v8269_v3  ;;  %v762_v41 = vrot.slane %v8493_v21, 4  ;;  %v768_v42 = vrot.slane %v8496_v22, 4 }
  0x2a   : > { %2081 = vmatpush.bf16.msra.mxu2 %v7995_v60  ;;  %v1059_v37 = vsel %vm1058_vm5, %v1057_v18, %v1056_v32  ;;  %v1072_v38 = vsel %vm1055_vm4, %v1071_v20, %v1070_v33  ;;  %377 = vst [vmem:[#allocation2 + $0x98] sm:$0xff] %v8269_v3  ;;  %v763_v45 = vrot.slane %v8493_v21, 6  ;;  %v769_v46 = vrot.slane %v8496_v22, 6 }
  0x2b   : > { %v1062_v43 = vsel %vm1061_vm6, %v1060_v24, %v1059_v37  ;;  %v1074_v44 = vsel %vm1058_vm5, %v1073_v26, %v1072_v38  ;;  %378 = vst [vmem:[#allocation2 + $0xa0] sm:$0x3] %v8269_v3  ;;  %v866_v48 = vpack.c.bf16 %v761_v34, %v761_v34  ;;  %v867_v49 = vpack.c.bf16 %v762_v41, %v762_v41 }
  0x2c   : > { %1223 = vmatpush.bf16.msra.mxu0 %v7986_v6  ;;  %8136 = vmatpush.bf16.msra.mxu3 %v7986_v6  ;;  %v1076_v47 = vsel %vm1061_vm6, %v1075_v29, %v1074_v44  ;;  %379 = vst [vmem:[#allocation2 + $0xa8] sm:$0xff] %v8269_v3  ;;  %v874_v50 = vpack.c.bf16 %v767_v35, %v767_v35  ;;  %v764_v52 = vrot.slane %v8522_v39, 2  ;;  %v770_v53 = vrot.slane %v8525_v40, 2  ;;  %v499_v44 = vld [vmem:[#allocation2 + $0x30] sm:$0xff] }
  0x2d   : > { %1548 = vmatpush.bf16.msra.mxu1 %v7978_v11  ;;  %v1161_v51 = vpack.c.b16 %v1076_v47, %v1062_v43  ;;  %380 = vst [vmem:[#allocation2 + $0xb0] sm:$0xff] %v8269_v3  ;;  %v865_v54 = vpack.c.bf16 %v8493_v21, %v8493_v21  ;;  %v765_v55 = vrot.slane %v8522_v39, 4  ;;  %v771_v56 = vrot.slane %v8525_v40, 4 }
  0x2e   : > { %2082 = vmatpush.bf16.msra.mxu2 %v7994_v16  ;;  %381 = vst [vmem:[#allocation2 + $0xb8] sm:$0x3] %v8269_v3  ;;  %v868_v57 = vpack.c.bf16 %v763_v45, %v763_v45  ;;  %v869_v58 = vpack.c.bf16 %v8522_v39, %v8522_v39  ;;  %v766_v59 = vrot.slane %v8522_v39, 6  ;;  %v772_v60 = vrot.slane %v8525_v40, 6 }
  0x2f   : > { %382 = vst [vmem:[#allocation2 + $0xc0] sm:$0xff] %v8269_v3  ;;  %v870_v61 = vpack.c.bf16 %v764_v52, %v764_v52  ;;  %v873_v62 = vpack.c.bf16 %v8496_v22, %v8496_v22  ;;  %v871_v63 = vpack.c.bf16 %v765_v55, %v765_v55  ;;  %v875_v0 = vpack.c.bf16 %v768_v42, %v768_v42 }
  0x30   : > { %1224 = vmatpush.bf16.msra.mxu0 %v7985_v30  ;;  %8137 = vmatpush.bf16.msra.mxu3 %v7985_v30  ;;  %383 = vst [vmem:[#allocation2 + $0xc8] sm:$0xff] %v8269_v3  ;;  %v876_v1 = vpack.c.bf16 %v769_v46, %v769_v46  ;;  %v1010_v2 = vunpack.c.l.b16 %v865_v54  ;;  %v872_v4 = vpack.c.bf16 %v766_v59, %v766_v59  ;;  %v1011_v9 = vunpack.c.l.b16 %v866_v48  ;;  %v500_v48 = vld [vmem:[#allocation2 + $0x38] sm:$0xff] }
  0x31   : > { %1549 = vmatpush.bf16.msra.mxu1 %v7977_v31  ;;  %384 = vst [vmem:[#allocation2 + $0xd0] sm:$0x3] %v8269_v3  ;;  %v877_v5 = vpack.c.bf16 %v8525_v40, %v8525_v40  ;;  %v878_v6 = vpack.c.bf16 %v770_v53, %v770_v53  ;;  %v879_v7 = vpack.c.bf16 %v771_v56, %v771_v56  ;;  %v1012_v10 = vunpack.c.l.b16 %v867_v49 }
  0x32   : > { %2083 = vmatpush.bf16.msra.mxu2 %v7993_v36  ;;  %385 = vst [vmem:[#allocation2 + $0xd8] sm:$0xff] %v8269_v3  ;;  %v880_v8 = vpack.c.bf16 %v772_v60, %v772_v60  ;;  %v1013_v11 = vunpack.c.l.b16 %v868_v57  ;;  %v1014_v12 = vunpack.c.l.b16 %v869_v58  ;;  %v1015_v13 = vunpack.c.l.b16 %v870_v61 }
  0x33   : > { %1225 = vmatmul.bf16.vlgmr.msra.gmra.mxu0 %v1161_v51  ;;  %386 = vst [vmem:[#allocation2 + $0xe0] sm:$0xff] %v8269_v3  ;;  %v1016_v14 = vunpack.c.l.b16 %v871_v63  ;;  %v1017_v15 = vunpack.c.l.b16 %v872_v4  ;;  %v1018_v16 = vunpack.c.l.b16 %v873_v62  ;;  %v1019_v17 = vunpack.c.l.b16 %v874_v50 }
  0x34   : > { %387 = vst [vmem:[#allocation2 + $0xe8] sm:$0x3] %v8269_v3  ;;  %v1020_v18 = vunpack.c.l.b16 %v875_v0  ;;  %v1021_v19 = vunpack.c.l.b16 %v876_v1  ;;  %v1022_v20 = vunpack.c.l.b16 %v877_v5  ;;  %v1023_v23 = vunpack.c.l.b16 %v878_v6 }
  0x35   : > { %388 = vst [vmem:[#allocation2 + $0xf0] sm:$0xff] %v8269_v3  ;;  %v1024_v24 = vunpack.c.l.b16 %v879_v7  ;;  %v1025_v25 = vunpack.c.l.b16 %v880_v8  ;;  %v1105_v26 = vrot.slane %v1011_v9, 7  ;;  %v1107_v27 = vrot.slane %v1012_v10, 6 }
  0x36   : > { %389 = vst [vmem:[#allocation2 + $0xf8] sm:$0xff] %v8269_v3  ;;  %v1109_v28 = vrot.slane %v1013_v11, 5  ;;  %v1111_v29 = vrot.slane %v1014_v12, 4  ;;  %v1113_v30 = vrot.slane %v1015_v13, 3  ;;  %v1115_v31 = vrot.slane %v1016_v14, 2 }
  0x37   : > { %390 = vst [vmem:[#allocation2 + $0x100] sm:$0x3] %v8269_v3  ;;  %v1117_v32 = vrot.slane %v1017_v15, 1  ;;  %v1119_v33 = vrot.slane %v1019_v17, 7  ;;  %v1106_v34 = vsel %vm1043_vm0, %v1105_v26, %v1010_v2  ;;  %v1121_v35 = vrot.slane %v1020_v18, 6  ;;  %v8016_v26 = vld [vmem:[%s10246_s1 + $0x138] sm:$0xff] }
  0x38   : > { %391 = vst [vmem:[#allocation2 + $0x108] sm:$0xff] %v8269_v3  ;;  %v1123_v36 = vrot.slane %v1021_v19, 5  ;;  %v1125_v37 = vrot.slane %v1022_v20, 4  ;;  %v1108_v38 = vsel %vm1046_vm1, %v1107_v27, %v1106_v34  ;;  %v1127_v42 = vrot.slane %v1023_v23, 3  ;;  %3160 = vmatpush.bf16.msrb.mxu0 %v8016_v26 }
  0x39   : > { %392 = vst [vmem:[#allocation2 + $0x110] sm:$0xff] %v8269_v3  ;;  %v1120_v41 = vsel %vm1043_vm0, %v1119_v33, %v1018_v16  ;;  %v1129_v43 = vrot.slane %v1024_v24, 2  ;;  %v1110_v45 = vsel %vm1049_vm2, %v1109_v28, %v1108_v38  ;;  %v1131_v47 = vrot.slane %v1025_v25, 1  ;;  %v8008_v25 = vld [vmem:[%s10246_s1 + $0xf8] sm:$0xff] }
  0x3a   : > { %393 = vst [vmem:[#allocation2 + $0x118] sm:$0x3] %v8269_v3  ;;  %v1122_v46 = vsel %vm1046_vm1, %v1121_v35, %v1120_v41  ;;  %v529_v49 = vrot.slane %v8269_v3, 2  ;;  %v1112_v50 = vsel %vm1052_vm3, %v1111_v29, %v1110_v45  ;;  %v530_v52 = vrot.slane %v8269_v3, 4  ;;  %2618 = vmatpush.bf16.msrb.mxu3 %v8008_v25  ;;  %v8007_v35 = vld [vmem:[%s10246_s1 + $0xf0] sm:$0xff] }
  0x3b   : > { %394 = vst [vmem:[#allocation2 + $0x120] sm:$0xff] %v8269_v3  ;;  %v1124_v51 = vsel %vm1049_vm2, %v1123_v36, %v1122_v46  ;;  %v531_v53 = vrot.slane %v8269_v3, 6  ;;  %v1114_v54 = vsel %vm1055_vm4, %v1113_v30, %v1112_v50  ;;  %v535_v56 = vrot.slane %v499_v44, 2  ;;  %v8015_v36 = vld [vmem:[%s10246_s1 + $0x130] sm:$0xff] }
  0x3c   : > { %395 = vst [vmem:[#allocation2 + $0x128] sm:$0xff] %v8269_v3  ;;  %v1126_v55 = vsel %vm1052_vm3, %v1125_v37, %v1124_v51  ;;  %v536_v57 = vrot.slane %v499_v44, 4  ;;  %v1116_v58 = vsel %vm1058_vm5, %v1115_v31, %v1114_v54  ;;  %v537_v60 = vrot.slane %v499_v44, 6  ;;  %3161 = vmatpush.bf16.msrb.mxu0 %v8015_v36 }
  0x3d   : > { %396 = vst [vmem:[#allocation2 + $0x130] sm:$0x3] %v8269_v3  ;;  %v1128_v59 = vsel %vm1055_vm4, %v1127_v42, %v1126_v55  ;;  %v538_v61 = vrot.slane %v500_v48, 2  ;;  %v1118_v62 = vsel %vm1061_vm6, %v1117_v32, %v1116_v58  ;;  %v539_v0 = vrot.slane %v500_v48, 4  ;;  %v8014_v58 = vld [vmem:[%s10246_s1 + $0x128] sm:$0xff] }
  0x3e   : > { %397 = vst [vmem:[#allocation2 + $0x138] sm:$0xff] %v8269_v3  ;;  %v1130_v63 = vsel %vm1058_vm5, %v1129_v43, %v1128_v59  ;;  %v540_v1 = vrot.slane %v500_v48, 6  ;;  %v626_v4 = vpack.c.bf16 %v529_v49, %v529_v49  ;;  %v627_v5 = vpack.c.bf16 %v530_v52, %v530_v52  ;;  %v8615_v52 = vld [vmem:[#allocation2 + $0xa] sm:$0xff]  ;;  %2619 = vmatpush.bf16.msrb.mxu3 %v8007_v35 }
  0x3f   : > { %398 = vst [vmem:[#allocation2 + $0x140] sm:$0xff] %v8269_v3  ;;  %v1132_v2 = vsel %vm1061_vm6, %v1131_v47, %v1130_v63  ;;  %v628_v7 = vpack.c.bf16 %v531_v53, %v531_v53  ;;  %v633_v8 = vpack.c.bf16 %v499_v44, %v499_v44  ;;  %v634_v9 = vpack.c.bf16 %v535_v56, %v535_v56  ;;  %v8611_v47 = vld [vmem:[#allocation2 + $0x2] sm:$0xff] }
  0x40   : > { %399 = vst [vmem:[#allocation2 + $0x148] sm:$0x3] %v8269_v3  ;;  %v1163_v6 = vpack.c.b16 %v1132_v2, %v1118_v62  ;;  %v635_v10 = vpack.c.bf16 %v536_v57, %v536_v57  ;;  %v636_v11 = vpack.c.bf16 %v537_v60, %v537_v60  ;;  %v637_v12 = vpack.c.bf16 %v500_v48, %v500_v48  ;;  %v8006_v57 = vld [vmem:[%s10246_s1 + $0xe8] sm:$0xff]  ;;  %v8636_v2 = vld [vmem:[#allocation2 + $0x3a] sm:$0xff] }
  0x41   : > { %400 = vst [vmem:[#allocation2 + $0x150] sm:$0xff] %v8269_v3  ;;  %v638_v13 = vpack.c.bf16 %v538_v61, %v538_v61  ;;  %v639_v14 = vpack.c.bf16 %v539_v0, %v539_v0  ;;  %v640_v15 = vpack.c.bf16 %v540_v1, %v540_v1  ;;  %v8270_v16 = vmov 0.0|0.0   ;;  %v8629_v61 = vld [vmem:[#allocation2 + $0x32] sm:$0xff]  ;;  %3162 = vmatpush.bf16.msrb.mxu0 %v8014_v58 }
  0x42   : > { %401 = vst [vmem:[#allocation2 + $0x158] sm:$0xff] %v8269_v3  ;;  %1235 = vmatmul.bf16.vlgmr.msra.gmra.mxu3 %v1163_v6  ;;  %v1310_v17 = vunpack.c.l.b16 %v8270_v16  ;;  %v1311_v18 = vunpack.c.l.b16 %v626_v4  ;;  %v1312_v19 = vunpack.c.l.b16 %v627_v5  ;;  %v8590_v20 = vunpack.c.l.b16 %v628_v7 }
  0x43   : > { %402 = vst [vmem:[#allocation2 + $0x160] sm:$0x3] %v8269_v3  ;;  %v1318_v23 = vunpack.c.l.b16 %v633_v8  ;;  %v1319_v24 = vunpack.c.l.b16 %v634_v9  ;;  %v1320_v27 = vunpack.c.l.b16 %v635_v10  ;;  %v1321_v28 = vunpack.c.l.b16 %v636_v11  ;;  %2620 = vmatpush.bf16.msrb.mxu3 %v8006_v57 }
  0x44   : > { %403 = vst [vmem:[#allocation2 + $0x168] sm:$0xff] %v8269_v3  ;;  %v1322_v29 = vunpack.c.l.b16 %v637_v12  ;;  %v1323_v30 = vunpack.c.l.b16 %v638_v13  ;;  %v1324_v31 = vunpack.c.l.b16 %v639_v14  ;;  %v1325_v32 = vunpack.c.l.b16 %v640_v15 }
  0x45   : > { %404 = vst [vmem:[#allocation2 + $0x170] sm:$0xff] %v8269_v3  ;;  %v1374_v33 = vrot.slane %v1311_v18, 7  ;;  %v1376_v34 = vrot.slane %v1312_v19, 6  ;;  %v1378_v37 = vrot.slane %v8590_v20, 5  ;;  %v1380_v38 = vrot.slane %v1310_v17, 4 }
  0x46   : > { %405 = vst [vmem:[#allocation2 + $0x178] sm:$0x3] %v8269_v3  ;;  %v1382_v41 = vrot.slane %v1311_v18, 3  ;;  %v1384_v42 = vrot.slane %v1312_v19, 2  ;;  %v1386_v44 = vrot.slane %v8590_v20, 1  ;;  %v1388_v45 = vrot.slane %v1319_v24, 7 }
  0x47   : > { %406 = vst [vmem:[#allocation2 + $0x180] sm:$0xff] %v8269_v3  ;;  %v1375_v43 = vsel %vm1043_vm0, %v1374_v33, %v1310_v17  ;;  %v1390_v46 = vrot.slane %v1320_v27, 6  ;;  %v1392_v49 = vrot.slane %v1321_v28, 5  ;;  %v1394_v50 = vrot.slane %v1322_v29, 4  ;;  %v8005_v28 = vld [vmem:[%s10246_s1 + $0xe0] sm:$0xff] }
  0x48   : > { %407 = vst [vmem:[#allocation2 + $0x188] sm:$0xff] %v8269_v3  ;;  %v1377_v48 = vsel %vm1046_vm1, %v1376_v34, %v1375_v43  ;;  %v1396_v51 = vrot.slane %v1323_v30, 3  ;;  %v1389_v54 = vsel %vm1043_vm0, %v1388_v45, %v1318_v23  ;;  %v1398_v55 = vrot.slane %v1324_v31, 2  ;;  %v8013_v29 = vld [vmem:[%s10246_s1 + $0x120] sm:$0xff]  ;;  %2621 = vmatpush.bf16.msrb.mxu3 %v8005_v28 }
  0x49   : > { %408 = vst [vmem:[#allocation2 + $0x190] sm:$0x3] %v8269_v3  ;;  %v1379_v53 = vsel %vm1049_vm2, %v1378_v37, %v1377_v48  ;;  %v1400_v56 = vrot.slane %v1325_v32, 1  ;;  %v1391_v60 = vsel %vm1046_vm1, %v1390_v46, %v1389_v54  ;;  %v1603_v62 = vrot.slane %v8611_v47, 2  ;;  %3163 = vmatpush.bf16.msrb.mxu0 %v8013_v29 }
  0x4a   : > { %412 = vst [vmem:[#allocation3] sm:$0xff] %v8269_v3  ;;  %v1381_v59 = vsel %vm1052_vm3, %v1380_v38, %v1379_v53  ;;  %v1604_v63 = vrot.slane %v8611_v47, 4  ;;  %v1393_v1 = vsel %vm1049_vm2, %v1392_v49, %v1391_v60  ;;  %v1605_v4 = vrot.slane %v8611_v47, 6 }
  0x4b   : > { %413 = vst [vmem:[#allocation3 + $0x8] sm:$0x3] %v8269_v3  ;;  %v1383_v0 = vsel %vm1055_vm4, %v1382_v41, %v1381_v59  ;;  %v1606_v5 = vrot.slane %v8615_v52, 2  ;;  %v1395_v7 = vsel %vm1052_vm3, %v1394_v50, %v1393_v1  ;;  %v1607_v8 = vrot.slane %v8615_v52, 4 }
  0x4c   : > { %414 = vst [vmem:[#allocation3 + $0x10] sm:$0xff] %v8269_v3  ;;  %v1385_v6 = vsel %vm1058_vm5, %v1384_v42, %v1383_v0  ;;  %v1608_v9 = vrot.slane %v8615_v52, 6  ;;  %v1397_v11 = vsel %vm1055_vm4, %v1396_v51, %v1395_v7  ;;  %v1609_v12 = vrot.slane %v8629_v61, 2 }
  0x4d   : > { %415 = vst [vmem:[#allocation3 + $0x18] sm:$0x3] %v8269_v3  ;;  %v1387_v10 = vsel %vm1061_vm6, %v1386_v44, %v1385_v6  ;;  %v1610_v13 = vrot.slane %v8629_v61, 4  ;;  %v1399_v14 = vsel %vm1058_vm5, %v1398_v55, %v1397_v11  ;;  %v1611_v15 = vrot.slane %v8629_v61, 6 }
  0x4e   : > { %416 = vst [vmem:[#allocation3 + $0x20] sm:$0xff] %v8269_v3  ;;  %v1612_v16 = vrot.slane %v8636_v2, 2  ;;  %v1613_v17 = vrot.slane %v8636_v2, 4  ;;  %v1401_v18 = vsel %vm1061_vm6, %v1400_v56, %v1399_v14  ;;  %v1614_v19 = vrot.slane %v8636_v2, 6 }
  0x4f   : > { %417 = vst [vmem:[#allocation3 + $0x28] sm:$0x3] %v8269_v3  ;;  %v1699_v20 = vpack.c.bf16 %v8611_v47, %v8611_v47  ;;  %v1700_v23 = vpack.c.bf16 %v1603_v62, %v1603_v62  ;;  %v1486_v24 = vpack.c.b16 %v1401_v18, %v1387_v10  ;;  %v1701_v25 = vpack.c.bf16 %v1604_v63, %v1604_v63 }
  0x50   : > { %418 = vst [vmem:[#allocation3 + $0x30] sm:$0xff] %v8269_v3  ;;  %v1702_v26 = vpack.c.bf16 %v1605_v4, %v1605_v4  ;;  %v1703_v27 = vpack.c.bf16 %v8615_v52, %v8615_v52  ;;  %v1704_v30 = vpack.c.bf16 %v1606_v5, %v1606_v5  ;;  %v1705_v31 = vpack.c.bf16 %v1607_v8, %v1607_v8 }
  0x51   : > { %419 = vst [vmem:[#allocation3 + $0x38] sm:$0x3] %v8269_v3  ;;  %v1706_v32 = vpack.c.bf16 %v1608_v9, %v1608_v9  ;;  %v1707_v33 = vpack.c.bf16 %v8629_v61, %v8629_v61  ;;  %1550 = vmatmul.bf16.vlgmr.msra.gmra.mxu1 %v1486_v24  ;;  %v1708_v34 = vpack.c.bf16 %v1609_v12, %v1609_v12  ;;  %v1844_v37 = vunpack.c.l.b16 %v1699_v20  ;;  %v439_v20 = vld [vmem:[%s8403_s30 + $0x38] sm:$0xff] }
  0x52   : > { %420 = vst [vmem:[#allocation3 + $0x40] sm:$0xff] %v8269_v3  ;;  %v1709_v35 = vpack.c.bf16 %v1610_v13, %v1610_v13  ;;  %v1710_v36 = vpack.c.bf16 %v1611_v15, %v1611_v15  ;;  %v1711_v38 = vpack.c.bf16 %v8636_v2, %v8636_v2  ;;  %v1712_v41 = vpack.c.bf16 %v1612_v16, %v1612_v16  ;;  %v438_v13 = vld [vmem:[%s8403_s30 + $0x30] sm:$0xff] }
  0x53   : > { %421 = vst [vmem:[#allocation3 + $0x48] sm:$0x3] %v8269_v3  ;;  %v1713_v42 = vpack.c.bf16 %v1613_v17, %v1613_v17  ;;  %v1714_v43 = vpack.c.bf16 %v1614_v19, %v1614_v19  ;;  %v1845_v44 = vunpack.c.l.b16 %v1700_v23  ;;  %v1846_v45 = vunpack.c.l.b16 %v1701_v25 }
  0x54   : > { %422 = vst [vmem:[#allocation3 + $0x50] sm:$0xff] %v8269_v3  ;;  %v1847_v46 = vunpack.c.l.b16 %v1702_v26  ;;  %v1848_v47 = vunpack.c.l.b16 %v1703_v27  ;;  %v1849_v48 = vunpack.c.l.b16 %v1704_v30  ;;  %v1850_v49 = vunpack.c.l.b16 %v1705_v31  ;;  %v442_v27 = vld [vmem:[%s8403_s30 + $0x50] sm:$0xff]  ;;  %v443_v31 = vld [vmem:[%s8403_s30 + $0x58] sm:$0xff] }
  0x55   : > { %423 = vst [vmem:[#allocation3 + $0x58] sm:$0x3] %v8269_v3  ;;  %v1851_v50 = vunpack.c.l.b16 %v1706_v32  ;;  %v1852_v51 = vunpack.c.l.b16 %v1707_v33  ;;  %v1853_v52 = vunpack.c.l.b16 %v1708_v34  ;;  %v1854_v53 = vunpack.c.l.b16 %v1709_v35 }
  0x56   : > { %424 = vst [vmem:[#allocation3 + $0x60] sm:$0xff] %v8269_v3  ;;  %v1855_v54 = vunpack.c.l.b16 %v1710_v36  ;;  %v1856_v55 = vunpack.c.l.b16 %v1711_v38  ;;  %v1857_v56 = vunpack.c.l.b16 %v1712_v41  ;;  %v1858_v57 = vunpack.c.l.b16 %v1713_v42 }
  0x57   : > { %425 = vst [vmem:[#allocation3 + $0x68] sm:$0x3] %v8269_v3  ;;  %v1859_v58 = vunpack.c.l.b16 %v1714_v43  ;;  %v1908_v59 = vrot.slane %v1845_v44, 7  ;;  %v1910_v60 = vrot.slane %v1846_v45, 6  ;;  %v1912_v61 = vrot.slane %v1847_v46, 5 }
  0x58   : > { %426 = vst [vmem:[#allocation3 + $0x70] sm:$0xff] %v8269_v3  ;;  %v1914_v62 = vrot.slane %v1848_v47, 4  ;;  %v1916_v63 = vrot.slane %v1849_v48, 3  ;;  %v1918_v1 = vrot.slane %v1850_v49, 2  ;;  %v1920_v2 = vrot.slane %v1851_v50, 1 }
  0x59   : > { %427 = vst [vmem:[#allocation3 + $0x78] sm:$0x3] %v8269_v3  ;;  %v1909_v0 = vsel %vm1043_vm0, %v1908_v59, %v1844_v37  ;;  %v1922_v4 = vrot.slane %v1853_v52, 7  ;;  %v1924_v6 = vrot.slane %v1854_v53, 6  ;;  %v1926_v7 = vrot.slane %v1855_v54, 5 }
  0x5a   : > { %428 = vst [vmem:[#allocation3 + $0x80] sm:$0xff] %v8269_v3  ;;  %v1911_v5 = vsel %vm1046_vm1, %v1910_v60, %v1909_v0  ;;  %v1928_v8 = vrot.slane %v1856_v55, 4  ;;  %v1930_v11 = vrot.slane %v1857_v56, 3  ;;  %v1932_v12 = vrot.slane %v1858_v57, 2  ;;  %v8709_v56 = vld [vmem:[%s8403_s30 + $0xb0] sm:$0xff] }
  0x5b   : > { %429 = vst [vmem:[#allocation3 + $0x88] sm:$0x3] %v8269_v3  ;;  %v1913_v9 = vsel %vm1049_vm2, %v1912_v61, %v1911_v5  ;;  %v1923_v10 = vsel %vm1043_vm0, %v1922_v4, %v1852_v51  ;;  %v1934_v16 = vrot.slane %v1859_v58, 1  ;;  %v749_v17 = vrot.slane %v438_v13, 2  ;;  %v8712_v61 = vld [vmem:[%s8403_s30 + $0xb8] sm:$0xff] }
  0x5c   : > { %430 = vst [vmem:[#allocation3 + $0x90] sm:$0xff] %v8269_v3  ;;  %v1915_v14 = vsel %vm1052_vm3, %v1914_v62, %v1913_v9  ;;  %v1925_v15 = vsel %vm1046_vm1, %v1924_v6, %v1923_v10  ;;  %v750_v23 = vrot.slane %v438_v13, 4  ;;  %v751_v24 = vrot.slane %v438_v13, 6 }
  0x5d   : > { %431 = vst [vmem:[#allocation3 + $0x98] sm:$0x3] %v8269_v3  ;;  %v1917_v18 = vsel %vm1055_vm4, %v1916_v63, %v1915_v14  ;;  %v1927_v19 = vsel %vm1049_vm2, %v1926_v7, %v1925_v15  ;;  %v752_v28 = vrot.slane %v439_v20, 2  ;;  %v753_v29 = vrot.slane %v439_v20, 4 }
  0x5e   : > { %479 = vst [vmem:[#allocation2 + $0xc1] sm:$0xff] %v8493_v21  ;;  %v1919_v25 = vsel %vm1058_vm5, %v1918_v1, %v1917_v18  ;;  %v1929_v26 = vsel %vm1052_vm3, %v1928_v8, %v1927_v19  ;;  %v754_v32 = vrot.slane %v439_v20, 6  ;;  %v755_v33 = vrot.slane %v442_v27, 2  ;;  %v8720_v8 = vld [vmem:[%s8403_s30 + $0xd8] sm:$0xff] }
  0x5f   : > { %480 = vst [vmem:[#allocation2 + $0xc9] sm:$0xff] %v8522_v39  ;;  %v1921_v3 = vsel %vm1061_vm6, %v1920_v2, %v1919_v25  ;;  %v1931_v30 = vsel %vm1055_vm4, %v1930_v11, %v1929_v26  ;;  %v756_v34 = vrot.slane %v442_v27, 4  ;;  %v757_v35 = vrot.slane %v442_v27, 6  ;;  %v8716_v2 = vld [vmem:[%s8403_s30 + $0xd0] sm:$0xff] }
  0x60   : > { %483 = vst [vmem:[#allocation2 + $0xf1] sm:$0xff] %v8496_v22  ;;  %v1933_v21 = vsel %vm1058_vm5, %v1932_v12, %v1931_v30  ;;  %v758_v36 = vrot.slane %v443_v31, 2  ;;  %v759_v38 = vrot.slane %v443_v31, 4  ;;  %v760_v39 = vrot.slane %v443_v31, 6 }
  0x61   : > { %484 = vst [vmem:[#allocation2 + $0xf9] sm:$0xff] %v8525_v40  ;;  %v1935_v37 = vsel %vm1061_vm6, %v1934_v16, %v1933_v21  ;;  %v849_v41 = vpack.c.bf16 %v438_v13, %v438_v13  ;;  %v850_v43 = vpack.c.bf16 %v749_v17, %v749_v17  ;;  %v851_v44 = vpack.c.bf16 %v750_v23, %v750_v23 }
  0x62   : > { %v2020_v42 = vpack.c.b16 %v1935_v37, %v1921_v3  ;;  %471 = vst [vmem:[#allocation2 + $0x61] sm:$0xff] %v438_v13  ;;  %v852_v45 = vpack.c.bf16 %v751_v24, %v751_v24  ;;  %v853_v22 = vpack.c.bf16 %v439_v20, %v439_v20  ;;  %v854_v46 = vpack.c.bf16 %v752_v28, %v752_v28 }
  0x63   : > { %472 = vst [vmem:[#allocation2 + $0x69] sm:$0xff] %v439_v20  ;;  %v855_v47 = vpack.c.bf16 %v753_v29, %v753_v29  ;;  %v856_v48 = vpack.c.bf16 %v754_v32, %v754_v32  ;;  %v857_v40 = vpack.c.bf16 %v442_v27, %v442_v27  ;;  %v858_v49 = vpack.c.bf16 %v755_v33, %v755_v33 }
  0x64   : > { %2084 = vmatmul.bf16.vlgmr.msra.gmra.mxu2 %v2020_v42  ;;  %475 = vst [vmem:[#allocation2 + $0x91] sm:$0xff] %v442_v27  ;;  %v859_v50 = vpack.c.bf16 %v756_v34, %v756_v34  ;;  %v994_v51 = vunpack.c.l.b16 %v849_v41  ;;  %v860_v52 = vpack.c.bf16 %v757_v35, %v757_v35  ;;  %v861_v53 = vpack.c.bf16 %v443_v31, %v443_v31 }
  0x65   : > { %476 = vst [vmem:[#allocation2 + $0x99] sm:$0xff] %v443_v31  ;;  %v862_v54 = vpack.c.bf16 %v758_v36, %v758_v36  ;;  %v863_v55 = vpack.c.bf16 %v759_v38, %v759_v38  ;;  %v864_v57 = vpack.c.bf16 %v760_v39, %v760_v39  ;;  %v995_v58 = vunpack.c.l.b16 %v850_v43 }
  0x66   : > { %v996_v59 = vunpack.c.l.b16 %v851_v44  ;;  %v997_v60 = vunpack.c.l.b16 %v852_v45  ;;  %487 = vst [vmem:[#allocation2 + $0x121] sm:$0xff] %v8709_v56  ;;  %v998_v62 = vunpack.c.l.b16 %v853_v22  ;;  %v999_v63 = vunpack.c.l.b16 %v854_v46 }
  0x67   : > { %v1000_v0 = vunpack.c.l.b16 %v855_v47  ;;  %v1001_v1 = vunpack.c.l.b16 %v856_v48  ;;  %488 = vst [vmem:[#allocation2 + $0x129] sm:$0xff] %v8712_v61  ;;  %v1002_v4 = vunpack.c.l.b16 %v857_v40  ;;  %v1003_v5 = vunpack.c.l.b16 %v858_v49 }
  0x68   : > { %v1004_v6 = vunpack.c.l.b16 %v859_v50  ;;  %v1005_v7 = vunpack.c.l.b16 %v860_v52  ;;  %491 = vst [vmem:[#allocation2 + $0x151] sm:$0xff] %v8716_v2  ;;  %v1006_v9 = vunpack.c.l.b16 %v861_v53  ;;  %v1007_v10 = vunpack.c.l.b16 %v862_v54 }
  0x69   : > { %v1008_v11 = vunpack.c.l.b16 %v863_v55  ;;  %v1009_v12 = vunpack.c.l.b16 %v864_v57  ;;  %492 = vst [vmem:[#allocation2 + $0x159] sm:$0xff] %v8720_v8  ;;  %v1077_v13 = vrot.slane %v995_v58, 7  ;;  %v1079_v14 = vrot.slane %v996_v59, 6 }
  0x6a   : > { %v1081_v15 = vrot.slane %v997_v60, 5  ;;  %v1083_v16 = vrot.slane %v998_v62, 4  ;;  %v1085_v17 = vrot.slane %v999_v63, 3  ;;  %v1087_v18 = vrot.slane %v1000_v0, 2 }
  0x6b   : > { %v1089_v19 = vrot.slane %v1001_v1, 1  ;;  %v1091_v20 = vrot.slane %v1003_v5, 7  ;;  %v1078_v23 = vsel %vm1043_vm0, %v1077_v13, %v994_v51  ;;  %v1093_v24 = vrot.slane %v1004_v6, 6 }
  0x6c   : > { %v1095_v25 = vrot.slane %v1005_v7, 5  ;;  %v1097_v26 = vrot.slane %v1006_v9, 4  ;;  %v1080_v27 = vsel %vm1046_vm1, %v1079_v14, %v1078_v23  ;;  %v1099_v29 = vrot.slane %v1007_v10, 3 }
  0x6d   : > { %v1092_v28 = vsel %vm1043_vm0, %v1091_v20, %v1002_v4  ;;  %v1101_v3 = vrot.slane %v1008_v11, 2  ;;  %v1082_v30 = vsel %vm1049_vm2, %v1081_v15, %v1080_v27  ;;  %v1103_v32 = vrot.slane %v1009_v12, 1 }
  0x6e   : > { %v1094_v31 = vsel %vm1046_vm1, %v1093_v24, %v1092_v28  ;;  %v773_v33 = vrot.slane %v8709_v56, 2  ;;  %v1084_v21 = vsel %vm1052_vm3, %v1083_v16, %v1082_v30  ;;  %v774_v35 = vrot.slane %v8709_v56, 4  ;;  %v501_v30 = vld [vmem:[#allocation2 + $0x60] sm:$0xff] }
  0x6f   : > { %v1096_v34 = vsel %vm1049_vm2, %v1095_v25, %v1094_v31  ;;  %v775_v36 = vrot.slane %v8709_v56, 6  ;;  %v1086_v37 = vsel %vm1055_vm4, %v1085_v17, %v1084_v21  ;;  %v776_v39 = vrot.slane %v8712_v61, 2 }
  0x70   : > { %v1098_v38 = vsel %vm1052_vm3, %v1097_v26, %v1096_v34  ;;  %v777_v41 = vrot.slane %v8712_v61, 4  ;;  %v1088_v42 = vsel %vm1058_vm5, %v1087_v18, %v1086_v37  ;;  %v778_v44 = vrot.slane %v8712_v61, 6 }
  0x71   : > { %v1100_v43 = vsel %vm1055_vm4, %v1099_v29, %v1098_v38  ;;  %v779_v45 = vrot.slane %v8716_v2, 2  ;;  %v1090_v22 = vsel %vm1061_vm6, %v1089_v19, %v1088_v42  ;;  %v780_v47 = vrot.slane %v8716_v2, 4  ;;  %v502_v38 = vld [vmem:[#allocation2 + $0x68] sm:$0xff] }
  0x72   : > { %v1102_v46 = vsel %vm1058_vm5, %v1101_v3, %v1100_v43  ;;  %v781_v48 = vrot.slane %v8716_v2, 6  ;;  %v782_v49 = vrot.slane %v8720_v8, 2  ;;  %v783_v50 = vrot.slane %v8720_v8, 4  ;;  %v503_v43 = vld [vmem:[#allocation2 + $0x90] sm:$0xff] }
  0x73   : > { %v1104_v40 = vsel %vm1061_vm6, %v1103_v32, %v1102_v46  ;;  %v784_v51 = vrot.slane %v8720_v8, 6  ;;  %v881_v53 = vpack.c.bf16 %v8709_v56, %v8709_v56  ;;  %v882_v54 = vpack.c.bf16 %v773_v33, %v773_v33 }
  0x74   : > { %v1162_v52 = vpack.c.b16 %v1104_v40, %v1090_v22  ;;  %v883_v55 = vpack.c.bf16 %v774_v35, %v774_v35  ;;  %v884_v57 = vpack.c.bf16 %v775_v36, %v775_v36  ;;  %v885_v58 = vpack.c.bf16 %v8712_v61, %v8712_v61 }
  0x75   : > { %v886_v59 = vpack.c.bf16 %v776_v39, %v776_v39  ;;  %v887_v60 = vpack.c.bf16 %v777_v41, %v777_v41  ;;  %v888_v62 = vpack.c.bf16 %v778_v44, %v778_v44  ;;  %v889_v63 = vpack.c.bf16 %v8716_v2, %v8716_v2 }
  0x76   : > { %1230 = vmatmul.bf16.gmra.mxu0 %v1162_v52  ;;  %v890_v0 = vpack.c.bf16 %v779_v45, %v779_v45  ;;  %v891_v1 = vpack.c.bf16 %v780_v47, %v780_v47  ;;  %v892_v4 = vpack.c.bf16 %v781_v48, %v781_v48  ;;  %v893_v5 = vpack.c.bf16 %v8720_v8, %v8720_v8 }
  0x77   : > { %v894_v56 = vpack.c.bf16 %v782_v49, %v782_v49  ;;  %v895_v6 = vpack.c.bf16 %v783_v50, %v783_v50  ;;  %v896_v7 = vpack.c.bf16 %v784_v51, %v784_v51  ;;  %v1026_v9 = vunpack.c.l.b16 %v881_v53  ;;  %v504_v49 = vld [vmem:[#allocation2 + $0x98] sm:$0xff] }
  0x78   : > { %v1027_v10 = vunpack.c.l.b16 %v882_v54  ;;  %v1028_v11 = vunpack.c.l.b16 %v883_v55  ;;  %v1029_v61 = vunpack.c.l.b16 %v884_v57  ;;  %v1030_v12 = vunpack.c.l.b16 %v885_v58 }
  0x79   : > { %v1031_v13 = vunpack.c.l.b16 %v886_v59  ;;  %v1032_v14 = vunpack.c.l.b16 %v887_v60  ;;  %v1033_v15 = vunpack.c.l.b16 %v888_v62  ;;  %v1034_v16 = vunpack.c.l.b16 %v889_v63 }
  0x7a   : > { %v1035_v17 = vunpack.c.l.b16 %v890_v0  ;;  %v1036_v2 = vunpack.c.l.b16 %v891_v1  ;;  %v1037_v18 = vunpack.c.l.b16 %v892_v4  ;;  %v1038_v19 = vunpack.c.l.b16 %v893_v5 }
  0x7b   : > { %v1039_v20 = vunpack.c.l.b16 %v894_v56  ;;  %v1040_v23 = vunpack.c.l.b16 %v895_v6  ;;  %v1041_v24 = vunpack.c.l.b16 %v896_v7  ;;  %v1133_v8 = vrot.slane %v1027_v10, 7 }
  0x7c   : > { %v1135_v25 = vrot.slane %v1028_v11, 6  ;;  %v1137_v26 = vrot.slane %v1029_v61, 5  ;;  %v1139_v27 = vrot.slane %v1030_v12, 4  ;;  %v1141_v28 = vrot.slane %v1031_v13, 3 }
  0x7d   : > { %v1143_v29 = vrot.slane %v1032_v14, 2  ;;  %v1145_v3 = vrot.slane %v1033_v15, 1  ;;  %v1134_v31 = vsel %vm1043_vm0, %v1133_v8, %v1026_v9  ;;  %v1147_v32 = vrot.slane %v1035_v17, 7 }
  0x7e   : > { %v1149_v33 = vrot.slane %v1036_v2, 6  ;;  %v1151_v21 = vrot.slane %v1037_v18, 5  ;;  %v1136_v34 = vsel %vm1046_vm1, %v1135_v25, %v1134_v31  ;;  %v1153_v35 = vrot.slane %v1038_v19, 4  ;;  %v8012_v31 = vld [vmem:[%s10246_s1 + $0x118] sm:$0xff] }
  0x7f   : > { %v1155_v36 = vrot.slane %v1039_v20, 3  ;;  %v1157_v37 = vrot.slane %v1040_v23, 2  ;;  %v1138_v39 = vsel %vm1049_vm2, %v1137_v26, %v1136_v34  ;;  %v1148_v41 = vsel %vm1043_vm0, %v1147_v32, %v1034_v16  ;;  %3164 = vmatpush.bf16.msrb.mxu0 %v8012_v31 }
  0x80   : > { %v1159_v42 = vrot.slane %v1041_v24, 1  ;;  %v541_v44 = vrot.slane %v501_v30, 2  ;;  %v1140_v45 = vsel %vm1052_vm3, %v1139_v27, %v1138_v39  ;;  %v1150_v22 = vsel %vm1046_vm1, %v1149_v33, %v1148_v41  ;;  %v8003_v39 = vld [vmem:[%s10246_s1 + $0xd0] sm:$0xff] }
  0x81   : > { %v542_v46 = vrot.slane %v501_v30, 4  ;;  %v543_v47 = vrot.slane %v501_v30, 6  ;;  %v1142_v48 = vsel %vm1055_vm4, %v1141_v28, %v1140_v45  ;;  %v1152_v40 = vsel %vm1049_vm2, %v1151_v21, %v1150_v22  ;;  %v8011_v41 = vld [vmem:[%s10246_s1 + $0x110] sm:$0xff]  ;;  %v8032_v22 = vld [vmem:[%s10246_s1 + $0x1b8] sm:$0xff] }
  0x82   : > { %v544_v50 = vrot.slane %v502_v38, 2  ;;  %v545_v51 = vrot.slane %v502_v38, 4  ;;  %v1144_v52 = vsel %vm1058_vm5, %v1143_v29, %v1142_v48  ;;  %v1154_v53 = vsel %vm1052_vm3, %v1153_v35, %v1152_v40  ;;  %4245 = vmatpush.bf16.msrb.mxu2 %v8032_v22  ;;  %v8838_v22 = vld [vmem:[%s8403_s30 + $0x28] sm:$0xff] }
  0x83   : > { %v546_v54 = vrot.slane %v502_v38, 6  ;;  %v547_v55 = vrot.slane %v503_v43, 2  ;;  %v1146_v57 = vsel %vm1061_vm6, %v1145_v3, %v1144_v52  ;;  %v1156_v58 = vsel %vm1055_vm4, %v1155_v36, %v1154_v53  ;;  %3165 = vmatpush.bf16.msrb.mxu0 %v8011_v41  ;;  %470 = vst [vmem:[#allocation2 + $0x51] sm:$0xff] %v8838_v22 }
  0x84   : > { %v548_v59 = vrot.slane %v503_v43, 4  ;;  %v549_v60 = vrot.slane %v503_v43, 6  ;;  %v1158_v62 = vsel %vm1058_vm5, %v1157_v37, %v1156_v58  ;;  %v550_v63 = vrot.slane %v504_v49, 2 }
  0x85   : > { %v551_v0 = vrot.slane %v504_v49, 4  ;;  %v552_v1 = vrot.slane %v504_v49, 6  ;;  %v1160_v4 = vsel %vm1061_vm6, %v1159_v42, %v1158_v62  ;;  %v641_v5 = vpack.c.bf16 %v501_v30, %v501_v30  ;;  %v8004_v30 = vld [vmem:[%s10246_s1 + $0xd8] sm:$0xff]  ;;  %v8010_v62 = vld [vmem:[%s10246_s1 + $0x108] sm:$0xff] }
  0x86   : > { %v642_v56 = vpack.c.bf16 %v541_v44, %v541_v44  ;;  %v643_v6 = vpack.c.bf16 %v542_v46, %v542_v46  ;;  %v1164_v7 = vpack.c.b16 %v1160_v4, %v1146_v57  ;;  %v644_v9 = vpack.c.bf16 %v543_v47, %v543_v47  ;;  %2622 = vmatpush.bf16.msrb.mxu3 %v8004_v30 }
  0x87   : > { %v645_v10 = vpack.c.bf16 %v502_v38, %v502_v38  ;;  %v646_v11 = vpack.c.bf16 %v544_v50, %v544_v50  ;;  %v647_v61 = vpack.c.bf16 %v545_v51, %v545_v51  ;;  %v648_v12 = vpack.c.bf16 %v546_v54, %v546_v54  ;;  %v8791_v54 = vld [vmem:[#allocation2 + $0x6a] sm:$0xff]  ;;  %3166 = vmatpush.bf16.msrb.mxu0 %v8010_v62 }
  0x88   : > { %v649_v13 = vpack.c.bf16 %v503_v43, %v503_v43  ;;  %v650_v14 = vpack.c.bf16 %v547_v55, %v547_v55  ;;  %1240 = vmatmul.bf16.gmra.mxu3 %v1164_v7  ;;  %v651_v15 = vpack.c.bf16 %v548_v59, %v548_v59  ;;  %v652_v16 = vpack.c.bf16 %v549_v60, %v549_v60  ;;  %v8002_v60 = vld [vmem:[%s10246_s1 + $0xc8] sm:$0xff]  ;;  %v1578_v7 = vld [vmem:[#allocation2 + $0x9a] sm:$0xff] }
  0x89   : > { %v653_v17 = vpack.c.bf16 %v504_v49, %v504_v49  ;;  %v654_v2 = vpack.c.bf16 %v550_v63, %v550_v63  ;;  %v655_v18 = vpack.c.bf16 %v551_v0, %v551_v0  ;;  %v656_v19 = vpack.c.bf16 %v552_v1, %v552_v1  ;;  %v8788_v49 = vld [vmem:[#allocation2 + $0x62] sm:$0xff]  ;;  %v1577_v1 = vld [vmem:[#allocation2 + $0x92] sm:$0xff] }
  0x8a   : > { %v1326_v20 = vunpack.c.l.b16 %v641_v5  ;;  %v1327_v23 = vunpack.c.l.b16 %v642_v56  ;;  %v1328_v24 = vunpack.c.l.b16 %v643_v6  ;;  %v1329_v8 = vunpack.c.l.b16 %v644_v9  ;;  %2623 = vmatpush.bf16.msrb.mxu3 %v8003_v39 }
  0x8b   : > { %v1330_v25 = vunpack.c.l.b16 %v645_v10  ;;  %v1331_v26 = vunpack.c.l.b16 %v646_v11  ;;  %v1332_v27 = vunpack.c.l.b16 %v647_v61  ;;  %v1333_v28 = vunpack.c.l.b16 %v648_v12 }
  0x8c   : > { %v1334_v29 = vunpack.c.l.b16 %v649_v13  ;;  %v1335_v3 = vunpack.c.l.b16 %v650_v14  ;;  %v1336_v32 = vunpack.c.l.b16 %v651_v15  ;;  %v1337_v33 = vunpack.c.l.b16 %v652_v16 }
  0x8d   : > { %v1338_v21 = vunpack.c.l.b16 %v653_v17  ;;  %v1339_v34 = vunpack.c.l.b16 %v654_v2  ;;  %v1340_v35 = vunpack.c.l.b16 %v655_v18  ;;  %v1341_v36 = vunpack.c.l.b16 %v656_v19  ;;  %v8001_v2 = vld [vmem:[%s10246_s1 + $0xc0] sm:$0xff] }
  0x8e   : > { %v1402_v37 = vrot.slane %v1327_v23, 7  ;;  %v1404_v38 = vrot.slane %v1328_v24, 6  ;;  %v1406_v42 = vrot.slane %v1329_v8, 5  ;;  %v1408_v43 = vrot.slane %v1330_v25, 4  ;;  %2624 = vmatpush.bf16.msrb.mxu3 %v8002_v60 }
  0x8f   : > { %v1410_v44 = vrot.slane %v1331_v26, 3  ;;  %v1412_v45 = vrot.slane %v1332_v27, 2  ;;  %v1414_v47 = vrot.slane %v1333_v28, 1  ;;  %v1416_v48 = vrot.slane %v1335_v3, 7  ;;  %v8009_v27 = vld [vmem:[%s10246_s1 + $0x100] sm:$0xff] }
  0x90   : > { %v1403_v46 = vsel %vm1043_vm0, %v1402_v37, %v1326_v20  ;;  %v1418_v40 = vrot.slane %v1336_v32, 6  ;;  %v1420_v51 = vrot.slane %v1337_v33, 5  ;;  %v1422_v52 = vrot.slane %v1338_v21, 4  ;;  %v8826_v28 = vld [vmem:[%s8403_s30] sm:$0xff]  ;;  %3167 = vmatpush.bf16.msrb.mxu0 %v8009_v27 }
  0x91   : > { %v1405_v50 = vsel %vm1046_vm1, %v1404_v38, %v1403_v46  ;;  %v1424_v53 = vrot.slane %v1339_v34, 3  ;;  %v1417_v57 = vsel %vm1043_vm0, %v1416_v48, %v1334_v29  ;;  %v1426_v58 = vrot.slane %v1340_v35, 2  ;;  %v8831_v32 = vld [vmem:[%s8403_s30 + $0x20] sm:$0xff]  ;;  %465 = vst [vmem:[#allocation2 + $0x19] sm:$0xff] %v8826_v28 }
  0x92   : > { %v1407_v55 = vsel %vm1049_vm2, %v1406_v42, %v1405_v50  ;;  %v1428_v59 = vrot.slane %v1341_v36, 1  ;;  %v1419_v0 = vsel %vm1046_vm1, %v1418_v40, %v1417_v57  ;;  %v1615_v4 = vrot.slane %v8788_v49, 2  ;;  %2625 = vmatpush.bf16.msrb.mxu3 %v8001_v2  ;;  %469 = vst [vmem:[#allocation2 + $0x49] sm:$0xff] %v8831_v32 }
  0x93   : > { %v1409_v63 = vsel %vm1052_vm3, %v1408_v43, %v1407_v55  ;;  %v1616_v5 = vrot.slane %v8788_v49, 4  ;;  %v1421_v6 = vsel %vm1049_vm2, %v1420_v51, %v1419_v0  ;;  %v1617_v9 = vrot.slane %v8788_v49, 6 }
  0x94   : > { %v1411_v56 = vsel %vm1055_vm4, %v1410_v44, %v1409_v63  ;;  %v1618_v10 = vrot.slane %v8791_v54, 2  ;;  %v1423_v61 = vsel %vm1052_vm3, %v1422_v52, %v1421_v6  ;;  %v1619_v12 = vrot.slane %v8791_v54, 4 }
  0x95   : > { %v1413_v11 = vsel %vm1058_vm5, %v1412_v45, %v1411_v56  ;;  %v1620_v13 = vrot.slane %v8791_v54, 6  ;;  %v1425_v15 = vsel %vm1055_vm4, %v1424_v53, %v1423_v61  ;;  %v1621_v16 = vrot.slane %v1577_v1, 2  ;;  %v8835_v45 = vld [vmem:[%s8403_s30 + $0x8] sm:$0xff] }
  0x96   : > { %v1415_v14 = vsel %vm1061_vm6, %v1414_v47, %v1413_v11  ;;  %v1622_v17 = vrot.slane %v1577_v1, 4  ;;  %v1427_v18 = vsel %vm1058_vm5, %v1426_v58, %v1425_v15  ;;  %v1623_v19 = vrot.slane %v1577_v1, 6  ;;  %466 = vst [vmem:[#allocation2 + $0x21] sm:$0xff] %v8835_v45 }
  0x97   : > { %v1624_v20 = vrot.slane %v1578_v7, 2  ;;  %v1625_v23 = vrot.slane %v1578_v7, 4  ;;  %v1429_v24 = vsel %vm1061_vm6, %v1428_v59, %v1427_v18  ;;  %v1626_v8 = vrot.slane %v1578_v7, 6 }
  0x98   : > { %v1715_v25 = vpack.c.bf16 %v8788_v49, %v8788_v49  ;;  %v1716_v26 = vpack.c.bf16 %v1615_v4, %v1615_v4  ;;  %v1487_v29 = vpack.c.b16 %v1429_v24, %v1415_v14  ;;  %v1717_v3 = vpack.c.bf16 %v1616_v5, %v1616_v5 }
  0x99   : > { %v1718_v30 = vpack.c.bf16 %v1617_v9, %v1617_v9  ;;  %v1719_v31 = vpack.c.bf16 %v8791_v54, %v8791_v54  ;;  %v1720_v33 = vpack.c.bf16 %v1618_v10, %v1618_v10  ;;  %v1721_v21 = vpack.c.bf16 %v1619_v12, %v1619_v12  ;;  %v505_v9 = vld [vmem:[#allocation2 + $0xc0] sm:$0xff] }
  0x9a   : > { %v1722_v34 = vpack.c.bf16 %v1620_v13, %v1620_v13  ;;  %v1723_v35 = vpack.c.bf16 %v1577_v1, %v1577_v1  ;;  %1555 = vmatmul.bf16.gmra.mxu1 %v1487_v29  ;;  %v1724_v36 = vpack.c.bf16 %v1621_v16, %v1621_v16  ;;  %v1725_v37 = vpack.c.bf16 %v1622_v17, %v1622_v17  ;;  %v506_v17 = vld [vmem:[#allocation2 + $0xc8] sm:$0xff] }
  0x9b   : > { %v1726_v38 = vpack.c.bf16 %v1623_v19, %v1623_v19  ;;  %v1727_v39 = vpack.c.bf16 %v1578_v7, %v1578_v7  ;;  %v1728_v41 = vpack.c.bf16 %v1624_v20, %v1624_v20  ;;  %v1729_v42 = vpack.c.bf16 %v1625_v23, %v1625_v23  ;;  %v507_v20 = vld [vmem:[#allocation2 + $0xf0] sm:$0xff] }
  0x9c   : > { %v1730_v43 = vpack.c.bf16 %v1626_v8, %v1626_v8  ;;  %v1860_v44 = vunpack.c.l.b16 %v1715_v25  ;;  %v1861_v46 = vunpack.c.l.b16 %v1716_v26  ;;  %v1862_v47 = vunpack.c.l.b16 %v1717_v3  ;;  %v508_v25 = vld [vmem:[#allocation2 + $0xf8] sm:$0xff] }
  0x9d   : > { %v1863_v48 = vunpack.c.l.b16 %v1718_v30  ;;  %v1864_v40 = vunpack.c.l.b16 %v1719_v31  ;;  %v1865_v49 = vunpack.c.l.b16 %v1720_v33  ;;  %v1866_v50 = vunpack.c.l.b16 %v1721_v21 }
  0x9e   : > { %v1867_v51 = vunpack.c.l.b16 %v1722_v34  ;;  %v1868_v52 = vunpack.c.l.b16 %v1723_v35  ;;  %v1869_v53 = vunpack.c.l.b16 %v1724_v36  ;;  %v1870_v54 = vunpack.c.l.b16 %v1725_v37 }
  0x9f   : > { %v1871_v55 = vunpack.c.l.b16 %v1726_v38  ;;  %v1872_v57 = vunpack.c.l.b16 %v1727_v39  ;;  %v1873_v58 = vunpack.c.l.b16 %v1728_v41  ;;  %v1874_v59 = vunpack.c.l.b16 %v1729_v42 }
  0xa0   : > { %v1875_v60 = vunpack.c.l.b16 %v1730_v43  ;;  %v1936_v62 = vrot.slane %v1861_v46, 7  ;;  %v1938_v63 = vrot.slane %v1862_v47, 6  ;;  %v1940_v0 = vrot.slane %v1863_v48, 5 }
  0xa1   : > { %v1942_v1 = vrot.slane %v1864_v40, 4  ;;  %v1944_v4 = vrot.slane %v1865_v49, 3  ;;  %v1946_v56 = vrot.slane %v1866_v50, 2  ;;  %v1948_v6 = vrot.slane %v1867_v51, 1 }
  0xa2   : > { %v1937_v5 = vsel %vm1043_vm0, %v1936_v62, %v1860_v44  ;;  %v1950_v7 = vrot.slane %v1869_v53, 7  ;;  %v1952_v11 = vrot.slane %v1870_v54, 6  ;;  %v1954_v61 = vrot.slane %v1871_v55, 5 }
  0xa3   : > { %v1939_v10 = vsel %vm1046_vm1, %v1938_v63, %v1937_v5  ;;  %v1956_v12 = vrot.slane %v1872_v57, 4  ;;  %v1958_v15 = vrot.slane %v1873_v58, 3  ;;  %v1960_v16 = vrot.slane %v1874_v59, 2 }
  0xa4   : > { %v1941_v13 = vsel %vm1049_vm2, %v1940_v0, %v1939_v10  ;;  %v1951_v14 = vsel %vm1043_vm0, %v1950_v7, %v1868_v52  ;;  %v1962_v19 = vrot.slane %v1875_v60, 1  ;;  %v553_v23 = vrot.slane %v505_v9, 2 }
  0xa5   : > { %v1943_v2 = vsel %vm1052_vm3, %v1942_v1, %v1941_v13  ;;  %v1953_v18 = vsel %vm1046_vm1, %v1952_v11, %v1951_v14  ;;  %v554_v26 = vrot.slane %v505_v9, 4  ;;  %v555_v27 = vrot.slane %v505_v9, 6 }
  0xa6   : > { %v1945_v24 = vsel %vm1055_vm4, %v1944_v4, %v1943_v2  ;;  %v1955_v8 = vsel %vm1049_vm2, %v1954_v61, %v1953_v18  ;;  %v556_v30 = vrot.slane %v506_v17, 2  ;;  %v557_v31 = vrot.slane %v506_v17, 4 }
  0xa7   : > { %v1947_v29 = vsel %vm1058_vm5, %v1946_v56, %v1945_v24  ;;  %v1957_v3 = vsel %vm1052_vm3, %v1956_v12, %v1955_v8  ;;  %v558_v34 = vrot.slane %v506_v17, 6  ;;  %v559_v35 = vrot.slane %v507_v20, 2  ;;  %v1579_v8 = vld [vmem:[#allocation2 + $0xc2] sm:$0xff] }
  0xa8   : > { %v1949_v33 = vsel %vm1061_vm6, %v1948_v6, %v1947_v29  ;;  %v1959_v21 = vsel %vm1055_vm4, %v1958_v15, %v1957_v3  ;;  %v560_v37 = vrot.slane %v507_v20, 4  ;;  %v561_v38 = vrot.slane %v507_v20, 6 }
  0xa9   : > { %v1961_v36 = vsel %vm1058_vm5, %v1960_v16, %v1959_v21  ;;  %v562_v39 = vrot.slane %v508_v25, 2  ;;  %v563_v42 = vrot.slane %v508_v25, 4  ;;  %v564_v43 = vrot.slane %v508_v25, 6  ;;  %v1580_v21 = vld [vmem:[#allocation2 + $0xca] sm:$0xff] }
  0xaa   : > { %v1963_v41 = vsel %vm1061_vm6, %v1962_v19, %v1961_v36  ;;  %v657_v44 = vpack.c.bf16 %v505_v9, %v505_v9  ;;  %v658_v47 = vpack.c.bf16 %v553_v23, %v553_v23  ;;  %v659_v48 = vpack.c.bf16 %v554_v26, %v554_v26 }
  0xab   : > { %v2021_v46 = vpack.c.b16 %v1963_v41, %v1949_v33  ;;  %v660_v40 = vpack.c.bf16 %v555_v27, %v555_v27  ;;  %v661_v49 = vpack.c.bf16 %v506_v17, %v506_v17  ;;  %v662_v50 = vpack.c.bf16 %v556_v30, %v556_v30 }
  0xac   : > { %v663_v51 = vpack.c.bf16 %v557_v31, %v557_v31  ;;  %v664_v52 = vpack.c.bf16 %v558_v34, %v558_v34  ;;  %v665_v53 = vpack.c.bf16 %v507_v20, %v507_v20  ;;  %v666_v54 = vpack.c.bf16 %v559_v35, %v559_v35 }
  0xad   : > { %2089 = vmatmul.bf16.gmra.mxu2 %v2021_v46  ;;  %v667_v55 = vpack.c.bf16 %v560_v37, %v560_v37  ;;  %v668_v57 = vpack.c.bf16 %v561_v38, %v561_v38  ;;  %v669_v58 = vpack.c.bf16 %v508_v25, %v508_v25  ;;  %v670_v59 = vpack.c.bf16 %v562_v39, %v562_v39  ;;  %v1581_v37 = vld [vmem:[#allocation2 + $0xf2] sm:$0xff] }
  0xae   : > { %v671_v60 = vpack.c.bf16 %v563_v42, %v563_v42  ;;  %v672_v62 = vpack.c.bf16 %v564_v43, %v564_v43  ;;  %v1342_v63 = vunpack.c.l.b16 %v657_v44  ;;  %v1343_v0 = vunpack.c.l.b16 %v658_v47  ;;  %v1582_v47 = vld [vmem:[#allocation2 + $0xfa] sm:$0xff] }
  0xaf   : > { %v1344_v1 = vunpack.c.l.b16 %v659_v48  ;;  %v1345_v4 = vunpack.c.l.b16 %v660_v40  ;;  %v1346_v5 = vunpack.c.l.b16 %v661_v49  ;;  %v1347_v56 = vunpack.c.l.b16 %v662_v50 }
  0xb0   : > { %v1348_v6 = vunpack.c.l.b16 %v663_v51  ;;  %v1349_v7 = vunpack.c.l.b16 %v664_v52  ;;  %v1350_v9 = vunpack.c.l.b16 %v665_v53  ;;  %v1351_v10 = vunpack.c.l.b16 %v666_v54 }
  0xb1   : > { %v1352_v11 = vunpack.c.l.b16 %v667_v55  ;;  %v1353_v61 = vunpack.c.l.b16 %v668_v57  ;;  %v1354_v12 = vunpack.c.l.b16 %v669_v58  ;;  %v1355_v13 = vunpack.c.l.b16 %v670_v59 }
  0xb2   : > { %v1356_v14 = vunpack.c.l.b16 %v671_v60  ;;  %v1357_v15 = vunpack.c.l.b16 %v672_v62  ;;  %v1430_v16 = vrot.slane %v1343_v0, 7  ;;  %v1432_v17 = vrot.slane %v1344_v1, 6 }
  0xb3   : > { %v1434_v2 = vrot.slane %v1345_v4, 5  ;;  %v1436_v18 = vrot.slane %v1346_v5, 4  ;;  %v1438_v19 = vrot.slane %v1347_v56, 3  ;;  %v1440_v20 = vrot.slane %v1348_v6, 2 }
  0xb4   : > { %v1442_v23 = vrot.slane %v1349_v7, 1  ;;  %v1444_v24 = vrot.slane %v1351_v10, 7  ;;  %v1431_v25 = vsel %vm1043_vm0, %v1430_v16, %v1342_v63  ;;  %v1446_v26 = vrot.slane %v1352_v11, 6 }
  0xb5   : > { %v1448_v27 = vrot.slane %v1353_v61, 5  ;;  %v1450_v29 = vrot.slane %v1354_v12, 4  ;;  %v1433_v3 = vsel %vm1046_vm1, %v1432_v17, %v1431_v25  ;;  %v1452_v31 = vrot.slane %v1355_v13, 3 }
  0xb6   : > { %v1445_v30 = vsel %vm1043_vm0, %v1444_v24, %v1350_v9  ;;  %v1454_v33 = vrot.slane %v1356_v14, 2  ;;  %v1435_v34 = vsel %vm1049_vm2, %v1434_v2, %v1433_v3  ;;  %v1456_v36 = vrot.slane %v1357_v15, 1 }
  0xb7   : > { %v1447_v35 = vsel %vm1046_vm1, %v1446_v26, %v1445_v30  ;;  %v1627_v38 = vrot.slane %v1579_v8, 2  ;;  %v1437_v39 = vsel %vm1052_vm3, %v1436_v18, %v1435_v34  ;;  %v1628_v42 = vrot.slane %v1579_v8, 4 }
  0xb8   : > { %v1449_v41 = vsel %vm1049_vm2, %v1448_v27, %v1447_v35  ;;  %v1629_v43 = vrot.slane %v1579_v8, 6  ;;  %v1439_v44 = vsel %vm1055_vm4, %v1438_v19, %v1437_v39  ;;  %v1630_v48 = vrot.slane %v1580_v21, 2 }
  0xb9   : > { %v1451_v46 = vsel %vm1052_vm3, %v1450_v29, %v1449_v41  ;;  %v1631_v40 = vrot.slane %v1580_v21, 4  ;;  %v1441_v49 = vsel %vm1058_vm5, %v1440_v20, %v1439_v44  ;;  %v1632_v51 = vrot.slane %v1580_v21, 6  ;;  %v2113_v41 = vld [vmem:[#allocation2 + $0x18] sm:$0xff] }
  0xba   : > { %v1453_v50 = vsel %vm1055_vm4, %v1452_v31, %v1451_v46  ;;  %v1633_v52 = vrot.slane %v1581_v37, 2  ;;  %v1443_v53 = vsel %vm1061_vm6, %v1442_v23, %v1441_v49  ;;  %v1634_v55 = vrot.slane %v1581_v37, 4 }
  0xbb   : > { %v1455_v54 = vsel %vm1058_vm5, %v1454_v33, %v1453_v50  ;;  %v1635_v57 = vrot.slane %v1581_v37, 6  ;;  %v1636_v59 = vrot.slane %v1582_v47, 2  ;;  %v1637_v60 = vrot.slane %v1582_v47, 4  ;;  %v2114_v50 = vld [vmem:[#allocation2 + $0x20] sm:$0xff] }
  0xbc   : > { %v1457_v58 = vsel %vm1061_vm6, %v1456_v36, %v1455_v54  ;;  %v1638_v62 = vrot.slane %v1582_v47, 6  ;;  %v1731_v0 = vpack.c.bf16 %v1579_v8, %v1579_v8  ;;  %v1732_v1 = vpack.c.bf16 %v1627_v38, %v1627_v38  ;;  %v2115_v54 = vld [vmem:[#allocation2 + $0x48] sm:$0xff] }
  0xbd   : > { %v1488_v63 = vpack.c.b16 %v1457_v58, %v1443_v53  ;;  %v1733_v4 = vpack.c.bf16 %v1628_v42, %v1628_v42  ;;  %v1734_v5 = vpack.c.bf16 %v1629_v43, %v1629_v43  ;;  %v1735_v56 = vpack.c.bf16 %v1580_v21, %v1580_v21 }
  0xbe   : > { %v1736_v6 = vpack.c.bf16 %v1630_v48, %v1630_v48  ;;  %v1737_v7 = vpack.c.bf16 %v1631_v40, %v1631_v40  ;;  %v1738_v9 = vpack.c.bf16 %v1632_v51, %v1632_v51  ;;  %v1739_v10 = vpack.c.bf16 %v1581_v37, %v1581_v37 }
  0xbf   : > { %1560 = vmatmul.bf16.gmra.mxu1 %v1488_v63  ;;  %v1740_v11 = vpack.c.bf16 %v1633_v52, %v1633_v52  ;;  %v1741_v61 = vpack.c.bf16 %v1634_v55, %v1634_v55  ;;  %v1742_v12 = vpack.c.bf16 %v1635_v57, %v1635_v57  ;;  %v1743_v13 = vpack.c.bf16 %v1582_v47, %v1582_v47 }
  0xc0   : > { %v1744_v14 = vpack.c.bf16 %v1636_v59, %v1636_v59  ;;  %v1745_v15 = vpack.c.bf16 %v1637_v60, %v1637_v60  ;;  %v1746_v16 = vpack.c.bf16 %v1638_v62, %v1638_v62  ;;  %v1876_v17 = vunpack.c.l.b16 %v1731_v0  ;;  %v2116_v0 = vld [vmem:[#allocation2 + $0x50] sm:$0xff] }
  0xc1   : > { %v1877_v2 = vunpack.c.l.b16 %v1732_v1  ;;  %v1878_v18 = vunpack.c.l.b16 %v1733_v4  ;;  %v1879_v19 = vunpack.c.l.b16 %v1734_v5  ;;  %v1880_v20 = vunpack.c.l.b16 %v1735_v56 }
  0xc2   : > { %v1881_v23 = vunpack.c.l.b16 %v1736_v6  ;;  %v1882_v24 = vunpack.c.l.b16 %v1737_v7  ;;  %v1883_v8 = vunpack.c.l.b16 %v1738_v9  ;;  %v1884_v25 = vunpack.c.l.b16 %v1739_v10 }
  0xc3   : > { %v1885_v26 = vunpack.c.l.b16 %v1740_v11  ;;  %v1886_v27 = vunpack.c.l.b16 %v1741_v61  ;;  %v1887_v29 = vunpack.c.l.b16 %v1742_v12  ;;  %v1888_v3 = vunpack.c.l.b16 %v1743_v13 }
  0xc4   : > { %v1889_v30 = vunpack.c.l.b16 %v1744_v14  ;;  %v1890_v31 = vunpack.c.l.b16 %v1745_v15  ;;  %v1891_v33 = vunpack.c.l.b16 %v1746_v16  ;;  %v1964_v21 = vrot.slane %v1877_v2, 7 }
  0xc5   : > { %v1966_v34 = vrot.slane %v1878_v18, 6  ;;  %v1968_v35 = vrot.slane %v1879_v19, 5  ;;  %v1970_v36 = vrot.slane %v1880_v20, 4  ;;  %v1972_v37 = vrot.slane %v1881_v23, 3 }
  0xc6   : > { %v1974_v38 = vrot.slane %v1882_v24, 2  ;;  %v1976_v39 = vrot.slane %v1883_v8, 1  ;;  %v1965_v42 = vsel %vm1043_vm0, %v1964_v21, %v1876_v17  ;;  %v1978_v43 = vrot.slane %v1885_v26, 7 }
  0xc7   : > { %v1980_v44 = vrot.slane %v1886_v27, 6  ;;  %v1982_v46 = vrot.slane %v1887_v29, 5  ;;  %v1967_v47 = vsel %vm1046_vm1, %v1966_v34, %v1965_v42  ;;  %v1984_v48 = vrot.slane %v1888_v3, 4 }
  0xc8   : > { %v1986_v40 = vrot.slane %v1889_v30, 3  ;;  %v1988_v49 = vrot.slane %v1890_v31, 2  ;;  %v1969_v51 = vsel %vm1049_vm2, %v1968_v35, %v1967_v47  ;;  %v1979_v52 = vsel %vm1043_vm0, %v1978_v43, %v1884_v25 }
  0xc9   : > { %v1990_v53 = vrot.slane %v1891_v33, 1  ;;  %v2145_v55 = vrot.slane %v2113_v41, 2  ;;  %v1971_v57 = vsel %vm1052_vm3, %v1970_v36, %v1969_v51  ;;  %v1981_v58 = vsel %vm1046_vm1, %v1980_v44, %v1979_v52  ;;  %v8031_v51 = vld [vmem:[%s10246_s1 + $0x1b0] sm:$0xff] }
  0xca   : > { %v2146_v59 = vrot.slane %v2113_v41, 4  ;;  %v2147_v60 = vrot.slane %v2113_v41, 6  ;;  %v1973_v62 = vsel %vm1055_vm4, %v1972_v37, %v1971_v57  ;;  %v1983_v63 = vsel %vm1049_vm2, %v1982_v46, %v1981_v58  ;;  %v8024_v46 = vld [vmem:[%s10246_s1 + $0x178] sm:$0xff]  ;;  %v8023_v57 = vld [vmem:[%s10246_s1 + $0x170] sm:$0xff]  ;;  %4246 = vmatpush.bf16.msrb.mxu2 %v8031_v51 }
  0xcb   : > { %v2148_v1 = vrot.slane %v2114_v50, 2  ;;  %v2149_v4 = vrot.slane %v2114_v50, 4  ;;  %v1975_v5 = vsel %vm1058_vm5, %v1974_v38, %v1973_v62  ;;  %v1985_v56 = vsel %vm1052_vm3, %v1984_v48, %v1983_v63  ;;  %3702 = vmatpush.bf16.msrb.mxu1 %v8024_v46  ;;  %v8048_v58 = vld [vmem:[%s10246_s1 + $0x238] sm:$0xff] }
  0xcc   : > { %v2150_v6 = vrot.slane %v2114_v50, 6  ;;  %v2151_v7 = vrot.slane %v2115_v54, 2  ;;  %v1977_v9 = vsel %vm1061_vm6, %v1976_v39, %v1975_v5  ;;  %v1987_v10 = vsel %vm1055_vm4, %v1986_v40, %v1985_v56  ;;  %5329 = vmatpush.bf16.msra.mxu0 %v8048_v58 }
  0xcd   : > { %v2152_v11 = vrot.slane %v2115_v54, 4  ;;  %v2153_v61 = vrot.slane %v2115_v54, 6  ;;  %v1989_v12 = vsel %vm1058_vm5, %v1988_v49, %v1987_v10  ;;  %v2154_v13 = vrot.slane %v2116_v0, 2 }
  0xce   : > { %v2155_v14 = vrot.slane %v2116_v0, 4  ;;  %v2156_v15 = vrot.slane %v2116_v0, 6  ;;  %v1991_v16 = vsel %vm1061_vm6, %v1990_v53, %v1989_v12  ;;  %v2241_v17 = vpack.c.bf16 %v2113_v41, %v2113_v41 }
  0xcf   : > { %v2242_v2 = vpack.c.bf16 %v2145_v55, %v2145_v55  ;;  %v2243_v18 = vpack.c.bf16 %v2146_v59, %v2146_v59  ;;  %v2022_v19 = vpack.c.b16 %v1991_v16, %v1977_v9  ;;  %v2244_v20 = vpack.c.bf16 %v2147_v60, %v2147_v60  ;;  %3703 = vmatpush.bf16.msrb.mxu1 %v8023_v57 }
  0xd0   : > { %v2245_v23 = vpack.c.bf16 %v2114_v50, %v2114_v50  ;;  %v2246_v24 = vpack.c.bf16 %v2148_v1, %v2148_v1  ;;  %v2247_v8 = vpack.c.bf16 %v2149_v4, %v2149_v4  ;;  %v2248_v25 = vpack.c.bf16 %v2150_v6, %v2150_v6  ;;  %v8040_v50 = vld [vmem:[%s10246_s1 + $0x1f8] sm:$0xff]  ;;  %v8030_v1 = vld [vmem:[%s10246_s1 + $0x1a8] sm:$0xff] }
  0xd1   : > { %v2249_v26 = vpack.c.bf16 %v2115_v54, %v2115_v54  ;;  %v2250_v27 = vpack.c.bf16 %v2151_v7, %v2151_v7  ;;  %2094 = vmatmul.bf16.gmra.mxu2 %v2022_v19  ;;  %v2251_v29 = vpack.c.bf16 %v2152_v11, %v2152_v11  ;;  %v2252_v3 = vpack.c.bf16 %v2153_v61, %v2153_v61  ;;  %v8029_v19 = vld [vmem:[%s10246_s1 + $0x1a0] sm:$0xff] }
  0xd2   : > { %v2253_v30 = vpack.c.bf16 %v2116_v0, %v2116_v0  ;;  %v2254_v31 = vpack.c.bf16 %v2154_v13, %v2154_v13  ;;  %v2255_v33 = vpack.c.bf16 %v2155_v14, %v2155_v14  ;;  %v2256_v21 = vpack.c.bf16 %v2156_v15, %v2156_v15  ;;  %4787 = vmatpush.bf16.msra.mxu3 %v8040_v50  ;;  %v8039_v0 = vld [vmem:[%s10246_s1 + $0x1f0] sm:$0xff]  ;;  %v8022_v15 = vld [vmem:[%s10246_s1 + $0x168] sm:$0xff] }
  0xd3   : > { %v2386_v34 = vunpack.c.l.b16 %v2241_v17  ;;  %v2387_v35 = vunpack.c.l.b16 %v2242_v2  ;;  %v2388_v36 = vunpack.c.l.b16 %v2243_v18  ;;  %v2389_v37 = vunpack.c.l.b16 %v2244_v20  ;;  %4247 = vmatpush.bf16.msrb.mxu2 %v8030_v1  ;;  %3704 = vmatpush.bf16.msrb.mxu1 %v8022_v15 }
  0xd4   : > { %v2390_v38 = vunpack.c.l.b16 %v2245_v23  ;;  %v2391_v39 = vunpack.c.l.b16 %v2246_v24  ;;  %v2392_v41 = vunpack.c.l.b16 %v2247_v8  ;;  %v2393_v42 = vunpack.c.l.b16 %v2248_v25 }
  0xd5   : > { %v2394_v43 = vunpack.c.l.b16 %v2249_v26  ;;  %v2395_v44 = vunpack.c.l.b16 %v2250_v27  ;;  %v2396_v47 = vunpack.c.l.b16 %v2251_v29  ;;  %v2397_v48 = vunpack.c.l.b16 %v2252_v3 }
  0xd6   : > { %v2398_v40 = vunpack.c.l.b16 %v2253_v30  ;;  %v2399_v49 = vunpack.c.l.b16 %v2254_v31  ;;  %v2400_v52 = vunpack.c.l.b16 %v2255_v33  ;;  %v2401_v53 = vunpack.c.l.b16 %v2256_v21  ;;  %4788 = vmatpush.bf16.msra.mxu3 %v8039_v0  ;;  %v8021_v21 = vld [vmem:[%s10246_s1 + $0x160] sm:$0xff] }
  0xd7   : > { %v2450_v54 = vrot.slane %v2387_v35, 7  ;;  %v2452_v55 = vrot.slane %v2388_v36, 6  ;;  %v2454_v59 = vrot.slane %v2389_v37, 5  ;;  %v2456_v60 = vrot.slane %v2390_v38, 4  ;;  %4248 = vmatpush.bf16.msrb.mxu2 %v8029_v19  ;;  %3705 = vmatpush.bf16.msrb.mxu1 %v8021_v21 }
  0xd8   : > { %v2458_v62 = vrot.slane %v2391_v39, 3  ;;  %v2460_v63 = vrot.slane %v2392_v41, 2  ;;  %v2462_v5 = vrot.slane %v2393_v42, 1  ;;  %v2464_v56 = vrot.slane %v2395_v44, 7 }
  0xd9   : > { %v2451_v4 = vsel %vm1043_vm0, %v2450_v54, %v2386_v34  ;;  %v2466_v6 = vrot.slane %v2396_v47, 6  ;;  %v2468_v9 = vrot.slane %v2397_v48, 5  ;;  %v2470_v10 = vrot.slane %v2398_v40, 4  ;;  %v8949_v40 = vld [vmem:[%s8403_s30 + $0x60] sm:$0xff] }
  0xda   : > { %v2453_v7 = vsel %vm1046_vm1, %v2452_v55, %v2451_v4  ;;  %v2472_v11 = vrot.slane %v2399_v49, 3  ;;  %v2465_v12 = vsel %vm1043_vm0, %v2464_v56, %v2394_v43  ;;  %v2474_v13 = vrot.slane %v2400_v52, 2  ;;  %v8944_v43 = vld [vmem:[%s8403_s30 + $0x40] sm:$0xff]  ;;  %477 = vst [vmem:[#allocation2 + $0xa9] sm:$0xff] %v8949_v40 }
  0xdb   : > { %v2455_v61 = vsel %vm1049_vm2, %v2454_v59, %v2453_v7  ;;  %v2476_v14 = vrot.slane %v2401_v53, 1  ;;  %v2467_v17 = vsel %vm1046_vm1, %v2466_v6, %v2465_v12  ;;  %v2687_v2 = vrot.slane %v8826_v28, 2  ;;  %473 = vst [vmem:[#allocation2 + $0x79] sm:$0xff] %v8944_v43 }
  0xdc   : > { %v2457_v16 = vsel %vm1052_vm3, %v2456_v60, %v2455_v61  ;;  %v2688_v18 = vrot.slane %v8826_v28, 4  ;;  %v2469_v23 = vsel %vm1049_vm2, %v2468_v9, %v2467_v17  ;;  %v2689_v24 = vrot.slane %v8826_v28, 6  ;;  %v8957_v60 = vld [vmem:[%s8403_s30 + $0x48] sm:$0xff] }
  0xdd   : > { %v2459_v20 = vsel %vm1055_vm4, %v2458_v62, %v2457_v16  ;;  %v2690_v8 = vrot.slane %v8835_v45, 2  ;;  %v2471_v26 = vsel %vm1052_vm3, %v2470_v10, %v2469_v23  ;;  %v2691_v27 = vrot.slane %v8835_v45, 4  ;;  %v8960_v62 = vld [vmem:[%s8403_s30 + $0x68] sm:$0xff]  ;;  %474 = vst [vmem:[#allocation2 + $0x81] sm:$0xff] %v8957_v60  ;;  %v509_v23 = vld [vmem:[#allocation2 + $0x120] sm:$0xff] }
  0xde   : > { %v2461_v25 = vsel %vm1058_vm5, %v2460_v63, %v2459_v20  ;;  %v2692_v29 = vrot.slane %v8835_v45, 6  ;;  %v2473_v30 = vsel %vm1055_vm4, %v2472_v11, %v2471_v26  ;;  %v2693_v31 = vrot.slane %v8831_v32, 2  ;;  %478 = vst [vmem:[#allocation2 + $0xb1] sm:$0xff] %v8960_v62 }
  0xdf   : > { %v2463_v3 = vsel %vm1061_vm6, %v2462_v5, %v2461_v25  ;;  %v2694_v33 = vrot.slane %v8831_v32, 4  ;;  %v2475_v34 = vsel %vm1058_vm5, %v2474_v13, %v2473_v30  ;;  %v2695_v35 = vrot.slane %v8831_v32, 6 }
  0xe0   : > { %v2696_v36 = vrot.slane %v8838_v22, 2  ;;  %v2697_v37 = vrot.slane %v8838_v22, 4  ;;  %v2477_v38 = vsel %vm1061_vm6, %v2476_v14, %v2475_v34  ;;  %v2698_v39 = vrot.slane %v8838_v22, 6 }
  0xe1   : > { %v2783_v41 = vpack.c.bf16 %v8826_v28, %v8826_v28  ;;  %v2784_v42 = vpack.c.bf16 %v2687_v2, %v2687_v2  ;;  %v2562_v44 = vpack.c.b16 %v2477_v38, %v2463_v3  ;;  %v2785_v46 = vpack.c.bf16 %v2688_v18, %v2688_v18 }
  0xe2   : > { %v2786_v47 = vpack.c.bf16 %v2689_v24, %v2689_v24  ;;  %v2787_v48 = vpack.c.bf16 %v8835_v45, %v8835_v45  ;;  %v2788_v49 = vpack.c.bf16 %v2690_v8, %v2690_v8  ;;  %v2789_v50 = vpack.c.bf16 %v2691_v27, %v2691_v27 }
  0xe3   : > { %v2790_v51 = vpack.c.bf16 %v2692_v29, %v2692_v29  ;;  %v2791_v28 = vpack.c.bf16 %v8831_v32, %v8831_v32  ;;  %2626 = vmatmul.bf16.vlgmr.msrb.gmra.mxu3 %v2562_v44  ;;  %v2792_v52 = vpack.c.bf16 %v2693_v31, %v2693_v31  ;;  %v2793_v53 = vpack.c.bf16 %v2694_v33, %v2694_v33  ;;  %v510_v31 = vld [vmem:[#allocation2 + $0x128] sm:$0xff] }
  0xe4   : > { %v2794_v54 = vpack.c.bf16 %v2695_v35, %v2695_v35  ;;  %v2795_v45 = vpack.c.bf16 %v8838_v22, %v8838_v22  ;;  %v2796_v55 = vpack.c.bf16 %v2696_v36, %v2696_v36  ;;  %v2797_v57 = vpack.c.bf16 %v2697_v37, %v2697_v37  ;;  %v511_v35 = vld [vmem:[#allocation2 + $0x150] sm:$0xff] }
  0xe5   : > { %v2798_v58 = vpack.c.bf16 %v2698_v39, %v2698_v39  ;;  %v2928_v59 = vunpack.c.l.b16 %v2783_v41  ;;  %v2929_v63 = vunpack.c.l.b16 %v2784_v42  ;;  %v2930_v32 = vunpack.c.l.b16 %v2785_v46  ;;  %v512_v39 = vld [vmem:[#allocation2 + $0x158] sm:$0xff] }
  0xe6   : > { %v2931_v0 = vunpack.c.l.b16 %v2786_v47  ;;  %v2932_v1 = vunpack.c.l.b16 %v2787_v48  ;;  %v2933_v4 = vunpack.c.l.b16 %v2788_v49  ;;  %v2934_v5 = vunpack.c.l.b16 %v2789_v50 }
  0xe7   : > { %v2935_v56 = vunpack.c.l.b16 %v2790_v51  ;;  %v2936_v22 = vunpack.c.l.b16 %v2791_v28  ;;  %v2937_v6 = vunpack.c.l.b16 %v2792_v52  ;;  %v2938_v7 = vunpack.c.l.b16 %v2793_v53 }
  0xe8   : > { %v2939_v9 = vunpack.c.l.b16 %v2794_v54  ;;  %v2940_v10 = vunpack.c.l.b16 %v2795_v45  ;;  %v2941_v11 = vunpack.c.l.b16 %v2796_v55  ;;  %v2942_v61 = vunpack.c.l.b16 %v2797_v57 }
  0xe9   : > { %v2943_v12 = vunpack.c.l.b16 %v2798_v58  ;;  %v2992_v13 = vrot.slane %v2929_v63, 7  ;;  %v2994_v14 = vrot.slane %v2930_v32, 6  ;;  %v2996_v15 = vrot.slane %v2931_v0, 5 }
  0xea   : > { %v2998_v16 = vrot.slane %v2932_v1, 4  ;;  %v3000_v17 = vrot.slane %v2933_v4, 3  ;;  %v3002_v18 = vrot.slane %v2934_v5, 2  ;;  %v3004_v19 = vrot.slane %v2935_v56, 1 }
  0xeb   : > { %v2993_v2 = vsel %vm1043_vm0, %v2992_v13, %v2928_v59  ;;  %v3006_v20 = vrot.slane %v2937_v6, 7  ;;  %v3008_v8 = vrot.slane %v2938_v7, 6  ;;  %v3010_v25 = vrot.slane %v2939_v9, 5 }
  0xec   : > { %v2995_v24 = vsel %vm1046_vm1, %v2994_v14, %v2993_v2  ;;  %v3012_v26 = vrot.slane %v2940_v10, 4  ;;  %v3014_v3 = vrot.slane %v2941_v11, 3  ;;  %v3016_v30 = vrot.slane %v2942_v61, 2 }
  0xed   : > { %v2997_v27 = vsel %vm1049_vm2, %v2996_v15, %v2995_v24  ;;  %v3007_v29 = vsel %vm1043_vm0, %v3006_v20, %v2936_v22  ;;  %v3018_v34 = vrot.slane %v2943_v12, 1  ;;  %v565_v36 = vrot.slane %v509_v23, 2 }
  0xee   : > { %v2999_v33 = vsel %vm1052_vm3, %v2998_v16, %v2997_v27  ;;  %v3009_v21 = vsel %vm1046_vm1, %v3008_v8, %v3007_v29  ;;  %v566_v41 = vrot.slane %v509_v23, 4  ;;  %v567_v42 = vrot.slane %v509_v23, 6 }
  0xef   : > { %v3001_v37 = vsel %vm1055_vm4, %v3000_v17, %v2999_v33  ;;  %v3011_v38 = vsel %vm1049_vm2, %v3010_v25, %v3009_v21  ;;  %v568_v47 = vrot.slane %v510_v31, 2  ;;  %v569_v48 = vrot.slane %v510_v31, 4 }
  0xf0   : > { %v3003_v44 = vsel %vm1058_vm5, %v3002_v18, %v3001_v37  ;;  %v3013_v46 = vsel %vm1052_vm3, %v3012_v26, %v3011_v38  ;;  %v570_v51 = vrot.slane %v510_v31, 6  ;;  %v571_v28 = vrot.slane %v511_v35, 2  ;;  %v1583_v38 = vld [vmem:[#allocation2 + $0x122] sm:$0xff] }
  0xf1   : > { %v3005_v49 = vsel %vm1061_vm6, %v3004_v19, %v3003_v44  ;;  %v3015_v50 = vsel %vm1055_vm4, %v3014_v3, %v3013_v46  ;;  %v572_v53 = vrot.slane %v511_v35, 4  ;;  %v573_v54 = vrot.slane %v511_v35, 6 }
  0xf2   : > { %v3017_v52 = vsel %vm1058_vm5, %v3016_v30, %v3015_v50  ;;  %v574_v45 = vrot.slane %v512_v39, 2  ;;  %v575_v57 = vrot.slane %v512_v39, 4  ;;  %v576_v58 = vrot.slane %v512_v39, 6  ;;  %v1584_v50 = vld [vmem:[#allocation2 + $0x12a] sm:$0xff] }
  0xf3   : > { %v3019_v55 = vsel %vm1061_vm6, %v3018_v34, %v3017_v52  ;;  %v673_v59 = vpack.c.bf16 %v509_v23, %v509_v23  ;;  %v674_v32 = vpack.c.bf16 %v565_v36, %v565_v36  ;;  %v675_v0 = vpack.c.bf16 %v566_v41, %v566_v41 }
  0xf4   : > { %v3104_v63 = vpack.c.b16 %v3019_v55, %v3005_v49  ;;  %v676_v1 = vpack.c.bf16 %v567_v42, %v567_v42  ;;  %v677_v4 = vpack.c.bf16 %v510_v31, %v510_v31  ;;  %v678_v5 = vpack.c.bf16 %v568_v47, %v568_v47 }
  0xf5   : > { %v679_v56 = vpack.c.bf16 %v569_v48, %v569_v48  ;;  %v680_v22 = vpack.c.bf16 %v570_v51, %v570_v51  ;;  %v681_v6 = vpack.c.bf16 %v511_v35, %v511_v35  ;;  %v682_v7 = vpack.c.bf16 %v571_v28, %v571_v28 }
  0xf6   : > { %3168 = vmatmul.bf16.vlgmr.msrb.gmra.mxu0 %v3104_v63  ;;  %v683_v9 = vpack.c.bf16 %v572_v53, %v572_v53  ;;  %v684_v10 = vpack.c.bf16 %v573_v54, %v573_v54  ;;  %v685_v11 = vpack.c.bf16 %v512_v39, %v512_v39  ;;  %v686_v61 = vpack.c.bf16 %v574_v45, %v574_v45  ;;  %v1585_v53 = vld [vmem:[#allocation2 + $0x152] sm:$0xff] }
  0xf7   : > { %v687_v12 = vpack.c.bf16 %v575_v57, %v575_v57  ;;  %v688_v13 = vpack.c.bf16 %v576_v58, %v576_v58  ;;  %v1358_v14 = vunpack.c.l.b16 %v673_v59  ;;  %v1359_v15 = vunpack.c.l.b16 %v674_v32  ;;  %v1586_v32 = vld [vmem:[#allocation2 + $0x15a] sm:$0xff] }
  0xf8   : > { %v1360_v16 = vunpack.c.l.b16 %v675_v0  ;;  %v1361_v17 = vunpack.c.l.b16 %v676_v1  ;;  %v1362_v2 = vunpack.c.l.b16 %v677_v4  ;;  %v1363_v18 = vunpack.c.l.b16 %v678_v5 }
  0xf9   : > { %v1364_v19 = vunpack.c.l.b16 %v679_v56  ;;  %v1365_v20 = vunpack.c.l.b16 %v680_v22  ;;  %v1366_v23 = vunpack.c.l.b16 %v681_v6  ;;  %v1367_v24 = vunpack.c.l.b16 %v682_v7 }
  0xfa   : > { %v1368_v8 = vunpack.c.l.b16 %v683_v9  ;;  %v1369_v25 = vunpack.c.l.b16 %v684_v10  ;;  %v1370_v26 = vunpack.c.l.b16 %v685_v11  ;;  %v1371_v27 = vunpack.c.l.b16 %v686_v61 }
  0xfb   : > { %v1372_v29 = vunpack.c.l.b16 %v687_v12  ;;  %v1373_v3 = vunpack.c.l.b16 %v688_v13  ;;  %v1458_v30 = vrot.slane %v1359_v15, 7  ;;  %v1460_v31 = vrot.slane %v1360_v16, 6 }
  0xfc   : > { %v1462_v33 = vrot.slane %v1361_v17, 5  ;;  %v1464_v21 = vrot.slane %v1362_v2, 4  ;;  %v1466_v34 = vrot.slane %v1363_v18, 3  ;;  %v1468_v35 = vrot.slane %v1364_v19, 2 }
  0xfd   : > { %v1470_v36 = vrot.slane %v1365_v20, 1  ;;  %v1472_v37 = vrot.slane %v1367_v24, 7  ;;  %v1459_v39 = vsel %vm1043_vm0, %v1458_v30, %v1358_v14  ;;  %v1474_v41 = vrot.slane %v1368_v8, 6 }
  0xfe   : > { %v1476_v42 = vrot.slane %v1369_v25, 5  ;;  %v1478_v44 = vrot.slane %v1370_v26, 4  ;;  %v1461_v46 = vsel %vm1046_vm1, %v1460_v31, %v1459_v39  ;;  %v1480_v48 = vrot.slane %v1371_v27, 3 }
  0xff   : > { %v1473_v47 = vsel %vm1043_vm0, %v1472_v37, %v1366_v23  ;;  %v1482_v49 = vrot.slane %v1372_v29, 2  ;;  %v1463_v51 = vsel %vm1049_vm2, %v1462_v33, %v1461_v46  ;;  %v1484_v52 = vrot.slane %v1373_v3, 1 }
 0x100   : > { %v1475_v28 = vsel %vm1046_vm1, %v1474_v41, %v1473_v47  ;;  %v1639_v54 = vrot.slane %v1583_v38, 2  ;;  %v1465_v45 = vsel %vm1052_vm3, %v1464_v21, %v1463_v51  ;;  %v1640_v57 = vrot.slane %v1583_v38, 4 }
 0x101   : > { %v1477_v55 = vsel %vm1049_vm2, %v1476_v42, %v1475_v28  ;;  %v1641_v58 = vrot.slane %v1583_v38, 6  ;;  %v1467_v59 = vsel %vm1055_vm4, %v1466_v34, %v1465_v45  ;;  %v1642_v0 = vrot.slane %v1584_v50, 2 }
 0x102   : > { %v1479_v63 = vsel %vm1052_vm3, %v1478_v44, %v1477_v55  ;;  %v1643_v1 = vrot.slane %v1584_v50, 4  ;;  %v1469_v4 = vsel %vm1058_vm5, %v1468_v35, %v1467_v59  ;;  %v1644_v56 = vrot.slane %v1584_v50, 6  ;;  %v2117_v55 = vld [vmem:[#allocation2 + $0x78] sm:$0xff] }
 0x103   : > { %v1481_v5 = vsel %vm1055_vm4, %v1480_v48, %v1479_v63  ;;  %v1645_v22 = vrot.slane %v1585_v53, 2  ;;  %v1471_v6 = vsel %vm1061_vm6, %v1470_v36, %v1469_v4  ;;  %v1646_v9 = vrot.slane %v1585_v53, 4 }
 0x104   : > { %v1483_v7 = vsel %vm1058_vm5, %v1482_v49, %v1481_v5  ;;  %v1647_v10 = vrot.slane %v1585_v53, 6  ;;  %v1648_v61 = vrot.slane %v1586_v32, 2  ;;  %v1649_v12 = vrot.slane %v1586_v32, 4  ;;  %v2118_v5 = vld [vmem:[#allocation2 + $0x80] sm:$0xff] }
 0x105   : > { %v1485_v11 = vsel %vm1061_vm6, %v1484_v52, %v1483_v7  ;;  %v1650_v13 = vrot.slane %v1586_v32, 6  ;;  %v1747_v15 = vpack.c.bf16 %v1583_v38, %v1583_v38  ;;  %v1748_v16 = vpack.c.bf16 %v1639_v54, %v1639_v54  ;;  %v2119_v7 = vld [vmem:[#allocation2 + $0xa8] sm:$0xff] }
 0x106   : > { %v1489_v14 = vpack.c.b16 %v1485_v11, %v1471_v6  ;;  %v1749_v17 = vpack.c.bf16 %v1640_v57, %v1640_v57  ;;  %v1750_v2 = vpack.c.bf16 %v1641_v58, %v1641_v58  ;;  %v1751_v18 = vpack.c.bf16 %v1584_v50, %v1584_v50 }
 0x107   : > { %v1752_v19 = vpack.c.bf16 %v1642_v0, %v1642_v0  ;;  %v1753_v20 = vpack.c.bf16 %v1643_v1, %v1643_v1  ;;  %v1754_v23 = vpack.c.bf16 %v1644_v56, %v1644_v56  ;;  %v1755_v24 = vpack.c.bf16 %v1585_v53, %v1585_v53 }
 0x108   : > { %1565 = vmatmul.bf16.gmra.mxu1 %v1489_v14  ;;  %v1756_v8 = vpack.c.bf16 %v1645_v22, %v1645_v22  ;;  %v1757_v25 = vpack.c.bf16 %v1646_v9, %v1646_v9  ;;  %v1758_v26 = vpack.c.bf16 %v1647_v10, %v1647_v10  ;;  %v1759_v27 = vpack.c.bf16 %v1586_v32, %v1586_v32 }
 0x109   : > { %v1760_v29 = vpack.c.bf16 %v1648_v61, %v1648_v61  ;;  %v1761_v3 = vpack.c.bf16 %v1649_v12, %v1649_v12  ;;  %v1762_v30 = vpack.c.bf16 %v1650_v13, %v1650_v13  ;;  %v1892_v31 = vunpack.c.l.b16 %v1747_v15  ;;  %v2120_v15 = vld [vmem:[#allocation2 + $0xb0] sm:$0xff] }
 0x10a   : > { %v1893_v33 = vunpack.c.l.b16 %v1748_v16  ;;  %v1894_v21 = vunpack.c.l.b16 %v1749_v17  ;;  %v1895_v34 = vunpack.c.l.b16 %v1750_v2  ;;  %v1896_v35 = vunpack.c.l.b16 %v1751_v18 }
 0x10b   : > { %v1897_v36 = vunpack.c.l.b16 %v1752_v19  ;;  %v1898_v37 = vunpack.c.l.b16 %v1753_v20  ;;  %v1899_v38 = vunpack.c.l.b16 %v1754_v23  ;;  %v1900_v39 = vunpack.c.l.b16 %v1755_v24  ;;  %v9004_v23 = vld [vmem:[%s8403_s30 + $0x80] sm:$0xff] }
 0x10c   : > { %v1901_v41 = vunpack.c.l.b16 %v1756_v8  ;;  %v1902_v42 = vunpack.c.l.b16 %v1757_v25  ;;  %v1903_v44 = vunpack.c.l.b16 %v1758_v26  ;;  %v1904_v46 = vunpack.c.l.b16 %v1759_v27  ;;  %v9007_v24 = vld [vmem:[%s8403_s30 + $0xa0] sm:$0xff]  ;;  %481 = vst [vmem:[#allocation2 + $0xd9] sm:$0xff] %v9004_v23 }
 0x10d   : > { %v1905_v47 = vunpack.c.l.b16 %v1760_v29  ;;  %v1906_v48 = vunpack.c.l.b16 %v1761_v3  ;;  %v1907_v49 = vunpack.c.l.b16 %v1762_v30  ;;  %v1992_v50 = vrot.slane %v1893_v33, 7  ;;  %485 = vst [vmem:[#allocation2 + $0x109] sm:$0xff] %v9007_v24 }
 0x10e   : > { %v1994_v51 = vrot.slane %v1894_v21, 6  ;;  %v1996_v28 = vrot.slane %v1895_v34, 5  ;;  %v1998_v52 = vrot.slane %v1896_v35, 4  ;;  %v2000_v53 = vrot.slane %v1897_v36, 3 }
 0x10f   : > { %v2002_v54 = vrot.slane %v1898_v37, 2  ;;  %v2004_v45 = vrot.slane %v1899_v38, 1  ;;  %v1993_v57 = vsel %vm1043_vm0, %v1992_v50, %v1892_v31  ;;  %v2006_v58 = vrot.slane %v1901_v41, 7  ;;  %v9016_v41 = vld [vmem:[%s8403_s30 + $0x88] sm:$0xff] }
 0x110   : > { %v2008_v59 = vrot.slane %v1902_v42, 6  ;;  %v2010_v63 = vrot.slane %v1903_v44, 5  ;;  %v1995_v32 = vsel %vm1046_vm1, %v1994_v51, %v1993_v57  ;;  %v2012_v0 = vrot.slane %v1904_v46, 4  ;;  %v9019_v42 = vld [vmem:[%s8403_s30 + $0xa8] sm:$0xff]  ;;  %482 = vst [vmem:[#allocation2 + $0xe1] sm:$0xff] %v9016_v41 }
 0x111   : > { %v2014_v1 = vrot.slane %v1905_v47, 3  ;;  %v2016_v4 = vrot.slane %v1906_v48, 2  ;;  %v1997_v56 = vsel %vm1049_vm2, %v1996_v28, %v1995_v32  ;;  %v2007_v22 = vsel %vm1043_vm0, %v2006_v58, %v1900_v39  ;;  %486 = vst [vmem:[#allocation2 + $0x111] sm:$0xff] %v9019_v42 }
 0x112   : > { %v2018_v6 = vrot.slane %v1907_v49, 1  ;;  %v2157_v9 = vrot.slane %v2117_v55, 2  ;;  %v1999_v10 = vsel %vm1052_vm3, %v1998_v52, %v1997_v56  ;;  %v2009_v11 = vsel %vm1046_vm1, %v2008_v59, %v2007_v22 }
 0x113   : > { %v2158_v61 = vrot.slane %v2117_v55, 4  ;;  %v2159_v12 = vrot.slane %v2117_v55, 6  ;;  %v2001_v13 = vsel %vm1055_vm4, %v2000_v53, %v1999_v10  ;;  %v2011_v14 = vsel %vm1049_vm2, %v2010_v63, %v2009_v11  ;;  %v8047_v10 = vld [vmem:[%s10246_s1 + $0x230] sm:$0xff] }
 0x114   : > { %v2160_v16 = vrot.slane %v2118_v5, 2  ;;  %v2161_v17 = vrot.slane %v2118_v5, 4  ;;  %v2003_v2 = vsel %vm1058_vm5, %v2002_v54, %v2001_v13  ;;  %v2013_v18 = vsel %vm1052_vm3, %v2012_v0, %v2011_v14  ;;  %v8019_v14 = vld [vmem:[%s10246_s1 + $0x150] sm:$0xff]  ;;  %5330 = vmatpush.bf16.msra.mxu0 %v8047_v10 }
 0x115   : > { %v2162_v19 = vrot.slane %v2118_v5, 6  ;;  %v2163_v20 = vrot.slane %v2119_v7, 2  ;;  %v2005_v8 = vsel %vm1061_vm6, %v2004_v45, %v2003_v2  ;;  %v2015_v25 = vsel %vm1055_vm4, %v2014_v1, %v2013_v18 }
 0x116   : > { %v2164_v26 = vrot.slane %v2119_v7, 4  ;;  %v2165_v27 = vrot.slane %v2119_v7, 6  ;;  %v2017_v29 = vsel %vm1058_vm5, %v2016_v4, %v2015_v25  ;;  %v2166_v3 = vrot.slane %v2120_v15, 2  ;;  %v8020_v4 = vld [vmem:[%s10246_s1 + $0x158] sm:$0xff] }
 0x117   : > { %v2167_v30 = vrot.slane %v2120_v15, 4  ;;  %v2168_v31 = vrot.slane %v2120_v15, 6  ;;  %v2019_v33 = vsel %vm1061_vm6, %v2018_v6, %v2017_v29  ;;  %v2257_v21 = vpack.c.bf16 %v2117_v55, %v2117_v55  ;;  %3706 = vmatpush.bf16.msrb.mxu1 %v8020_v4 }
 0x118   : > { %v2258_v34 = vpack.c.bf16 %v2157_v9, %v2157_v9  ;;  %v2259_v35 = vpack.c.bf16 %v2158_v61, %v2158_v61  ;;  %v2023_v36 = vpack.c.b16 %v2019_v33, %v2005_v8  ;;  %v2260_v37 = vpack.c.bf16 %v2159_v12, %v2159_v12  ;;  %v8038_v9 = vld [vmem:[%s10246_s1 + $0x1e8] sm:$0xff] }
 0x119   : > { %v2261_v38 = vpack.c.bf16 %v2118_v5, %v2118_v5  ;;  %v2262_v39 = vpack.c.bf16 %v2160_v16, %v2160_v16  ;;  %v2263_v44 = vpack.c.bf16 %v2161_v17, %v2161_v17  ;;  %v2264_v46 = vpack.c.bf16 %v2162_v19, %v2162_v19  ;;  %v8028_v5 = vld [vmem:[%s10246_s1 + $0x198] sm:$0xff]  ;;  %4789 = vmatpush.bf16.msra.mxu3 %v8038_v9  ;;  %v8037_v19 = vld [vmem:[%s10246_s1 + $0x1e0] sm:$0xff] }
 0x11a   : > { %v2265_v47 = vpack.c.bf16 %v2119_v7, %v2119_v7  ;;  %v2266_v48 = vpack.c.bf16 %v2163_v20, %v2163_v20  ;;  %2099 = vmatmul.bf16.gmra.mxu2 %v2023_v36  ;;  %v2267_v49 = vpack.c.bf16 %v2164_v26, %v2164_v26  ;;  %v2268_v50 = vpack.c.bf16 %v2165_v27, %v2165_v27  ;;  %v8046_v20 = vld [vmem:[%s10246_s1 + $0x228] sm:$0xff] }
 0x11b   : > { %v2269_v51 = vpack.c.bf16 %v2120_v15, %v2120_v15  ;;  %v2270_v28 = vpack.c.bf16 %v2166_v3, %v2166_v3  ;;  %v2271_v52 = vpack.c.bf16 %v2167_v30, %v2167_v30  ;;  %v2272_v53 = vpack.c.bf16 %v2168_v31, %v2168_v31  ;;  %4249 = vmatpush.bf16.msrb.mxu2 %v8028_v5  ;;  %v8027_v15 = vld [vmem:[%s10246_s1 + $0x190] sm:$0xff]  ;;  %v8018_v36 = vld [vmem:[%s10246_s1 + $0x148] sm:$0xff] }
 0x11c   : > { %v2402_v54 = vunpack.c.l.b16 %v2257_v21  ;;  %v2403_v45 = vunpack.c.l.b16 %v2258_v34  ;;  %v2404_v55 = vunpack.c.l.b16 %v2259_v35  ;;  %v2405_v57 = vunpack.c.l.b16 %v2260_v37  ;;  %3707 = vmatpush.bf16.msrb.mxu1 %v8019_v14  ;;  %v8026_v37 = vld [vmem:[%s10246_s1 + $0x188] sm:$0xff]  ;;  %5331 = vmatpush.bf16.msra.mxu0 %v8046_v20 }
 0x11d   : > { %v2406_v58 = vunpack.c.l.b16 %v2261_v38  ;;  %v2407_v59 = vunpack.c.l.b16 %v2262_v39  ;;  %v2408_v63 = vunpack.c.l.b16 %v2263_v44  ;;  %v2409_v32 = vunpack.c.l.b16 %v2264_v46  ;;  %4790 = vmatpush.bf16.msra.mxu3 %v8037_v19 }
 0x11e   : > { %v2410_v0 = vunpack.c.l.b16 %v2265_v47  ;;  %v2411_v1 = vunpack.c.l.b16 %v2266_v48  ;;  %v2412_v56 = vunpack.c.l.b16 %v2267_v49  ;;  %v2413_v22 = vunpack.c.l.b16 %v2268_v50 }
 0x11f   : > { %v2414_v6 = vunpack.c.l.b16 %v2269_v51  ;;  %v2415_v7 = vunpack.c.l.b16 %v2270_v28  ;;  %v2416_v11 = vunpack.c.l.b16 %v2271_v52  ;;  %v2417_v61 = vunpack.c.l.b16 %v2272_v53  ;;  %4250 = vmatpush.bf16.msrb.mxu2 %v8027_v15 }
 0x120   : > { %v2478_v12 = vrot.slane %v2403_v45, 7  ;;  %v2480_v13 = vrot.slane %v2404_v55, 6  ;;  %v2482_v16 = vrot.slane %v2405_v57, 5  ;;  %v2484_v17 = vrot.slane %v2406_v58, 4  ;;  %3708 = vmatpush.bf16.msrb.mxu1 %v8018_v36  ;;  %v8017_v58 = vld [vmem:[%s10246_s1 + $0x140] sm:$0xff] }
 0x121   : > { %v2486_v2 = vrot.slane %v2407_v59, 3  ;;  %v2488_v18 = vrot.slane %v2408_v63, 2  ;;  %v2490_v25 = vrot.slane %v2409_v32, 1  ;;  %v2492_v26 = vrot.slane %v2411_v1, 7 }
 0x122   : > { %v2479_v8 = vsel %vm1043_vm0, %v2478_v12, %v2402_v54  ;;  %v2494_v27 = vrot.slane %v2412_v56, 6  ;;  %v2496_v3 = vrot.slane %v2413_v22, 5  ;;  %v2498_v30 = vrot.slane %v2414_v6, 4  ;;  %v8025_v22 = vld [vmem:[%s10246_s1 + $0x180] sm:$0xff] }
 0x123   : > { %v2481_v29 = vsel %vm1046_vm1, %v2480_v13, %v2479_v8  ;;  %v2500_v31 = vrot.slane %v2415_v7, 3  ;;  %v2493_v21 = vsel %vm1043_vm0, %v2492_v26, %v2410_v0  ;;  %v2502_v34 = vrot.slane %v2416_v11, 2  ;;  %4251 = vmatpush.bf16.msrb.mxu2 %v8026_v37 }
 0x124   : > { %v2483_v33 = vsel %vm1049_vm2, %v2482_v16, %v2481_v29  ;;  %v2504_v35 = vrot.slane %v2417_v61, 1  ;;  %v2495_v39 = vsel %vm1046_vm1, %v2494_v27, %v2493_v21  ;;  %v2699_v44 = vrot.slane %v8944_v43, 2  ;;  %3709 = vmatpush.bf16.msrb.mxu1 %v8017_v58 }
 0x125   : > { %v2485_v38 = vsel %vm1052_vm3, %v2484_v17, %v2483_v33  ;;  %v2700_v46 = vrot.slane %v8944_v43, 4  ;;  %v2497_v48 = vsel %vm1049_vm2, %v2496_v3, %v2495_v39  ;;  %v2701_v49 = vrot.slane %v8944_v43, 6 }
 0x126   : > { %v2487_v47 = vsel %vm1055_vm4, %v2486_v2, %v2485_v38  ;;  %v2702_v50 = vrot.slane %v8957_v60, 2  ;;  %v2499_v28 = vsel %vm1052_vm3, %v2498_v30, %v2497_v48  ;;  %v2703_v52 = vrot.slane %v8957_v60, 4 }
 0x127   : > { %v2489_v51 = vsel %vm1058_vm5, %v2488_v18, %v2487_v47  ;;  %v2704_v53 = vrot.slane %v8957_v60, 6  ;;  %v2501_v45 = vsel %vm1055_vm4, %v2500_v31, %v2499_v28  ;;  %v2705_v55 = vrot.slane %v8949_v40, 2  ;;  %4252 = vmatpush.bf16.msrb.mxu2 %v8025_v22 }
 0x128   : > { %v2491_v54 = vsel %vm1061_vm6, %v2490_v25, %v2489_v51  ;;  %v2706_v57 = vrot.slane %v8949_v40, 4  ;;  %v2503_v59 = vsel %vm1058_vm5, %v2502_v34, %v2501_v45  ;;  %v2707_v63 = vrot.slane %v8949_v40, 6 }
 0x129   : > { %v2708_v32 = vrot.slane %v8960_v62, 2  ;;  %v2709_v0 = vrot.slane %v8960_v62, 4  ;;  %v2505_v1 = vsel %vm1061_vm6, %v2504_v35, %v2503_v59  ;;  %v2710_v4 = vrot.slane %v8960_v62, 6 }
 0x12a   : > { %v2799_v5 = vpack.c.bf16 %v8944_v43, %v8944_v43  ;;  %v2800_v56 = vpack.c.bf16 %v2699_v44, %v2699_v44  ;;  %v2563_v6 = vpack.c.b16 %v2505_v1, %v2491_v54  ;;  %v2801_v7 = vpack.c.bf16 %v2700_v46, %v2700_v46 }
 0x12b   : > { %v2802_v9 = vpack.c.bf16 %v2701_v49, %v2701_v49  ;;  %v2803_v10 = vpack.c.bf16 %v8957_v60, %v8957_v60  ;;  %v2804_v11 = vpack.c.bf16 %v2702_v50, %v2702_v50  ;;  %v2805_v61 = vpack.c.bf16 %v2703_v52, %v2703_v52  ;;  %v2121_v49 = vld [vmem:[#allocation2 + $0xd8] sm:$0xff] }
 0x12c   : > { %v2806_v12 = vpack.c.bf16 %v2704_v53, %v2704_v53  ;;  %v2807_v13 = vpack.c.bf16 %v8949_v40, %v8949_v40  ;;  %2631 = vmatmul.bf16.gmra.mxu3 %v2563_v6  ;;  %v2808_v43 = vpack.c.bf16 %v2705_v55, %v2705_v55  ;;  %v2809_v14 = vpack.c.bf16 %v2706_v57, %v2706_v57  ;;  %v2122_v57 = vld [vmem:[#allocation2 + $0xe0] sm:$0xff] }
 0x12d   : > { %v2810_v15 = vpack.c.bf16 %v2707_v63, %v2707_v63  ;;  %v2811_v16 = vpack.c.bf16 %v8960_v62, %v8960_v62  ;;  %v2812_v17 = vpack.c.bf16 %v2708_v32, %v2708_v32  ;;  %v2813_v2 = vpack.c.bf16 %v2709_v0, %v2709_v0  ;;  %v2123_v32 = vld [vmem:[#allocation2 + $0x108] sm:$0xff] }
 0x12e   : > { %v2814_v18 = vpack.c.bf16 %v2710_v4, %v2710_v4  ;;  %v2944_v19 = vunpack.c.l.b16 %v2799_v5  ;;  %v2945_v60 = vunpack.c.l.b16 %v2800_v56  ;;  %v2946_v20 = vunpack.c.l.b16 %v2801_v7  ;;  %v2124_v5 = vld [vmem:[#allocation2 + $0x110] sm:$0xff] }
 0x12f   : > { %v2947_v8 = vunpack.c.l.b16 %v2802_v9  ;;  %v2948_v25 = vunpack.c.l.b16 %v2803_v10  ;;  %v2949_v26 = vunpack.c.l.b16 %v2804_v11  ;;  %v2950_v27 = vunpack.c.l.b16 %v2805_v61 }
 0x130   : > { %v2951_v40 = vunpack.c.l.b16 %v2806_v12  ;;  %v2952_v29 = vunpack.c.l.b16 %v2807_v13  ;;  %v2953_v3 = vunpack.c.l.b16 %v2808_v43  ;;  %v2954_v30 = vunpack.c.l.b16 %v2809_v14 }
 0x131   : > { %v2955_v31 = vunpack.c.l.b16 %v2810_v15  ;;  %v2956_v33 = vunpack.c.l.b16 %v2811_v16  ;;  %v2957_v21 = vunpack.c.l.b16 %v2812_v17  ;;  %v2958_v34 = vunpack.c.l.b16 %v2813_v2 }
 0x132   : > { %v2959_v62 = vunpack.c.l.b16 %v2814_v18  ;;  %v3020_v35 = vrot.slane %v2945_v60, 7  ;;  %v3022_v36 = vrot.slane %v2946_v20, 6  ;;  %v3024_v37 = vrot.slane %v2947_v8, 5 }
 0x133   : > { %v3026_v38 = vrot.slane %v2948_v25, 4  ;;  %v3028_v39 = vrot.slane %v2949_v26, 3  ;;  %v3030_v46 = vrot.slane %v2950_v27, 2  ;;  %v3032_v47 = vrot.slane %v2951_v40, 1 }
 0x134   : > { %v3021_v44 = vsel %vm1043_vm0, %v3020_v35, %v2944_v19  ;;  %v3034_v48 = vrot.slane %v2953_v3, 7  ;;  %v3036_v51 = vrot.slane %v2954_v30, 6  ;;  %v3038_v28 = vrot.slane %v2955_v31, 5 }
 0x135   : > { %v3023_v50 = vsel %vm1046_vm1, %v3022_v36, %v3021_v44  ;;  %v3040_v52 = vrot.slane %v2956_v33, 4  ;;  %v3042_v45 = vrot.slane %v2957_v21, 3  ;;  %v3044_v55 = vrot.slane %v2958_v34, 2 }
 0x136   : > { %v3025_v53 = vsel %vm1049_vm2, %v3024_v37, %v3023_v50  ;;  %v3035_v54 = vsel %vm1043_vm0, %v3034_v48, %v2952_v29  ;;  %v3046_v63 = vrot.slane %v2959_v62, 1  ;;  %v2169_v0 = vrot.slane %v2121_v49, 2 }
 0x137   : > { %v3027_v58 = vsel %vm1052_vm3, %v3026_v38, %v3025_v53  ;;  %v3037_v59 = vsel %vm1046_vm1, %v3036_v51, %v3035_v54  ;;  %v2170_v56 = vrot.slane %v2121_v49, 4  ;;  %v2171_v22 = vrot.slane %v2121_v49, 6 }
 0x138   : > { %v3029_v1 = vsel %vm1055_vm4, %v3028_v39, %v3027_v58  ;;  %v3039_v4 = vsel %vm1049_vm2, %v3038_v28, %v3037_v59  ;;  %v2172_v9 = vrot.slane %v2122_v57, 2  ;;  %v2173_v10 = vrot.slane %v2122_v57, 4 }
 0x139   : > { %v3031_v6 = vsel %vm1058_vm5, %v3030_v46, %v3029_v1  ;;  %v3041_v7 = vsel %vm1052_vm3, %v3040_v52, %v3039_v4  ;;  %v2174_v12 = vrot.slane %v2122_v57, 6  ;;  %v2175_v13 = vrot.slane %v2123_v32, 2 }
 0x13a   : > { %v3033_v11 = vsel %vm1061_vm6, %v3032_v47, %v3031_v6  ;;  %v3043_v61 = vsel %vm1055_vm4, %v3042_v45, %v3041_v7  ;;  %v2176_v14 = vrot.slane %v2123_v32, 4  ;;  %v2177_v15 = vrot.slane %v2123_v32, 6 }
 0x13b   : > { %v3045_v43 = vsel %vm1058_vm5, %v3044_v55, %v3043_v61  ;;  %v2178_v16 = vrot.slane %v2124_v5, 2  ;;  %v2179_v2 = vrot.slane %v2124_v5, 4  ;;  %v2180_v18 = vrot.slane %v2124_v5, 6 }
 0x13c   : > { %v3047_v17 = vsel %vm1061_vm6, %v3046_v63, %v3045_v43  ;;  %v2273_v19 = vpack.c.bf16 %v2121_v49, %v2121_v49  ;;  %v2274_v20 = vpack.c.bf16 %v2169_v0, %v2169_v0  ;;  %v2275_v8 = vpack.c.bf16 %v2170_v56, %v2170_v56 }
 0x13d   : > { %v3105_v60 = vpack.c.b16 %v3047_v17, %v3033_v11  ;;  %v2276_v25 = vpack.c.bf16 %v2171_v22, %v2171_v22  ;;  %v2277_v26 = vpack.c.bf16 %v2122_v57, %v2122_v57  ;;  %v2278_v27 = vpack.c.bf16 %v2172_v9, %v2172_v9 }
 0x13e   : > { %v2279_v40 = vpack.c.bf16 %v2173_v10, %v2173_v10  ;;  %v2280_v29 = vpack.c.bf16 %v2174_v12, %v2174_v12  ;;  %v2281_v3 = vpack.c.bf16 %v2123_v32, %v2123_v32  ;;  %v2282_v30 = vpack.c.bf16 %v2175_v13, %v2175_v13 }
 0x13f   : > { %3173 = vmatmul.bf16.gmra.mxu0 %v3105_v60  ;;  %v2283_v31 = vpack.c.bf16 %v2176_v14, %v2176_v14  ;;  %v2284_v33 = vpack.c.bf16 %v2177_v15, %v2177_v15  ;;  %v2285_v21 = vpack.c.bf16 %v2124_v5, %v2124_v5  ;;  %v2286_v34 = vpack.c.bf16 %v2178_v16, %v2178_v16 }
 0x140   : > { %v2287_v62 = vpack.c.bf16 %v2179_v2, %v2179_v2  ;;  %v2288_v35 = vpack.c.bf16 %v2180_v18, %v2180_v18  ;;  %v2418_v36 = vunpack.c.l.b16 %v2273_v19  ;;  %v2419_v37 = vunpack.c.l.b16 %v2274_v20 }
 0x141   : > { %v2420_v38 = vunpack.c.l.b16 %v2275_v8  ;;  %v2421_v39 = vunpack.c.l.b16 %v2276_v25  ;;  %v2422_v44 = vunpack.c.l.b16 %v2277_v26  ;;  %v2423_v46 = vunpack.c.l.b16 %v2278_v27 }
 0x142   : > { %v2424_v47 = vunpack.c.l.b16 %v2279_v40  ;;  %v2425_v48 = vunpack.c.l.b16 %v2280_v29  ;;  %v2426_v49 = vunpack.c.l.b16 %v2281_v3  ;;  %v2427_v50 = vunpack.c.l.b16 %v2282_v30 }
 0x143   : > { %v2428_v51 = vunpack.c.l.b16 %v2283_v31  ;;  %v2429_v28 = vunpack.c.l.b16 %v2284_v33  ;;  %v2430_v52 = vunpack.c.l.b16 %v2285_v21  ;;  %v2431_v53 = vunpack.c.l.b16 %v2286_v34 }
 0x144   : > { %v2432_v54 = vunpack.c.l.b16 %v2287_v62  ;;  %v2433_v45 = vunpack.c.l.b16 %v2288_v35  ;;  %v2506_v55 = vrot.slane %v2419_v37, 7  ;;  %v2508_v57 = vrot.slane %v2420_v38, 6 }
 0x145   : > { %v2510_v58 = vrot.slane %v2421_v39, 5  ;;  %v2512_v59 = vrot.slane %v2422_v44, 4  ;;  %v2514_v63 = vrot.slane %v2423_v46, 3  ;;  %v2516_v32 = vrot.slane %v2424_v47, 2 }
 0x146   : > { %v2518_v0 = vrot.slane %v2425_v48, 1  ;;  %v2520_v1 = vrot.slane %v2427_v50, 7  ;;  %v2507_v4 = vsel %vm1043_vm0, %v2506_v55, %v2418_v36  ;;  %v2522_v5 = vrot.slane %v2428_v51, 6 }
 0x147   : > { %v2524_v56 = vrot.slane %v2429_v28, 5  ;;  %v2526_v22 = vrot.slane %v2430_v52, 4  ;;  %v2509_v6 = vsel %vm1046_vm1, %v2508_v57, %v2507_v4  ;;  %v2528_v9 = vrot.slane %v2431_v53, 3 }
 0x148   : > { %v2521_v7 = vsel %vm1043_vm0, %v2520_v1, %v2426_v49  ;;  %v2530_v10 = vrot.slane %v2432_v54, 2  ;;  %v2511_v11 = vsel %vm1049_vm2, %v2510_v58, %v2509_v6  ;;  %v2532_v12 = vrot.slane %v2433_v45, 1 }
 0x149   : > { %v2523_v61 = vsel %vm1046_vm1, %v2522_v5, %v2521_v7  ;;  %v2711_v13 = vrot.slane %v9004_v23, 2  ;;  %v2513_v43 = vsel %vm1052_vm3, %v2512_v59, %v2511_v11  ;;  %v2712_v15 = vrot.slane %v9004_v23, 4  ;;  %v3197_v11 = vld [vmem:[#allocation2 + $0x1a] sm:$0xff] }
 0x14a   : > { %v2525_v14 = vsel %vm1049_vm2, %v2524_v56, %v2523_v61  ;;  %v2713_v16 = vrot.slane %v9004_v23, 6  ;;  %v2515_v17 = vsel %vm1055_vm4, %v2514_v63, %v2513_v43  ;;  %v2714_v18 = vrot.slane %v9016_v41, 2 }
 0x14b   : > { %v2527_v2 = vsel %vm1052_vm3, %v2526_v22, %v2525_v14  ;;  %v2715_v19 = vrot.slane %v9016_v41, 4  ;;  %v2517_v60 = vsel %vm1058_vm5, %v2516_v32, %v2515_v17  ;;  %v2716_v8 = vrot.slane %v9016_v41, 6 }
 0x14c   : > { %v2529_v20 = vsel %vm1055_vm4, %v2528_v9, %v2527_v2  ;;  %v2717_v25 = vrot.slane %v9007_v24, 2  ;;  %v2519_v26 = vsel %vm1061_vm6, %v2518_v0, %v2517_v60  ;;  %v2718_v40 = vrot.slane %v9007_v24, 4  ;;  %v3198_v2 = vld [vmem:[#allocation2 + $0x22] sm:$0xff] }
 0x14d   : > { %v2531_v27 = vsel %vm1058_vm5, %v2530_v10, %v2529_v20  ;;  %v2719_v29 = vrot.slane %v9007_v24, 6  ;;  %v2720_v30 = vrot.slane %v9019_v42, 2  ;;  %v2721_v31 = vrot.slane %v9019_v42, 4  ;;  %v3199_v20 = vld [vmem:[#allocation2 + $0x4a] sm:$0xff] }
 0x14e   : > { %v2533_v3 = vsel %vm1061_vm6, %v2532_v12, %v2531_v27  ;;  %v2722_v33 = vrot.slane %v9019_v42, 6  ;;  %v2815_v34 = vpack.c.bf16 %v9004_v23, %v9004_v23  ;;  %v2816_v62 = vpack.c.bf16 %v2711_v13, %v2711_v13 }
 0x14f   : > { %v2564_v21 = vpack.c.b16 %v2533_v3, %v2519_v26  ;;  %v2817_v35 = vpack.c.bf16 %v2712_v15, %v2712_v15  ;;  %v2818_v36 = vpack.c.bf16 %v2713_v16, %v2713_v16  ;;  %v2819_v37 = vpack.c.bf16 %v9016_v41, %v9016_v41 }
 0x150   : > { %v2820_v38 = vpack.c.bf16 %v2714_v18, %v2714_v18  ;;  %v2821_v39 = vpack.c.bf16 %v2715_v19, %v2715_v19  ;;  %v2822_v44 = vpack.c.bf16 %v2716_v8, %v2716_v8  ;;  %v2823_v46 = vpack.c.bf16 %v9007_v24, %v9007_v24 }
 0x151   : > { %2636 = vmatmul.bf16.gmra.mxu3 %v2564_v21  ;;  %v2824_v47 = vpack.c.bf16 %v2717_v25, %v2717_v25  ;;  %v2825_v48 = vpack.c.bf16 %v2718_v40, %v2718_v40  ;;  %v2826_v49 = vpack.c.bf16 %v2719_v29, %v2719_v29  ;;  %v2827_v50 = vpack.c.bf16 %v9019_v42, %v9019_v42 }
 0x152   : > { %v2828_v23 = vpack.c.bf16 %v2720_v30, %v2720_v30  ;;  %v2829_v51 = vpack.c.bf16 %v2721_v31, %v2721_v31  ;;  %v2830_v28 = vpack.c.bf16 %v2722_v33, %v2722_v33  ;;  %v2960_v52 = vunpack.c.l.b16 %v2815_v34  ;;  %v3200_v30 = vld [vmem:[#allocation2 + $0x52] sm:$0xff] }
 0x153   : > { %v2961_v53 = vunpack.c.l.b16 %v2816_v62  ;;  %v2962_v54 = vunpack.c.l.b16 %v2817_v35  ;;  %v2963_v41 = vunpack.c.l.b16 %v2818_v36  ;;  %v2964_v45 = vunpack.c.l.b16 %v2819_v37  ;;  %v9152_v36 = vld [vmem:[%s8403_s30 + $0xc0] sm:$0xff] }
 0x154   : > { %v2965_v55 = vunpack.c.l.b16 %v2820_v38  ;;  %v2966_v57 = vunpack.c.l.b16 %v2821_v39  ;;  %v2967_v58 = vunpack.c.l.b16 %v2822_v44  ;;  %v2968_v59 = vunpack.c.l.b16 %v2823_v46  ;;  %v9155_v37 = vld [vmem:[%s8403_s30 + $0xe0] sm:$0xff]  ;;  %489 = vst [vmem:[#allocation2 + $0x139] sm:$0xff] %v9152_v36 }
 0x155   : > { %v2969_v63 = vunpack.c.l.b16 %v2824_v47  ;;  %v2970_v24 = vunpack.c.l.b16 %v2825_v48  ;;  %v2971_v32 = vunpack.c.l.b16 %v2826_v49  ;;  %v2972_v0 = vunpack.c.l.b16 %v2827_v50  ;;  %493 = vst [vmem:[#allocation2 + $0x169] sm:$0xff] %v9155_v37 }
 0x156   : > { %v2973_v1 = vunpack.c.l.b16 %v2828_v23  ;;  %v2974_v4 = vunpack.c.l.b16 %v2829_v51  ;;  %v2975_v5 = vunpack.c.l.b16 %v2830_v28  ;;  %v3048_v42 = vrot.slane %v2961_v53, 7 }
 0x157   : > { %v3050_v56 = vrot.slane %v2962_v54, 6  ;;  %v3052_v22 = vrot.slane %v2963_v41, 5  ;;  %v3054_v6 = vrot.slane %v2964_v45, 4  ;;  %v3056_v7 = vrot.slane %v2965_v55, 3  ;;  %v9164_v55 = vld [vmem:[%s8403_s30 + $0xc8] sm:$0xff] }
 0x158   : > { %v3058_v9 = vrot.slane %v2966_v57, 2  ;;  %v3060_v10 = vrot.slane %v2967_v58, 1  ;;  %v3049_v61 = vsel %vm1043_vm0, %v3048_v42, %v2960_v52  ;;  %v3062_v12 = vrot.slane %v2969_v63, 7  ;;  %v9167_v57 = vld [vmem:[%s8403_s30 + $0xe8] sm:$0xff]  ;;  %490 = vst [vmem:[#allocation2 + $0x141] sm:$0xff] %v9164_v55 }
 0x159   : > { %v3064_v13 = vrot.slane %v2970_v24, 6  ;;  %v3066_v43 = vrot.slane %v2971_v32, 5  ;;  %v3051_v14 = vsel %vm1046_vm1, %v3050_v56, %v3049_v61  ;;  %v3068_v15 = vrot.slane %v2972_v0, 4  ;;  %494 = vst [vmem:[#allocation2 + $0x171] sm:$0xff] %v9167_v57 }
 0x15a   : > { %v3070_v16 = vrot.slane %v2973_v1, 3  ;;  %v3072_v17 = vrot.slane %v2974_v4, 2  ;;  %v3053_v18 = vsel %vm1049_vm2, %v3052_v22, %v3051_v14  ;;  %v3063_v19 = vsel %vm1043_vm0, %v3062_v12, %v2968_v59 }
 0x15b   : > { %v3074_v60 = vrot.slane %v2975_v5, 1  ;;  %v3229_v8 = vrot.slane %v3197_v11, 2  ;;  %v3055_v25 = vsel %vm1052_vm3, %v3054_v6, %v3053_v18  ;;  %v3065_v26 = vsel %vm1046_vm1, %v3064_v13, %v3063_v19 }
 0x15c   : > { %v3230_v27 = vrot.slane %v3197_v11, 4  ;;  %v3231_v40 = vrot.slane %v3197_v11, 6  ;;  %v3057_v29 = vsel %vm1055_vm4, %v3056_v7, %v3055_v25  ;;  %v3067_v3 = vsel %vm1049_vm2, %v3066_v43, %v3065_v26 }
 0x15d   : > { %v3232_v31 = vrot.slane %v3198_v2, 2  ;;  %v3233_v33 = vrot.slane %v3198_v2, 4  ;;  %v3059_v21 = vsel %vm1058_vm5, %v3058_v9, %v3057_v29  ;;  %v3069_v34 = vsel %vm1052_vm3, %v3068_v15, %v3067_v3  ;;  %v8044_v29 = vld [vmem:[%s10246_s1 + $0x218] sm:$0xff] }
 0x15e   : > { %v3234_v62 = vrot.slane %v3198_v2, 6  ;;  %v3235_v35 = vrot.slane %v3199_v20, 2  ;;  %v3061_v38 = vsel %vm1061_vm6, %v3060_v10, %v3059_v21  ;;  %v3071_v39 = vsel %vm1055_vm4, %v3070_v16, %v3069_v34  ;;  %v3740_v21 = vld [vmem:[#allocation2 + $0x30] sm:$0xff] }
 0x15f   : > { %v3236_v44 = vrot.slane %v3199_v20, 4  ;;  %v3237_v46 = vrot.slane %v3199_v20, 6  ;;  %v3073_v47 = vsel %vm1058_vm5, %v3072_v17, %v3071_v39  ;;  %v3238_v48 = vrot.slane %v3200_v30, 2  ;;  %v8036_v17 = vld [vmem:[%s10246_s1 + $0x1d8] sm:$0xff] }
 0x160   : > { %v3239_v49 = vrot.slane %v3200_v30, 4  ;;  %v3240_v50 = vrot.slane %v3200_v30, 6  ;;  %v3075_v23 = vsel %vm1061_vm6, %v3074_v60, %v3073_v47  ;;  %v3325_v51 = vpack.c.bf16 %v3197_v11, %v3197_v11  ;;  %4791 = vmatpush.bf16.msra.mxu3 %v8036_v17  ;;  %v3741_v39 = vld [vmem:[#allocation2 + $0x38] sm:$0xff] }
 0x161   : > { %v3326_v28 = vpack.c.bf16 %v3229_v8, %v3229_v8  ;;  %v3327_v52 = vpack.c.bf16 %v3230_v27, %v3230_v27  ;;  %v3106_v53 = vpack.c.b16 %v3075_v23, %v3061_v38  ;;  %v3328_v54 = vpack.c.bf16 %v3231_v40, %v3231_v40  ;;  %v8035_v40 = vld [vmem:[%s10246_s1 + $0x1d0] sm:$0xff]  ;;  %v3742_v23 = vld [vmem:[#allocation2 + $0x60] sm:$0xff] }
 0x162   : > { %v3329_v41 = vpack.c.bf16 %v3198_v2, %v3198_v2  ;;  %v3330_v45 = vpack.c.bf16 %v3232_v31, %v3232_v31  ;;  %v3331_v58 = vpack.c.bf16 %v3233_v33, %v3233_v33  ;;  %v3332_v59 = vpack.c.bf16 %v3234_v62, %v3234_v62  ;;  %v8045_v2 = vld [vmem:[%s10246_s1 + $0x220] sm:$0xff] }
 0x163   : > { %v3333_v63 = vpack.c.bf16 %v3199_v20, %v3199_v20  ;;  %v3334_v24 = vpack.c.bf16 %v3235_v35, %v3235_v35  ;;  %3178 = vmatmul.bf16.gmra.mxu0 %v3106_v53  ;;  %v3335_v32 = vpack.c.bf16 %v3236_v44, %v3236_v44  ;;  %v3336_v0 = vpack.c.bf16 %v3237_v46, %v3237_v46 }
 0x164   : > { %v3337_v1 = vpack.c.bf16 %v3200_v30, %v3200_v30  ;;  %v3338_v4 = vpack.c.bf16 %v3238_v48, %v3238_v48  ;;  %v3339_v5 = vpack.c.bf16 %v3239_v49, %v3239_v49  ;;  %v3340_v42 = vpack.c.bf16 %v3240_v50, %v3240_v50  ;;  %5332 = vmatpush.bf16.msra.mxu0 %v8045_v2 }
 0x165   : > { %v3470_v56 = vunpack.c.l.b16 %v3325_v51  ;;  %v3471_v22 = vunpack.c.l.b16 %v3326_v28  ;;  %v3472_v6 = vunpack.c.l.b16 %v3327_v52  ;;  %v3473_v7 = vunpack.c.l.b16 %v3328_v54  ;;  %4792 = vmatpush.bf16.msra.mxu3 %v8035_v40  ;;  %v3743_v54 = vld [vmem:[#allocation2 + $0x68] sm:$0xff] }
 0x166   : > { %v3474_v9 = vunpack.c.l.b16 %v3329_v41  ;;  %v3475_v10 = vunpack.c.l.b16 %v3330_v45  ;;  %v3476_v11 = vunpack.c.l.b16 %v3331_v58  ;;  %v3477_v61 = vunpack.c.l.b16 %v3332_v59 }
 0x167   : > { %v3478_v12 = vunpack.c.l.b16 %v3333_v63  ;;  %v3479_v13 = vunpack.c.l.b16 %v3334_v24  ;;  %v3480_v43 = vunpack.c.l.b16 %v3335_v32  ;;  %v3481_v14 = vunpack.c.l.b16 %v3336_v0 }
 0x168   : > { %v3482_v15 = vunpack.c.l.b16 %v3337_v1  ;;  %v3483_v16 = vunpack.c.l.b16 %v3338_v4  ;;  %v3484_v18 = vunpack.c.l.b16 %v3339_v5  ;;  %v3485_v19 = vunpack.c.l.b16 %v3340_v42  ;;  %5333 = vmatpush.bf16.msra.mxu0 %v8044_v29 }
 0x169   : > { %v3534_v60 = vrot.slane %v3471_v22, 7  ;;  %v3536_v20 = vrot.slane %v3472_v6, 6  ;;  %v3538_v8 = vrot.slane %v3473_v7, 5  ;;  %v3540_v25 = vrot.slane %v3474_v9, 4 }
 0x16a   : > { %v3542_v26 = vrot.slane %v3475_v10, 3  ;;  %v3544_v27 = vrot.slane %v3476_v11, 2  ;;  %v3546_v30 = vrot.slane %v3477_v61, 1  ;;  %v3548_v31 = vrot.slane %v3479_v13, 7 }
 0x16b   : > { %v3535_v3 = vsel %vm1043_vm0, %v3534_v60, %v3470_v56  ;;  %v3550_v33 = vrot.slane %v3480_v43, 6  ;;  %v3552_v62 = vrot.slane %v3481_v14, 5  ;;  %v3554_v35 = vrot.slane %v3482_v15, 4 }
 0x16c   : > { %v3537_v34 = vsel %vm1046_vm1, %v3536_v20, %v3535_v3  ;;  %v3556_v38 = vrot.slane %v3483_v16, 3  ;;  %v3549_v46 = vsel %vm1043_vm0, %v3548_v31, %v3478_v12  ;;  %v3558_v47 = vrot.slane %v3484_v18, 2 }
 0x16d   : > { %v3539_v44 = vsel %vm1049_vm2, %v3538_v8, %v3537_v34  ;;  %v3560_v48 = vrot.slane %v3485_v19, 1  ;;  %v3551_v50 = vsel %vm1046_vm1, %v3550_v33, %v3549_v46  ;;  %v3772_v51 = vrot.slane %v3740_v21, 2 }
 0x16e   : > { %v3541_v49 = vsel %vm1052_vm3, %v3540_v25, %v3539_v44  ;;  %v3773_v28 = vrot.slane %v3740_v21, 4  ;;  %v3553_v53 = vsel %vm1049_vm2, %v3552_v62, %v3551_v50  ;;  %v3774_v41 = vrot.slane %v3740_v21, 6 }
 0x16f   : > { %v3543_v52 = vsel %vm1055_vm4, %v3542_v26, %v3541_v49  ;;  %v3775_v45 = vrot.slane %v3741_v39, 2  ;;  %v3555_v59 = vsel %vm1052_vm3, %v3554_v35, %v3553_v53  ;;  %v3776_v63 = vrot.slane %v3741_v39, 4  ;;  %v2125_v53 = vld [vmem:[#allocation2 + $0x138] sm:$0xff] }
 0x170   : > { %v3545_v58 = vsel %vm1058_vm5, %v3544_v27, %v3543_v52  ;;  %v3777_v24 = vrot.slane %v3741_v39, 6  ;;  %v3557_v0 = vsel %vm1055_vm4, %v3556_v38, %v3555_v59  ;;  %v3778_v1 = vrot.slane %v3742_v23, 2 }
 0x171   : > { %v3547_v32 = vsel %vm1061_vm6, %v3546_v30, %v3545_v58  ;;  %v3779_v4 = vrot.slane %v3742_v23, 4  ;;  %v3559_v5 = vsel %vm1058_vm5, %v3558_v47, %v3557_v0  ;;  %v3780_v42 = vrot.slane %v3742_v23, 6  ;;  %v2126_v0 = vld [vmem:[#allocation2 + $0x140] sm:$0xff] }
 0x172   : > { %v3781_v56 = vrot.slane %v3743_v54, 2  ;;  %v3782_v22 = vrot.slane %v3743_v54, 4  ;;  %v3561_v6 = vsel %vm1061_vm6, %v3560_v48, %v3559_v5  ;;  %v3783_v7 = vrot.slane %v3743_v54, 6 }
 0x173   : > { %v3868_v9 = vpack.c.bf16 %v3740_v21, %v3740_v21  ;;  %v3869_v10 = vpack.c.bf16 %v3772_v51, %v3772_v51  ;;  %v3646_v11 = vpack.c.b16 %v3561_v6, %v3547_v32  ;;  %v3870_v61 = vpack.c.bf16 %v3773_v28, %v3773_v28 }
 0x174   : > { %v3871_v12 = vpack.c.bf16 %v3774_v41, %v3774_v41  ;;  %v3872_v13 = vpack.c.bf16 %v3741_v39, %v3741_v39  ;;  %v3873_v43 = vpack.c.bf16 %v3775_v45, %v3775_v45  ;;  %v3874_v14 = vpack.c.bf16 %v3776_v63, %v3776_v63 }
 0x175   : > { %v3875_v15 = vpack.c.bf16 %v3777_v24, %v3777_v24  ;;  %v3876_v16 = vpack.c.bf16 %v3742_v23, %v3742_v23  ;;  %3710 = vmatmul.bf16.vlgmr.msrb.gmra.mxu1 %v3646_v11  ;;  %v3877_v17 = vpack.c.bf16 %v3778_v1, %v3778_v1  ;;  %v3878_v2 = vpack.c.bf16 %v3779_v4, %v3779_v4 }
 0x176   : > { %v3879_v18 = vpack.c.bf16 %v3780_v42, %v3780_v42  ;;  %v3880_v19 = vpack.c.bf16 %v3743_v54, %v3743_v54  ;;  %v3881_v60 = vpack.c.bf16 %v3781_v56, %v3781_v56  ;;  %v3882_v20 = vpack.c.bf16 %v3782_v22, %v3782_v22  ;;  %v2127_v42 = vld [vmem:[#allocation2 + $0x168] sm:$0xff] }
 0x177   : > { %v3883_v8 = vpack.c.bf16 %v3783_v7, %v3783_v7  ;;  %v4013_v25 = vunpack.c.l.b16 %v3868_v9  ;;  %v4014_v26 = vunpack.c.l.b16 %v3869_v10  ;;  %v4015_v27 = vunpack.c.l.b16 %v3870_v61  ;;  %v2128_v7 = vld [vmem:[#allocation2 + $0x170] sm:$0xff] }
 0x178   : > { %v4016_v40 = vunpack.c.l.b16 %v3871_v12  ;;  %v4017_v29 = vunpack.c.l.b16 %v3872_v13  ;;  %v4018_v3 = vunpack.c.l.b16 %v3873_v43  ;;  %v4019_v30 = vunpack.c.l.b16 %v3874_v14 }
 0x179   : > { %v4020_v31 = vunpack.c.l.b16 %v3875_v15  ;;  %v4021_v33 = vunpack.c.l.b16 %v3876_v16  ;;  %v4022_v21 = vunpack.c.l.b16 %v3877_v17  ;;  %v4023_v34 = vunpack.c.l.b16 %v3878_v2 }
 0x17a   : > { %v4024_v62 = vunpack.c.l.b16 %v3879_v18  ;;  %v4025_v35 = vunpack.c.l.b16 %v3880_v19  ;;  %v4026_v38 = vunpack.c.l.b16 %v3881_v60  ;;  %v4027_v39 = vunpack.c.l.b16 %v3882_v20 }
 0x17b   : > { %v4028_v44 = vunpack.c.l.b16 %v3883_v8  ;;  %v4077_v46 = vrot.slane %v4014_v26, 7  ;;  %v4079_v47 = vrot.slane %v4015_v27, 6  ;;  %v4081_v48 = vrot.slane %v4016_v40, 5 }
 0x17c   : > { %v4083_v49 = vrot.slane %v4017_v29, 4  ;;  %v4085_v50 = vrot.slane %v4018_v3, 3  ;;  %v4087_v51 = vrot.slane %v4019_v30, 2  ;;  %v4089_v28 = vrot.slane %v4020_v31, 1 }
 0x17d   : > { %v4078_v23 = vsel %vm1043_vm0, %v4077_v46, %v4013_v25  ;;  %v4091_v52 = vrot.slane %v4022_v21, 7  ;;  %v4093_v41 = vrot.slane %v4023_v34, 6  ;;  %v4095_v45 = vrot.slane %v4024_v62, 5 }
 0x17e   : > { %v4080_v54 = vsel %vm1046_vm1, %v4079_v47, %v4078_v23  ;;  %v4097_v58 = vrot.slane %v4025_v35, 4  ;;  %v4099_v24 = vrot.slane %v4026_v38, 3  ;;  %v4101_v32 = vrot.slane %v4027_v39, 2 }
 0x17f   : > { %v4082_v59 = vsel %vm1049_vm2, %v4081_v48, %v4080_v54  ;;  %v4092_v63 = vsel %vm1043_vm0, %v4091_v52, %v4021_v33  ;;  %v4103_v5 = vrot.slane %v4028_v44, 1  ;;  %v2181_v56 = vrot.slane %v2125_v53, 2 }
 0x180   : > { %v4084_v1 = vsel %vm1052_vm3, %v4083_v49, %v4082_v59  ;;  %v4094_v4 = vsel %vm1046_vm1, %v4093_v41, %v4092_v63  ;;  %v2182_v9 = vrot.slane %v2125_v53, 4  ;;  %v2183_v10 = vrot.slane %v2125_v53, 6 }
 0x181   : > { %v4086_v22 = vsel %vm1055_vm4, %v4085_v50, %v4084_v1  ;;  %v4096_v6 = vsel %vm1049_vm2, %v4095_v45, %v4094_v4  ;;  %v2184_v12 = vrot.slane %v2126_v0, 2  ;;  %v2185_v13 = vrot.slane %v2126_v0, 4 }
 0x182   : > { %v4088_v11 = vsel %vm1058_vm5, %v4087_v51, %v4086_v22  ;;  %v4098_v61 = vsel %vm1052_vm3, %v4097_v58, %v4096_v6  ;;  %v2186_v15 = vrot.slane %v2126_v0, 6  ;;  %v2187_v16 = vrot.slane %v2127_v42, 2 }
 0x183   : > { %v4090_v43 = vsel %vm1061_vm6, %v4089_v28, %v4088_v11  ;;  %v4100_v14 = vsel %vm1055_vm4, %v4099_v24, %v4098_v61  ;;  %v2188_v2 = vrot.slane %v2127_v42, 4  ;;  %v2189_v18 = vrot.slane %v2127_v42, 6 }
 0x184   : > { %v4102_v17 = vsel %vm1058_vm5, %v4101_v32, %v4100_v14  ;;  %v2190_v19 = vrot.slane %v2128_v7, 2  ;;  %v2191_v20 = vrot.slane %v2128_v7, 4  ;;  %v2192_v8 = vrot.slane %v2128_v7, 6 }
 0x185   : > { %v4104_v60 = vsel %vm1061_vm6, %v4103_v5, %v4102_v17  ;;  %v2289_v25 = vpack.c.bf16 %v2125_v53, %v2125_v53  ;;  %v2290_v27 = vpack.c.bf16 %v2181_v56, %v2181_v56  ;;  %v2291_v40 = vpack.c.bf16 %v2182_v9, %v2182_v9 }
 0x186   : > { %v4189_v26 = vpack.c.b16 %v4104_v60, %v4090_v43  ;;  %v2292_v29 = vpack.c.bf16 %v2183_v10, %v2183_v10  ;;  %v2293_v3 = vpack.c.bf16 %v2126_v0, %v2126_v0  ;;  %v2294_v30 = vpack.c.bf16 %v2184_v12, %v2184_v12 }
 0x187   : > { %v2295_v31 = vpack.c.bf16 %v2185_v13, %v2185_v13  ;;  %v2296_v33 = vpack.c.bf16 %v2186_v15, %v2186_v15  ;;  %v2297_v21 = vpack.c.bf16 %v2127_v42, %v2127_v42  ;;  %v2298_v34 = vpack.c.bf16 %v2187_v16, %v2187_v16 }
 0x188   : > { %4253 = vmatmul.bf16.vlgmr.msrb.gmra.mxu2 %v4189_v26  ;;  %v2299_v62 = vpack.c.bf16 %v2188_v2, %v2188_v2  ;;  %v2300_v35 = vpack.c.bf16 %v2189_v18, %v2189_v18  ;;  %v2301_v38 = vpack.c.bf16 %v2128_v7, %v2128_v7  ;;  %v2302_v39 = vpack.c.bf16 %v2190_v19, %v2190_v19 }
 0x189   : > { %v2303_v44 = vpack.c.bf16 %v2191_v20, %v2191_v20  ;;  %v2304_v46 = vpack.c.bf16 %v2192_v8, %v2192_v8  ;;  %v2434_v47 = vunpack.c.l.b16 %v2289_v25  ;;  %v2435_v48 = vunpack.c.l.b16 %v2290_v27 }
 0x18a   : > { %v2436_v49 = vunpack.c.l.b16 %v2291_v40  ;;  %v2437_v50 = vunpack.c.l.b16 %v2292_v29  ;;  %v2438_v23 = vunpack.c.l.b16 %v2293_v3  ;;  %v2439_v51 = vunpack.c.l.b16 %v2294_v30 }
 0x18b   : > { %v2440_v28 = vunpack.c.l.b16 %v2295_v31  ;;  %v2441_v52 = vunpack.c.l.b16 %v2296_v33  ;;  %v2442_v53 = vunpack.c.l.b16 %v2297_v21  ;;  %v2443_v54 = vunpack.c.l.b16 %v2298_v34 }
 0x18c   : > { %v2444_v41 = vunpack.c.l.b16 %v2299_v62  ;;  %v2445_v45 = vunpack.c.l.b16 %v2300_v35  ;;  %v2446_v58 = vunpack.c.l.b16 %v2301_v38  ;;  %v2447_v59 = vunpack.c.l.b16 %v2302_v39 }
 0x18d   : > { %v2448_v63 = vunpack.c.l.b16 %v2303_v44  ;;  %v2449_v24 = vunpack.c.l.b16 %v2304_v46  ;;  %v2534_v32 = vrot.slane %v2435_v48, 7  ;;  %v2536_v0 = vrot.slane %v2436_v49, 6 }
 0x18e   : > { %v2538_v1 = vrot.slane %v2437_v50, 5  ;;  %v2540_v4 = vrot.slane %v2438_v23, 4  ;;  %v2542_v5 = vrot.slane %v2439_v51, 3  ;;  %v2544_v42 = vrot.slane %v2440_v28, 2 }
 0x18f   : > { %v2546_v56 = vrot.slane %v2441_v52, 1  ;;  %v2548_v22 = vrot.slane %v2443_v54, 7  ;;  %v2535_v6 = vsel %vm1043_vm0, %v2534_v32, %v2434_v47  ;;  %v2550_v7 = vrot.slane %v2444_v41, 6 }
 0x190   : > { %v2552_v9 = vrot.slane %v2445_v45, 5  ;;  %v2554_v10 = vrot.slane %v2446_v58, 4  ;;  %v2537_v11 = vsel %vm1046_vm1, %v2536_v0, %v2535_v6  ;;  %v2556_v12 = vrot.slane %v2447_v59, 3 }
 0x191   : > { %v2549_v61 = vsel %vm1043_vm0, %v2548_v22, %v2442_v53  ;;  %v2558_v13 = vrot.slane %v2448_v63, 2  ;;  %v2539_v43 = vsel %vm1049_vm2, %v2538_v1, %v2537_v11  ;;  %v2560_v15 = vrot.slane %v2449_v24, 1 }
 0x192   : > { %v2551_v14 = vsel %vm1046_vm1, %v2550_v7, %v2549_v61  ;;  %v2723_v16 = vrot.slane %v9152_v36, 2  ;;  %v2541_v17 = vsel %vm1052_vm3, %v2540_v4, %v2539_v43  ;;  %v2724_v18 = vrot.slane %v9152_v36, 4  ;;  %v3201_v43 = vld [vmem:[#allocation2 + $0x7a] sm:$0xff] }
 0x193   : > { %v2553_v2 = vsel %vm1049_vm2, %v2552_v9, %v2551_v14  ;;  %v2725_v19 = vrot.slane %v9152_v36, 6  ;;  %v2543_v60 = vsel %vm1055_vm4, %v2542_v5, %v2541_v17  ;;  %v2726_v8 = vrot.slane %v9164_v55, 2 }
 0x194   : > { %v2555_v20 = vsel %vm1052_vm3, %v2554_v10, %v2553_v2  ;;  %v2727_v25 = vrot.slane %v9164_v55, 4  ;;  %v2545_v26 = vsel %vm1058_vm5, %v2544_v42, %v2543_v60  ;;  %v2728_v40 = vrot.slane %v9164_v55, 6 }
 0x195   : > { %v2557_v27 = vsel %vm1055_vm4, %v2556_v12, %v2555_v20  ;;  %v2729_v29 = vrot.slane %v9155_v37, 2  ;;  %v2547_v3 = vsel %vm1061_vm6, %v2546_v56, %v2545_v26  ;;  %v2730_v31 = vrot.slane %v9155_v37, 4  ;;  %v3202_v20 = vld [vmem:[#allocation2 + $0x82] sm:$0xff] }
 0x196   : > { %v2559_v30 = vsel %vm1058_vm5, %v2558_v13, %v2557_v27  ;;  %v2731_v33 = vrot.slane %v9155_v37, 6  ;;  %v2732_v34 = vrot.slane %v9167_v57, 2  ;;  %v2733_v62 = vrot.slane %v9167_v57, 4  ;;  %v3203_v27 = vld [vmem:[#allocation2 + $0xaa] sm:$0xff] }
 0x197   : > { %v2561_v21 = vsel %vm1061_vm6, %v2560_v15, %v2559_v30  ;;  %v2734_v35 = vrot.slane %v9167_v57, 6  ;;  %v2831_v39 = vpack.c.bf16 %v9152_v36, %v9152_v36  ;;  %v2832_v44 = vpack.c.bf16 %v2723_v16, %v2723_v16 }
 0x198   : > { %v2565_v38 = vpack.c.b16 %v2561_v21, %v2547_v3  ;;  %v2833_v46 = vpack.c.bf16 %v2724_v18, %v2724_v18  ;;  %v2834_v47 = vpack.c.bf16 %v2725_v19, %v2725_v19  ;;  %v2835_v48 = vpack.c.bf16 %v9164_v55, %v9164_v55 }
 0x199   : > { %v2836_v49 = vpack.c.bf16 %v2726_v8, %v2726_v8  ;;  %v2837_v50 = vpack.c.bf16 %v2727_v25, %v2727_v25  ;;  %v2838_v23 = vpack.c.bf16 %v2728_v40, %v2728_v40  ;;  %v2839_v51 = vpack.c.bf16 %v9155_v37, %v9155_v37 }
 0x19a   : > { %2641 = vmatmul.bf16.gmra.mxu3 %v2565_v38  ;;  %v2840_v28 = vpack.c.bf16 %v2729_v29, %v2729_v29  ;;  %v2841_v52 = vpack.c.bf16 %v2730_v31, %v2730_v31  ;;  %v2842_v53 = vpack.c.bf16 %v2731_v33, %v2731_v33  ;;  %v2843_v54 = vpack.c.bf16 %v9167_v57, %v9167_v57 }
 0x19b   : > { %v2844_v36 = vpack.c.bf16 %v2732_v34, %v2732_v34  ;;  %v2845_v41 = vpack.c.bf16 %v2733_v62, %v2733_v62  ;;  %v2846_v45 = vpack.c.bf16 %v2734_v35, %v2734_v35  ;;  %v2976_v58 = vunpack.c.l.b16 %v2831_v39  ;;  %v3204_v34 = vld [vmem:[#allocation2 + $0xb2] sm:$0xff] }
 0x19c   : > { %v2977_v59 = vunpack.c.l.b16 %v2832_v44  ;;  %v2978_v63 = vunpack.c.l.b16 %v2833_v46  ;;  %v2979_v55 = vunpack.c.l.b16 %v2834_v47  ;;  %v2980_v24 = vunpack.c.l.b16 %v2835_v48 }
 0x19d   : > { %v2981_v32 = vunpack.c.l.b16 %v2836_v49  ;;  %v2982_v0 = vunpack.c.l.b16 %v2837_v50  ;;  %v2983_v1 = vunpack.c.l.b16 %v2838_v23  ;;  %v2984_v4 = vunpack.c.l.b16 %v2839_v51 }
 0x19e   : > { %v2985_v5 = vunpack.c.l.b16 %v2840_v28  ;;  %v2986_v37 = vunpack.c.l.b16 %v2841_v52  ;;  %v2987_v42 = vunpack.c.l.b16 %v2842_v53  ;;  %v2988_v56 = vunpack.c.l.b16 %v2843_v54 }
 0x19f   : > { %v2989_v22 = vunpack.c.l.b16 %v2844_v36  ;;  %v2990_v6 = vunpack.c.l.b16 %v2845_v41  ;;  %v2991_v7 = vunpack.c.l.b16 %v2846_v45  ;;  %v3076_v57 = vrot.slane %v2977_v59, 7 }
 0x1a0   : > { %v3078_v9 = vrot.slane %v2978_v63, 6  ;;  %v3080_v10 = vrot.slane %v2979_v55, 5  ;;  %v3082_v11 = vrot.slane %v2980_v24, 4  ;;  %v3084_v61 = vrot.slane %v2981_v32, 3 }
 0x1a1   : > { %v3086_v12 = vrot.slane %v2982_v0, 2  ;;  %v3088_v13 = vrot.slane %v2983_v1, 1  ;;  %v3077_v14 = vsel %vm1043_vm0, %v3076_v57, %v2976_v58  ;;  %v3090_v15 = vrot.slane %v2985_v5, 7 }
 0x1a2   : > { %v3092_v16 = vrot.slane %v2986_v37, 6  ;;  %v3094_v17 = vrot.slane %v2987_v42, 5  ;;  %v3079_v2 = vsel %vm1046_vm1, %v3078_v9, %v3077_v14  ;;  %v3096_v18 = vrot.slane %v2988_v56, 4 }
 0x1a3   : > { %v3098_v19 = vrot.slane %v2989_v22, 3  ;;  %v3100_v60 = vrot.slane %v2990_v6, 2  ;;  %v3081_v8 = vsel %vm1049_vm2, %v3080_v10, %v3079_v2  ;;  %v3091_v25 = vsel %vm1043_vm0, %v3090_v15, %v2984_v4  ;;  %v8043_v2 = vld [vmem:[%s10246_s1 + $0x210] sm:$0xff] }
 0x1a4   : > { %v3102_v26 = vrot.slane %v2991_v7, 1  ;;  %v3241_v40 = vrot.slane %v3201_v43, 2  ;;  %v3083_v29 = vsel %vm1052_vm3, %v3082_v11, %v3081_v8  ;;  %v3093_v3 = vsel %vm1046_vm1, %v3092_v16, %v3091_v25  ;;  %5334 = vmatpush.bf16.msra.mxu0 %v8043_v2 }
 0x1a5   : > { %v3242_v30 = vrot.slane %v3201_v43, 4  ;;  %v3243_v31 = vrot.slane %v3201_v43, 6  ;;  %v3085_v33 = vsel %vm1055_vm4, %v3084_v61, %v3083_v29  ;;  %v3095_v21 = vsel %vm1049_vm2, %v3094_v17, %v3093_v3  ;;  %v8034_v17 = vld [vmem:[%s10246_s1 + $0x1c8] sm:$0xff] }
 0x1a6   : > { %v3244_v62 = vrot.slane %v3202_v20, 2  ;;  %v3245_v35 = vrot.slane %v3202_v20, 4  ;;  %v3087_v38 = vsel %vm1058_vm5, %v3086_v12, %v3085_v33  ;;  %v3097_v39 = vsel %vm1052_vm3, %v3096_v18, %v3095_v21  ;;  %4793 = vmatpush.bf16.msra.mxu3 %v8034_v17  ;;  %v8042_v29 = vld [vmem:[%s10246_s1 + $0x208] sm:$0xff]  ;;  %v3744_v21 = vld [vmem:[#allocation2 + $0x90] sm:$0xff] }
 0x1a7   : > { %v3246_v44 = vrot.slane %v3202_v20, 6  ;;  %v3247_v46 = vrot.slane %v3203_v27, 2  ;;  %v3089_v47 = vsel %vm1061_vm6, %v3088_v13, %v3087_v38  ;;  %v3099_v48 = vsel %vm1055_vm4, %v3098_v19, %v3097_v39  ;;  %v3745_v39 = vld [vmem:[#allocation2 + $0x98] sm:$0xff] }
 0x1a8   : > { %v3248_v49 = vrot.slane %v3203_v27, 4  ;;  %v3249_v50 = vrot.slane %v3203_v27, 6  ;;  %v3101_v23 = vsel %vm1058_vm5, %v3100_v60, %v3099_v48  ;;  %v3250_v51 = vrot.slane %v3204_v34, 2  ;;  %5335 = vmatpush.bf16.msra.mxu0 %v8042_v29 }
 0x1a9   : > { %v3251_v28 = vrot.slane %v3204_v34, 4  ;;  %v3252_v52 = vrot.slane %v3204_v34, 6  ;;  %v3103_v53 = vsel %vm1061_vm6, %v3102_v26, %v3101_v23  ;;  %v3341_v54 = vpack.c.bf16 %v3201_v43, %v3201_v43  ;;  %v3746_v23 = vld [vmem:[#allocation2 + $0xc0] sm:$0xff] }
 0x1aa   : > { %v3342_v36 = vpack.c.bf16 %v3241_v40, %v3241_v40  ;;  %v3343_v41 = vpack.c.bf16 %v3242_v30, %v3242_v30  ;;  %v3107_v45 = vpack.c.b16 %v3103_v53, %v3089_v47  ;;  %v3344_v58 = vpack.c.bf16 %v3243_v31, %v3243_v31  ;;  %v8033_v40 = vld [vmem:[%s10246_s1 + $0x1c0] sm:$0xff] }
 0x1ab   : > { %v3345_v59 = vpack.c.bf16 %v3202_v20, %v3202_v20  ;;  %v3346_v63 = vpack.c.bf16 %v3244_v62, %v3244_v62  ;;  %v3347_v55 = vpack.c.bf16 %v3245_v35, %v3245_v35  ;;  %v3348_v24 = vpack.c.bf16 %v3246_v44, %v3246_v44  ;;  %4794 = vmatpush.bf16.msra.mxu3 %v8033_v40 }
 0x1ac   : > { %v3349_v32 = vpack.c.bf16 %v3203_v27, %v3203_v27  ;;  %v3350_v0 = vpack.c.bf16 %v3247_v46, %v3247_v46  ;;  %3183 = vmatmul.bf16.gmra.mxu0 %v3107_v45  ;;  %v3351_v1 = vpack.c.bf16 %v3248_v49, %v3248_v49  ;;  %v3352_v4 = vpack.c.bf16 %v3249_v50, %v3249_v50 }
 0x1ad   : > { %v3353_v5 = vpack.c.bf16 %v3204_v34, %v3204_v34  ;;  %v3354_v37 = vpack.c.bf16 %v3250_v51, %v3250_v51  ;;  %v3355_v42 = vpack.c.bf16 %v3251_v28, %v3251_v28  ;;  %v3356_v56 = vpack.c.bf16 %v3252_v52, %v3252_v52  ;;  %v8041_v52 = vld [vmem:[%s10246_s1 + $0x200] sm:$0xff] }
 0x1ae   : > { %v3486_v22 = vunpack.c.l.b16 %v3341_v54  ;;  %v3487_v6 = vunpack.c.l.b16 %v3342_v36  ;;  %v3488_v7 = vunpack.c.l.b16 %v3343_v41  ;;  %v3489_v57 = vunpack.c.l.b16 %v3344_v58  ;;  %v3747_v36 = vld [vmem:[#allocation2 + $0xc8] sm:$0xff]  ;;  %5336 = vmatpush.bf16.msra.mxu0 %v8041_v52 }
 0x1af   : > { %v3490_v9 = vunpack.c.l.b16 %v3345_v59  ;;  %v3491_v10 = vunpack.c.l.b16 %v3346_v63  ;;  %v3492_v11 = vunpack.c.l.b16 %v3347_v55  ;;  %v3493_v61 = vunpack.c.l.b16 %v3348_v24 }
 0x1b0   : > { %v3494_v12 = vunpack.c.l.b16 %v3349_v32  ;;  %v3495_v13 = vunpack.c.l.b16 %v3350_v0  ;;  %v3496_v43 = vunpack.c.l.b16 %v3351_v1  ;;  %v3497_v14 = vunpack.c.l.b16 %v3352_v4 }
 0x1b1   : > { %v3498_v15 = vunpack.c.l.b16 %v3353_v5  ;;  %v3499_v16 = vunpack.c.l.b16 %v3354_v37  ;;  %v3500_v18 = vunpack.c.l.b16 %v3355_v42  ;;  %v3501_v19 = vunpack.c.l.b16 %v3356_v56 }
 0x1b2   : > { %v3562_v60 = vrot.slane %v3487_v6, 7  ;;  %v3564_v20 = vrot.slane %v3488_v7, 6  ;;  %v3566_v8 = vrot.slane %v3489_v57, 5  ;;  %v3568_v25 = vrot.slane %v3490_v9, 4 }
 0x1b3   : > { %v3570_v26 = vrot.slane %v3491_v10, 3  ;;  %v3572_v27 = vrot.slane %v3492_v11, 2  ;;  %v3574_v30 = vrot.slane %v3493_v61, 1  ;;  %v3576_v31 = vrot.slane %v3495_v13, 7 }
 0x1b4   : > { %v3563_v3 = vsel %vm1043_vm0, %v3562_v60, %v3486_v22  ;;  %v3578_v33 = vrot.slane %v3496_v43, 6  ;;  %v3580_v62 = vrot.slane %v3497_v14, 5  ;;  %v3582_v35 = vrot.slane %v3498_v15, 4 }
 0x1b5   : > { %v3565_v34 = vsel %vm1046_vm1, %v3564_v20, %v3563_v3  ;;  %v3584_v38 = vrot.slane %v3499_v16, 3  ;;  %v3577_v46 = vsel %vm1043_vm0, %v3576_v31, %v3494_v12  ;;  %v3586_v47 = vrot.slane %v3500_v18, 2 }
 0x1b6   : > { %v3567_v44 = vsel %vm1049_vm2, %v3566_v8, %v3565_v34  ;;  %v3588_v48 = vrot.slane %v3501_v19, 1  ;;  %v3579_v50 = vsel %vm1046_vm1, %v3578_v33, %v3577_v46  ;;  %v3784_v51 = vrot.slane %v3744_v21, 2 }
 0x1b7   : > { %v3569_v49 = vsel %vm1052_vm3, %v3568_v25, %v3567_v44  ;;  %v3785_v28 = vrot.slane %v3744_v21, 4  ;;  %v3581_v54 = vsel %vm1049_vm2, %v3580_v62, %v3579_v50  ;;  %v3786_v41 = vrot.slane %v3744_v21, 6 }
 0x1b8   : > { %v3571_v53 = vsel %vm1055_vm4, %v3570_v26, %v3569_v49  ;;  %v3787_v45 = vrot.slane %v3745_v39, 2  ;;  %v3583_v59 = vsel %vm1052_vm3, %v3582_v35, %v3581_v54  ;;  %v3788_v63 = vrot.slane %v3745_v39, 4 }
 0x1b9   : > { %v3573_v58 = vsel %vm1058_vm5, %v3572_v27, %v3571_v53  ;;  %v3789_v55 = vrot.slane %v3745_v39, 6  ;;  %v3585_v32 = vsel %vm1055_vm4, %v3584_v38, %v3583_v59  ;;  %v3790_v0 = vrot.slane %v3746_v23, 2  ;;  %v3206_v59 = vld [vmem:[#allocation2 + $0xe2] sm:$0xff] }
 0x1ba   : > { %v3575_v24 = vsel %vm1061_vm6, %v3574_v30, %v3573_v58  ;;  %v3791_v1 = vrot.slane %v3746_v23, 4  ;;  %v3587_v4 = vsel %vm1058_vm5, %v3586_v47, %v3585_v32  ;;  %v3792_v5 = vrot.slane %v3746_v23, 6  ;;  %v3207_v32 = vld [vmem:[#allocation2 + $0x10a] sm:$0xff] }
 0x1bb   : > { %v3793_v37 = vrot.slane %v3747_v36, 2  ;;  %v3794_v42 = vrot.slane %v3747_v36, 4  ;;  %v3589_v56 = vsel %vm1061_vm6, %v3588_v48, %v3587_v4  ;;  %v3795_v22 = vrot.slane %v3747_v36, 6 }
 0x1bc   : > { %v3884_v6 = vpack.c.bf16 %v3744_v21, %v3744_v21  ;;  %v3885_v7 = vpack.c.bf16 %v3784_v51, %v3784_v51  ;;  %v3647_v57 = vpack.c.b16 %v3589_v56, %v3575_v24  ;;  %v3886_v9 = vpack.c.bf16 %v3785_v28, %v3785_v28  ;;  %v3205_v51 = vld [vmem:[#allocation2 + $0xda] sm:$0xff] }
 0x1bd   : > { %v3887_v10 = vpack.c.bf16 %v3786_v41, %v3786_v41  ;;  %v3888_v11 = vpack.c.bf16 %v3745_v39, %v3745_v39  ;;  %v3889_v61 = vpack.c.bf16 %v3787_v45, %v3787_v45  ;;  %v3890_v12 = vpack.c.bf16 %v3788_v63, %v3788_v63 }
 0x1be   : > { %v3891_v13 = vpack.c.bf16 %v3789_v55, %v3789_v55  ;;  %v3892_v43 = vpack.c.bf16 %v3746_v23, %v3746_v23  ;;  %3715 = vmatmul.bf16.gmra.mxu1 %v3647_v57  ;;  %v3893_v14 = vpack.c.bf16 %v3790_v0, %v3790_v0  ;;  %v3894_v15 = vpack.c.bf16 %v3791_v1, %v3791_v1 }
 0x1bf   : > { %v3895_v16 = vpack.c.bf16 %v3792_v5, %v3792_v5  ;;  %v3896_v17 = vpack.c.bf16 %v3747_v36, %v3747_v36  ;;  %v3897_v2 = vpack.c.bf16 %v3793_v37, %v3793_v37  ;;  %v3898_v18 = vpack.c.bf16 %v3794_v42, %v3794_v42  ;;  %v3208_v5 = vld [vmem:[#allocation2 + $0x112] sm:$0xff] }
 0x1c0   : > { %v3899_v19 = vpack.c.bf16 %v3795_v22, %v3795_v22  ;;  %v4029_v60 = vunpack.c.l.b16 %v3884_v6  ;;  %v4030_v20 = vunpack.c.l.b16 %v3885_v7  ;;  %v4031_v8 = vunpack.c.l.b16 %v3886_v9 }
 0x1c1   : > { %v4032_v25 = vunpack.c.l.b16 %v3887_v10  ;;  %v4033_v26 = vunpack.c.l.b16 %v3888_v11  ;;  %v4034_v27 = vunpack.c.l.b16 %v3889_v61  ;;  %v4035_v40 = vunpack.c.l.b16 %v3890_v12 }
 0x1c2   : > { %v4036_v29 = vunpack.c.l.b16 %v3891_v13  ;;  %v4037_v3 = vunpack.c.l.b16 %v3892_v43  ;;  %v4038_v30 = vunpack.c.l.b16 %v3893_v14  ;;  %v4039_v31 = vunpack.c.l.b16 %v3894_v15 }
 0x1c3   : > { %v4040_v33 = vunpack.c.l.b16 %v3895_v16  ;;  %v4041_v21 = vunpack.c.l.b16 %v3896_v17  ;;  %v4042_v34 = vunpack.c.l.b16 %v3897_v2  ;;  %v4043_v62 = vunpack.c.l.b16 %v3898_v18 }
 0x1c4   : > { %v4044_v35 = vunpack.c.l.b16 %v3899_v19  ;;  %v4105_v38 = vrot.slane %v4030_v20, 7  ;;  %v4107_v39 = vrot.slane %v4031_v8, 6  ;;  %v4109_v44 = vrot.slane %v4032_v25, 5 }
 0x1c5   : > { %v4111_v46 = vrot.slane %v4033_v26, 4  ;;  %v4113_v47 = vrot.slane %v4034_v27, 3  ;;  %v4115_v49 = vrot.slane %v4035_v40, 2  ;;  %v4117_v50 = vrot.slane %v4036_v29, 1 }
 0x1c6   : > { %v4106_v48 = vsel %vm1043_vm0, %v4105_v38, %v4029_v60  ;;  %v4119_v23 = vrot.slane %v4038_v30, 7  ;;  %v4121_v52 = vrot.slane %v4039_v31, 6  ;;  %v4123_v53 = vrot.slane %v4040_v33, 5 }
 0x1c7   : > { %v4108_v28 = vsel %vm1046_vm1, %v4107_v39, %v4106_v48  ;;  %v4125_v54 = vrot.slane %v4041_v21, 4  ;;  %v4127_v45 = vrot.slane %v4042_v34, 3  ;;  %v4129_v58 = vrot.slane %v4043_v62, 2 }
 0x1c8   : > { %v4110_v36 = vsel %vm1049_vm2, %v4109_v44, %v4108_v28  ;;  %v4120_v41 = vsel %vm1043_vm0, %v4119_v23, %v4037_v3  ;;  %v4131_v24 = vrot.slane %v4044_v35, 1  ;;  %v3253_v0 = vrot.slane %v3205_v51, 2 }
 0x1c9   : > { %v4112_v63 = vsel %vm1052_vm3, %v4111_v46, %v4110_v36  ;;  %v4122_v55 = vsel %vm1046_vm1, %v4121_v52, %v4120_v41  ;;  %v3254_v37 = vrot.slane %v3205_v51, 4  ;;  %v3255_v42 = vrot.slane %v3205_v51, 6 }
 0x1ca   : > { %v4114_v1 = vsel %vm1055_vm4, %v4113_v47, %v4112_v63  ;;  %v4124_v4 = vsel %vm1049_vm2, %v4123_v53, %v4122_v55  ;;  %v3256_v6 = vrot.slane %v3206_v59, 2  ;;  %v3257_v7 = vrot.slane %v3206_v59, 4 }
 0x1cb   : > { %v4116_v56 = vsel %vm1058_vm5, %v4115_v49, %v4114_v1  ;;  %v4126_v22 = vsel %vm1052_vm3, %v4125_v54, %v4124_v4  ;;  %v3258_v10 = vrot.slane %v3206_v59, 6  ;;  %v3259_v11 = vrot.slane %v3207_v32, 2 }
 0x1cc   : > { %v4118_v57 = vsel %vm1061_vm6, %v4117_v50, %v4116_v56  ;;  %v4128_v9 = vsel %vm1055_vm4, %v4127_v45, %v4126_v22  ;;  %v3260_v12 = vrot.slane %v3207_v32, 4  ;;  %v3261_v13 = vrot.slane %v3207_v32, 6  ;;  %v3749_v22 = vld [vmem:[#allocation2 + $0xf8] sm:$0xff] }
 0x1cd   : > { %v4130_v61 = vsel %vm1058_vm5, %v4129_v58, %v4128_v9  ;;  %v3262_v43 = vrot.slane %v3208_v5, 2  ;;  %v3263_v15 = vrot.slane %v3208_v5, 4  ;;  %v3264_v16 = vrot.slane %v3208_v5, 6  ;;  %v3750_v9 = vld [vmem:[#allocation2 + $0x120] sm:$0xff] }
 0x1ce   : > { %v4132_v14 = vsel %vm1061_vm6, %v4131_v24, %v4130_v61  ;;  %v3357_v17 = vpack.c.bf16 %v3205_v51, %v3205_v51  ;;  %v3358_v18 = vpack.c.bf16 %v3253_v0, %v3253_v0  ;;  %v3359_v19 = vpack.c.bf16 %v3254_v37, %v3254_v37  ;;  %v3748_v24 = vld [vmem:[#allocation2 + $0xf0] sm:$0xff] }
 0x1cf   : > { %v4190_v2 = vpack.c.b16 %v4132_v14, %v4118_v57  ;;  %v3360_v60 = vpack.c.bf16 %v3255_v42, %v3255_v42  ;;  %v3361_v20 = vpack.c.bf16 %v3206_v59, %v3206_v59  ;;  %v3362_v8 = vpack.c.bf16 %v3256_v6, %v3256_v6 }
 0x1d0   : > { %v3363_v25 = vpack.c.bf16 %v3257_v7, %v3257_v7  ;;  %v3364_v26 = vpack.c.bf16 %v3258_v10, %v3258_v10  ;;  %v3365_v27 = vpack.c.bf16 %v3207_v32, %v3207_v32  ;;  %v3366_v40 = vpack.c.bf16 %v3259_v11, %v3259_v11 }
 0x1d1   : > { %4258 = vmatmul.bf16.gmra.mxu2 %v4190_v2  ;;  %v3367_v29 = vpack.c.bf16 %v3260_v12, %v3260_v12  ;;  %v3368_v3 = vpack.c.bf16 %v3261_v13, %v3261_v13  ;;  %v3369_v30 = vpack.c.bf16 %v3208_v5, %v3208_v5  ;;  %v3370_v31 = vpack.c.bf16 %v3262_v43, %v3262_v43 }
 0x1d2   : > { %v3371_v33 = vpack.c.bf16 %v3263_v15, %v3263_v15  ;;  %v3372_v21 = vpack.c.bf16 %v3264_v16, %v3264_v16  ;;  %v3502_v34 = vunpack.c.l.b16 %v3357_v17  ;;  %v3503_v62 = vunpack.c.l.b16 %v3358_v18  ;;  %v3751_v15 = vld [vmem:[#allocation2 + $0x128] sm:$0xff] }
 0x1d3   : > { %v3504_v35 = vunpack.c.l.b16 %v3359_v19  ;;  %v3505_v38 = vunpack.c.l.b16 %v3360_v60  ;;  %v3506_v39 = vunpack.c.l.b16 %v3361_v20  ;;  %v3507_v44 = vunpack.c.l.b16 %v3362_v8 }
 0x1d4   : > { %v3508_v46 = vunpack.c.l.b16 %v3363_v25  ;;  %v3509_v47 = vunpack.c.l.b16 %v3364_v26  ;;  %v3510_v48 = vunpack.c.l.b16 %v3365_v27  ;;  %v3511_v49 = vunpack.c.l.b16 %v3366_v40 }
 0x1d5   : > { %v3512_v50 = vunpack.c.l.b16 %v3367_v29  ;;  %v3513_v23 = vunpack.c.l.b16 %v3368_v3  ;;  %v3514_v51 = vunpack.c.l.b16 %v3369_v30  ;;  %v3515_v28 = vunpack.c.l.b16 %v3370_v31 }
 0x1d6   : > { %v3516_v52 = vunpack.c.l.b16 %v3371_v33  ;;  %v3517_v53 = vunpack.c.l.b16 %v3372_v21  ;;  %v3590_v54 = vrot.slane %v3503_v62, 7  ;;  %v3592_v36 = vrot.slane %v3504_v35, 6 }
 0x1d7   : > { %v3594_v41 = vrot.slane %v3505_v38, 5  ;;  %v3596_v45 = vrot.slane %v3506_v39, 4  ;;  %v3598_v58 = vrot.slane %v3507_v44, 3  ;;  %v3600_v59 = vrot.slane %v3508_v46, 2 }
 0x1d8   : > { %v3602_v63 = vrot.slane %v3509_v47, 1  ;;  %v3604_v55 = vrot.slane %v3511_v49, 7  ;;  %v3591_v32 = vsel %vm1043_vm0, %v3590_v54, %v3502_v34  ;;  %v3606_v0 = vrot.slane %v3512_v50, 6 }
 0x1d9   : > { %v3608_v1 = vrot.slane %v3513_v23, 5  ;;  %v3610_v4 = vrot.slane %v3514_v51, 4  ;;  %v3593_v5 = vsel %vm1046_vm1, %v3592_v36, %v3591_v32  ;;  %v3612_v42 = vrot.slane %v3515_v28, 3 }
 0x1da   : > { %v3605_v37 = vsel %vm1043_vm0, %v3604_v55, %v3510_v48  ;;  %v3614_v56 = vrot.slane %v3516_v52, 2  ;;  %v3595_v6 = vsel %vm1049_vm2, %v3594_v41, %v3593_v5  ;;  %v3616_v57 = vrot.slane %v3517_v53, 1 }
 0x1db   : > { %v3607_v7 = vsel %vm1046_vm1, %v3606_v0, %v3605_v37  ;;  %v3796_v10 = vrot.slane %v3748_v24, 2  ;;  %v3597_v11 = vsel %vm1052_vm3, %v3596_v45, %v3595_v6  ;;  %v3797_v12 = vrot.slane %v3748_v24, 4 }
 0x1dc   : > { %v3609_v61 = vsel %vm1049_vm2, %v3608_v1, %v3607_v7  ;;  %v3798_v13 = vrot.slane %v3748_v24, 6  ;;  %v3599_v43 = vsel %vm1055_vm4, %v3598_v58, %v3597_v11  ;;  %v3799_v16 = vrot.slane %v3749_v22, 2 }
 0x1dd   : > { %v3611_v14 = vsel %vm1052_vm3, %v3610_v4, %v3609_v61  ;;  %v3800_v17 = vrot.slane %v3749_v22, 4  ;;  %v3601_v2 = vsel %vm1058_vm5, %v3600_v59, %v3599_v43  ;;  %v3801_v19 = vrot.slane %v3749_v22, 6 }
 0x1de   : > { %v3613_v18 = vsel %vm1055_vm4, %v3612_v42, %v3611_v14  ;;  %v3802_v60 = vrot.slane %v3750_v9, 2  ;;  %v3603_v20 = vsel %vm1061_vm6, %v3602_v63, %v3601_v2  ;;  %v3803_v25 = vrot.slane %v3750_v9, 4 }
 0x1df   : > { %v3615_v8 = vsel %vm1058_vm5, %v3614_v56, %v3613_v18  ;;  %v3804_v26 = vrot.slane %v3750_v9, 6  ;;  %v3805_v40 = vrot.slane %v3751_v15, 2  ;;  %v3806_v29 = vrot.slane %v3751_v15, 4  ;;  %v4284_v18 = vld [vmem:[#allocation2 + $0x61] sm:$0xff] }
 0x1e0   : > { %v3617_v27 = vsel %vm1061_vm6, %v3616_v57, %v3615_v8  ;;  %v3807_v3 = vrot.slane %v3751_v15, 6  ;;  %v3900_v31 = vpack.c.bf16 %v3748_v24, %v3748_v24  ;;  %v3901_v33 = vpack.c.bf16 %v3796_v10, %v3796_v10  ;;  %v4282_v57 = vld [vmem:[#allocation2 + $0x31] sm:$0xff] }
 0x1e1   : > { %v3648_v30 = vpack.c.b16 %v3617_v27, %v3603_v20  ;;  %v3902_v21 = vpack.c.bf16 %v3797_v12, %v3797_v12  ;;  %v3903_v34 = vpack.c.bf16 %v3798_v13, %v3798_v13  ;;  %v3904_v62 = vpack.c.bf16 %v3749_v22, %v3749_v22 }
 0x1e2   : > { %v3905_v35 = vpack.c.bf16 %v3799_v16, %v3799_v16  ;;  %v3906_v38 = vpack.c.bf16 %v3800_v17, %v3800_v17  ;;  %v3907_v39 = vpack.c.bf16 %v3801_v19, %v3801_v19  ;;  %v3908_v44 = vpack.c.bf16 %v3750_v9, %v3750_v9 }
 0x1e3   : > { %3720 = vmatmul.bf16.gmra.mxu1 %v3648_v30  ;;  %v3909_v46 = vpack.c.bf16 %v3802_v60, %v3802_v60  ;;  %v3910_v47 = vpack.c.bf16 %v3803_v25, %v3803_v25  ;;  %v3911_v48 = vpack.c.bf16 %v3804_v26, %v3804_v26  ;;  %v3912_v49 = vpack.c.bf16 %v3751_v15, %v3751_v15  ;;  %v4283_v15 = vld [vmem:[#allocation2 + $0x39] sm:$0xff] }
 0x1e4   : > { %v3913_v50 = vpack.c.bf16 %v3805_v40, %v3805_v40  ;;  %v3914_v23 = vpack.c.bf16 %v3806_v29, %v3806_v29  ;;  %v3915_v51 = vpack.c.bf16 %v3807_v3, %v3807_v3  ;;  %v4045_v28 = vunpack.c.l.b16 %v3900_v31  ;;  %v4285_v40 = vld [vmem:[#allocation2 + $0x69] sm:$0xff] }
 0x1e5   : > { %v4046_v52 = vunpack.c.l.b16 %v3901_v33  ;;  %v4047_v53 = vunpack.c.l.b16 %v3902_v21  ;;  %v4048_v54 = vunpack.c.l.b16 %v3903_v34  ;;  %v4049_v36 = vunpack.c.l.b16 %v3904_v62 }
 0x1e6   : > { %v4050_v41 = vunpack.c.l.b16 %v3905_v35  ;;  %v4051_v45 = vunpack.c.l.b16 %v3906_v38  ;;  %v4052_v58 = vunpack.c.l.b16 %v3907_v39  ;;  %v4053_v59 = vunpack.c.l.b16 %v3908_v44 }
 0x1e7   : > { %v4054_v63 = vunpack.c.l.b16 %v3909_v46  ;;  %v4055_v55 = vunpack.c.l.b16 %v3910_v47  ;;  %v4056_v24 = vunpack.c.l.b16 %v3911_v48  ;;  %v4057_v32 = vunpack.c.l.b16 %v3912_v49  ;;  %v462_v48 = vld [vmem:[%s8403_s30 + $0xf0] sm:$0xff] }
 0x1e8   : > { %v4058_v0 = vunpack.c.l.b16 %v3913_v50  ;;  %v4059_v1 = vunpack.c.l.b16 %v3914_v23  ;;  %v4060_v4 = vunpack.c.l.b16 %v3915_v51  ;;  %v4133_v5 = vrot.slane %v4046_v52, 7  ;;  %495 = vst [vmem:[#allocation2 + $0x181] sm:$0xff] %v462_v48 }
 0x1e9   : > { %v4135_v37 = vrot.slane %v4047_v53, 6  ;;  %v4137_v42 = vrot.slane %v4048_v54, 5  ;;  %v4139_v56 = vrot.slane %v4049_v36, 4  ;;  %v4141_v22 = vrot.slane %v4050_v41, 3 }
 0x1ea   : > { %v4143_v6 = vrot.slane %v4051_v45, 2  ;;  %v4145_v7 = vrot.slane %v4052_v58, 1  ;;  %v4134_v9 = vsel %vm1043_vm0, %v4133_v5, %v4045_v28  ;;  %v4147_v10 = vrot.slane %v4054_v63, 7 }
 0x1eb   : > { %v4149_v11 = vrot.slane %v4055_v55, 6  ;;  %v4151_v61 = vrot.slane %v4056_v24, 5  ;;  %v4136_v12 = vsel %vm1046_vm1, %v4135_v37, %v4134_v9  ;;  %v4153_v13 = vrot.slane %v4057_v32, 4  ;;  %v463_v32 = vld [vmem:[%s8403_s30 + $0xf8] sm:$0xff]  ;;  %s8225_s30 = scalar_lea.hbm %s10255_s10, 128 }
 0x1ec   : > { %v4155_v43 = vrot.slane %v4058_v0, 3  ;;  %v4157_v14 = vrot.slane %v4059_v1, 2  ;;  %v4138_v16 = vsel %vm1049_vm2, %v4137_v42, %v4136_v12  ;;  %v4148_v17 = vsel %vm1043_vm0, %v4147_v10, %v4053_v59  ;;  %496 = vst [vmem:[#allocation2 + $0x189] sm:$0xff] %v463_v32  ;;  %p8227_p1 = scmp.lt.s32.totalorder %s8225_s30, %s8221_s28 }
 0x1ed   : > { %v4159_v2 = vrot.slane %v4060_v4, 1  ;;  %v4314_v19 = vrot.slane %v4282_v57, 2  ;;  %v4140_v60 = vsel %vm1052_vm3, %v4139_v56, %v4138_v16  ;;  %v4150_v20 = vsel %vm1046_vm1, %v4149_v11, %v4148_v17 }
 0x1ee   : > { %v4315_v8 = vrot.slane %v4282_v57, 4  ;;  %v4316_v25 = vrot.slane %v4282_v57, 6  ;;  %v4142_v26 = vsel %vm1055_vm4, %v4141_v22, %v4140_v60  ;;  %v4152_v27 = vsel %vm1049_vm2, %v4151_v61, %v4150_v20  ;;  %p8228_p2 = por %p8227_p1, %p8226_p0 }
 0x1ef   : > { %v4317_v29 = vrot.slane %v4283_v15, 2  ;;  %v4318_v3 = vrot.slane %v4283_v15, 4  ;;  %v4144_v30 = vsel %vm1058_vm5, %v4143_v6, %v4142_v26  ;;  %v4154_v31 = vsel %vm1052_vm3, %v4153_v13, %v4152_v27 }
 0x1f0   : > { %v4319_v33 = vrot.slane %v4283_v15, 6  ;;  %v4320_v21 = vrot.slane %v4284_v18, 2  ;;  %v4146_v34 = vsel %vm1061_vm6, %v4145_v7, %v4144_v30  ;;  %v4156_v62 = vsel %vm1055_vm4, %v4155_v43, %v4154_v31  ;;  %p8229_p3 = pnand %p8228_p2, %p8224_p13 }
 0x1f1   : > { %v4321_v35 = vrot.slane %v4284_v18, 4  ;;  %v4322_v38 = vrot.slane %v4284_v18, 6  ;;  %v4158_v39 = vsel %vm1058_vm5, %v4157_v14, %v4156_v62  ;;  %v4323_v44 = vrot.slane %v4285_v40, 2 }
 0x1f2   : > { %v4324_v46 = vrot.slane %v4285_v40, 4  ;;  %v4325_v47 = vrot.slane %v4285_v40, 6  ;;  %v4160_v49 = vsel %vm1061_vm6, %v4159_v2, %v4158_v39  ;;  %v4410_v50 = vpack.c.bf16 %v4282_v57, %v4282_v57 }
 0x1f3   : > { %v4411_v23 = vpack.c.bf16 %v4314_v19, %v4314_v19  ;;  %v4412_v51 = vpack.c.bf16 %v4315_v8, %v4315_v8  ;;  %v4191_v28 = vpack.c.b16 %v4160_v49, %v4146_v34  ;;  %v4413_v52 = vpack.c.bf16 %v4316_v25, %v4316_v25  ;;  %v4824_v25 = vld [vmem:[#allocation2 + $0x32] sm:$0xff] }
 0x1f4   : > { %v4414_v53 = vpack.c.bf16 %v4283_v15, %v4283_v15  ;;  %v4415_v54 = vpack.c.bf16 %v4317_v29, %v4317_v29  ;;  %v4416_v36 = vpack.c.bf16 %v4318_v3, %v4318_v3  ;;  %v4417_v41 = vpack.c.bf16 %v4319_v33, %v4319_v33  ;;  %v4825_v3 = vld [vmem:[#allocation2 + $0x3a] sm:$0xff] }
 0x1f5   : > { %v4418_v45 = vpack.c.bf16 %v4284_v18, %v4284_v18  ;;  %v4419_v58 = vpack.c.bf16 %v4320_v21, %v4320_v21  ;;  %4263 = vmatmul.bf16.gmra.mxu2 %v4191_v28  ;;  %v4420_v59 = vpack.c.bf16 %v4321_v35, %v4321_v35  ;;  %v4421_v63 = vpack.c.bf16 %v4322_v38, %v4322_v38  ;;  %v4826_v35 = vld [vmem:[#allocation2 + $0x62] sm:$0xff] }
 0x1f6   : > { %v4422_v55 = vpack.c.bf16 %v4285_v40, %v4285_v40  ;;  %v4423_v24 = vpack.c.bf16 %v4323_v44, %v4323_v44  ;;  %v4424_v0 = vpack.c.bf16 %v4324_v46, %v4324_v46  ;;  %v4425_v1 = vpack.c.bf16 %v4325_v47, %v4325_v47  ;;  %v4827_v47 = vld [vmem:[#allocation2 + $0x6a] sm:$0xff] }
 0x1f7   : > { %v4555_v4 = vunpack.c.l.b16 %v4410_v50  ;;  %v4556_v5 = vunpack.c.l.b16 %v4411_v23  ;;  %v4557_v37 = vunpack.c.l.b16 %v4412_v51  ;;  %v4558_v42 = vunpack.c.l.b16 %v4413_v52 }
 0x1f8   : > { %v4559_v56 = vunpack.c.l.b16 %v4414_v53  ;;  %v4560_v22 = vunpack.c.l.b16 %v4415_v54  ;;  %v4561_v6 = vunpack.c.l.b16 %v4416_v36  ;;  %v4562_v7 = vunpack.c.l.b16 %v4417_v41 }
 0x1f9   : > { %v4563_v57 = vunpack.c.l.b16 %v4418_v45  ;;  %v4564_v9 = vunpack.c.l.b16 %v4419_v58  ;;  %v4565_v10 = vunpack.c.l.b16 %v4420_v59  ;;  %v4566_v11 = vunpack.c.l.b16 %v4421_v63 }
 0x1fa   : > { %v4567_v61 = vunpack.c.l.b16 %v4422_v55  ;;  %v4568_v12 = vunpack.c.l.b16 %v4423_v24  ;;  %v4569_v13 = vunpack.c.l.b16 %v4424_v0  ;;  %v4570_v43 = vunpack.c.l.b16 %v4425_v1 }
 0x1fb   : > { %v4619_v14 = vrot.slane %v4556_v5, 7  ;;  %v4621_v15 = vrot.slane %v4557_v37, 6  ;;  %v4623_v16 = vrot.slane %v4558_v42, 5  ;;  %v4625_v17 = vrot.slane %v4559_v56, 4 }
 0x1fc   : > { %v4627_v2 = vrot.slane %v4560_v22, 3  ;;  %v4629_v18 = vrot.slane %v4561_v6, 2  ;;  %v4631_v60 = vrot.slane %v4562_v7, 1  ;;  %v4633_v20 = vrot.slane %v4564_v9, 7 }
 0x1fd   : > { %v4620_v19 = vsel %vm1043_vm0, %v4619_v14, %v4555_v4  ;;  %v4635_v8 = vrot.slane %v4565_v10, 6  ;;  %v4637_v27 = vrot.slane %v4566_v11, 5  ;;  %v4639_v40 = vrot.slane %v4567_v61, 4 }
 0x1fe   : > { %v4622_v26 = vsel %vm1046_vm1, %v4621_v15, %v4620_v19  ;;  %v4641_v29 = vrot.slane %v4568_v12, 3  ;;  %v4634_v31 = vsel %vm1043_vm0, %v4633_v20, %v4563_v57  ;;  %v4643_v33 = vrot.slane %v4569_v13, 2 }
 0x1ff   : > { %v4624_v30 = vsel %vm1049_vm2, %v4623_v16, %v4622_v26  ;;  %v4645_v21 = vrot.slane %v4570_v43, 1  ;;  %v4636_v62 = vsel %vm1046_vm1, %v4635_v8, %v4634_v31  ;;  %v4856_v38 = vrot.slane %v4824_v25, 2 }
 0x200   : > { %v4626_v34 = vsel %vm1052_vm3, %v4625_v17, %v4624_v30  ;;  %v4857_v39 = vrot.slane %v4824_v25, 4  ;;  %v4638_v46 = vsel %vm1049_vm2, %v4637_v27, %v4636_v62  ;;  %v4858_v48 = vrot.slane %v4824_v25, 6 }
 0x201   : > { %v4628_v44 = vsel %vm1055_vm4, %v4627_v2, %v4626_v34  ;;  %v4859_v49 = vrot.slane %v4825_v3, 2  ;;  %v4640_v23 = vsel %vm1052_vm3, %v4639_v40, %v4638_v46  ;;  %v4860_v51 = vrot.slane %v4825_v3, 4 }
 0x202   : > { %v4630_v50 = vsel %vm1058_vm5, %v4629_v18, %v4628_v44  ;;  %v4861_v28 = vrot.slane %v4825_v3, 6  ;;  %v4642_v53 = vsel %vm1055_vm4, %v4641_v29, %v4640_v23  ;;  %v4862_v54 = vrot.slane %v4826_v35, 2  ;;  %v3210_v23 = vld [vmem:[#allocation2 + $0x142] sm:$0xff] }
 0x203   : > { %v4632_v52 = vsel %vm1061_vm6, %v4631_v60, %v4630_v50  ;;  %v4863_v36 = vrot.slane %v4826_v35, 4  ;;  %v4644_v41 = vsel %vm1058_vm5, %v4643_v33, %v4642_v53  ;;  %v4864_v45 = vrot.slane %v4826_v35, 6  ;;  %v3211_v53 = vld [vmem:[#allocation2 + $0x16a] sm:$0xff] }
 0x204   : > { %v4865_v58 = vrot.slane %v4827_v47, 2  ;;  %v4866_v59 = vrot.slane %v4827_v47, 4  ;;  %v4646_v63 = vsel %vm1061_vm6, %v4645_v21, %v4644_v41  ;;  %v4867_v55 = vrot.slane %v4827_v47, 6 }
 0x205   : > { %v4952_v24 = vpack.c.bf16 %v4824_v25, %v4824_v25  ;;  %v4953_v32 = vpack.c.bf16 %v4856_v38, %v4856_v38  ;;  %v4731_v0 = vpack.c.b16 %v4646_v63, %v4632_v52  ;;  %v4954_v1 = vpack.c.bf16 %v4857_v39, %v4857_v39 }
 0x206   : > { %v4955_v4 = vpack.c.bf16 %v4858_v48, %v4858_v48  ;;  %v4956_v5 = vpack.c.bf16 %v4825_v3, %v4825_v3  ;;  %v4957_v37 = vpack.c.bf16 %v4859_v49, %v4859_v49  ;;  %v4958_v42 = vpack.c.bf16 %v4860_v51, %v4860_v51 }
 0x207   : > { %v4959_v56 = vpack.c.bf16 %v4861_v28, %v4861_v28  ;;  %v4960_v22 = vpack.c.bf16 %v4826_v35, %v4826_v35  ;;  %4795 = vmatmul.bf16.vlgmr.msra.gmra.mxu3 %v4731_v0  ;;  %v4961_v6 = vpack.c.bf16 %v4862_v54, %v4862_v54  ;;  %v4962_v7 = vpack.c.bf16 %v4863_v36, %v4863_v36  ;;  %v3209_v35 = vld [vmem:[#allocation2 + $0x13a] sm:$0xff] }
 0x208   : > { %v4963_v57 = vpack.c.bf16 %v4864_v45, %v4864_v45  ;;  %v4964_v9 = vpack.c.bf16 %v4827_v47, %v4827_v47  ;;  %v4965_v10 = vpack.c.bf16 %v4865_v58, %v4865_v58  ;;  %v4966_v11 = vpack.c.bf16 %v4866_v59, %v4866_v59  ;;  %v3212_v45 = vld [vmem:[#allocation2 + $0x172] sm:$0xff] }
 0x209   : > { %v4967_v61 = vpack.c.bf16 %v4867_v55, %v4867_v55  ;;  %v5097_v12 = vunpack.c.l.b16 %v4952_v24  ;;  %v5098_v13 = vunpack.c.l.b16 %v4953_v32  ;;  %v5099_v43 = vunpack.c.l.b16 %v4954_v1 }
 0x20a   : > { %v5100_v14 = vunpack.c.l.b16 %v4955_v4  ;;  %v5101_v15 = vunpack.c.l.b16 %v4956_v5  ;;  %v5102_v16 = vunpack.c.l.b16 %v4957_v37  ;;  %v5103_v17 = vunpack.c.l.b16 %v4958_v42 }
 0x20b   : > { %v5104_v2 = vunpack.c.l.b16 %v4959_v56  ;;  %v5105_v18 = vunpack.c.l.b16 %v4960_v22  ;;  %v5106_v19 = vunpack.c.l.b16 %v4961_v6  ;;  %v5107_v60 = vunpack.c.l.b16 %v4962_v7 }
 0x20c   : > { %v5108_v20 = vunpack.c.l.b16 %v4963_v57  ;;  %v5109_v8 = vunpack.c.l.b16 %v4964_v9  ;;  %v5110_v25 = vunpack.c.l.b16 %v4965_v10  ;;  %v5111_v26 = vunpack.c.l.b16 %v4966_v11 }
 0x20d   : > { %v5112_v27 = vunpack.c.l.b16 %v4967_v61  ;;  %v5161_v40 = vrot.slane %v5098_v13, 7  ;;  %v5163_v29 = vrot.slane %v5099_v43, 6  ;;  %v5165_v3 = vrot.slane %v5100_v14, 5 }
 0x20e   : > { %v5167_v30 = vrot.slane %v5101_v15, 4  ;;  %v5169_v31 = vrot.slane %v5102_v16, 3  ;;  %v5171_v21 = vrot.slane %v5103_v17, 2  ;;  %v5173_v34 = vrot.slane %v5104_v2, 1 }
 0x20f   : > { %v5162_v33 = vsel %vm1043_vm0, %v5161_v40, %v5097_v12  ;;  %v5175_v62 = vrot.slane %v5106_v19, 7  ;;  %v5177_v39 = vrot.slane %v5107_v60, 6  ;;  %v5179_v44 = vrot.slane %v5108_v20, 5 }
 0x210   : > { %v5164_v38 = vsel %vm1046_vm1, %v5163_v29, %v5162_v33  ;;  %v5181_v46 = vrot.slane %v5109_v8, 4  ;;  %v5183_v49 = vrot.slane %v5110_v25, 3  ;;  %v5185_v50 = vrot.slane %v5111_v26, 2 }
 0x211   : > { %v5166_v47 = vsel %vm1049_vm2, %v5165_v3, %v5164_v38  ;;  %v5176_v48 = vsel %vm1043_vm0, %v5175_v62, %v5105_v18  ;;  %v5187_v52 = vrot.slane %v5112_v27, 1  ;;  %v3265_v54 = vrot.slane %v3209_v35, 2 }
 0x212   : > { %v5168_v51 = vsel %vm1052_vm3, %v5167_v30, %v5166_v47  ;;  %v5178_v28 = vsel %vm1046_vm1, %v5177_v39, %v5176_v48  ;;  %v3266_v58 = vrot.slane %v3209_v35, 4  ;;  %v3267_v59 = vrot.slane %v3209_v35, 6 }
 0x213   : > { %v5170_v36 = vsel %vm1055_vm4, %v5169_v31, %v5168_v51  ;;  %v5180_v41 = vsel %vm1049_vm2, %v5179_v44, %v5178_v28  ;;  %v3268_v24 = vrot.slane %v3210_v23, 2  ;;  %v3269_v32 = vrot.slane %v3210_v23, 4 }
 0x214   : > { %v5172_v63 = vsel %vm1058_vm5, %v5171_v21, %v5170_v36  ;;  %v5182_v55 = vsel %vm1052_vm3, %v5181_v46, %v5180_v41  ;;  %v3270_v4 = vrot.slane %v3210_v23, 6  ;;  %v3271_v5 = vrot.slane %v3211_v53, 2 }
 0x215   : > { %v5174_v0 = vsel %vm1061_vm6, %v5173_v34, %v5172_v63  ;;  %v5184_v1 = vsel %vm1055_vm4, %v5183_v49, %v5182_v55  ;;  %v3272_v42 = vrot.slane %v3211_v53, 4  ;;  %v3273_v56 = vrot.slane %v3211_v53, 6  ;;  %v3753_v55 = vld [vmem:[#allocation2 + $0x158] sm:$0xff] }
 0x216   : > { %v5186_v37 = vsel %vm1058_vm5, %v5185_v50, %v5184_v1  ;;  %v3274_v22 = vrot.slane %v3212_v45, 2  ;;  %v3275_v7 = vrot.slane %v3212_v45, 4  ;;  %v3276_v57 = vrot.slane %v3212_v45, 6  ;;  %v3754_v1 = vld [vmem:[#allocation2 + $0x180] sm:$0xff] }
 0x217   : > { %v5188_v6 = vsel %vm1061_vm6, %v5187_v52, %v5186_v37  ;;  %v3373_v9 = vpack.c.bf16 %v3209_v35, %v3209_v35  ;;  %v3374_v11 = vpack.c.bf16 %v3265_v54, %v3265_v54  ;;  %v3375_v61 = vpack.c.bf16 %v3266_v58, %v3266_v58  ;;  %v3752_v52 = vld [vmem:[#allocation2 + $0x150] sm:$0xff] }
 0x218   : > { %v5273_v10 = vpack.c.b16 %v5188_v6, %v5174_v0  ;;  %v3376_v12 = vpack.c.bf16 %v3267_v59, %v3267_v59  ;;  %v3377_v13 = vpack.c.bf16 %v3210_v23, %v3210_v23  ;;  %v3378_v43 = vpack.c.bf16 %v3268_v24, %v3268_v24 }
 0x219   : > { %v3379_v14 = vpack.c.bf16 %v3269_v32, %v3269_v32  ;;  %v3380_v15 = vpack.c.bf16 %v3270_v4, %v3270_v4  ;;  %v3381_v16 = vpack.c.bf16 %v3211_v53, %v3211_v53  ;;  %v3382_v17 = vpack.c.bf16 %v3271_v5, %v3271_v5 }
 0x21a   : > { %5337 = vmatmul.bf16.vlgmr.msra.gmra.mxu0 %v5273_v10  ;;  %v3383_v2 = vpack.c.bf16 %v3272_v42, %v3272_v42  ;;  %v3384_v18 = vpack.c.bf16 %v3273_v56, %v3273_v56  ;;  %v3385_v19 = vpack.c.bf16 %v3212_v45, %v3212_v45  ;;  %v3386_v60 = vpack.c.bf16 %v3274_v22, %v3274_v22 }
 0x21b   : > { %v3387_v20 = vpack.c.bf16 %v3275_v7, %v3275_v7  ;;  %v3388_v8 = vpack.c.bf16 %v3276_v57, %v3276_v57  ;;  %v3518_v25 = vunpack.c.l.b16 %v3373_v9  ;;  %v3519_v26 = vunpack.c.l.b16 %v3374_v11  ;;  %v3755_v7 = vld [vmem:[#allocation2 + $0x188] sm:$0xff] }
 0x21c   : > { %v3520_v27 = vunpack.c.l.b16 %v3375_v61  ;;  %v3521_v40 = vunpack.c.l.b16 %v3376_v12  ;;  %v3522_v29 = vunpack.c.l.b16 %v3377_v13  ;;  %v3523_v3 = vunpack.c.l.b16 %v3378_v43 }
 0x21d   : > { %v3524_v30 = vunpack.c.l.b16 %v3379_v14  ;;  %v3525_v31 = vunpack.c.l.b16 %v3380_v15  ;;  %v3526_v33 = vunpack.c.l.b16 %v3381_v16  ;;  %v3527_v21 = vunpack.c.l.b16 %v3382_v17 }
 0x21e   : > { %v3528_v34 = vunpack.c.l.b16 %v3383_v2  ;;  %v3529_v62 = vunpack.c.l.b16 %v3384_v18  ;;  %v3530_v35 = vunpack.c.l.b16 %v3385_v19  ;;  %v3531_v38 = vunpack.c.l.b16 %v3386_v60 }
 0x21f   : > { %v3532_v39 = vunpack.c.l.b16 %v3387_v20  ;;  %v3533_v44 = vunpack.c.l.b16 %v3388_v8  ;;  %v3618_v46 = vrot.slane %v3519_v26, 7  ;;  %v3620_v47 = vrot.slane %v3520_v27, 6 }
 0x220   : > { %v3622_v48 = vrot.slane %v3521_v40, 5  ;;  %v3624_v49 = vrot.slane %v3522_v29, 4  ;;  %v3626_v50 = vrot.slane %v3523_v3, 3  ;;  %v3628_v23 = vrot.slane %v3524_v30, 2 }
 0x221   : > { %v3630_v51 = vrot.slane %v3525_v31, 1  ;;  %v3632_v28 = vrot.slane %v3527_v21, 7  ;;  %v3619_v53 = vsel %vm1043_vm0, %v3618_v46, %v3518_v25  ;;  %v3634_v54 = vrot.slane %v3528_v34, 6 }
 0x222   : > { %v3636_v36 = vrot.slane %v3529_v62, 5  ;;  %v3638_v41 = vrot.slane %v3530_v35, 4  ;;  %v3621_v45 = vsel %vm1046_vm1, %v3620_v47, %v3619_v53  ;;  %v3640_v59 = vrot.slane %v3531_v38, 3 }
 0x223   : > { %v3633_v58 = vsel %vm1043_vm0, %v3632_v28, %v3526_v33  ;;  %v3642_v63 = vrot.slane %v3532_v39, 2  ;;  %v3623_v24 = vsel %vm1049_vm2, %v3622_v48, %v3621_v45  ;;  %v3644_v0 = vrot.slane %v3533_v44, 1 }
 0x224   : > { %v3635_v32 = vsel %vm1046_vm1, %v3634_v54, %v3633_v58  ;;  %v3808_v4 = vrot.slane %v3752_v52, 2  ;;  %v3625_v5 = vsel %vm1052_vm3, %v3624_v49, %v3623_v24  ;;  %v3809_v42 = vrot.slane %v3752_v52, 4 }
 0x225   : > { %v3637_v37 = vsel %vm1049_vm2, %v3636_v36, %v3635_v32  ;;  %v3810_v56 = vrot.slane %v3752_v52, 6  ;;  %v3627_v22 = vsel %vm1055_vm4, %v3626_v50, %v3625_v5  ;;  %v3811_v57 = vrot.slane %v3753_v55, 2  ;;  %v4286_v5 = vld [vmem:[#allocation2 + $0x91] sm:$0xff] }
 0x226   : > { %v3639_v6 = vsel %vm1052_vm3, %v3638_v41, %v3637_v37  ;;  %v3812_v9 = vrot.slane %v3753_v55, 4  ;;  %v3629_v10 = vsel %vm1058_vm5, %v3628_v23, %v3627_v22  ;;  %v3813_v61 = vrot.slane %v3753_v55, 6 }
 0x227   : > { %v3641_v11 = vsel %vm1055_vm4, %v3640_v59, %v3639_v6  ;;  %v3814_v12 = vrot.slane %v3754_v1, 2  ;;  %v3631_v13 = vsel %vm1061_vm6, %v3630_v51, %v3629_v10  ;;  %v3815_v14 = vrot.slane %v3754_v1, 4  ;;  %v4287_v6 = vld [vmem:[#allocation2 + $0x99] sm:$0xff] }
 0x228   : > { %v3643_v43 = vsel %vm1058_vm5, %v3642_v63, %v3641_v11  ;;  %v3816_v15 = vrot.slane %v3754_v1, 6  ;;  %v3817_v17 = vrot.slane %v3755_v7, 2  ;;  %v3818_v2 = vrot.slane %v3755_v7, 4 }
 0x229   : > { %v3645_v16 = vsel %vm1061_vm6, %v3644_v0, %v3643_v43  ;;  %v3819_v18 = vrot.slane %v3755_v7, 6  ;;  %v3916_v60 = vpack.c.bf16 %v3752_v52, %v3752_v52  ;;  %v3917_v20 = vpack.c.bf16 %v3808_v4, %v3808_v4 }
 0x22a   : > { %v3649_v19 = vpack.c.b16 %v3645_v16, %v3631_v13  ;;  %v3918_v8 = vpack.c.bf16 %v3809_v42, %v3809_v42  ;;  %v3919_v25 = vpack.c.bf16 %v3810_v56, %v3810_v56  ;;  %v3920_v26 = vpack.c.bf16 %v3753_v55, %v3753_v55  ;;  %v4289_v16 = vld [vmem:[#allocation2 + $0xc9] sm:$0xff] }
 0x22b   : > { %v3921_v27 = vpack.c.bf16 %v3811_v57, %v3811_v57  ;;  %v3922_v40 = vpack.c.bf16 %v3812_v9, %v3812_v9  ;;  %v3923_v29 = vpack.c.bf16 %v3813_v61, %v3813_v61  ;;  %v3924_v3 = vpack.c.bf16 %v3754_v1, %v3754_v1 }
 0x22c   : > { %3725 = vmatmul.bf16.gmra.mxu1 %v3649_v19  ;;  %v3925_v30 = vpack.c.bf16 %v3814_v12, %v3814_v12  ;;  %v3926_v31 = vpack.c.bf16 %v3815_v14, %v3815_v14  ;;  %v3927_v33 = vpack.c.bf16 %v3816_v15, %v3816_v15  ;;  %v3928_v21 = vpack.c.bf16 %v3755_v7, %v3755_v7  ;;  %v4288_v12 = vld [vmem:[#allocation2 + $0xc1] sm:$0xff] }
 0x22d   : > { %v3929_v34 = vpack.c.bf16 %v3817_v17, %v3817_v17  ;;  %v3930_v62 = vpack.c.bf16 %v3818_v2, %v3818_v2  ;;  %v3931_v35 = vpack.c.bf16 %v3819_v18, %v3819_v18  ;;  %v4061_v38 = vunpack.c.l.b16 %v3916_v60 }
 0x22e   : > { %v4062_v39 = vunpack.c.l.b16 %v3917_v20  ;;  %v4063_v44 = vunpack.c.l.b16 %v3918_v8  ;;  %v4064_v46 = vunpack.c.l.b16 %v3919_v25  ;;  %v4065_v47 = vunpack.c.l.b16 %v3920_v26 }
 0x22f   : > { %v4066_v48 = vunpack.c.l.b16 %v3921_v27  ;;  %v4067_v49 = vunpack.c.l.b16 %v3922_v40  ;;  %v4068_v50 = vunpack.c.l.b16 %v3923_v29  ;;  %v4069_v23 = vunpack.c.l.b16 %v3924_v3 }
 0x230   : > { %v4070_v51 = vunpack.c.l.b16 %v3925_v30  ;;  %v4071_v28 = vunpack.c.l.b16 %v3926_v31  ;;  %v4072_v52 = vunpack.c.l.b16 %v3927_v33  ;;  %v4073_v53 = vunpack.c.l.b16 %v3928_v21 }
 0x231   : > { %v4074_v54 = vunpack.c.l.b16 %v3929_v34  ;;  %v4075_v36 = vunpack.c.l.b16 %v3930_v62  ;;  %v4076_v41 = vunpack.c.l.b16 %v3931_v35  ;;  %v4161_v45 = vrot.slane %v4062_v39, 7 }
 0x232   : > { %v4163_v58 = vrot.slane %v4063_v44, 6  ;;  %v4165_v59 = vrot.slane %v4064_v46, 5  ;;  %v4167_v63 = vrot.slane %v4065_v47, 4  ;;  %v4169_v55 = vrot.slane %v4066_v48, 3 }
 0x233   : > { %v4171_v24 = vrot.slane %v4067_v49, 2  ;;  %v4162_v32 = vsel %vm1043_vm0, %v4161_v45, %v4061_v38  ;;  %v4175_v0 = vrot.slane %v4070_v51, 7  ;;  %v4177_v1 = vrot.slane %v4071_v28, 6 }
 0x234   : > { %v4179_v4 = vrot.slane %v4072_v52, 5  ;;  %v4164_v37 = vsel %vm1046_vm1, %v4163_v58, %v4162_v32  ;;  %v4173_v42 = vrot.slane %v4068_v50, 1  ;;  %v4181_v56 = vrot.slane %v4073_v53, 4 }
 0x235   : > { %v4183_v22 = vrot.slane %v4074_v54, 3  ;;  %v4166_v7 = vsel %vm1049_vm2, %v4165_v59, %v4164_v37  ;;  %v4176_v57 = vsel %vm1043_vm0, %v4175_v0, %v4069_v23  ;;  %v4185_v9 = vrot.slane %v4075_v36, 2 }
 0x236   : > { %v4187_v10 = vrot.slane %v4076_v41, 1  ;;  %v4168_v11 = vsel %vm1052_vm3, %v4167_v63, %v4166_v7  ;;  %v4178_v61 = vsel %vm1046_vm1, %v4177_v1, %v4176_v57  ;;  %v4326_v13 = vrot.slane %v4286_v5, 2 }
 0x237   : > { %v4327_v43 = vrot.slane %v4286_v5, 4  ;;  %v4170_v14 = vsel %vm1055_vm4, %v4169_v55, %v4168_v11  ;;  %v4180_v15 = vsel %vm1049_vm2, %v4179_v4, %v4178_v61  ;;  %v4328_v17 = vrot.slane %v4286_v5, 6 }
 0x238   : > { %v4329_v2 = vrot.slane %v4287_v6, 2  ;;  %v4172_v18 = vsel %vm1058_vm5, %v4171_v24, %v4170_v14  ;;  %v4182_v19 = vsel %vm1052_vm3, %v4181_v56, %v4180_v15  ;;  %v4330_v60 = vrot.slane %v4287_v6, 4 }
 0x239   : > { %v4331_v20 = vrot.slane %v4287_v6, 6  ;;  %v4174_v8 = vsel %vm1061_vm6, %v4173_v42, %v4172_v18  ;;  %v4184_v25 = vsel %vm1055_vm4, %v4183_v22, %v4182_v19  ;;  %v4332_v26 = vrot.slane %v4288_v12, 2  ;;  %v4829_v19 = vld [vmem:[#allocation2 + $0x9a] sm:$0xff] }
 0x23a   : > { %v4333_v27 = vrot.slane %v4288_v12, 4  ;;  %v4186_v40 = vsel %vm1058_vm5, %v4185_v9, %v4184_v25  ;;  %v4334_v29 = vrot.slane %v4288_v12, 6  ;;  %v4335_v3 = vrot.slane %v4289_v16, 2  ;;  %v4830_v25 = vld [vmem:[#allocation2 + $0xc2] sm:$0xff] }
 0x23b   : > { %v4336_v30 = vrot.slane %v4289_v16, 4  ;;  %v4188_v31 = vsel %vm1061_vm6, %v4187_v10, %v4186_v40  ;;  %v4337_v33 = vrot.slane %v4289_v16, 6  ;;  %v4427_v21 = vpack.c.bf16 %v4326_v13, %v4326_v13 }
 0x23c   : > { %v4428_v34 = vpack.c.bf16 %v4327_v43, %v4327_v43  ;;  %v4192_v62 = vpack.c.b16 %v4188_v31, %v4174_v8  ;;  %v4429_v35 = vpack.c.bf16 %v4328_v17, %v4328_v17  ;;  %v4430_v38 = vpack.c.bf16 %v4287_v6, %v4287_v6 }
 0x23d   : > { %v4431_v39 = vpack.c.bf16 %v4329_v2, %v4329_v2  ;;  %v4426_v44 = vpack.c.bf16 %v4286_v5, %v4286_v5  ;;  %v4432_v46 = vpack.c.bf16 %v4330_v60, %v4330_v60  ;;  %v4433_v47 = vpack.c.bf16 %v4331_v20, %v4331_v20 }
 0x23e   : > { %v4435_v48 = vpack.c.bf16 %v4332_v26, %v4332_v26  ;;  %4268 = vmatmul.bf16.gmra.mxu2 %v4192_v62  ;;  %v4434_v49 = vpack.c.bf16 %v4288_v12, %v4288_v12  ;;  %v4436_v50 = vpack.c.bf16 %v4333_v27, %v4333_v27  ;;  %v4437_v23 = vpack.c.bf16 %v4334_v29, %v4334_v29  ;;  %v4828_v12 = vld [vmem:[#allocation2 + $0x92] sm:$0xff]  ;;  %v4831_v29 = vld [vmem:[#allocation2 + $0xca] sm:$0xff] }
 0x23f   : > { %v4438_v51 = vpack.c.bf16 %v4289_v16, %v4289_v16  ;;  %v4439_v28 = vpack.c.bf16 %v4335_v3, %v4335_v3  ;;  %v4440_v52 = vpack.c.bf16 %v4336_v30, %v4336_v30  ;;  %v4441_v53 = vpack.c.bf16 %v4337_v33, %v4337_v33 }
 0x240   : > { %v4572_v54 = vunpack.c.l.b16 %v4427_v21  ;;  %v4573_v36 = vunpack.c.l.b16 %v4428_v34  ;;  %v4574_v41 = vunpack.c.l.b16 %v4429_v35  ;;  %v4575_v45 = vunpack.c.l.b16 %v4430_v38 }
 0x241   : > { %v4576_v58 = vunpack.c.l.b16 %v4431_v39  ;;  %v4571_v59 = vunpack.c.l.b16 %v4426_v44  ;;  %v4577_v63 = vunpack.c.l.b16 %v4432_v46  ;;  %v4578_v55 = vunpack.c.l.b16 %v4433_v47 }
 0x242   : > { %v4580_v24 = vunpack.c.l.b16 %v4435_v48  ;;  %v4579_v32 = vunpack.c.l.b16 %v4434_v49  ;;  %v4581_v0 = vunpack.c.l.b16 %v4436_v50  ;;  %v4582_v1 = vunpack.c.l.b16 %v4437_v23 }
 0x243   : > { %v4583_v4 = vunpack.c.l.b16 %v4438_v51  ;;  %v4584_v5 = vunpack.c.l.b16 %v4439_v28  ;;  %v4585_v37 = vunpack.c.l.b16 %v4440_v52  ;;  %v4647_v42 = vrot.slane %v4572_v54, 7 }
 0x244   : > { %v4649_v56 = vrot.slane %v4573_v36, 6  ;;  %v4586_v22 = vunpack.c.l.b16 %v4441_v53  ;;  %v4651_v6 = vrot.slane %v4574_v41, 5  ;;  %v4653_v7 = vrot.slane %v4575_v45, 4 }
 0x245   : > { %v4655_v57 = vrot.slane %v4576_v58, 3  ;;  %v4648_v9 = vsel %vm1043_vm0, %v4647_v42, %v4571_v59  ;;  %v4657_v10 = vrot.slane %v4577_v63, 2  ;;  %v4661_v11 = vrot.slane %v4580_v24, 7 }
 0x246   : > { %v4663_v61 = vrot.slane %v4581_v0, 6  ;;  %v4650_v13 = vsel %vm1046_vm1, %v4649_v56, %v4648_v9  ;;  %v4659_v43 = vrot.slane %v4578_v55, 1  ;;  %v4665_v14 = vrot.slane %v4582_v1, 5 }
 0x247   : > { %v4667_v15 = vrot.slane %v4583_v4, 4  ;;  %v4652_v16 = vsel %vm1049_vm2, %v4651_v6, %v4650_v13  ;;  %v4662_v17 = vsel %vm1043_vm0, %v4661_v11, %v4579_v32  ;;  %v4669_v2 = vrot.slane %v4584_v5, 3 }
 0x248   : > { %v4671_v18 = vrot.slane %v4585_v37, 2  ;;  %v4654_v60 = vsel %vm1052_vm3, %v4653_v7, %v4652_v16  ;;  %v4664_v20 = vsel %vm1046_vm1, %v4663_v61, %v4662_v17  ;;  %v4673_v8 = vrot.slane %v4586_v22, 1 }
 0x249   : > { %v4868_v26 = vrot.slane %v4828_v12, 2  ;;  %v4656_v27 = vsel %vm1055_vm4, %v4655_v57, %v4654_v60  ;;  %v4666_v40 = vsel %vm1049_vm2, %v4665_v14, %v4664_v20  ;;  %v4869_v3 = vrot.slane %v4828_v12, 4 }
 0x24a   : > { %v4870_v30 = vrot.slane %v4828_v12, 6  ;;  %v4658_v31 = vsel %vm1058_vm5, %v4657_v10, %v4656_v27  ;;  %v4668_v33 = vsel %vm1052_vm3, %v4667_v15, %v4666_v40  ;;  %v4871_v21 = vrot.slane %v4829_v19, 2  ;;  %v4290_v40 = vld [vmem:[#allocation2 + $0xf1] sm:$0xff] }
 0x24b   : > { %v4872_v34 = vrot.slane %v4829_v19, 4  ;;  %v4660_v62 = vsel %vm1061_vm6, %v4659_v43, %v4658_v31  ;;  %v4670_v35 = vsel %vm1055_vm4, %v4669_v2, %v4668_v33  ;;  %v4873_v38 = vrot.slane %v4829_v19, 6 }
 0x24c   : > { %v4874_v39 = vrot.slane %v4830_v25, 2  ;;  %v4672_v44 = vsel %vm1058_vm5, %v4671_v18, %v4670_v35  ;;  %v4875_v46 = vrot.slane %v4830_v25, 4  ;;  %v4876_v47 = vrot.slane %v4830_v25, 6 }
 0x24d   : > { %v4877_v48 = vrot.slane %v4831_v29, 2  ;;  %v4674_v49 = vsel %vm1061_vm6, %v4673_v8, %v4672_v44  ;;  %v4878_v50 = vrot.slane %v4831_v29, 4  ;;  %v4879_v23 = vrot.slane %v4831_v29, 6  ;;  %v4292_v44 = vld [vmem:[#allocation2 + $0x121] sm:$0xff] }
 0x24e   : > { %v4969_v51 = vpack.c.bf16 %v4868_v26, %v4868_v26  ;;  %v4732_v28 = vpack.c.b16 %v4674_v49, %v4660_v62  ;;  %v4970_v52 = vpack.c.bf16 %v4869_v3, %v4869_v3  ;;  %v4971_v53 = vpack.c.bf16 %v4870_v30, %v4870_v30  ;;  %v4291_v62 = vld [vmem:[#allocation2 + $0xf9] sm:$0xff]  ;;  %v4293_v49 = vld [vmem:[#allocation2 + $0x129] sm:$0xff] }
 0x24f   : > { %v4972_v54 = vpack.c.bf16 %v4829_v19, %v4829_v19  ;;  %v4968_v36 = vpack.c.bf16 %v4828_v12, %v4828_v12  ;;  %v4973_v41 = vpack.c.bf16 %v4871_v21, %v4871_v21  ;;  %v4974_v45 = vpack.c.bf16 %v4872_v34, %v4872_v34 }
 0x250   : > { %v4975_v58 = vpack.c.bf16 %v4873_v38, %v4873_v38  ;;  %4800 = vmatmul.bf16.gmra.mxu3 %v4732_v28  ;;  %v4977_v59 = vpack.c.bf16 %v4874_v39, %v4874_v39  ;;  %v4978_v63 = vpack.c.bf16 %v4875_v46, %v4875_v46  ;;  %v4979_v55 = vpack.c.bf16 %v4876_v47, %v4876_v47 }
 0x251   : > { %v4980_v24 = vpack.c.bf16 %v4831_v29, %v4831_v29  ;;  %v4976_v32 = vpack.c.bf16 %v4830_v25, %v4830_v25  ;;  %v4981_v0 = vpack.c.bf16 %v4877_v48, %v4877_v48  ;;  %v4982_v1 = vpack.c.bf16 %v4878_v50, %v4878_v50 }
 0x252   : > { %v4983_v4 = vpack.c.bf16 %v4879_v23, %v4879_v23  ;;  %v5114_v5 = vunpack.c.l.b16 %v4969_v51  ;;  %v5115_v37 = vunpack.c.l.b16 %v4970_v52  ;;  %v5116_v42 = vunpack.c.l.b16 %v4971_v53 }
 0x253   : > { %v5117_v56 = vunpack.c.l.b16 %v4972_v54  ;;  %v5113_v22 = vunpack.c.l.b16 %v4968_v36  ;;  %v5118_v6 = vunpack.c.l.b16 %v4973_v41  ;;  %v5119_v7 = vunpack.c.l.b16 %v4974_v45 }
 0x254   : > { %v5120_v57 = vunpack.c.l.b16 %v4975_v58  ;;  %v5122_v9 = vunpack.c.l.b16 %v4977_v59  ;;  %v5123_v10 = vunpack.c.l.b16 %v4978_v63  ;;  %v5124_v11 = vunpack.c.l.b16 %v4979_v55 }
 0x255   : > { %v5125_v61 = vunpack.c.l.b16 %v4980_v24  ;;  %v5121_v12 = vunpack.c.l.b16 %v4976_v32  ;;  %v5126_v13 = vunpack.c.l.b16 %v4981_v0  ;;  %v5127_v43 = vunpack.c.l.b16 %v4982_v1 }
 0x256   : > { %v5189_v14 = vrot.slane %v5114_v5, 7  ;;  %v5128_v15 = vunpack.c.l.b16 %v4983_v4  ;;  %v5191_v16 = vrot.slane %v5115_v37, 6  ;;  %v5193_v17 = vrot.slane %v5116_v42, 5 }
 0x257   : > { %v5195_v2 = vrot.slane %v5117_v56, 4  ;;  %v5197_v19 = vrot.slane %v5118_v6, 3  ;;  %v5199_v60 = vrot.slane %v5119_v7, 2  ;;  %v5203_v20 = vrot.slane %v5122_v9, 7 }
 0x258   : > { %v5190_v18 = vsel %vm1043_vm0, %v5189_v14, %v5113_v22  ;;  %v5205_v25 = vrot.slane %v5123_v10, 6  ;;  %v5207_v26 = vrot.slane %v5124_v11, 5  ;;  %v5209_v27 = vrot.slane %v5125_v61, 4 }
 0x259   : > { %v5192_v8 = vsel %vm1046_vm1, %v5191_v16, %v5190_v18  ;;  %v5201_v3 = vrot.slane %v5120_v57, 1  ;;  %v5204_v30 = vsel %vm1043_vm0, %v5203_v20, %v5121_v12  ;;  %v5211_v31 = vrot.slane %v5126_v13, 3 }
 0x25a   : > { %v5194_v29 = vsel %vm1049_vm2, %v5193_v17, %v5192_v8  ;;  %v5206_v21 = vsel %vm1046_vm1, %v5205_v25, %v5204_v30  ;;  %v5213_v34 = vrot.slane %v5127_v43, 2  ;;  %v5215_v39 = vrot.slane %v5128_v15, 1 }
 0x25b   : > { %v5196_v33 = vsel %vm1052_vm3, %v5195_v2, %v5194_v29  ;;  %v5208_v38 = vsel %vm1049_vm2, %v5207_v26, %v5206_v21  ;;  %v4338_v46 = vrot.slane %v4290_v40, 2  ;;  %v4339_v50 = vrot.slane %v4290_v40, 4 }
 0x25c   : > { %v5198_v35 = vsel %vm1055_vm4, %v5197_v19, %v5196_v33  ;;  %v5210_v48 = vsel %vm1052_vm3, %v5209_v27, %v5208_v38  ;;  %v4340_v23 = vrot.slane %v4290_v40, 6  ;;  %v4341_v52 = vrot.slane %v4291_v62, 2  ;;  %v4832_v38 = vld [vmem:[#allocation2 + $0xf2] sm:$0xff] }
 0x25d   : > { %v5200_v47 = vsel %vm1058_vm5, %v5199_v60, %v5198_v35  ;;  %v5212_v28 = vsel %vm1055_vm4, %v5211_v31, %v5210_v48  ;;  %v4342_v53 = vrot.slane %v4291_v62, 4  ;;  %v4343_v36 = vrot.slane %v4291_v62, 6 }
 0x25e   : > { %v5202_v51 = vsel %vm1061_vm6, %v5201_v3, %v5200_v47  ;;  %v5214_v54 = vsel %vm1058_vm5, %v5213_v34, %v5212_v28  ;;  %v4344_v41 = vrot.slane %v4292_v44, 2  ;;  %v4345_v45 = vrot.slane %v4292_v44, 4 }
 0x25f   : > { %v5216_v58 = vsel %vm1061_vm6, %v5215_v39, %v5214_v54  ;;  %v4346_v59 = vrot.slane %v4292_v44, 6  ;;  %v4347_v63 = vrot.slane %v4293_v49, 2  ;;  %v4348_v55 = vrot.slane %v4293_v49, 4  ;;  %v4834_v54 = vld [vmem:[#allocation2 + $0x122] sm:$0xff] }
 0x260   : > { %v5274_v24 = vpack.c.b16 %v5216_v58, %v5202_v51  ;;  %v4349_v32 = vrot.slane %v4293_v49, 6  ;;  %v4443_v0 = vpack.c.bf16 %v4338_v46, %v4338_v46  ;;  %v4444_v1 = vpack.c.bf16 %v4339_v50, %v4339_v50  ;;  %v4833_v51 = vld [vmem:[#allocation2 + $0xfa] sm:$0xff]  ;;  %v4835_v58 = vld [vmem:[#allocation2 + $0x12a] sm:$0xff] }
 0x261   : > { %v4442_v4 = vpack.c.bf16 %v4290_v40, %v4290_v40  ;;  %v4445_v5 = vpack.c.bf16 %v4340_v23, %v4340_v23  ;;  %v4446_v37 = vpack.c.bf16 %v4291_v62, %v4291_v62  ;;  %v4447_v42 = vpack.c.bf16 %v4341_v52, %v4341_v52 }
 0x262   : > { %5342 = vmatmul.bf16.gmra.mxu0 %v5274_v24  ;;  %v4448_v56 = vpack.c.bf16 %v4342_v53, %v4342_v53  ;;  %v4449_v22 = vpack.c.bf16 %v4343_v36, %v4343_v36  ;;  %v4451_v6 = vpack.c.bf16 %v4344_v41, %v4344_v41  ;;  %v4452_v7 = vpack.c.bf16 %v4345_v45, %v4345_v45  ;;  %v9426_v24 = vpop.f32.mrf.mxu1 }
 0x263   : > { %v4450_v57 = vpack.c.bf16 %v4292_v44, %v4292_v44  ;;  %v4453_v9 = vpack.c.bf16 %v4346_v59, %v4346_v59  ;;  %v4454_v10 = vpack.c.bf16 %v4293_v49, %v4293_v49  ;;  %v4455_v11 = vpack.c.bf16 %v4347_v63, %v4347_v63 }
 0x264   : > { %v4456_v61 = vpack.c.bf16 %v4348_v55, %v4348_v55  ;;  %v4457_v12 = vpack.c.bf16 %v4349_v32, %v4349_v32  ;;  %v4588_v13 = vunpack.c.l.b16 %v4443_v0  ;;  %v4589_v43 = vunpack.c.l.b16 %v4444_v1  ;;  %v9424_v55 = vpop.f32.mrf.mxu0 }
 0x265   : > { %v4587_v14 = vunpack.c.l.b16 %v4442_v4  ;;  %v4590_v15 = vunpack.c.l.b16 %v4445_v5  ;;  %v4591_v16 = vunpack.c.l.b16 %v4446_v37  ;;  %v4592_v17 = vunpack.c.l.b16 %v4447_v42 }
 0x266   : > { %v4593_v2 = vunpack.c.l.b16 %v4448_v56  ;;  %v4594_v18 = vunpack.c.l.b16 %v4449_v22  ;;  %v4596_v19 = vunpack.c.l.b16 %v4451_v6  ;;  %v4597_v60 = vunpack.c.l.b16 %v4452_v7 }
 0x267   : > { %v4595_v20 = vunpack.c.l.b16 %v4450_v57  ;;  %v4598_v8 = vunpack.c.l.b16 %v4453_v9  ;;  %v4599_v25 = vunpack.c.l.b16 %v4454_v10  ;;  %v4600_v26 = vunpack.c.l.b16 %v4455_v11 }
 0x268   : > { %v4601_v27 = vunpack.c.l.b16 %v4456_v61  ;;  %v4675_v40 = vrot.slane %v4588_v13, 7  ;;  %v4677_v29 = vrot.slane %v4589_v43, 6  ;;  %v4679_v3 = vrot.slane %v4590_v15, 5 }
 0x269   : > { %v4602_v30 = vunpack.c.l.b16 %v4457_v12  ;;  %v4681_v31 = vrot.slane %v4591_v16, 4  ;;  %v4683_v33 = vrot.slane %v4592_v17, 3  ;;  %v4689_v34 = vrot.slane %v4596_v19, 7 }
 0x26a   : > { %v4676_v21 = vsel %vm1043_vm0, %v4675_v40, %v4587_v14  ;;  %v4691_v62 = vrot.slane %v4597_v60, 6  ;;  %v4693_v35 = vrot.slane %v4598_v8, 5  ;;  %v4685_v44 = vrot.slane %v4593_v2, 2 }
 0x26b   : > { %v4678_v39 = vsel %vm1046_vm1, %v4677_v29, %v4676_v21  ;;  %v4687_v46 = vrot.slane %v4594_v18, 1  ;;  %v4695_v47 = vrot.slane %v4599_v25, 4  ;;  %v4690_v49 = vsel %vm1043_vm0, %v4689_v34, %v4595_v20 }
 0x26c   : > { %v4680_v48 = vsel %vm1049_vm2, %v4679_v3, %v4678_v39  ;;  %v4697_v50 = vrot.slane %v4600_v26, 3  ;;  %v4699_v23 = vrot.slane %v4601_v27, 2  ;;  %v4692_v52 = vsel %vm1046_vm1, %v4691_v62, %v4690_v49  ;;  %v9434_v62 = vpop.f32.mrf.mxu3 }
 0x26d   : > { %v4682_v28 = vsel %vm1052_vm3, %v4681_v31, %v4680_v48  ;;  %v4701_v53 = vrot.slane %v4602_v30, 1  ;;  %v4880_v36 = vrot.slane %v4832_v38, 2  ;;  %v4694_v45 = vsel %vm1049_vm2, %v4693_v35, %v4692_v52  ;;  %v9436_v35 = vpop.f32.mrf.mxu2  ;;  %v9440_v48 = vpop.f32.mrf.mxu1 }
 0x26e   : > { %v4684_v41 = vsel %vm1055_vm4, %v4683_v33, %v4682_v28  ;;  %v4881_v59 = vrot.slane %v4832_v38, 4  ;;  %v4882_v63 = vrot.slane %v4832_v38, 6  ;;  %v4696_v0 = vsel %vm1052_vm3, %v4695_v47, %v4694_v45  ;;  %v9438_v47 = vpop.f32.mrf.mxu0 }
 0x26f   : > { %v4686_v32 = vsel %vm1058_vm5, %v4685_v44, %v4684_v41  ;;  %v4883_v1 = vrot.slane %v4833_v51, 2  ;;  %v4884_v4 = vrot.slane %v4833_v51, 4  ;;  %v4698_v37 = vsel %vm1055_vm4, %v4697_v50, %v4696_v0 }
 0x270   : > { %v4688_v5 = vsel %vm1061_vm6, %v4687_v46, %v4686_v32  ;;  %v4885_v42 = vrot.slane %v4833_v51, 6  ;;  %v4886_v56 = vrot.slane %v4834_v54, 2  ;;  %v4700_v22 = vsel %vm1058_vm5, %v4699_v23, %v4698_v37 }
 0x271   : > { %v4887_v6 = vrot.slane %v4834_v54, 4  ;;  %v4888_v7 = vrot.slane %v4834_v54, 6  ;;  %v4889_v57 = vrot.slane %v4835_v58, 2  ;;  %v4702_v9 = vsel %vm1061_vm6, %v4701_v53, %v4700_v22 }
 0x272   : > { %v4890_v10 = vrot.slane %v4835_v58, 4  ;;  %v4891_v11 = vrot.slane %v4835_v58, 6  ;;  %v4985_v61 = vpack.c.bf16 %v4880_v36, %v4880_v36  ;;  %v4733_v12 = vpack.c.b16 %v4702_v9, %v4688_v5 }
 0x273   : > { %v4986_v13 = vpack.c.bf16 %v4881_v59, %v4881_v59  ;;  %v4987_v43 = vpack.c.bf16 %v4882_v63, %v4882_v63  ;;  %v4988_v14 = vpack.c.bf16 %v4833_v51, %v4833_v51  ;;  %v4984_v15 = vpack.c.bf16 %v4832_v38, %v4832_v38 }
 0x274   : > { %v4989_v16 = vpack.c.bf16 %v4883_v1, %v4883_v1  ;;  %v4990_v17 = vpack.c.bf16 %v4884_v4, %v4884_v4  ;;  %v4993_v2 = vpack.c.bf16 %v4886_v56, %v4886_v56  ;;  %4805 = vmatmul.bf16.gmra.mxu3 %v4733_v12  ;;  %v4991_v18 = vpack.c.bf16 %v4885_v42, %v4885_v42  ;;  %v4294_v42 = vld [vmem:[#allocation2 + $0x151] sm:$0xff] }
 0x275   : > { %v4994_v19 = vpack.c.bf16 %v4887_v6, %v4887_v6  ;;  %v4995_v60 = vpack.c.bf16 %v4888_v7, %v4888_v7  ;;  %v4996_v20 = vpack.c.bf16 %v4835_v58, %v4835_v58  ;;  %v4992_v8 = vpack.c.bf16 %v4834_v54, %v4834_v54 }
 0x276   : > { %v4997_v25 = vpack.c.bf16 %v4889_v57, %v4889_v57  ;;  %v4998_v26 = vpack.c.bf16 %v4890_v10, %v4890_v10  ;;  %v5130_v27 = vunpack.c.l.b16 %v4985_v61  ;;  %v4999_v40 = vpack.c.bf16 %v4891_v11, %v4891_v11  ;;  %v4295_v10 = vld [vmem:[#allocation2 + $0x159] sm:$0xff] }
 0x277   : > { %v5131_v29 = vunpack.c.l.b16 %v4986_v13  ;;  %v5132_v3 = vunpack.c.l.b16 %v4987_v43  ;;  %v5133_v30 = vunpack.c.l.b16 %v4988_v14  ;;  %v5129_v31 = vunpack.c.l.b16 %v4984_v15  ;;  %v9454_v14 = vpop.f32.mrf.mxu3  ;;  %v9456_v15 = vpop.f32.mrf.mxu2 }
 0x278   : > { %v5134_v33 = vunpack.c.l.b16 %v4989_v16  ;;  %v5135_v21 = vunpack.c.l.b16 %v4990_v17  ;;  %v5138_v34 = vunpack.c.l.b16 %v4993_v2  ;;  %v5136_v38 = vunpack.c.l.b16 %v4991_v18  ;;  %v9459_v18 = vpop.f32.mrf.mxu0 }
 0x279   : > { %v5139_v39 = vunpack.c.l.b16 %v4994_v19  ;;  %v5140_v44 = vunpack.c.l.b16 %v4995_v60  ;;  %v5141_v46 = vunpack.c.l.b16 %v4996_v20  ;;  %v5137_v49 = vunpack.c.l.b16 %v4992_v8  ;;  %v9461_v19 = vpop.f32.mrf.mxu1 }
 0x27a   : > { %v5142_v50 = vunpack.c.l.b16 %v4997_v25  ;;  %v5217_v23 = vrot.slane %v5130_v27, 7  ;;  %v5219_v51 = vrot.slane %v5131_v29, 6  ;;  %v5143_v28 = vunpack.c.l.b16 %v4998_v26  ;;  %v8202_v26 = vld [vmem:[#allocation2 + $0x181] sm:$0xff] }
 0x27b   : > { %v5144_v52 = vunpack.c.l.b16 %v4999_v40  ;;  %v5221_v53 = vrot.slane %v5132_v3, 5  ;;  %v5223_v54 = vrot.slane %v5133_v30, 4  ;;  %v5225_v41 = vrot.slane %v5134_v33, 3  ;;  %v8203_v30 = vld [vmem:[#allocation2 + $0x189] sm:$0xff] }
 0x27c   : > { %v5218_v36 = vsel %vm1043_vm0, %v5217_v23, %v5129_v31  ;;  %v5231_v45 = vrot.slane %v5138_v34, 7  ;;  %v5233_v58 = vrot.slane %v5139_v39, 6  ;;  %v5227_v63 = vrot.slane %v5135_v21, 2 }
 0x27d   : > { %v5220_v59 = vsel %vm1046_vm1, %v5219_v51, %v5218_v36  ;;  %v5235_v32 = vrot.slane %v5140_v44, 5  ;;  %v5237_v0 = vrot.slane %v5141_v46, 4  ;;  %v5229_v4 = vrot.slane %v5136_v38, 1 }
 0x27e   : > { %v5222_v1 = vsel %vm1049_vm2, %v5221_v53, %v5220_v59  ;;  %v5232_v5 = vsel %vm1043_vm0, %v5231_v45, %v5137_v49  ;;  %v5239_v37 = vrot.slane %v5142_v50, 3  ;;  %v5241_v6 = vrot.slane %v5143_v28, 2 }
 0x27f   : > { %v5224_v56 = vsel %vm1052_vm3, %v5223_v54, %v5222_v1  ;;  %v5234_v22 = vsel %vm1046_vm1, %v5233_v58, %v5232_v5  ;;  %v5243_v9 = vrot.slane %v5144_v52, 1  ;;  %v4350_v12 = vrot.slane %v4294_v42, 2 }
 0x280   : > { %v5226_v7 = vsel %vm1055_vm4, %v5225_v41, %v5224_v56  ;;  %v5236_v57 = vsel %vm1049_vm2, %v5235_v32, %v5234_v22  ;;  %v4351_v16 = vrot.slane %v4294_v42, 4  ;;  %v4352_v17 = vrot.slane %v4294_v42, 6 }
 0x281   : > { %v5228_v11 = vsel %vm1058_vm5, %v5227_v63, %v5226_v7  ;;  %v5238_v61 = vsel %vm1052_vm3, %v5237_v0, %v5236_v57  ;;  %v4353_v60 = vrot.slane %v4295_v10, 2  ;;  %v4354_v20 = vrot.slane %v4295_v10, 4  ;;  %v9466_v7 = vpop.f32.mrf.mxu2 }
 0x282   : > { %v5230_v13 = vsel %vm1061_vm6, %v5229_v4, %v5228_v11  ;;  %v5240_v43 = vsel %vm1055_vm4, %v5239_v37, %v5238_v61  ;;  %v4355_v8 = vrot.slane %v4295_v10, 6  ;;  %v4356_v27 = vrot.slane %v8202_v26, 2  ;;  %v9468_v61 = vpop.f32.mrf.mxu0 }
 0x283   : > { %v5242_v2 = vsel %vm1058_vm5, %v5241_v6, %v5240_v43  ;;  %v4357_v40 = vrot.slane %v8202_v26, 4  ;;  %v4358_v29 = vrot.slane %v8202_v26, 6  ;;  %v4359_v31 = vrot.slane %v8203_v30, 2  ;;  %v9464_v6 = vpop.f32.mrf.mxu3 }
 0x284   : > { %v5244_v25 = vsel %vm1061_vm6, %v5243_v9, %v5242_v2  ;;  %v4360_v33 = vrot.slane %v8203_v30, 4  ;;  %v4361_v21 = vrot.slane %v8203_v30, 6  ;;  %v4459_v34 = vpack.c.bf16 %v4350_v12, %v4350_v12  ;;  %v9470_v12 = vpop.f32.mrf.mxu1  ;;  %v8056_v2 = vld [vmem:[%s10249_s4 + $0x38] sm:$0xff] }
 0x285   : > { %v5275_v3 = vpack.c.b16 %v5244_v25, %v5230_v13  ;;  %v4460_v38 = vpack.c.bf16 %v4351_v16, %v4351_v16  ;;  %v4461_v39 = vpack.c.bf16 %v4352_v17, %v4352_v17  ;;  %v4462_v44 = vpack.c.bf16 %v4295_v10, %v4295_v10  ;;  %5589 = vmatpush.bf16.msra.mxu2 %v8056_v2 }
 0x286   : > { %v4458_v46 = vpack.c.bf16 %v4294_v42, %v4294_v42  ;;  %v4463_v49 = vpack.c.bf16 %v4353_v60, %v4353_v60  ;;  %v4464_v50 = vpack.c.bf16 %v4354_v20, %v4354_v20  ;;  %v4465_v23 = vpack.c.bf16 %v4355_v8, %v4355_v8 }
 0x287   : > { %5347 = vmatmul.bf16.gmra.mxu0 %v5275_v3  ;;  %v4467_v51 = vpack.c.bf16 %v4356_v27, %v4356_v27  ;;  %v4468_v28 = vpack.c.bf16 %v4357_v40, %v4357_v40  ;;  %v4469_v52 = vpack.c.bf16 %v4358_v29, %v4358_v29  ;;  %v4470_v53 = vpack.c.bf16 %v8203_v30, %v8203_v30  ;;  %v9477_v3 = vld [vmem:[#allocation2 + $0x152] sm:$0xff] }
 0x288   : > { %v4466_v54 = vpack.c.bf16 %v8202_v26, %v8202_v26  ;;  %v4471_v36 = vpack.c.bf16 %v4359_v31, %v4359_v31  ;;  %v4472_v41 = vpack.c.bf16 %v4360_v33, %v4360_v33  ;;  %v4473_v45 = vpack.c.bf16 %v4361_v21, %v4361_v21 }
 0x289   : > { %v4604_v58 = vunpack.c.l.b16 %v4459_v34  ;;  %v4605_v59 = vunpack.c.l.b16 %v4460_v38  ;;  %v4606_v63 = vunpack.c.l.b16 %v4461_v39  ;;  %v4607_v32 = vunpack.c.l.b16 %v4462_v44  ;;  %v4837_v44 = vld [vmem:[#allocation2 + $0x15a] sm:$0xff] }
 0x28a   : > { %v4603_v0 = vunpack.c.l.b16 %v4458_v46  ;;  %v4608_v1 = vunpack.c.l.b16 %v4463_v49  ;;  %v4609_v4 = vunpack.c.l.b16 %v4464_v50  ;;  %v4610_v5 = vunpack.c.l.b16 %v4465_v23  ;;  %v9485_v23 = vld [vmem:[#allocation2 + $0x182] sm:$0xff] }
 0x28b   : > { %v4612_v37 = vunpack.c.l.b16 %v4467_v51  ;;  %v4613_v42 = vunpack.c.l.b16 %v4468_v28  ;;  %v4614_v56 = vunpack.c.l.b16 %v4469_v52  ;;  %v4615_v22 = vunpack.c.l.b16 %v4470_v53  ;;  %v4839_v53 = vld [vmem:[#allocation2 + $0x18a] sm:$0xff] }
 0x28c   : > { %v4611_v57 = vunpack.c.l.b16 %v4466_v54  ;;  %v4616_v9 = vunpack.c.l.b16 %v4471_v36  ;;  %v4617_v10 = vunpack.c.l.b16 %v4472_v41  ;;  %v4703_v11 = vrot.slane %v4604_v58, 7  ;;  %v9492_v41 = vpop.f32.mrf.mxu3 }
 0x28d   : > { %v4618_v13 = vunpack.c.l.b16 %v4473_v45  ;;  %v4705_v43 = vrot.slane %v4605_v59, 6  ;;  %v4707_v16 = vrot.slane %v4606_v63, 5  ;;  %v4709_v17 = vrot.slane %v4607_v32, 4  ;;  %v9494_v45 = vpop.f32.mrf.mxu2 }
 0x28e   : > { %v4704_v60 = vsel %vm1043_vm0, %v4703_v11, %v4603_v0  ;;  %v4711_v20 = vrot.slane %v4608_v1, 3  ;;  %v4713_v8 = vrot.slane %v4609_v4, 2  ;;  %v4717_v25 = vrot.slane %v4612_v37, 7  ;;  %v9498_v0 = vpop.f32.mrf.mxu1  ;;  %v9500_v1 = vpop.f32.mrf.mxu0  ;;  %v8064_v4 = vld [vmem:[%s10249_s4 + $0x78] sm:$0xff] }
 0x28f   : > { %v4706_v26 = vsel %vm1046_vm1, %v4705_v43, %v4704_v60  ;;  %v4719_v27 = vrot.slane %v4613_v42, 6  ;;  %v4721_v40 = vrot.slane %v4614_v56, 5  ;;  %v4723_v29 = vrot.slane %v4615_v22, 4  ;;  %v8055_v22 = vld [vmem:[%s10249_s4 + $0x30] sm:$0xff]  ;;  %5512 = vmatpush.bf16.msra.mxu1 %v8064_v4 }
 0x290   : > { %v4708_v30 = vsel %vm1049_vm2, %v4707_v16, %v4706_v26  ;;  %v4715_v31 = vrot.slane %v4610_v5, 1  ;;  %v4718_v33 = vsel %vm1043_vm0, %v4717_v25, %v4611_v57  ;;  %v4725_v21 = vrot.slane %v4616_v9, 3  ;;  %5590 = vmatpush.bf16.msra.mxu2 %v8055_v22 }
 0x291   : > { %v4710_v34 = vsel %vm1052_vm3, %v4709_v17, %v4708_v30  ;;  %v4720_v38 = vsel %vm1046_vm1, %v4719_v27, %v4718_v33  ;;  %v4727_v39 = vrot.slane %v4617_v10, 2  ;;  %v4729_v50 = vrot.slane %v4618_v13, 1 }
 0x292   : > { %v4712_v46 = vsel %vm1055_vm4, %v4711_v20, %v4710_v34  ;;  %v4722_v49 = vsel %vm1049_vm2, %v4721_v40, %v4720_v38  ;;  %v4892_v51 = vrot.slane %v9477_v3, 2  ;;  %v4893_v54 = vrot.slane %v9477_v3, 4 }
 0x293   : > { %v4714_v28 = vsel %vm1058_vm5, %v4713_v8, %v4712_v46  ;;  %v4724_v52 = vsel %vm1052_vm3, %v4723_v29, %v4722_v49  ;;  %v4894_v36 = vrot.slane %v9477_v3, 6  ;;  %v4895_v63 = vrot.slane %v4837_v44, 2 }
 0x294   : > { %v4716_v58 = vsel %vm1061_vm6, %v4715_v31, %v4714_v28  ;;  %v4726_v59 = vsel %vm1055_vm4, %v4725_v21, %v4724_v52  ;;  %v4896_v32 = vrot.slane %v4837_v44, 4  ;;  %v4898_v37 = vrot.slane %v9485_v23, 2 }
 0x295   : > { %v4728_v5 = vsel %vm1058_vm5, %v4727_v39, %v4726_v59  ;;  %v4899_v42 = vrot.slane %v9485_v23, 4  ;;  %v4900_v56 = vrot.slane %v9485_v23, 6  ;;  %v4897_v9 = vrot.slane %v4837_v44, 6  ;;  %v9517_v46 = vpop.f32.mrf.mxu2  ;;  %v8054_v59 = vld [vmem:[%s10249_s4 + $0x28] sm:$0xff] }
 0x296   : > { %v4730_v57 = vsel %vm1061_vm6, %v4729_v50, %v4728_v5  ;;  %v4901_v10 = vrot.slane %v4839_v53, 2  ;;  %v4902_v11 = vrot.slane %v4839_v53, 4  ;;  %v5001_v43 = vpack.c.bf16 %v4892_v51, %v4892_v51  ;;  %v9521_v28 = vpop.f32.mrf.mxu1  ;;  %v9523_v52 = vpop.f32.mrf.mxu0  ;;  %5591 = vmatpush.bf16.msra.mxu2 %v8054_v59 }
 0x297   : > { %v4734_v13 = vpack.c.b16 %v4730_v57, %v4716_v58  ;;  %v5002_v16 = vpack.c.bf16 %v4893_v54, %v4893_v54  ;;  %v5003_v17 = vpack.c.bf16 %v4894_v36, %v4894_v36  ;;  %v4903_v2 = vrot.slane %v4839_v53, 6 }
 0x298   : > { %v5000_v60 = vpack.c.bf16 %v9477_v3, %v9477_v3  ;;  %v5004_v20 = vpack.c.bf16 %v4837_v44, %v4837_v44  ;;  %v5005_v8 = vpack.c.bf16 %v4895_v63, %v4895_v63  ;;  %v5006_v25 = vpack.c.bf16 %v4896_v32, %v4896_v32  ;;  %v9519_v3 = vpop.f32.mrf.mxu3 }
 0x299   : > { %4810 = vmatmul.bf16.gmra.mxu3 %v4734_v13  ;;  %v5009_v26 = vpack.c.bf16 %v4898_v37, %v4898_v37  ;;  %v5010_v27 = vpack.c.bf16 %v4899_v42, %v4899_v42  ;;  %v5011_v40 = vpack.c.bf16 %v4900_v56, %v4900_v56  ;;  %v5007_v29 = vpack.c.bf16 %v4897_v9, %v4897_v9 }
 0x29a   : > { %v5008_v30 = vpack.c.bf16 %v9485_v23, %v9485_v23  ;;  %v5012_v31 = vpack.c.bf16 %v4839_v53, %v4839_v53  ;;  %v5013_v33 = vpack.c.bf16 %v4901_v10, %v4901_v10  ;;  %v5014_v21 = vpack.c.bf16 %v4902_v11, %v4902_v11  ;;  %v8063_v23 = vld [vmem:[%s10249_s4 + $0x70] sm:$0xff] }
 0x29b   : > { %v5146_v34 = vunpack.c.l.b16 %v5001_v43  ;;  %v5147_v38 = vunpack.c.l.b16 %v5002_v16  ;;  %v5148_v39 = vunpack.c.l.b16 %v5003_v17  ;;  %v5015_v44 = vpack.c.bf16 %v4903_v2, %v4903_v2  ;;  %5513 = vmatpush.bf16.msra.mxu1 %v8063_v23 }
 0x29c   : > { %v5145_v49 = vunpack.c.l.b16 %v5000_v60  ;;  %v5149_v50 = vunpack.c.l.b16 %v5004_v20  ;;  %v5150_v51 = vunpack.c.l.b16 %v5005_v8  ;;  %v5151_v53 = vunpack.c.l.b16 %v5006_v25 }
 0x29d   : > { %v5154_v54 = vunpack.c.l.b16 %v5009_v26  ;;  %v5155_v36 = vunpack.c.l.b16 %v5010_v27  ;;  %v5156_v58 = vunpack.c.l.b16 %v5011_v40  ;;  %v5152_v63 = vunpack.c.l.b16 %v5007_v29  ;;  %v9536_v29 = vpop.f32.mrf.mxu2 }
 0x29e   : > { %v5153_v32 = vunpack.c.l.b16 %v5008_v30  ;;  %v5157_v4 = vunpack.c.l.b16 %v5012_v31  ;;  %v5158_v5 = vunpack.c.l.b16 %v5013_v33  ;;  %v5159_v37 = vunpack.c.l.b16 %v5014_v21 }
 0x29f   : > { %v5245_v42 = vrot.slane %v5146_v34, 7  ;;  %v5247_v56 = vrot.slane %v5147_v38, 6  ;;  %v5249_v22 = vrot.slane %v5148_v39, 5  ;;  %v5160_v57 = vunpack.c.l.b16 %v5015_v44  ;;  %v9542_v34 = vpop.f32.mrf.mxu0  ;;  %v8062_v38 = vld [vmem:[%s10249_s4 + $0x68] sm:$0xff] }
 0x2a0   : > { %v5251_v9 = vrot.slane %v5149_v50, 4  ;;  %v5253_v10 = vrot.slane %v5150_v51, 3  ;;  %v5259_v11 = vrot.slane %v5154_v54, 7  ;;  %v5261_v43 = vrot.slane %v5155_v36, 6  ;;  %v9538_v30 = vpop.f32.mrf.mxu3  ;;  %v8053_v50 = vld [vmem:[%s10249_s4 + $0x20] sm:$0xff]  ;;  %5514 = vmatpush.bf16.msra.mxu1 %v8062_v38 }
 0x2a1   : > { %v5246_v13 = vsel %vm1043_vm0, %v5245_v42, %v5145_v49  ;;  %v5263_v16 = vrot.slane %v5156_v58, 5  ;;  %v5265_v17 = vrot.slane %v5157_v4, 4  ;;  %v5255_v60 = vrot.slane %v5151_v53, 2  ;;  %v1566_v49 = vpop.f32.mrf.mxu1  ;;  %5592 = vmatpush.bf16.msra.mxu2 %v8053_v50  ;;  %v8052_v42 = vld [vmem:[%s10249_s4 + $0x18] sm:$0xff]  ;;  %v8067_v50 = vld [vmem:[%s10249_s4 + $0x90] sm:$0xff] }
 0x2a2   : > { %v5248_v2 = vsel %vm1046_vm1, %v5247_v56, %v5246_v13  ;;  %v5260_v20 = vsel %vm1043_vm0, %v5259_v11, %v5153_v32  ;;  %v5267_v8 = vrot.slane %v5158_v5, 3  ;;  %v5257_v26 = vrot.slane %v5152_v63, 1  ;;  %v8051_v11 = vld [vmem:[%s10249_s4 + $0x10] sm:$0xff]  ;;  %v8070_v13 = vld [vmem:[%s10249_s4 + $0xa8] sm:$0xff] }
 0x2a3   : > { %v5250_v25 = vsel %vm1049_vm2, %v5249_v22, %v5248_v2  ;;  %v5262_v27 = vsel %vm1046_vm1, %v5261_v43, %v5260_v20  ;;  %v5269_v40 = vrot.slane %v5159_v37, 2  ;;  %v5271_v21 = vrot.slane %v5160_v57, 1  ;;  %v8061_v37 = vld [vmem:[%s10249_s4 + $0x60] sm:$0xff]  ;;  %v8060_v57 = vld [vmem:[%s10249_s4 + $0x58] sm:$0xff]  ;;  %v8059_v20 = vld [vmem:[%s10249_s4 + $0x50] sm:$0xff] }
 0x2a4   : > { %v5252_v31 = vsel %vm1052_vm3, %v5251_v9, %v5250_v25  ;;  %v5264_v33 = vsel %vm1049_vm2, %v5263_v16, %v5262_v27  ;;  %v1567_v58 = vadd.f32 %v1566_v49, %v9464_v6  ;;  %v8072_v6 = vld [vmem:[%s10249_s4 + $0xb8] sm:$0xff]  ;;  %5515 = vmatpush.bf16.msra.mxu1 %v8061_v37  ;;  %v8069_v25 = vld [vmem:[%s10249_s4 + $0xa0] sm:$0xff]  ;;  %v8050_v27 = vld [vmem:[%s10249_s4 + $0x8] sm:$0xff] }
 0x2a5   : > { %v5254_v39 = vsel %vm1055_vm4, %v5253_v10, %v5252_v31  ;;  %v5266_v44 = vsel %vm1052_vm3, %v5265_v17, %v5264_v33  ;;  %v2100_v63 = vpop.f32.mrf.mxu2  ;;  %5593 = vmatpush.bf16.msra.mxu2 %v8052_v42  ;;  %5695 = vmatpush.bf16.msrb.mxu3 %v8072_v6  ;;  %v8080_v9 = vld [vmem:[%s10249_s4 + $0xf8] sm:$0xff]  ;;  %v8071_v10 = vld [vmem:[%s10249_s4 + $0xb0] sm:$0xff]  ;;  %v8065_v37 = vld [vmem:[%s10249_s4 + $0x80] sm:$0xff] }
 0x2a6   : > { %v5256_v51 = vsel %vm1058_vm5, %v5255_v60, %v5254_v39  ;;  %v5268_v23 = vsel %vm1055_vm4, %v5267_v8, %v5266_v44  ;;  %v2111_v4 = vadd.f32 %v2100_v63, %v1567_v58  ;;  %5809 = vmatpush.bf16.msrb.mxu0 %v8080_v9  ;;  %v8079_v8 = vld [vmem:[%s10249_s4 + $0xf0] sm:$0xff]  ;;  %v8068_v31 = vld [vmem:[%s10249_s4 + $0x98] sm:$0xff]  ;;  %v8058_v44 = vld [vmem:[%s10249_s4 + $0x48] sm:$0xff] }
 0x2a7   : > { %v5258_v53 = vsel %vm1061_vm6, %v5257_v26, %v5256_v51  ;;  %v5270_v54 = vsel %vm1058_vm5, %v5269_v40, %v5268_v23  ;;  %v9560_v5 = vpop.f32.mrf.mxu0  ;;  %v8078_v40 = vld [vmem:[%s10249_s4 + $0xe8] sm:$0xff]  ;;  %v8077_v51 = vld [vmem:[%s10249_s4 + $0xe0] sm:$0xff]  ;;  %v8096_v6 = vld [vmem:[%s10249_s4 + $0x178] sm:$0xff] }
 0x2a8   : > { %v5272_v36 = vsel %vm1061_vm6, %v5271_v21, %v5270_v54  ;;  %v9558_v32 = vpop.f32.mrf.mxu3  ;;  %5516 = vmatpush.bf16.msra.mxu1 %v8060_v57  ;;  %v1552_v21 = vadd.f32 %v9426_v24, %v9424_v55  ;;  %v8049_v24 = vld [vmem:[%s10249_s4] sm:$0xff] }
 0x2a9   : > { %v5276_v59 = vpack.c.b16 %v5272_v36, %v5258_v53  ;;  %5696 = vmatpush.bf16.msrb.mxu3 %v8071_v10  ;;  %5594 = vmatpush.bf16.msra.mxu2 %v8051_v11  ;;  %v9596_v60 = vpop.f32.mrf.mxu1  ;;  %v8076_v53 = vld [vmem:[%s10249_s4 + $0xd8] sm:$0xff]  ;;  %v8066_v36 = vld [vmem:[%s10249_s4 + $0x88] sm:$0xff] }
 0x2aa   : > { %5810 = vmatpush.bf16.msrb.mxu0 %v8079_v8  ;;  %v2105_v23 = vadd.f32 %v9436_v35, %v1552_v21  ;;  %v1554_v35 = vadd.f32 %v9440_v48, %v9438_v47 }
 0x2ab   : > { %5352 = vmatmul.bf16.gmra.mxu0 %v5276_v59 }
 0x2ac   : > { %5517 = vmatpush.bf16.msra.mxu1 %v8059_v20  ;;  %v2647_v58 = vadd.f32 %v9519_v3, %v2105_v23  ;;  %v8075_v3 = vld [vmem:[%s10249_s4 + $0xd0] sm:$0xff]  ;;  %v2106_v47 = vadd.f32 %v9456_v15, %v1554_v35  ;;  %v9671_v15 = vld [vmem:[%s10247_s2] ss:$0 sm:$0xff] }
 0x2ad   : > { %5697 = vmatpush.bf16.msrb.mxu3 %v8070_v13  ;;  %v9607_v26 = vpop.f32.mrf.mxu2  ;;  %5595 = vmatpush.bf16.msra.mxu2 %v8050_v27  ;;  %v8088_v27 = vld [vmem:[%s10249_s4 + $0x138] sm:$0xff] }
 0x2ae   : > { %5811 = vmatpush.bf16.msrb.mxu0 %v8078_v40  ;;  %v3189_v63 = vadd.f32 %v9500_v1, %v2647_v58  ;;  %v8074_v1 = vld [vmem:[%s10249_s4 + $0xc8] sm:$0xff]  ;;  %v2648_v9 = vadd.f32 %v9538_v30, %v2106_v47  ;;  %v9677_v30 = vld [vmem:[%s10248_s3] ss:$0 sm:$0xff]  ;;  %v8087_v47 = vld [vmem:[%s10249_s4 + $0x130] sm:$0xff] }
 0x2af   : > { %v9573_v22 = vpop.f32.mrf.mxu0 }
 0x2b0   : > { %v9571_v56 = vpop.f32.mrf.mxu3  ;;  %5518 = vmatpush.bf16.msra.mxu1 %v8058_v44  ;;  %v3190_v8 = vadd.f32 %v9523_v52, %v2648_v9 }
 0x2b1   : > { %5698 = vmatpush.bf16.msrb.mxu3 %v8069_v25  ;;  %v3711_v55 = vpop.f32.mrf.mxu1  ;;  %5596 = vmatpush.bf16.msra.mxu2 %v8049_v24 }
 0x2b2   : > { %5812 = vmatpush.bf16.msrb.mxu0 %v8077_v51  ;;  %v3731_v48 = vadd.f32 %v3711_v55, %v3189_v63  ;;  %v8073_v51 = vld [vmem:[%s10249_s4 + $0xc0] sm:$0xff] }
 0x2b5   : > { %5699 = vmatpush.bf16.msrb.mxu3 %v8068_v31  ;;  %v4254_v54 = vpop.f32.mrf.mxu2  ;;  %6037 = vmatpush.bf16.msrb.mxu2 %v8096_v6 }
 0x2b6   : > { %5813 = vmatpush.bf16.msrb.mxu0 %v8076_v53  ;;  %v4274_v10 = vadd.f32 %v4254_v54, %v3731_v48 }
 0x2b7   : > { %v9592_v16 = vpop.f32.mrf.mxu0 }
 0x2b8   : > { %v9590_v43 = vpop.f32.mrf.mxu3 }
 0x2b9   : > { %5700 = vmatpush.bf16.msrb.mxu3 %v8067_v50  ;;  %v3713_v57 = vpop.f32.mrf.mxu1  ;;  %v5435_v50 = vld [vmem:[#allocation3 + $0x1] sm:$0xff] }
 0x2ba   : > { %5814 = vmatpush.bf16.msrb.mxu0 %v8075_v3 }
 0x2bd   : > { %5701 = vmatpush.bf16.msrb.mxu3 %v8066_v36  ;;  %v4256_v11 = vpop.f32.mrf.mxu2 }
 0x2be   : > { %5815 = vmatpush.bf16.msrb.mxu0 %v8074_v1 }
 0x2bf   : > { %v3184_v2 = vpop.f32.mrf.mxu0 }
 0x2c0   : > { %v9594_v17 = vpop.f32.mrf.mxu3 }
 0x2c1   : > { %5702 = vmatpush.bf16.msrb.mxu3 %v8065_v37 }
 0x2c2   : > { %5816 = vmatpush.bf16.msrb.mxu0 %v8073_v51 }
 0x2c5   : > { %v4259_v23 = vpop.f32.mrf.mxu2 }
 0x2c7   : > { %v9620_v39 = vpop.f32.mrf.mxu0 }
 0x2c8   : > { %v2642_v33 = vpop.f32.mrf.mxu3 }
 0x2c9   : > { %v2653_v38 = vadd.f32 %v2642_v33, %v2111_v4  ;;  %v8057_v4 = vld [vmem:[%s10249_s4 + $0x40] sm:$0xff] }
 0x2ca   : > { %5519 = vmatpush.bf16.msra.mxu1 %v8057_v4 }
 0x2cb   : > { %v9625_v49 = vadd.f32 %v3184_v2, %v2653_v38  ;;  %v1557_v2 = vadd.f32 %v9461_v19, %v9459_v18  ;;  %v3732_v19 = vadd.f32 %v3713_v57, %v3190_v8  ;;  %v3716_v38 = vpop.f32.mrf.mxu1 }
 0x2cd   : > { %v2107_v18 = vadd.f32 %v9466_v7, %v1557_v2  ;;  %v4275_v52 = vadd.f32 %v4256_v11, %v3732_v19  ;;  %v8095_v7 = vld [vmem:[%s10249_s4 + $0x170] sm:$0xff]  ;;  %v4261_v2 = vpop.f32.mrf.mxu2 }
 0x2ce   : > { %5923 = vmatpush.bf16.msrb.mxu1 %v8088_v27  ;;  %6038 = vmatpush.bf16.msrb.mxu2 %v8095_v7 }
 0x2cf   : > { %v5338_v42 = vpop.f32.mrf.mxu0  ;;  %v2649_v33 = vadd.f32 %v9558_v32, %v2107_v18  ;;  %v1559_v32 = vadd.f32 %v9470_v12, %v9468_v61 }
 0x2d0   : > { %v9644_v59 = vpop.f32.mrf.mxu3 }
 0x2d1   : > { %v3191_v53 = vadd.f32 %v9542_v34, %v2649_v33  ;;  %v2108_v58 = vadd.f32 %v9494_v45, %v1559_v32  ;;  %v8094_v45 = vld [vmem:[%s10249_s4 + $0x168] sm:$0xff]  ;;  %v1564_v32 = vadd.f32 %v9521_v28, %v9454_v14 }
 0x2d2   : > { %5924 = vmatpush.bf16.msrb.mxu1 %v8087_v47  ;;  %6039 = vmatpush.bf16.msrb.mxu2 %v8094_v45 }
 0x2d3   : > { %v3733_v35 = vadd.f32 %v3716_v38, %v3191_v53  ;;  %v2650_v4 = vadd.f32 %v9571_v56, %v2108_v58  ;;  %v3718_v56 = vpop.f32.mrf.mxu1 }
 0x2d5   : > { %v4276_v37 = vadd.f32 %v4259_v23, %v3733_v35  ;;  %v3192_v48 = vadd.f32 %v9560_v5, %v2650_v4  ;;  %v1562_v5 = vadd.f32 %v9498_v0, %v9434_v62 }
 0x2d7   : > { %v5340_v31 = vpop.f32.mrf.mxu0  ;;  %v2109_v19 = vadd.f32 %v9517_v46, %v1562_v5 }
 0x2d8   : > { %v4796_v13 = vpop.f32.mrf.mxu3 }
 0x2d9   : > { %v4816_v20 = vadd.f32 %v4796_v13, %v4274_v10  ;;  %v9715_v10 = vld [vmem:[#allocation2] sm:$0xff] }
 0x2db   : > { %v5358_v25 = vadd.f32 %v5338_v42, %v4816_v20  ;;  %v5618_v42 = vld [vmem:[#allocation3 + $0x2] sm:$0xff]  ;;  %v3734_v20 = vadd.f32 %v3718_v56, %v3192_v48  ;;  %v3721_v51 = vpop.f32.mrf.mxu1 }
 0x2dd   : > { %v5370_v40 = vmul.f32 %v9671_v15, %v5358_v25  ;;  %v4277_v27 = vadd.f32 %v4261_v2, %v3734_v20 }
 0x2df   : > { %v5382_v21 = vadd.f32 %v9677_v30, %v5370_v40  ;;  %v5343_v12 = vpop.f32.mrf.mxu0 }
 0x2e0   : > { %v4798_v44 = vpop.f32.mrf.mxu3 }
 0x2e1   : > { %v9692_v55 = vmax.f32 %v5382_v21, 0.0  ;;  %v4817_v24 = vadd.f32 %v4798_v44, %v4275_v52  ;;  %v8086_v52 = vld [vmem:[%s10249_s4 + $0x128] sm:$0xff]  ;;  %v2651_v21 = vadd.f32 %v9590_v43, %v2109_v19  ;;  %v4264_v43 = vpop.f32.mrf.mxu2 }
 0x2e2   : > { %5925 = vmatpush.bf16.msrb.mxu1 %v8086_v52  ;;  %v8092_v52 = vld [vmem:[%s10249_s4 + $0x158] sm:$0xff] }
 0x2e3   : > { %5399 = vst [vmem:[#allocation3 + $0x11] sm:$0xff] %v9692_v55  ;;  %v5359_v54 = vadd.f32 %v5340_v31, %v4817_v24  ;;  %v5443_v36 = vpack.c.bf16 %v9692_v55, %v5435_v50  ;;  %v3193_v23 = vadd.f32 %v9573_v22, %v2651_v21  ;;  %v8104_v21 = vld [vmem:[%s10249_s4 + $0x1b8] sm:$0xff] }
 0x2e4   : > { %6152 = vmatpush.bf16.msra.mxu3 %v8104_v21 }
 0x2e5   : > { %v5371_v63 = vmul.f32 %v9671_v15, %v5359_v54  ;;  %5520 = vmatmul.bf16.vlgmr.msra.gmra.mxu1 %v5443_v36  ;;  %v2110_v36 = vadd.f32 %v9536_v29, %v1564_v32  ;;  %v3735_v58 = vadd.f32 %v3721_v51, %v3193_v23  ;;  %v3723_v29 = vpop.f32.mrf.mxu1  ;;  %v8084_v32 = vld [vmem:[%s10249_s4 + $0x118] sm:$0xff] }
 0x2e6   : > { %v8112_v23 = vld [vmem:[%s10249_s4 + $0x1f8] sm:$0xff] }
 0x2e7   : > { %v5383_v61 = vadd.f32 %v9677_v30, %v5371_v63  ;;  %v5345_v38 = vpop.f32.mrf.mxu0  ;;  %6266 = vmatpush.bf16.msra.mxu0 %v8112_v23  ;;  %v8097_v23 = vld [vmem:[%s10249_s4 + $0x180] sm:$0xff] }
 0x2e8   : > { %v4801_v3 = vpop.f32.mrf.mxu3 }
 0x2e9   : > { %v9703_v34 = vmax.f32 %v5383_v61, 0.0  ;;  %v4818_v6 = vadd.f32 %v4801_v3, %v4276_v37  ;;  %v2652_v37 = vadd.f32 %v9594_v17, %v2110_v36  ;;  %v4278_v61 = vadd.f32 %v4264_v43, %v3735_v58  ;;  %v4266_v3 = vpop.f32.mrf.mxu2  ;;  %v8103_v43 = vld [vmem:[%s10249_s4 + $0x1b0] sm:$0xff] }
 0x2ea   : > { %v5408_v1 = vld [vmem:[#allocation3 + $0x10] sm:$0xff]  ;;  %6153 = vmatpush.bf16.msra.mxu3 %v8103_v43  ;;  %v8083_v58 = vld [vmem:[%s10249_s4 + $0x110] sm:$0xff]  ;;  %v8128_v43 = vld [vmem:[%s10252_s7 + $0x38] sm:$0xff] }
 0x2eb   : > { %v9712_v57 = vld [vmem:[#allocation3 + $0x12] sm:$0xff]  ;;  %5400 = vst [vmem:[#allocation3 + $0x21] sm:$0xff] %v9703_v34  ;;  %v5360_v9 = vadd.f32 %v5343_v12, %v4818_v6  ;;  %v5415_v11 = vpack.c.bf16 %v5408_v1, %v9715_v10  ;;  %v5854_v25 = vpack.c.bf16 %v9703_v34, %v9692_v55  ;;  %v3194_v17 = vadd.f32 %v9592_v16, %v2652_v37  ;;  %v8124_v55 = vld [vmem:[%s10252_s7 + $0x18] sm:$0xff] }
 0x2ec   : > { %v5626_v13 = vpack.c.bf16 %v9712_v57, %v5618_v42 }
 0x2ed   : > { %v5372_v8 = vmul.f32 %v9671_v15, %v5360_v9  ;;  %5597 = vmatmul.bf16.vlgmr.msra.gmra.mxu2 %v5415_v11  ;;  %v3736_v6 = vadd.f32 %v3723_v29, %v3194_v17  ;;  %v3726_v37 = vpop.f32.mrf.mxu1  ;;  %v8090_v29 = vld [vmem:[%s10249_s4 + $0x148] sm:$0xff] }
 0x2ee   : > { %5703 = vmatmul.bf16.vlgmr.msrb.gmra.mxu3 %v5626_v13  ;;  %v8093_v13 = vld [vmem:[%s10249_s4 + $0x160] sm:$0xff] }
 0x2ef   : > { %v5384_v18 = vadd.f32 %v9677_v30, %v5372_v8  ;;  %v4279_v48 = vadd.f32 %v4266_v3, %v3736_v6  ;;  %6040 = vmatpush.bf16.msrb.mxu2 %v8093_v13  ;;  %v1569_v3 = vadd.f32 %v9596_v60, %v9492_v41  ;;  %v8082_v6 = vld [vmem:[%s10249_s4 + $0x108] sm:$0xff]  ;;  %v3737_v41 = vadd.f32 %v3726_v37, %v9625_v49  ;;  %v8081_v49 = vld [vmem:[%s10249_s4 + $0x100] sm:$0xff] }
 0x2f0   : > { %v4803_v40 = vpop.f32.mrf.mxu3 }
 0x2f1   : > { %v9726_v31 = vmax.f32 %v5384_v18, 0.0  ;;  %v4819_v33 = vadd.f32 %v4803_v40, %v4277_v27  ;;  %v4269_v17 = vpop.f32.mrf.mxu2 }
 0x2f2   : > { %v5733_v62 = vld [vmem:[#allocation3 + $0x20] sm:$0xff] }
 0x2f3   : > { %5401 = vst [vmem:[#allocation3 + $0x31] sm:$0xff] %v9726_v31  ;;  %v5361_v0 = vadd.f32 %v5345_v38, %v4819_v33  ;;  %v5740_v44 = vpack.c.bf16 %v5733_v62, %v5408_v1  ;;  %v9735_v50 = vpack.c.bf16 %v9726_v31, %v9703_v34  ;;  %v9737_v46 = vld [vmem:[#allocation3 + $0x22] sm:$0xff]  ;;  %v8085_v33 = vld [vmem:[%s10249_s4 + $0x120] sm:$0xff]  ;;  %6041 = vmatpush.bf16.msrb.mxu2 %v8092_v52 }
 0x2f4   : > { %v5968_v24 = vpack.c.bf16 %v9737_v46, %v9712_v57  ;;  %5926 = vmatpush.bf16.msrb.mxu1 %v8085_v33  ;;  %v8116_v34 = vld [vmem:[%s10249_s4 + $0x218] sm:$0xff]  ;;  %v8123_v57 = vld [vmem:[%s10252_s7 + $0x10] sm:$0xff] }
 0x2f5   : > { %v5373_v7 = vmul.f32 %v9671_v15, %v5361_v0  ;;  %5817 = vmatmul.bf16.vlgmr.msrb.gmra.mxu0 %v5740_v44  ;;  %5525 = vmatmul.bf16.gmra.mxu1 %v9735_v50 }
 0x2f7   : > { %v5385_v53 = vadd.f32 %v9677_v30, %v5373_v7 }
 0x2f8   : > { %v4806_v54 = vpop.f32.mrf.mxu3  ;;  %5927 = vmatpush.bf16.msrb.mxu1 %v8084_v32  ;;  %v8120_v32 = vld [vmem:[%s10249_s4 + $0x238] sm:$0xff] }
 0x2f9   : > { %v9748_v35 = vmax.f32 %v5385_v53, 0.0  ;;  %v4820_v28 = vadd.f32 %v4806_v54, %v4278_v61  ;;  %v8091_v53 = vld [vmem:[%s10249_s4 + $0x150] sm:$0xff]  ;;  %v8102_v54 = vld [vmem:[%s10249_s4 + $0x1a8] sm:$0xff] }
 0x2fa   : > { %v5410_v63 = vld [vmem:[#allocation3 + $0x30] sm:$0xff]  ;;  %6042 = vmatpush.bf16.msrb.mxu2 %v8091_v53  ;;  %6154 = vmatpush.bf16.msra.mxu3 %v8102_v54 }
 0x2fb   : > { %v9750_v4 = vld [vmem:[#allocation3 + $0x32] sm:$0xff]  ;;  %5402 = vst [vmem:[#allocation3 + $0x41] sm:$0xff] %v9748_v35  ;;  %v9754_v12 = vpack.c.bf16 %v5410_v63, %v5733_v62  ;;  %v5855_v22 = vpack.c.bf16 %v9748_v35, %v9726_v31 }
 0x2fc   : > { %v9758_v14 = vpack.c.bf16 %v9750_v4, %v9737_v46  ;;  %5928 = vmatpush.bf16.msrb.mxu1 %v8083_v58  ;;  %v8122_v31 = vld [vmem:[%s10252_s7 + $0x8] sm:$0xff] }
 0x2fd   : > { %5602 = vmatmul.bf16.gmra.mxu2 %v9754_v12  ;;  %v9971_v46 = vld [vmem:[#allocation3 + $0x91] sm:$0xff] }
 0x2fe   : > { %5708 = vmatmul.bf16.gmra.mxu3 %v9758_v14  ;;  %6043 = vmatpush.bf16.msrb.mxu2 %v8090_v29 }
 0x300   : > { %v4808_v45 = vpop.f32.mrf.mxu3  ;;  %5929 = vmatpush.bf16.msrb.mxu1 %v8082_v6 }
 0x301   : > { %v4821_v9 = vadd.f32 %v4808_v45, %v4279_v48  ;;  %v8100_v45 = vld [vmem:[%s10249_s4 + $0x198] sm:$0xff]  ;;  %v2112_v48 = vadd.f32 %v9607_v26, %v1569_v3  ;;  %v8099_v26 = vld [vmem:[%s10249_s4 + $0x190] sm:$0xff] }
 0x302   : > { %v5735_v11 = vld [vmem:[#allocation3 + $0x40] sm:$0xff] }
 0x303   : > { %v9770_v2 = vld [vmem:[#allocation3 + $0x42] sm:$0xff]  ;;  %v5741_v20 = vpack.c.bf16 %v5735_v11, %v5410_v63  ;;  %v2654_v60 = vadd.f32 %v9644_v59, %v2112_v48 }
 0x304   : > { %v5348_v42 = vpop.f32.mrf.mxu0  ;;  %v5969_v16 = vpack.c.bf16 %v9770_v2, %v9750_v4  ;;  %v8111_v63 = vld [vmem:[%s10249_s4 + $0x1f0] sm:$0xff]  ;;  %5930 = vmatpush.bf16.msrb.mxu1 %v8081_v49 }
 0x305   : > { %v5362_v47 = vadd.f32 %v5348_v42, %v4820_v28  ;;  %5822 = vmatmul.bf16.gmra.mxu0 %v5741_v20  ;;  %v8101_v28 = vld [vmem:[%s10249_s4 + $0x1a0] sm:$0xff]  ;;  %v8110_v42 = vld [vmem:[%s10249_s4 + $0x1e8] sm:$0xff]  ;;  %v3196_v13 = vadd.f32 %v9620_v39, %v2654_v60  ;;  %v8108_v20 = vld [vmem:[%s10249_s4 + $0x1d8] sm:$0xff] }
 0x306   : > { %6267 = vmatpush.bf16.msra.mxu0 %v8111_v63  ;;  %6155 = vmatpush.bf16.msra.mxu3 %v8101_v28  ;;  %v8107_v39 = vld [vmem:[%s10249_s4 + $0x1d0] sm:$0xff]  ;;  %v8106_v63 = vld [vmem:[%s10249_s4 + $0x1c8] sm:$0xff] }
 0x307   : > { %v5374_v56 = vmul.f32 %v9671_v15, %v5362_v47  ;;  %v8127_v3 = vld [vmem:[%s10252_s7 + $0x30] sm:$0xff]  ;;  %v8126_v60 = vld [vmem:[%s10252_s7 + $0x28] sm:$0xff] }
 0x308   : > { %8138 = vmatpush.bf16.msra.mxu1 %v8120_v32 }
 0x309   : > { %v5386_v1 = vadd.f32 %v9677_v30, %v5374_v56  ;;  %v4280_v56 = vadd.f32 %v4269_v17, %v3737_v41  ;;  %v8105_v17 = vld [vmem:[%s10249_s4 + $0x1c0] sm:$0xff] }
 0x30a   : > { %6268 = vmatpush.bf16.msra.mxu0 %v8110_v42  ;;  %6156 = vmatpush.bf16.msra.mxu3 %v8100_v45  ;;  %v8119_v42 = vld [vmem:[%s10249_s4 + $0x230] sm:$0xff] }
 0x30b   : > { %v9774_v8 = vmax.f32 %v5386_v1, 0.0  ;;  %v8109_v1 = vld [vmem:[%s10249_s4 + $0x1e0] sm:$0xff] }
 0x30c   : > { %v5350_v5 = vpop.f32.mrf.mxu0  ;;  %8139 = vmatpush.bf16.msra.mxu1 %v8119_v42 }
 0x30d   : > { %5403 = vst [vmem:[#allocation3 + $0x51] sm:$0xff] %v9774_v8  ;;  %v5363_v27 = vadd.f32 %v5350_v5, %v4821_v9  ;;  %v9779_v18 = vpack.c.bf16 %v9774_v8, %v9748_v35  ;;  %v8089_v9 = vld [vmem:[%s10249_s4 + $0x140] sm:$0xff]  ;;  %v4271_v5 = vpop.f32.mrf.mxu2 }
 0x30e   : > { %6044 = vmatpush.bf16.msrb.mxu2 %v8089_v9  ;;  %6269 = vmatpush.bf16.msra.mxu0 %v8109_v1  ;;  %v8125_v9 = vld [vmem:[%s10252_s7 + $0x20] sm:$0xff] }
 0x30f   : > { %v5375_v19 = vmul.f32 %v9671_v15, %v5363_v27  ;;  %5530 = vmatmul.bf16.gmra.mxu1 %v9779_v18  ;;  %6157 = vmatpush.bf16.msra.mxu3 %v8099_v26  ;;  %v8117_v26 = vld [vmem:[%s10249_s4 + $0x220] sm:$0xff] }
 0x310   : > { %v9975_v35 = vld [vmem:[#allocation3 + $0x92] sm:$0xff] }
 0x311   : > { %v5387_v40 = vadd.f32 %v9677_v30, %v5375_v19  ;;  %v8098_v19 = vld [vmem:[%s10249_s4 + $0x188] sm:$0xff] }
 0x312   : > { %6270 = vmatpush.bf16.msra.mxu0 %v8108_v20  ;;  %6945 = vmatpush.bf16.msra.mxu2 %v8128_v43  ;;  %v6442_v20 = vld [vmem:[#allocation2 + $0x21] sm:$0xff] }
 0x313   : > { %v9793_v38 = vmax.f32 %v5387_v40, 0.0  ;;  %6158 = vmatpush.bf16.msra.mxu3 %v8098_v19 }
 0x314   : > { %v5412_v62 = vld [vmem:[#allocation3 + $0x50] sm:$0xff] }
 0x315   : > { %v9795_v0 = vld [vmem:[#allocation3 + $0x52] sm:$0xff]  ;;  %5404 = vst [vmem:[#allocation3 + $0x61] sm:$0xff] %v9793_v38  ;;  %v9798_v44 = vpack.c.bf16 %v5412_v62, %v5735_v11  ;;  %v5856_v7 = vpack.c.bf16 %v9793_v38, %v9774_v8  ;;  %v3728_v11 = vpop.f32.mrf.mxu1  ;;  %v6478_v8 = vrot.slane %v6442_v20, 6 }
 0x316   : > { %v9802_v51 = vpack.c.bf16 %v9795_v0, %v9770_v2  ;;  %v3738_v40 = vadd.f32 %v3728_v11, %v3196_v13  ;;  %6271 = vmatpush.bf16.msra.mxu0 %v8107_v39  ;;  %6946 = vmatpush.bf16.msra.mxu2 %v8127_v3  ;;  %v6441_v2 = vld [vmem:[#allocation2 + $0x19] sm:$0xff] }
 0x317   : > { %5607 = vmatmul.bf16.gmra.mxu2 %v9798_v44  ;;  %6159 = vmatpush.bf16.msra.mxu3 %v8097_v23  ;;  %v8113_v13 = vld [vmem:[%s10249_s4 + $0x200] sm:$0xff]  ;;  %v6573_v23 = vpack.c.bf16 %v6442_v20, %v6442_v20 }
 0x318   : > { %5713 = vmatmul.bf16.gmra.mxu3 %v9802_v51  ;;  %v4281_v21 = vadd.f32 %v4271_v5, %v3738_v40  ;;  %v6474_v5 = vrot.slane %v6441_v2, 4 }
 0x31a   : > { %6272 = vmatpush.bf16.msra.mxu0 %v8106_v63  ;;  %6947 = vmatpush.bf16.msra.mxu2 %v8126_v60 }
 0x31b   : > { %8146 = vmatpush.bf16.msrb.mxu3 %v8128_v43  ;;  %v6571_v43 = vpack.c.bf16 %v6474_v5, %v6474_v5 }
 0x31c   : > { %v9823_v36 = vld [vmem:[#allocation3 + $0x60] sm:$0xff]  ;;  %v4811_v47 = vpop.f32.mrf.mxu3 }
 0x31d   : > { %v5742_v61 = vpack.c.bf16 %v9823_v36, %v5412_v62  ;;  %v4822_v59 = vadd.f32 %v4811_v47, %v4280_v56  ;;  %v9909_v45 = vld [vmem:[#allocation3 + $0x62] sm:$0xff]  ;;  %v8118_v56 = vld [vmem:[%s10249_s4 + $0x228] sm:$0xff] }
 0x31e   : > { %6273 = vmatpush.bf16.msra.mxu0 %v8105_v17  ;;  %8140 = vmatpush.bf16.msra.mxu1 %v8118_v56  ;;  %v5970_v4 = vpack.c.bf16 %v9909_v45, %v9795_v0  ;;  %v8121_v0 = vld [vmem:[%s10252_s7] sm:$0xff] }
 0x31f   : > { %5827 = vmatmul.bf16.gmra.mxu0 %v5742_v61  ;;  %8147 = vmatpush.bf16.msrb.mxu3 %v8127_v3 }
 0x320   : > { %6948 = vmatpush.bf16.msra.mxu2 %v8125_v9 }
 0x322   : > { %6380 = vmatpush.bf16.msrb.mxu0 %v8120_v32  ;;  %8141 = vmatpush.bf16.msra.mxu1 %v8117_v26 }
 0x323   : > { %8148 = vmatpush.bf16.msrb.mxu3 %v8126_v60 }
 0x324   : > { %v4813_v52 = vpop.f32.mrf.mxu3  ;;  %6949 = vmatpush.bf16.msra.mxu2 %v8124_v55 }
 0x325   : > { %v4823_v54 = vadd.f32 %v4813_v52, %v4281_v21  ;;  %v6477_v52 = vrot.slane %v6442_v20, 4 }
 0x326   : > { %6381 = vmatpush.bf16.msrb.mxu0 %v8119_v42  ;;  %8142 = vmatpush.bf16.msra.mxu1 %v8116_v34 }
 0x327   : > { %8149 = vmatpush.bf16.msrb.mxu3 %v8125_v9  ;;  %v6575_v63 = vpack.c.bf16 %v6477_v52, %v6477_v52  ;;  %v6717_v9 = vunpack.c.l.b16 %v6573_v23  ;;  %v6445_v23 = vld [vmem:[#allocation2 + $0x79] sm:$0xff] }
 0x328   : > { %v5353_v27 = vpop.f32.mrf.mxu0  ;;  %6950 = vmatpush.bf16.msra.mxu2 %v8123_v57 }
 0x329   : > { %v5364_v33 = vadd.f32 %v5353_v27, %v4822_v59  ;;  %v6473_v59 = vrot.slane %v6441_v2, 2  ;;  %v6475_v27 = vrot.slane %v6441_v2, 6 }
 0x32a   : > { %6382 = vmatpush.bf16.msrb.mxu0 %v8118_v56  ;;  %v6715_v56 = vunpack.c.l.b16 %v6571_v43 }
 0x32b   : > { %v5376_v62 = vmul.f32 %v9671_v15, %v5364_v33  ;;  %8150 = vmatpush.bf16.msrb.mxu3 %v8124_v55  ;;  %v6476_v33 = vrot.slane %v6442_v20, 2  ;;  %v6570_v39 = vpack.c.bf16 %v6473_v59, %v6473_v59  ;;  %v6572_v32 = vpack.c.bf16 %v6475_v27, %v6475_v27 }
 0x32c   : > { %6951 = vmatpush.bf16.msra.mxu2 %v8122_v31  ;;  %v6783_v27 = vrot.slane %v6717_v9, 4  ;;  %v6487_v9 = vrot.slane %v6445_v23, 6 }
 0x32d   : > { %v5388_v53 = vadd.f32 %v9677_v30, %v5376_v62  ;;  %v6714_v60 = vunpack.c.l.b16 %v6570_v39 }
 0x32e   : > { %6383 = vmatpush.bf16.msrb.mxu0 %v8117_v26 }
 0x32f   : > { %v9885_v58 = vmax.f32 %v5388_v53, 0.0  ;;  %8151 = vmatpush.bf16.msrb.mxu3 %v8123_v57  ;;  %v6574_v53 = vpack.c.bf16 %v6476_v33, %v6476_v33 }
 0x330   : > { %v5355_v37 = vpop.f32.mrf.mxu0  ;;  %6952 = vmatpush.bf16.msra.mxu2 %v8121_v0 }
 0x331   : > { %5405 = vst [vmem:[#allocation3 + $0x71] sm:$0xff] %v9885_v58  ;;  %v5365_v61 = vadd.f32 %v5355_v37, %v4823_v54  ;;  %v9893_v28 = vpack.c.bf16 %v9885_v58, %v9793_v38  ;;  %v6569_v54 = vpack.c.bf16 %v6441_v2, %v6441_v2  ;;  %v6576_v37 = vpack.c.bf16 %v6478_v8, %v6478_v8 }
 0x332   : > { %6384 = vmatpush.bf16.msrb.mxu0 %v8116_v34  ;;  %v6718_v26 = vunpack.c.l.b16 %v6574_v53  ;;  %v6719_v34 = vunpack.c.l.b16 %v6575_v63  ;;  %v10004_v53 = vld [vmem:[#allocation2 + $0xa9] sm:$0xff] }
 0x333   : > { %v5377_v29 = vmul.f32 %v9671_v15, %v5365_v61  ;;  %5535 = vmatmul.bf16.gmra.mxu1 %v9893_v28  ;;  %8152 = vmatpush.bf16.msrb.mxu3 %v8122_v31  ;;  %v6713_v55 = vunpack.c.l.b16 %v6569_v54  ;;  %v6720_v57 = vunpack.c.l.b16 %v6576_v37 }
 0x335   : > { %v5389_v6 = vadd.f32 %v9677_v30, %v5377_v29 }
 0x337   : > { %v9907_v15 = vmax.f32 %v5389_v6, 0.0  ;;  %8153 = vmatpush.bf16.msrb.mxu3 %v8121_v0  ;;  %v6777_v0 = vrot.slane %v6714_v60, 7 }
 0x338   : > { %v5414_v47 = vld [vmem:[#allocation3 + $0x70] sm:$0xff] }
 0x339   : > { %v9911_v48 = vld [vmem:[#allocation3 + $0x72] sm:$0xff]  ;;  %5406 = vst [vmem:[#allocation3 + $0x81] sm:$0xff] %v9907_v15  ;;  %v9915_v41 = vpack.c.bf16 %v5414_v47, %v9823_v36 }
 0x33a   : > { %v9919_v30 = vpack.c.bf16 %v9911_v48, %v9909_v45 }
 0x33b   : > { %5612 = vmatmul.bf16.gmra.mxu2 %v9915_v41 }
 0x33c   : > { %5718 = vmatmul.bf16.gmra.mxu3 %v9919_v30 }
 0x340   : > { %v9929_v36 = vld [vmem:[#allocation3 + $0x80] sm:$0xff] }
 0x341   : > { %v5743_v1 = vpack.c.bf16 %v9929_v36, %v5414_v47  ;;  %v6086_v49 = vpack.c.bf16 %v9715_v10, %v9929_v36 }
 0x343   : > { %5832 = vmatmul.bf16.gmra.mxu0 %v5743_v1  ;;  %5931 = vmatmul.bf16.vlgmr.msrb.gmra.mxu1 %v5854_v25  ;;  %v8115_v25 = vld [vmem:[%s10249_s4 + $0x210] sm:$0xff]  ;;  %v6716_v1 = vunpack.c.l.b16 %v6572_v32 }
 0x344   : > { %8143 = vmatpush.bf16.msra.mxu1 %v8115_v25  ;;  %6385 = vmatpush.bf16.msrb.mxu0 %v8115_v25 }
 0x345   : > { %v6781_v5 = vrot.slane %v6716_v1, 5 }
 0x34b   : > { %6045 = vmatmul.bf16.vlgmr.msrb.gmra.mxu2 %v5968_v24  ;;  %v9973_v24 = vld [vmem:[#allocation3 + $0x82] sm:$0xff] }
 0x34c   : > { %6160 = vmatmul.bf16.vlgmr.msra.gmra.mxu3 %v9754_v12  ;;  %v5857_v12 = vpack.c.bf16 %v9907_v15, %v9885_v58  ;;  %v6314_v40 = vpack.c.bf16 %v9975_v35, %v9973_v24 }
 0x353   : > { %6274 = vmatmul.bf16.vlgmr.msra.gmra.mxu0 %v9735_v50  ;;  %5936 = vmatmul.bf16.gmra.mxu1 %v5855_v22  ;;  %v8114_v50 = vld [vmem:[%s10249_s4 + $0x208] sm:$0xff]  ;;  %v6200_v22 = vpack.c.bf16 %v9971_v46, %v9907_v15 }
 0x354   : > { %8144 = vmatpush.bf16.msra.mxu1 %v8114_v50  ;;  %6386 = vmatpush.bf16.msrb.mxu0 %v8114_v50 }
 0x358   : > { %8145 = vmatpush.bf16.msra.mxu1 %v8113_v13  ;;  %6387 = vmatpush.bf16.msrb.mxu0 %v8113_v13  ;;  %v6779_v13 = vrot.slane %v6715_v56, 6 }
 0x35b   : > { %6050 = vmatmul.bf16.gmra.mxu2 %v5969_v16  ;;  %v6443_v16 = vld [vmem:[#allocation2 + $0x49] sm:$0xff] }
 0x35c   : > { %6165 = vmatmul.bf16.gmra.mxu3 %v9798_v44  ;;  %v5971_v44 = vpack.c.bf16 %v9973_v24, %v9911_v48  ;;  %v6479_v11 = vrot.slane %v6443_v16, 2  ;;  %v6480_v19 = vrot.slane %v6443_v16, 4  ;;  %v6481_v38 = vrot.slane %v6443_v16, 6 }
 0x35d   : > { %v6577_v29 = vpack.c.bf16 %v6443_v16, %v6443_v16 }
 0x35e   : > { %v6578_v61 = vpack.c.bf16 %v6479_v11, %v6479_v11  ;;  %v6579_v17 = vpack.c.bf16 %v6480_v19, %v6480_v19  ;;  %v6580_v3 = vpack.c.bf16 %v6481_v38, %v6481_v38  ;;  %v6785_v19 = vrot.slane %v6718_v26, 3 }
 0x35f   : > { %v6721_v31 = vunpack.c.l.b16 %v6577_v29  ;;  %v6789_v38 = vrot.slane %v6720_v57, 1 }
 0x360   : > { %v6722_v25 = vunpack.c.l.b16 %v6578_v61  ;;  %v6723_v50 = vunpack.c.l.b16 %v6579_v17  ;;  %v6724_v2 = vunpack.c.l.b16 %v6580_v3  ;;  %v6485_v61 = vrot.slane %v6445_v23, 2 }
 0x362   : > { %v6793_v33 = vrot.slane %v6723_v50, 6  ;;  %v5521_v52 = vpop.f32.mrf.mxu1  ;;  %v6492_v50 = vrot.slane %v10004_v53, 4 }
 0x363   : > { %6279 = vmatmul.bf16.gmra.mxu0 %v9779_v18  ;;  %5941 = vmatmul.bf16.gmra.mxu1 %v5856_v7  ;;  %v6444_v18 = vld [vmem:[#allocation2 + $0x51] sm:$0xff] }
 0x364   : > { %v6482_v7 = vrot.slane %v6444_v18, 2  ;;  %v6483_v21 = vrot.slane %v6444_v18, 4  ;;  %v6484_v62 = vrot.slane %v6444_v18, 6  ;;  %v6581_v42 = vpack.c.bf16 %v6444_v18, %v6444_v18 }
 0x365   : > { %v6787_v18 = vrot.slane %v6719_v34, 2 }
 0x366   : > { %v6582_v6 = vpack.c.bf16 %v6482_v7, %v6482_v7  ;;  %v6583_v47 = vpack.c.bf16 %v6483_v21, %v6483_v21  ;;  %v6584_v45 = vpack.c.bf16 %v6484_v62, %v6484_v62  ;;  %v6725_v16 = vunpack.c.l.b16 %v6581_v42 }
 0x367   : > { %v6795_v7 = vrot.slane %v6724_v2, 5 }
 0x368   : > { %v6726_v59 = vunpack.c.l.b16 %v6582_v6  ;;  %v6727_v11 = vunpack.c.l.b16 %v6583_v47  ;;  %v6728_v20 = vunpack.c.l.b16 %v6584_v45  ;;  %v6797_v21 = vrot.slane %v6725_v16, 4  ;;  %v6446_v6 = vld [vmem:[#allocation2 + $0x81] sm:$0xff] }
 0x369   : > { %v6486_v47 = vrot.slane %v6445_v23, 4  ;;  %v6491_v45 = vrot.slane %v10004_v53, 2  ;;  %v6489_v34 = vrot.slane %v6446_v6, 4  ;;  %v6493_v16 = vrot.slane %v10004_v53, 6 }
 0x36a   : > { %v6799_v43 = vrot.slane %v6726_v59, 3  ;;  %v6801_v32 = vrot.slane %v6727_v11, 2  ;;  %v6803_v37 = vrot.slane %v6728_v20, 1 }
 0x36b   : > { %6055 = vmatmul.bf16.gmra.mxu2 %v5970_v4  ;;  %v6778_v4 = vsel %vm1043_vm0, %v6777_v0, %v6713_v55  ;;  %v6488_v55 = vrot.slane %v6446_v6, 2 }
 0x36c   : > { %6170 = vmatmul.bf16.gmra.mxu3 %v9915_v41  ;;  %v6791_v41 = vrot.slane %v6722_v25, 7  ;;  %v6780_v8 = vsel %vm1046_vm1, %v6779_v13, %v6778_v4  ;;  %v6588_v4 = vpack.c.bf16 %v6487_v9, %v6487_v9 }
 0x36d   : > { %v6782_v62 = vsel %vm1049_vm2, %v6781_v5, %v6780_v8  ;;  %v6585_v5 = vpack.c.bf16 %v6445_v23, %v6445_v23 }
 0x36e   : > { %v6792_v39 = vsel %vm1043_vm0, %v6791_v41, %v6721_v31  ;;  %v6784_v54 = vsel %vm1052_vm3, %v6783_v27, %v6782_v62  ;;  %v6490_v31 = vrot.slane %v6446_v6, 6  ;;  %v6586_v27 = vpack.c.bf16 %v6485_v61, %v6485_v61  ;;  %v5523_v41 = vpop.f32.mrf.mxu1 }
 0x36f   : > { %v6794_v63 = vsel %vm1046_vm1, %v6793_v33, %v6792_v39  ;;  %v6786_v29 = vsel %vm1055_vm4, %v6785_v19, %v6784_v54  ;;  %v6587_v19 = vpack.c.bf16 %v6486_v47, %v6486_v47  ;;  %v6590_v33 = vpack.c.bf16 %v6488_v55, %v6488_v55 }
 0x370   : > { %v6796_v17 = vsel %vm1049_vm2, %v6795_v7, %v6794_v63  ;;  %v5598_v3 = vpop.f32.mrf.mxu2  ;;  %v6788_v60 = vsel %vm1058_vm5, %v6787_v18, %v6786_v29  ;;  %v6589_v18 = vpack.c.bf16 %v6446_v6, %v6446_v6  ;;  %v6592_v8 = vpack.c.bf16 %v6490_v31, %v6490_v31 }
 0x371   : > { %v5704_v42 = vpop.f32.mrf.mxu3  ;;  %v6798_v56 = vsel %vm1052_vm3, %v6797_v21, %v6796_v17  ;;  %v5599_v1 = vadd.f32 %v5598_v3, %v5521_v52  ;;  %v10018_v58 = vsel %vm1061_vm6, %v6789_v38, %v6788_v60  ;;  %v6591_v52 = vpack.c.bf16 %v6489_v34, %v6489_v34 }
 0x372   : > { %v5818_v26 = vpop.f32.mrf.mxu0  ;;  %v6593_v38 = vpack.c.bf16 %v10004_v53, %v10004_v53  ;;  %v6594_v21 = vpack.c.bf16 %v6491_v45, %v6491_v45  ;;  %v6595_v62 = vpack.c.bf16 %v6492_v50, %v6492_v50  ;;  %v6596_v39 = vpack.c.bf16 %v6493_v16, %v6493_v16 }
 0x373   : > { %6284 = vmatmul.bf16.gmra.mxu0 %v9893_v28  ;;  %5946 = vmatmul.bf16.gmra.mxu1 %v5857_v12  ;;  %v6448_v28 = vld [vmem:[#allocation2 + $0xb1] sm:$0xff]  ;;  %v6800_v12 = vsel %vm1055_vm4, %v6799_v43, %v6798_v56  ;;  %v5724_v25 = vadd.f32 %v5704_v42, %v5599_v1  ;;  %v6729_v63 = vunpack.c.l.b16 %v6585_v5  ;;  %v6730_v61 = vunpack.c.l.b16 %v6586_v27 }
 0x374   : > { %v6802_v57 = vsel %vm1058_vm5, %v6801_v32, %v6800_v12  ;;  %v6494_v59 = vrot.slane %v6448_v28, 2  ;;  %v6495_v11 = vrot.slane %v6448_v28, 4  ;;  %v6496_v20 = vrot.slane %v6448_v28, 6 }
 0x375   : > { %v10024_v2 = vsel %vm1061_vm6, %v6803_v37, %v6802_v57  ;;  %v10029_v13 = vadd.f32 %v5818_v26, %v5724_v25  ;;  %v6597_v23 = vpack.c.bf16 %v6448_v28, %v6448_v28  ;;  %v6731_v53 = vunpack.c.l.b16 %v6587_v19 }
 0x376   : > { %v6889_v0 = vpack.c.b16 %v10024_v2, %v10018_v58  ;;  %v6598_v54 = vpack.c.bf16 %v6494_v59, %v6494_v59  ;;  %v6599_v37 = vpack.c.bf16 %v6495_v11, %v6495_v11  ;;  %v6732_v29 = vunpack.c.l.b16 %v6588_v4  ;;  %v5526_v11 = vpop.f32.mrf.mxu1  ;;  %v6453_v4 = vld [vmem:[#allocation2 + $0x139] sm:$0xff] }
 0x377   : > { %v6733_v3 = vunpack.c.l.b16 %v6589_v18  ;;  %v6734_v42 = vunpack.c.l.b16 %v6590_v33  ;;  %v6735_v10 = vunpack.c.l.b16 %v6591_v52  ;;  %v6738_v36 = vunpack.c.l.b16 %v6594_v21 }
 0x378   : > { %v5600_v7 = vpop.f32.mrf.mxu2  ;;  %v6740_v6 = vunpack.c.l.b16 %v6596_v39  ;;  %v6736_v45 = vunpack.c.l.b16 %v6592_v8  ;;  %v6737_v60 = vunpack.c.l.b16 %v6593_v38  ;;  %v6741_v56 = vunpack.c.l.b16 %v6597_v23  ;;  %v6454_v38 = vld [vmem:[#allocation2 + $0x141] sm:$0xff]  ;;  %v6455_v39 = vld [vmem:[#allocation2 + $0x169] sm:$0xff] }
 0x379   : > { %v5601_v43 = vadd.f32 %v5600_v7, %v5523_v41  ;;  %v5706_v32 = vpop.f32.mrf.mxu3  ;;  %v6742_v1 = vunpack.c.l.b16 %v6598_v54  ;;  %v6805_v28 = vrot.slane %v6730_v61, 7  ;;  %v6807_v9 = vrot.slane %v6731_v53, 6 }
 0x37a   : > { %v5820_v48 = vpop.f32.mrf.mxu0  ;;  %v6809_v12 = vrot.slane %v6732_v29, 5  ;;  %v6743_v26 = vunpack.c.l.b16 %v6599_v37  ;;  %v6811_v34 = vrot.slane %v6733_v3, 4  ;;  %v6813_v57 = vrot.slane %v6734_v42, 3 }
 0x37b   : > { %6060 = vmatmul.bf16.gmra.mxu2 %v5971_v44  ;;  %v5725_v17 = vadd.f32 %v5706_v32, %v5601_v43  ;;  %v6600_v44 = vpack.c.bf16 %v6496_v20, %v6496_v20  ;;  %v6806_v25 = vsel %vm1043_vm0, %v6805_v28, %v6729_v63  ;;  %v6819_v31 = vrot.slane %v6738_v36, 7  ;;  %v6456_v63 = vld [vmem:[#allocation2 + $0x171] sm:$0xff] }
 0x37c   : > { %6175 = vmatmul.bf16.gmra.mxu3 %v6086_v49  ;;  %v6739_v49 = vunpack.c.l.b16 %v6595_v62  ;;  %v6823_v16 = vrot.slane %v6740_v6, 5  ;;  %v6808_v20 = vsel %vm1046_vm1, %v6807_v9, %v6806_v25  ;;  %v6815_v5 = vrot.slane %v6735_v10, 2 }
 0x37d   : > { %v10039_v47 = vadd.f32 %v5820_v48, %v5725_v17  ;;  %v6744_v55 = vunpack.c.l.b16 %v6600_v44  ;;  %v6817_v27 = vrot.slane %v6736_v45, 1  ;;  %v6825_v19 = vrot.slane %v6741_v56, 4 }
 0x37e   : > { %v6821_v50 = vrot.slane %v6739_v49, 6  ;;  %v6810_v18 = vsel %vm1049_vm2, %v6809_v12, %v6808_v20  ;;  %v6820_v15 = vsel %vm1043_vm0, %v6819_v31, %v6737_v60  ;;  %v6827_v46 = vrot.slane %v6742_v1, 3 }
 0x37f   : > { %v6829_v33 = vrot.slane %v6743_v26, 2  ;;  %v6831_v52 = vrot.slane %v6744_v55, 1  ;;  %v6509_v43 = vrot.slane %v6453_v4, 2  ;;  %v6510_v37 = vrot.slane %v6453_v4, 4 }
 0x380   : > { %v5603_v59 = vpop.f32.mrf.mxu2  ;;  %v6822_v41 = vsel %vm1046_vm1, %v6821_v50, %v6820_v15  ;;  %v6511_v61 = vrot.slane %v6453_v4, 6  ;;  %v6512_v17 = vrot.slane %v6454_v38, 2  ;;  %v6513_v48 = vrot.slane %v6454_v38, 4  ;;  %v5528_v15 = vpop.f32.mrf.mxu1 }
 0x381   : > { %v5709_v8 = vpop.f32.mrf.mxu3  ;;  %v6824_v21 = vsel %vm1049_vm2, %v6823_v16, %v6822_v41  ;;  %v6515_v42 = vrot.slane %v6455_v39, 2  ;;  %v6516_v10 = vrot.slane %v6455_v39, 4  ;;  %v6514_v49 = vrot.slane %v6454_v38, 6 }
 0x382   : > { %v6826_v23 = vsel %vm1052_vm3, %v6825_v19, %v6824_v21  ;;  %v5823_v54 = vpop.f32.mrf.mxu0  ;;  %v6517_v6 = vrot.slane %v6455_v39, 6  ;;  %v6518_v45 = vrot.slane %v6456_v63, 2  ;;  %v6519_v60 = vrot.slane %v6456_v63, 4 }
 0x383   : > { %6289 = vmatmul.bf16.gmra.mxu0 %v6200_v22  ;;  %6393 = vmatmul.bf16.vlgmr.msra.gmra.mxu1 %v9802_v51  ;;  %v5604_v22 = vadd.f32 %v5603_v59, %v5526_v11  ;;  %v6812_v51 = vsel %vm1052_vm3, %v6811_v34, %v6810_v18  ;;  %v6828_v53 = vsel %vm1055_vm4, %v6827_v46, %v6826_v23  ;;  %v6520_v56 = vrot.slane %v6456_v63, 6 }
 0x384   : > { %v6814_v7 = vsel %vm1055_vm4, %v6813_v57, %v6812_v51  ;;  %v6830_v3 = vsel %vm1058_vm5, %v6829_v33, %v6828_v53  ;;  %v6618_v1 = vpack.c.bf16 %v6509_v43, %v6509_v43  ;;  %v6619_v28 = vpack.c.bf16 %v6510_v37, %v6510_v37 }
 0x385   : > { %v5726_v62 = vadd.f32 %v5709_v8, %v5604_v22  ;;  %v6816_v32 = vsel %vm1058_vm5, %v6815_v5, %v6814_v7  ;;  %v10066_v36 = vsel %vm1061_vm6, %v6831_v52, %v6830_v3  ;;  %v6620_v12 = vpack.c.bf16 %v6511_v61, %v6511_v61  ;;  %v10074_v3 = vld [vmem:[#allocation2 + $0xd9] sm:$0xff] }
 0x386   : > { %v10059_v44 = vsel %vm1061_vm6, %v6817_v27, %v6816_v32  ;;  %v6621_v26 = vpack.c.bf16 %v6454_v38, %v6454_v38  ;;  %v6622_v55 = vpack.c.bf16 %v6512_v17, %v6512_v17  ;;  %v6617_v34 = vpack.c.bf16 %v6453_v4, %v6453_v4 }
 0x387   : > { %v10056_v29 = vadd.f32 %v5823_v54, %v5726_v62  ;;  %v6890_v9 = vpack.c.b16 %v10066_v36, %v10059_v44  ;;  %v6623_v57 = vpack.c.bf16 %v6513_v48, %v6513_v48  ;;  %v6626_v58 = vpack.c.bf16 %v6515_v42, %v6515_v42 }
 0x388   : > { %v6627_v2 = vpack.c.bf16 %v6516_v10, %v6516_v10  ;;  %v6625_v25 = vpack.c.bf16 %v6455_v39, %v6455_v39  ;;  %v6628_v31 = vpack.c.bf16 %v6517_v6, %v6517_v6  ;;  %v6629_v50 = vpack.c.bf16 %v6456_v63, %v6456_v63  ;;  %v5605_v54 = vpop.f32.mrf.mxu2 }
 0x389   : > { %v6630_v16 = vpack.c.bf16 %v6518_v45, %v6518_v45  ;;  %v6631_v59 = vpack.c.bf16 %v6519_v60, %v6519_v60  ;;  %v6762_v11 = vunpack.c.l.b16 %v6618_v1  ;;  %v6763_v20 = vunpack.c.l.b16 %v6619_v28  ;;  %v5711_v28 = vpop.f32.mrf.mxu3 }
 0x38a   : > { %v6632_v5 = vpack.c.bf16 %v6520_v56, %v6520_v56  ;;  %v6764_v27 = vunpack.c.l.b16 %v6620_v12  ;;  %v6765_v19 = vunpack.c.l.b16 %v6621_v26  ;;  %v6766_v18 = vunpack.c.l.b16 %v6622_v55  ;;  %v6450_v12 = vld [vmem:[#allocation2 + $0xe1] sm:$0xff] }
 0x38b   : > { %6953 = vmatmul.bf16.vlgmr.msra.gmra.mxu2 %v6889_v0  ;;  %v6624_v0 = vpack.c.bf16 %v6514_v49, %v6514_v49  ;;  %v6761_v46 = vunpack.c.l.b16 %v6617_v34  ;;  %v6767_v22 = vunpack.c.l.b16 %v6623_v57  ;;  %v6770_v51 = vunpack.c.l.b16 %v6626_v58  ;;  %v6451_v57 = vld [vmem:[#allocation2 + $0x109] sm:$0xff] }
 0x38c   : > { %v6771_v4 = vunpack.c.l.b16 %v6627_v2  ;;  %v6769_v33 = vunpack.c.l.b16 %v6625_v25  ;;  %v6772_v52 = vunpack.c.l.b16 %v6628_v31  ;;  %v6773_v8 = vunpack.c.l.b16 %v6629_v50  ;;  %v5825_v25 = vpop.f32.mrf.mxu0  ;;  %v6452_v31 = vld [vmem:[#allocation2 + $0x111] sm:$0xff] }
 0x38d   : > { %v6768_v41 = vunpack.c.l.b16 %v6624_v0  ;;  %v6774_v38 = vunpack.c.l.b16 %v6630_v16  ;;  %v6861_v7 = vrot.slane %v6762_v11, 7  ;;  %v6863_v21 = vrot.slane %v6763_v20, 6  ;;  %v10092_v20 = vpop.f32.mrf.mxu1 }
 0x38e   : > { %v6865_v62 = vrot.slane %v6764_v27, 5  ;;  %v6775_v39 = vunpack.c.l.b16 %v6631_v59  ;;  %v6776_v43 = vunpack.c.l.b16 %v6632_v5  ;;  %v6867_v32 = vrot.slane %v6765_v19, 4 }
 0x38f   : > { %v6869_v23 = vrot.slane %v6766_v18, 3  ;;  %v6862_v63 = vsel %vm1043_vm0, %v6861_v7, %v6761_v46  ;;  %v6875_v37 = vrot.slane %v6770_v51, 7  ;;  %v6877_v61 = vrot.slane %v6771_v4, 6 }
 0x390   : > { %v6871_v53 = vrot.slane %v6767_v22, 2  ;;  %v6873_v17 = vrot.slane %v6768_v41, 1  ;;  %v6881_v48 = vrot.slane %v6773_v8, 4  ;;  %v6883_v49 = vrot.slane %v6774_v38, 3 }
 0x391   : > { %v6876_v10 = vsel %vm1043_vm0, %v6875_v37, %v6769_v33  ;;  %v5606_v6 = vadd.f32 %v5605_v54, %v5528_v15  ;;  %v6885_v56 = vrot.slane %v6775_v39, 2  ;;  %v6887_v1 = vrot.slane %v6776_v43, 1 }
 0x392   : > { %v6878_v60 = vsel %vm1046_vm1, %v6877_v61, %v6876_v10  ;;  %v6497_v58 = vrot.slane %v10074_v3, 2  ;;  %v6498_v50 = vrot.slane %v10074_v3, 4  ;;  %v6499_v16 = vrot.slane %v10074_v3, 6 }
 0x393   : > { %6388 = vmatmul.bf16.vlgmr.msrb.gmra.mxu0 %v9758_v14  ;;  %6398 = vmatmul.bf16.gmra.mxu1 %v9919_v30  ;;  %v6879_v14 = vrot.slane %v6772_v52, 5  ;;  %v6864_v30 = vsel %vm1046_vm1, %v6863_v21, %v6862_v63  ;;  %v5727_v34 = vadd.f32 %v5711_v28, %v5606_v6  ;;  %v6500_v44 = vrot.slane %v6450_v12, 2 }
 0x394   : > { %v6866_v42 = vsel %vm1049_vm2, %v6865_v62, %v6864_v30  ;;  %v6503_v27 = vrot.slane %v6451_v57, 2  ;;  %v6504_v19 = vrot.slane %v6451_v57, 4  ;;  %v6502_v15 = vrot.slane %v6450_v12, 6 }
 0x395   : > { %v6868_v45 = vsel %vm1052_vm3, %v6867_v32, %v6866_v42  ;;  %v6880_v55 = vsel %vm1049_vm2, %v6879_v14, %v6878_v60  ;;  %v10094_v5 = vadd.f32 %v5825_v25, %v5727_v34  ;;  %v6505_v46 = vrot.slane %v6451_v57, 6  ;;  %v5533_v24 = vpop.f32.mrf.mxu1 }
 0x396   : > { %v6870_v26 = vsel %vm1055_vm4, %v6869_v23, %v6868_v45  ;;  %v6882_v0 = vsel %vm1052_vm3, %v6881_v48, %v6880_v55  ;;  %v6506_v22 = vrot.slane %v6452_v31, 2  ;;  %v6507_v4 = vrot.slane %v6452_v31, 4 }
 0x397   : > { %v6872_v2 = vsel %vm1058_vm5, %v6871_v53, %v6870_v26  ;;  %v6884_v11 = vsel %vm1055_vm4, %v6883_v49, %v6882_v0  ;;  %v6602_v41 = vpack.c.bf16 %v6497_v58, %v6497_v58  ;;  %v6603_v33 = vpack.c.bf16 %v6498_v50, %v6498_v50 }
 0x398   : > { %v6874_v59 = vsel %vm1061_vm6, %v6873_v17, %v6872_v2  ;;  %v6886_v36 = vsel %vm1058_vm5, %v6885_v56, %v6884_v11  ;;  %v6508_v8 = vrot.slane %v6452_v31, 6  ;;  %v6604_v38 = vpack.c.bf16 %v6499_v16, %v6499_v16 }
 0x399   : > { %v6888_v18 = vsel %vm1061_vm6, %v6887_v1, %v6886_v36  ;;  %v6605_v7 = vpack.c.bf16 %v6450_v12, %v6450_v12  ;;  %v6606_v21 = vpack.c.bf16 %v6500_v44, %v6500_v44  ;;  %v6601_v62 = vpack.c.bf16 %v10074_v3, %v10074_v3 }
 0x39a   : > { %v6892_v51 = vpack.c.b16 %v6888_v18, %v6874_v59  ;;  %v5608_v52 = vpop.f32.mrf.mxu2  ;;  %v6610_v43 = vpack.c.bf16 %v6503_v27, %v6503_v27  ;;  %v6611_v32 = vpack.c.bf16 %v6504_v19, %v6504_v19  ;;  %v6608_v23 = vpack.c.bf16 %v6502_v15, %v6502_v15 }
 0x39b   : > { %6958 = vmatmul.bf16.gmra.mxu2 %v6890_v9  ;;  %v6501_v9 = vrot.slane %v6450_v12, 4  ;;  %v6609_v54 = vpack.c.bf16 %v6451_v57, %v6451_v57  ;;  %v6612_v63 = vpack.c.bf16 %v6505_v46, %v6505_v46  ;;  %v6613_v37 = vpack.c.bf16 %v6452_v31, %v6452_v31  ;;  %v5714_v17 = vpop.f32.mrf.mxu3 }
 0x39c   : > { %6968 = vmatmul.bf16.vlgmr.msrb.gmra.mxu3 %v6892_v51  ;;  %v6614_v61 = vpack.c.bf16 %v6506_v22, %v6506_v22  ;;  %v6615_v14 = vpack.c.bf16 %v6507_v4, %v6507_v4  ;;  %v6746_v30 = vunpack.c.l.b16 %v6602_v41  ;;  %v6747_v53 = vunpack.c.l.b16 %v6603_v33  ;;  %v5828_v56 = vpop.f32.mrf.mxu0 }
 0x39d   : > { %v6607_v39 = vpack.c.bf16 %v6501_v9, %v6501_v9  ;;  %v6616_v48 = vpack.c.bf16 %v6508_v8, %v6508_v8  ;;  %v6748_v42 = vunpack.c.l.b16 %v6604_v38  ;;  %v6749_v10 = vunpack.c.l.b16 %v6605_v7 }
 0x39e   : > { %v6750_v3 = vunpack.c.l.b16 %v6606_v21  ;;  %v6745_v49 = vunpack.c.l.b16 %v6601_v62  ;;  %v6754_v45 = vunpack.c.l.b16 %v6610_v43  ;;  %v6755_v60 = vunpack.c.l.b16 %v6611_v32 }
 0x39f   : > { %v6751_v6 = vunpack.c.l.b16 %v6607_v39  ;;  %v6752_v1 = vunpack.c.l.b16 %v6608_v23  ;;  %v6753_v28 = vunpack.c.l.b16 %v6609_v54  ;;  %v6756_v12 = vunpack.c.l.b16 %v6612_v63 }
 0x3a0   : > { %v6757_v26 = vunpack.c.l.b16 %v6613_v37  ;;  %v6758_v35 = vunpack.c.l.b16 %v6614_v61  ;;  %v6835_v55 = vrot.slane %v6747_v53, 6  ;;  %v6837_v34 = vrot.slane %v6748_v42, 5 }
 0x3a1   : > { %v6759_v57 = vunpack.c.l.b16 %v6615_v14  ;;  %v6760_v58 = vunpack.c.l.b16 %v6616_v48  ;;  %v6839_v2 = vrot.slane %v6749_v10, 4  ;;  %v6841_v0 = vrot.slane %v6750_v3, 3 }
 0x3a2   : > { %v6847_v31 = vrot.slane %v6754_v45, 7  ;;  %v6849_v50 = vrot.slane %v6755_v60, 6  ;;  %v6851_v16 = vrot.slane %v6756_v12, 5  ;;  %v5610_v59 = vpop.f32.mrf.mxu2  ;;  %v6843_v44 = vrot.slane %v6751_v6, 2 }
 0x3a3   : > { %6403 = vmatmul.bf16.gmra.mxu1 %v6314_v40  ;;  %v6833_v40 = vrot.slane %v6746_v30, 7  ;;  %v6845_v36 = vrot.slane %v6752_v1, 1  ;;  %v6853_v9 = vrot.slane %v6757_v26, 4  ;;  %v6855_v18 = vrot.slane %v6758_v35, 3  ;;  %v5716_v7 = vpop.f32.mrf.mxu3 }
 0x3a4   : > { %v6848_v19 = vsel %vm1043_vm0, %v6847_v31, %v6753_v28  ;;  %v5609_v15 = vadd.f32 %v5608_v52, %v10092_v20  ;;  %v6857_v51 = vrot.slane %v6759_v57, 2  ;;  %v5611_v4 = vadd.f32 %v5610_v59, %v5533_v24  ;;  %v5830_v32 = vpop.f32.mrf.mxu0 }
 0x3a5   : > { %v6834_v25 = vsel %vm1043_vm0, %v6833_v40, %v6745_v49  ;;  %v6850_v22 = vsel %vm1046_vm1, %v6849_v50, %v6848_v19  ;;  %v6859_v8 = vrot.slane %v6760_v58, 1 }
 0x3a6   : > { %v6836_v11 = vsel %vm1046_vm1, %v6835_v55, %v6834_v25  ;;  %v6852_v33 = vsel %vm1049_vm2, %v6851_v16, %v6850_v22  ;;  %v5728_v38 = vadd.f32 %v5714_v17, %v5609_v15  ;;  %v5729_v39 = vadd.f32 %v5716_v7, %v5611_v4 }
 0x3a7   : > { %v6838_v27 = vsel %vm1049_vm2, %v6837_v34, %v6836_v11  ;;  %v6854_v62 = vsel %vm1052_vm3, %v6853_v9, %v6852_v33 }
 0x3a8   : > { %v6840_v46 = vsel %vm1052_vm3, %v6839_v2, %v6838_v27  ;;  %v6856_v52 = vsel %vm1055_vm4, %v6855_v18, %v6854_v62  ;;  %v5842_v43 = vadd.f32 %v5828_v56, %v5728_v38  ;;  %v5843_v63 = vadd.f32 %v5830_v32, %v5729_v39 }
 0x3a9   : > { %v6842_v41 = vsel %vm1055_vm4, %v6841_v0, %v6840_v46  ;;  %v6858_v23 = vsel %vm1058_vm5, %v6857_v51, %v6856_v52 }
 0x3aa   : > { %v6844_v21 = vsel %vm1058_vm5, %v6843_v44, %v6842_v41  ;;  %v6860_v37 = vsel %vm1061_vm6, %v6859_v8, %v6858_v23  ;;  %v10137_v23 = vld [vmem:[%s10253_s8] ss:$0 sm:$0xff] }
 0x3ab   : > { %v6846_v20 = vsel %vm1061_vm6, %v6845_v36, %v6844_v21 }
 0x3ac   : > { %v6891_v61 = vpack.c.b16 %v6860_v37, %v6846_v20 }
 0x3ae   : > { %6963 = vmatmul.bf16.gmra.mxu2 %v6891_v61 }
 0x3b0   : > { %v5536_v54 = vpop.f32.mrf.mxu1 }
 0x3b8   : > { %v5538_v14 = vpop.f32.mrf.mxu1 }
 0x3be   : > { %v5613_v30 = vpop.f32.mrf.mxu2 }
 0x3bf   : > { %v5719_v53 = vpop.f32.mrf.mxu3  ;;  %v5614_v17 = vadd.f32 %v5613_v30, %v5536_v54 }
 0x3c0   : > { %v5833_v48 = vpop.f32.mrf.mxu0  ;;  %v5932_v42 = vpop.f32.mrf.mxu1 }
 0x3c1   : > { %v5730_v10 = vadd.f32 %v5719_v53, %v5614_v17  ;;  %v5952_v3 = vadd.f32 %v5932_v42, %v10029_v13  ;;  %v10144_v53 = vld [vmem:[%s10250_s5] ss:$0 sm:$0xff] }
 0x3c3   : > { %v10119_v49 = vadd.f32 %v5833_v48, %v5730_v10  ;;  %v10150_v48 = vld [vmem:[%s10254_s9] ss:$0 sm:$0xff] }
 0x3c6   : > { %v5615_v6 = vpop.f32.mrf.mxu2 }
 0x3c7   : > { %v5721_v45 = vpop.f32.mrf.mxu3  ;;  %v5616_v60 = vadd.f32 %v5615_v6, %v5538_v14 }
 0x3c8   : > { %v5835_v56 = vpop.f32.mrf.mxu0  ;;  %v5934_v1 = vpop.f32.mrf.mxu1 }
 0x3c9   : > { %v5731_v28 = vadd.f32 %v5721_v45, %v5616_v60  ;;  %v5953_v12 = vadd.f32 %v5934_v1, %v10039_v47  ;;  %v10156_v45 = vld [vmem:[%s10251_s6] ss:$0 sm:$0xff] }
 0x3cb   : > { %v10122_v26 = vadd.f32 %v5835_v56, %v5731_v28 }
 0x3ce   : > { %v6046_v24 = vpop.f32.mrf.mxu2 }
 0x3cf   : > { %v6161_v35 = vpop.f32.mrf.mxu3  ;;  %v6066_v20 = vadd.f32 %v6046_v24, %v5952_v3 }
 0x3d0   : > { %v6275_v40 = vpop.f32.mrf.mxu0  ;;  %v5937_v55 = vpop.f32.mrf.mxu1 }
 0x3d1   : > { %v5954_v34 = vadd.f32 %v5937_v55, %v10056_v29  ;;  %v6181_v32 = vadd.f32 %v6161_v35, %v6066_v20 }
 0x3d3   : > { %v6295_v37 = vadd.f32 %v6275_v40, %v6181_v32 }
 0x3d6   : > { %v6048_v57 = vpop.f32.mrf.mxu2 }
 0x3d7   : > { %v6163_v13 = vpop.f32.mrf.mxu3  ;;  %v6067_v61 = vadd.f32 %v6048_v57, %v5953_v12 }
 0x3d8   : > { %v6277_v58 = vpop.f32.mrf.mxu0  ;;  %v5939_v2 = vpop.f32.mrf.mxu1 }
 0x3d9   : > { %v5955_v0 = vadd.f32 %v5939_v2, %v10094_v5  ;;  %v6182_v6 = vadd.f32 %v6163_v13, %v6067_v61 }
 0x3db   : > { %v6296_v40 = vadd.f32 %v6277_v58, %v6182_v6 }
 0x3de   : > { %v6051_v25 = vpop.f32.mrf.mxu2 }
 0x3df   : > { %v6166_v31 = vpop.f32.mrf.mxu3  ;;  %v6068_v54 = vadd.f32 %v6051_v25, %v5954_v34 }
 0x3e0   : > { %v6280_v50 = vpop.f32.mrf.mxu0  ;;  %v5942_v16 = vpop.f32.mrf.mxu1 }
 0x3e1   : > { %v5956_v59 = vadd.f32 %v5942_v16, %v5842_v43  ;;  %v6183_v10 = vadd.f32 %v6166_v31, %v6068_v54 }
 0x3e3   : > { %v6297_v12 = vadd.f32 %v6280_v50, %v6183_v10 }
 0x3e6   : > { %v6053_v47 = vpop.f32.mrf.mxu2 }
 0x3e7   : > { %v6168_v11 = vpop.f32.mrf.mxu3  ;;  %v6069_v24 = vadd.f32 %v6053_v47, %v5955_v0 }
 0x3e8   : > { %v10126_v44 = vpop.f32.mrf.mxu0  ;;  %v5944_v36 = vpop.f32.mrf.mxu1 }
 0x3e9   : > { %v5957_v9 = vadd.f32 %v5944_v36, %v5843_v63  ;;  %v6184_v16 = vadd.f32 %v6168_v11, %v6069_v24 }
 0x3ee   : > { %v6056_v27 = vpop.f32.mrf.mxu2 }
 0x3ef   : > { %v6171_v19 = vpop.f32.mrf.mxu3  ;;  %v6070_v29 = vadd.f32 %v6056_v27, %v5956_v59  ;;  %v6298_v27 = vadd.f32 %v10126_v44, %v6184_v16 }
 0x3f0   : > { %v6285_v18 = vpop.f32.mrf.mxu0  ;;  %v5947_v15 = vpop.f32.mrf.mxu1 }
 0x3f1   : > { %v6185_v46 = vadd.f32 %v6171_v19, %v6070_v29  ;;  %v5958_v56 = vadd.f32 %v5947_v15, %v10119_v49 }
 0x3f3   : > { %v10128_v22 = vadd.f32 %v6285_v18, %v6185_v46 }
 0x3f6   : > { %v6058_v5 = vpop.f32.mrf.mxu2 }
 0x3f7   : > { %v6071_v51 = vadd.f32 %v6058_v5, %v5957_v9  ;;  %v6173_v4 = vpop.f32.mrf.mxu3 }
 0x3f8   : > { %v6287_v41 = vpop.f32.mrf.mxu0  ;;  %v5949_v33 = vpop.f32.mrf.mxu1 }
 0x3f9   : > { %v6186_v8 = vadd.f32 %v6173_v4, %v6071_v51  ;;  %v5959_v47 = vadd.f32 %v5949_v33, %v10122_v26 }
 0x3fb   : > { %v10130_v38 = vadd.f32 %v6287_v41, %v6186_v8 }
 0x3fe   : > { %v6061_v7 = vpop.f32.mrf.mxu2 }
 0x3ff   : > { %v6176_v3 = vpop.f32.mrf.mxu3  ;;  %v6072_v55 = vadd.f32 %v6061_v7, %v5958_v56 }
 0x400   : > { %v6290_v21 = vpop.f32.mrf.mxu0  ;;  %v6394_v62 = vpop.f32.mrf.mxu1 }
 0x401   : > { %v6411_v57 = vadd.f32 %v6394_v62, %v6297_v12  ;;  %v6187_v59 = vadd.f32 %v6176_v3, %v6072_v55 }
 0x403   : > { %v6423_v58 = vmul.f32 %v10144_v53, %v6411_v57  ;;  %v6301_v19 = vadd.f32 %v6290_v21, %v6187_v59 }
 0x405   : > { %v6435_v46 = vadd.f32 %v10156_v45, %v6423_v58 }
 0x406   : > { %v6063_v39 = vpop.f32.mrf.mxu2 }
 0x407   : > { %v6178_v50 = vpop.f32.mrf.mxu3  ;;  %v6073_v29 = vadd.f32 %v6063_v39, %v5959_v47 }
 0x408   : > { %v10132_v52 = vpop.f32.mrf.mxu0  ;;  %v6396_v43 = vpop.f32.mrf.mxu1 }
 0x409   : > { %v6412_v51 = vadd.f32 %v6396_v43, %v6298_v27  ;;  %v6188_v33 = vadd.f32 %v6178_v50, %v6073_v29 }
 0x40b   : > { %v6424_v21 = vmul.f32 %v10144_v53, %v6412_v51  ;;  %v6302_v43 = vadd.f32 %v10132_v52, %v6188_v33 }
 0x40d   : > { %v6436_v61 = vadd.f32 %v10156_v45, %v6424_v21 }
 0x40e   : > { %v6954_v63 = vpop.f32.mrf.mxu2 }
 0x40f   : > { %v6978_v17 = vmul.f32 %v10137_v23, %v6954_v63 }
 0x410   : > { %v6389_v14 = vpop.f32.mrf.mxu0  ;;  %v10139_v30 = vpop.f32.mrf.mxu1 }
 0x411   : > { %v6409_v42 = vadd.f32 %v6389_v14, %v6295_v37  ;;  %v6990_v1 = vadd.f32 %v10150_v48, %v6978_v17  ;;  %v6413_v24 = vadd.f32 %v10139_v30, %v10128_v22 }
 0x413   : > { %v6421_v60 = vmul.f32 %v10144_v53, %v6409_v42 }
 0x415   : > { %v6433_v28 = vadd.f32 %v10156_v45, %v6421_v60 }
 0x416   : > { %v6956_v35 = vpop.f32.mrf.mxu2 }
 0x417   : > { %v6998_v34 = vadd.f32 %v6990_v1, %v6433_v28  ;;  %v6979_v31 = vmul.f32 %v10137_v23, %v6956_v35 }
 0x418   : > { %v6391_v13 = vpop.f32.mrf.mxu0  ;;  %v10164_v2 = vpop.f32.mrf.mxu1 }
 0x419   : > { %v7006_v25 = vmax.f32 %v6998_v34, 0.0  ;;  %v6410_v49 = vadd.f32 %v6391_v13, %v6296_v40  ;;  %v6991_v36 = vadd.f32 %v10150_v48, %v6979_v31  ;;  %v6425_v40 = vmul.f32 %v10144_v53, %v6413_v24 }
 0x41a   : > { %v6414_v13 = vadd.f32 %v10164_v2, %v10130_v38 }
 0x41b   : > { %7014 = vst [vmem:[%s10167_s11] sm:$0xff] %v7006_v25  ;;  %v6422_v0 = vmul.f32 %v10144_v53, %v6410_v49  ;;  %v6437_v57 = vadd.f32 %v10156_v45, %v6425_v40 }
 0x41c   : > { %v6426_v22 = vmul.f32 %v10144_v53, %v6414_v13 }
 0x41d   : > { %v6434_v9 = vadd.f32 %v10156_v45, %v6422_v0 }
 0x41e   : > { %v6959_v11 = vpop.f32.mrf.mxu2  ;;  %v6438_v38 = vadd.f32 %v10156_v45, %v6426_v22 }
 0x41f   : > { %v6999_v18 = vadd.f32 %v6991_v36, %v6434_v9  ;;  %v6980_v15 = vmul.f32 %v10137_v23, %v6959_v11  ;;  %v6969_v7 = vpop.f32.mrf.mxu3 }
 0x420   : > { %v6404_v5 = vpop.f32.mrf.mxu1  ;;  %v6984_v39 = vmul.f32 %v10137_v23, %v6969_v7 }
 0x421   : > { %v7007_v4 = vmax.f32 %v6999_v18, 0.0  ;;  %v6992_v26 = vadd.f32 %v10150_v48, %v6980_v15  ;;  %v6415_v41 = vadd.f32 %v6404_v5, %v6301_v19 }
 0x422   : > { %v6996_v63 = vadd.f32 %v10150_v48, %v6984_v39 }
 0x423   : > { %7015 = vst [vmem:[%s10167_s11 + $0x8] sm:$0xff] %v7007_v4  ;;  %v7000_v8 = vadd.f32 %v6992_v26, %v6435_v46  ;;  %v6427_v44 = vmul.f32 %v10144_v53, %v6415_v41 }
 0x425   : > { %v7008_v62 = vmax.f32 %v7000_v8, 0.0  ;;  %v6439_v20 = vadd.f32 %v10156_v45, %v6427_v44 }
 0x426   : > { %v6961_v32 = vpop.f32.mrf.mxu2 }
 0x427   : > { %7016 = vst [vmem:[%s10167_s11 + $0x10] sm:$0xff] %v7008_v62  ;;  %v6981_v54 = vmul.f32 %v10137_v23, %v6961_v32  ;;  %v7004_v17 = vadd.f32 %v6996_v63, %v6439_v20  ;;  %v6971_v60 = vpop.f32.mrf.mxu3 }
 0x428   : > { %v6406_v37 = vpop.f32.mrf.mxu1  ;;  %v6985_v56 = vmul.f32 %v10137_v23, %v6971_v60 }
 0x429   : > { %v6993_v14 = vadd.f32 %v10150_v48, %v6981_v54  ;;  %v6416_v42 = vadd.f32 %v6406_v37, %v6302_v43  ;;  %v7012_v3 = vmax.f32 %v7004_v17, 0.0 }
 0x42a   : > { %v6997_v28 = vadd.f32 %v10150_v48, %v6985_v56 }
 0x42b   : > { %v7001_v10 = vadd.f32 %v6993_v14, %v6436_v61  ;;  %v6428_v6 = vmul.f32 %v10144_v53, %v6416_v42  ;;  %7020 = vst [vmem:[%s10167_s11 + $0x30] sm:$0xff] %v7012_v3 }
 0x42d   : > { %v7009_v52 = vmax.f32 %v7001_v10, 0.0  ;;  %v6440_v1 = vadd.f32 %v10156_v45, %v6428_v6 }
 0x42f   : > { %7017 = vst [vmem:[%s10167_s11 + $0x18] sm:$0xff] %v7009_v52  ;;  %v7005_v12 = vadd.f32 %v6997_v28, %v6440_v1 }
 0x431   : > { %v7013_v35 = vmax.f32 %v7005_v12, 0.0  ;;  %v6964_v55 = vpop.f32.mrf.mxu2 }
 0x432   : > { %v6982_v34 = vmul.f32 %v10137_v23, %v6964_v55 }
 0x433   : > { %7021 = vst [vmem:[%s10167_s11 + $0x38] sm:$0xff] %v7013_v35 }
 0x434   : > { %v6994_v25 = vadd.f32 %v10150_v48, %v6982_v34 }
 0x436   : > { %v7002_v31 = vadd.f32 %v6994_v25, %v6437_v57 }
 0x438   : > { %v7010_v30 = vmax.f32 %v7002_v31, 0.0 }
 0x439   : > { %v6966_v49 = vpop.f32.mrf.mxu2 }
 0x43a   : > { %7018 = vst [vmem:[%s10167_s11 + $0x20] sm:$0xff] %v7010_v30  ;;  %v6983_v16 = vmul.f32 %v10137_v23, %v6966_v49 }
 0x43c   : > { %v6995_v2 = vadd.f32 %v10150_v48, %v6983_v16 }
 0x43e   : > { %v7003_v59 = vadd.f32 %v6995_v2, %v6438_v38 }
 0x440   : > { %v7011_v53 = vmax.f32 %v7003_v59, 0.0 }
 0x442   : > { %7019 = vst [vmem:[%s10167_s11 + $0x28] sm:$0xff] %v7011_v53 }
 0x443   : > { %8232 = shalt.err (!%p8229_p3)
}
 0x444   : > { %s8271_s26 = smov 128   ;;  %s8272_s11 = smov 8  }
 0x445   : > { %8154 = dma.vmem_to_hbm [thread:$0]  (%p8366_p5), %s7036_s21, 1024, %s7038_s25, %s7023_s17, %s8271_s26, %s8271_s26, %s8272_s11  }
 0x446 PF: > { %p8160_p4 = scmp.ge.s32.totalorder %s8267_s16, 2  ;;  %s7052_s29 = sand.u32 1, %s8255_s13  }
 0x447   : > { %s7053_s12 = scalar_lea.sflag [#allocation5], %s7052_s29 }
 0x448   : > { %p8157_p7 = pnand %p8160_p4, %p8370_p6 }
 0x44a   : > { %p8158_p8 = pneg %p8157_p7 }
 0x44c   : > { %8250 = dma.done.wait (%p8158_p8), %s7053_s12, 1024  }
 0x44d   : > { %8252 = vsyncadd (%p8158_p8), %s7053_s12, 4294966272  ;;  %p20_p9 = scmp.ge.s32.totalorder %s8353_s19, 4   ;;  %s10258_s13 = smov %s8259_s14 }
 0x44e   : > { %s10259_s14 = smov %s8263_s15  ;;  %s10260_s15 = smov %s8364_s22 }
 0x44f   : > { %s10261_s16 = smov %s8353_s19  ;;  %22 = sbr.rel (!%p20_p9) target bundleno = 3 (0x3), region = 115 }
 0x454   :  { %7059 = vsyncpa [#allocation5], 1 }
 0x455   :  { %7061 = vsyncpa [#allocation5 + $0x1], 1 }

</bundles_post_ra>
